<compile_context>
chip_gen: v5e
topology: v5e:2x2
jax: 0.10.0
libtpu: 0.0.40
codegen_flags: <defaults>
</compile_context>

<pallas_src>
import math
from functools import partial

import jax
import jax.numpy as jnp
from jax import lax
from jax.experimental import pallas as pl
from jax.experimental.pallas import tpu as pltpu

_CHANNELS = (32, 64, 128, 128, 128)


# --------------------------- in-kernel building blocks ---------------------------

def _col_masks(n_rows, W):
    """(n_rows*W, 1) f32 masks. `not_last` zeroes image column W-1 (used for the
    dx==0 tap), `not_first` zeroes column 0 (dx==2).  Built once per plane size
    and reused by every conv layer on that plane."""
    col = lax.broadcasted_iota(jnp.int32, (W, 1), 0)
    nl1 = (col != W - 1).astype(jnp.float32)
    nf1 = (col != 0).astype(jnp.float32)
    not_last = jnp.concatenate([nl1] * n_rows, axis=0)
    not_first = jnp.concatenate([nf1] * n_rows, axis=0)
    return not_first, not_last


def _row_keep_mask(n_img, H, W):
    """(P_tall, 1) f32 mask that zeroes the separator row(s) of a tall plane."""
    keep = jnp.ones((H * W, 1), jnp.float32)
    sep = jnp.zeros((W, 1), jnp.float32)
    parts = []
    for b in range(n_img):
        parts.append(keep)
        if b + 1 < n_img:
            parts.append(sep)
    return jnp.concatenate(parts, axis=0)


def _stack_tall(imgs, W):
    """Stack per-image flat (H*W, C) planes vertically with one zero row between
    images, so a 3x3 conv over the tall plane equals per-image 'same' convs."""
    zrow = jnp.zeros((W, imgs[0].shape[1]), imgs[0].dtype)
    parts = []
    for b, p in enumerate(imgs):
        parts.append(p)
        if b + 1 < len(imgs):
            parts.append(zrow)
    return jnp.concatenate(parts, axis=0)


def _conv3x3_relu(x, w_ref, b_ref, W, not_first, not_last, fuse):
    """3x3 'same' conv (padding=1) + bias + ReLU on a flat (P, Cin) f32 plane.

    w_ref: (9*Cin, Cout) bf16 ref, rows ordered (ky, kx, cin).
    b_ref: (1, Cout) f32 ref.  Returns (P, Cout) f32.

    fuse=True: lane-concat the 9 shifted taps into a single (P, 9*Cin) bf16 LHS
    and do ONE MXU matmul (K = 9*Cin).  fuse=False: 9 per-tap matmuls (used for
    the Cin=32 layer where the lane concat is not 128-aligned).
    """
    P, cin = x.shape
    # column-masked variants in f32, then one bf16 cast each (<=3 casts/layer).
    x_mid = x.astype(jnp.bfloat16)
    x_nl = (x * not_last).astype(jnp.bfloat16)      # source col W-1 removed (dx==0)
    x_nf = (x * not_first).astype(jnp.bfloat16)     # source col 0   removed (dx==2)
    zpad = jnp.zeros((W + 1, cin), jnp.bfloat16)
    padded = [jnp.concatenate([zpad, x_nl, zpad], axis=0),    # dx == 0
              jnp.concatenate([zpad, x_mid, zpad], axis=0),   # dx == 1
              jnp.concatenate([zpad, x_nf, zpad], axis=0)]    # dx == 2

    if fuse:
        taps = [padded[dx][dy * W + dx:dy * W + dx + P, :]
                for dy in range(3) for dx in range(3)]
        lhs = jnp.concatenate(taps, axis=1)                   # (P, 9*Cin) bf16
        acc = jnp.dot(lhs, w_ref[...], preferred_element_type=jnp.float32)
    else:
        acc = jnp.zeros((P, w_ref.shape[1]), jnp.float32)
        for dy in range(3):
            for dx in range(3):
                k = dy * 3 + dx
                off = dy * W + dx
                acc = acc + jnp.dot(padded[dx][off:off + P, :],
                                    w_ref[k * cin:(k + 1) * cin, :],
                                    preferred_element_type=jnp.float32)
    return jnp.maximum(acc + b_ref[...], 0.0)


def _maxpool2_pad1(imgs, ps_ref, H, W):
    """MaxPool2d(kernel_size=2, stride=2, padding=1) on post-ReLU flat planes.

    imgs:   list of (H*W, C) f32 values (one per image, all >= 0 so the zero
            padding is equivalent to PyTorch's -inf padding).
    ps_ref: (len(imgs)*Ho*2*Wo, C) f32 staging scratch; row-pair maxes are
            written width-padded so the column decimation is two stride-2
            sublane loads.  Zero-filled once per layer (pad columns only are
            actually needed).
    Returns list of (Ho*Wo, C) f32 planes.
    """
    Ho, Wo = H // 2 + 1, W // 2 + 1
    Wp = 2 * Wo
    ps_ref[...] = jnp.zeros_like(ps_ref)
    for b, y in enumerate(imgs):
        base = b * Ho * Wp
        # output row 0 = max(pad, image row 0) == image row 0 (post-ReLU)
        ps_ref[base + 1:base + 1 + W, :] = y[0:W, :]
        for i in range(1, (H - 1) // 2 + 1):
            rm = jnp.maximum(y[(2 * i - 1) * W:(2 * i) * W, :],
                             y[(2 * i) * W:(2 * i + 1) * W, :])
            ps_ref[base + i * Wp + 1:base + i * Wp + 1 + W, :] = rm
        if H % 2 == 0:
            # last output row = image row H-1 alone (row H is padding)
            s = base + (Ho - 1) * Wp + 1
            ps_ref[s:s + W, :] = y[(H - 1) * W:H * W, :]
    n = len(imgs) * Ho * Wo
    left = ps_ref[pl.ds(0, n, stride=2), :]
    right = ps_ref[pl.ds(1, n, stride=2), :]
    out = jnp.maximum(left, right)
    return [out[k * Ho * Wo:(k + 1) * Ho * Wo, :] for k in range(len(imgs))]


# ----------------------------------- kernel -----------------------------------

def _alexnet_kernel(n_img, H0, W0,
                    x_ref, w1, b1, w2, b2, w3, b3, w4, b4, w5, b5, wf, bfc,
                    out_ref, ps1, ps2, ps3):
    H1, W1 = H0 // 2 + 1, W0 // 2 + 1
    H2, W2 = H1 // 2 + 1, W1 // 2 + 1
    P0, P1, P2 = H0 * W0, H1 * W1, H2 * W2

    # conv1: im2col done in the wrapper -> one (n*P0, 9*Cin0) x (9*Cin0, 32) matmul.
    y1 = jnp.maximum(
        jnp.dot(x_ref[...], w1[...], preferred_element_type=jnp.float32) + b1[...],
        0.0)                                                       # (n*P0, 32) f32

    p1 = _maxpool2_pad1([y1[b * P0:(b + 1) * P0, :] for b in range(n_img)],
                        ps1, H0, W0)                               # n x (P1, 32)

    # conv2 on the tall plane (images stacked with one zero separator row).
    t1 = _stack_tall(p1, W1)
    nf2, nl2 = _col_masks(n_img * H1 + (n_img - 1), W1)
    y2 = _conv3x3_relu(t1, w2, b2, W1, nf2, nl2, fuse=False)       # (Pt1, 64)

    p2 = _maxpool2_pad1([y2[b * (H1 + 1) * W1:b * (H1 + 1) * W1 + P1, :]
                         for b in range(n_img)], ps2, H1, W1)      # n x (P2, 64)

    # conv3/4/5 share the post-pool2 tall plane, column masks and separator mask.
    t2 = _stack_tall(p2, W2)
    nf3, nl3 = _col_masks(n_img * H2 + (n_img - 1), W2)
    sep = _row_keep_mask(n_img, H2, W2)       # re-zero separator between convs
    y3 = _conv3x3_relu(t2, w3, b3, W2, nf3, nl3, fuse=True)        # (Pt2, 128)
    y4 = _conv3x3_relu(y3 * sep, w4, b4, W2, nf3, nl3, fuse=True)
    y5 = _conv3x3_relu(y4 * sep, w5, b5, W2, nf3, nl3, fuse=True)

    p3 = _maxpool2_pad1([y5[b * (H2 + 1) * W2:b * (H2 + 1) * W2 + P2, :]
                         for b in range(n_img)], ps3, H2, W2)      # n x (9, 128)

    # GAP + classifier (lane-dense 128-wide output).
    gap = jnp.concatenate([jnp.mean(p, axis=0, keepdims=True) for p in p3], axis=0)
    logits = jnp.dot(gap.astype(jnp.bfloat16), wf[...],
                     preferred_element_type=jnp.float32) + bfc[...]
    out_ref[...] = logits                                          # (n, 128)


# --------------------------------- wrapper ---------------------------------

@jax.jit
def alexnet_forward(x_nchw, params):
    n, cin, h, w = x_nchw.shape
    c1, c2, _, _, c5 = _CHANNELS
    n_out = params["wf"].shape[1]
    n_out_p = max(128, ((n_out + 127) // 128) * 128)
    h1, w1 = h // 2 + 1, w // 2 + 1
    h2, w2 = h1 // 2 + 1, w1 // 2 + 1
    h3, w3 = h2 // 2 + 1, w2 // 2 + 1

    # Layer-1 im2col in XLA: (N,C,H,W) -> (N*H*W, 9*Cin) bf16, tap order (ky,kx,cin).
    x = jnp.transpose(x_nchw, (0, 2, 3, 1)).astype(jnp.float32)
    xp = jnp.pad(x, ((0, 0), (1, 1), (1, 1), (0, 0)))
    patches = [xp[:, dy:dy + h, dx:dx + w, :] for dy in range(3) for dx in range(3)]
    col = jnp.concatenate(patches, axis=-1).reshape(n * h * w, 9 * cin)
    col = col.astype(jnp.bfloat16)

    conv_w = [params[f"w{k}"].astype(jnp.bfloat16) for k in range(1, 6)]
    conv_b = [params[f"b{k}"].astype(jnp.float32) for k in range(1, 6)]
    wf = jnp.pad(params["wf"], ((0, 0), (0, n_out_p - n_out))).astype(jnp.bfloat16)
    bf = jnp.pad(params["bf"], ((0, 0), (0, n_out_p - n_out))).astype(jnp.float32)

    operands = [col]
    for wm, bv in zip(conv_w, conv_b):
        operands += [wm, bv]
    operands += [wf, bf]

    out = pl.pallas_call(
        partial(_alexnet_kernel, n, h, w),
        out_shape=jax.ShapeDtypeStruct((n, n_out_p), jnp.float32),
        in_specs=[pl.BlockSpec(memory_space=pltpu.MemorySpace.VMEM)
                  for _ in operands],
        out_specs=pl.BlockSpec(memory_space=pltpu.MemorySpace.VMEM),
        scratch_shapes=[
            pltpu.VMEM((n * h1 * 2 * w1, c1), jnp.float32),   # pool1 staging
            pltpu.VMEM((n * h2 * 2 * w2, c2), jnp.float32),   # pool2 staging
            pltpu.VMEM((n * h3 * 2 * w3, c5), jnp.float32),   # pool3 staging
        ],
    )(*operands)
    return out[:, :n_out]


# --------------------------- parameter initialization ---------------------------

def init_params(key, in_channels, out_channels):
    """Matches the PyTorch module: xavier_uniform_ conv/linear weights, default
    uniform(+-1/sqrt(fan_in)) biases.  Conv weights are stored directly as
    (9*Cin, Cout) im2col matrices with row order (ky, kx, cin)."""
    chans = [(in_channels, _CHANNELS[0])]
    for i in range(1, 5):
        chans.append((_CHANNELS[i - 1], _CHANNELS[i]))
    keys = jax.random.split(key, 2 * len(chans) + 2)
    params = {}
    for idx, (cin, cout) in enumerate(chans, start=1):
        fan_in, fan_out = cin * 9, cout * 9
        wb = math.sqrt(6.0 / (fan_in + fan_out))          # xavier_uniform_
        bb = 1.0 / math.sqrt(fan_in)                      # nn.Conv2d default bias
        params[f"w{idx}"] = jax.random.uniform(
            keys[2 * (idx - 1)], (9 * cin, cout), jnp.float32, -wb, wb)
        params[f"b{idx}"] = jax.random.uniform(
            keys[2 * (idx - 1) + 1], (1, cout), jnp.float32, -bb, bb)
    wb = math.sqrt(6.0 / (128 + out_channels))
    bb = 1.0 / math.sqrt(128.0)
    params["wf"] = jax.random.uniform(keys[-2], (128, out_channels), jnp.float32, -wb, wb)
    params["bf"] = jax.random.uniform(keys[-1], (1, out_channels), jnp.float32, -bb, bb)
    return params


# ----------------------------------- main -----------------------------------

if __name__ == "__main__":
    key = jax.random.PRNGKey(0)
    k_param, k_x = jax.random.split(key)

    N, IN_C, H, W = 2, 4, 16, 16
    OUT_C = 10

    params = init_params(k_param, IN_C, OUT_C)
    x = jax.random.normal(k_x, (N, IN_C, H, W), jnp.float32)

    out = alexnet_forward(x, params)
    jax.block_until_ready(out)

    assert out.shape == (N, OUT_C), out.shape
    assert out.dtype == jnp.float32
    assert bool(jnp.all(jnp.isfinite(out)))
    print("KERNEL_OK")
</pallas_src>

<mosaic_0001>
module attributes {stable_mosaic.version = 11 : i64} {
  func.func @_alexnet_kernel(%arg0: memref<512x36xbf16, #tpu.memory_space<vmem>>, %arg1: memref<36x32xbf16, #tpu.memory_space<vmem>>, %arg2: memref<1x32xf32, #tpu.memory_space<vmem>>, %arg3: memref<288x64xbf16, #tpu.memory_space<vmem>>, %arg4: memref<1x64xf32, #tpu.memory_space<vmem>>, %arg5: memref<576x128xbf16, #tpu.memory_space<vmem>>, %arg6: memref<1x128xf32, #tpu.memory_space<vmem>>, %arg7: memref<1152x128xbf16, #tpu.memory_space<vmem>>, %arg8: memref<1x128xf32, #tpu.memory_space<vmem>>, %arg9: memref<1152x128xbf16, #tpu.memory_space<vmem>>, %arg10: memref<1x128xf32, #tpu.memory_space<vmem>>, %arg11: memref<128x128xbf16, #tpu.memory_space<vmem>>, %arg12: memref<1x128xf32, #tpu.memory_space<vmem>>, %arg13: memref<2x128xf32, #tpu.memory_space<vmem>>, %arg14: memref<324x32xf32, #tpu.memory_space<vmem>>, %arg15: memref<100x64xf32, #tpu.memory_space<vmem>>, %arg16: memref<36x128xf32, #tpu.memory_space<vmem>>) attributes {dimension_semantics = [], scalar_prefetch = 0 : i64, scratch_operands = 3 : i64, tpu.core_type = #tpu.core_type<tc>} {
    %c0 = arith.constant 0 : index
    %c0_0 = arith.constant 0 : index
    %0 = vector.load %arg0[%c0, %c0_0] : memref<512x36xbf16, #tpu.memory_space<vmem>>, vector<512x36xbf16>
    %c0_1 = arith.constant 0 : index
    %c0_2 = arith.constant 0 : index
    %1 = vector.load %arg1[%c0_1, %c0_2] : memref<36x32xbf16, #tpu.memory_space<vmem>>, vector<36x32xbf16>
    %cst = arith.constant dense<0.000000e+00> : vector<512x32xf32>
    %2 = tpu.matmul %0, %1, %cst {dimension_numbers = #tpu.dot_dimension_numbers<[1], [0], [0], [1], [0, 0, 1, 1], [], []>} : vector<512x36xbf16>, vector<36x32xbf16>, vector<512x32xf32> -> vector<512x32xf32>
    %c0_3 = arith.constant 0 : index
    %c0_4 = arith.constant 0 : index
    %3 = vector.load %arg2[%c0_3, %c0_4] : memref<1x32xf32, #tpu.memory_space<vmem>>, vector<1x32xf32>
    %4 = vector.broadcast %3 : vector<1x32xf32> to vector<512x32xf32>
    %5 = arith.addf %2, %4 : vector<512x32xf32>
    %cst_5 = arith.constant 0.000000e+00 : f32
    %6 = vector.broadcast %cst_5 : f32 to vector<512x32xf32>
    %7 = arith.maximumf %5, %6 : vector<512x32xf32>
    %8 = vector.extract_strided_slice %7 {offsets = [0, 0], sizes = [256, 32], strides = [1, 1]} : vector<512x32xf32> to vector<256x32xf32>
    %9 = vector.extract_strided_slice %7 {offsets = [256, 0], sizes = [256, 32], strides = [1, 1]} : vector<512x32xf32> to vector<256x32xf32>
    %cst_6 = arith.constant 0.000000e+00 : f32
    %10 = vector.broadcast %cst_6 : f32 to vector<324x32xf32>
    %c0_7 = arith.constant 0 : index
    %c0_8 = arith.constant 0 : index
    %11 = vector.load %arg14[%c0_7, %c0_8] : memref<324x32xf32, #tpu.memory_space<vmem>>, vector<324x32xf32>
    tpu.vector_store %arg14[%c0_7, %c0_8], %10 {strides = array<i32>} : memref<324x32xf32, #tpu.memory_space<vmem>>, vector<324x32xf32>,
    %12 = vector.extract_strided_slice %8 {offsets = [0, 0], sizes = [16, 32], strides = [1, 1]} : vector<256x32xf32> to vector<16x32xf32>
    %c1 = arith.constant 1 : index
    %c0_9 = arith.constant 0 : index
    %13 = vector.load %arg14[%c1, %c0_9] : memref<324x32xf32, #tpu.memory_space<vmem>>, vector<16x32xf32>
    tpu.vector_store %arg14[%c1, %c0_9], %12 {strides = array<i32>} : memref<324x32xf32, #tpu.memory_space<vmem>>, vector<16x32xf32>,
    %14 = vector.extract_strided_slice %8 {offsets = [16, 0], sizes = [16, 32], strides = [1, 1]} : vector<256x32xf32> to vector<16x32xf32>
    %15 = vector.extract_strided_slice %8 {offsets = [32, 0], sizes = [16, 32], strides = [1, 1]} : vector<256x32xf32> to vector<16x32xf32>
    %16 = arith.maximumf %14, %15 : vector<16x32xf32>
    %c19 = arith.constant 19 : index
    %c0_10 = arith.constant 0 : index
    %17 = vector.load %arg14[%c19, %c0_10] : memref<324x32xf32, #tpu.memory_space<vmem>>, vector<16x32xf32>
    tpu.vector_store %arg14[%c19, %c0_10], %16 {strides = array<i32>} : memref<324x32xf32, #tpu.memory_space<vmem>>, vector<16x32xf32>,
    %18 = vector.extract_strided_slice %8 {offsets = [48, 0], sizes = [16, 32], strides = [1, 1]} : vector<256x32xf32> to vector<16x32xf32>
    %19 = vector.extract_strided_slice %8 {offsets = [64, 0], sizes = [16, 32], strides = [1, 1]} : vector<256x32xf32> to vector<16x32xf32>
    %20 = arith.maximumf %18, %19 : vector<16x32xf32>
    %c37 = arith.constant 37 : index
    %c0_11 = arith.constant 0 : index
    %21 = vector.load %arg14[%c37, %c0_11] : memref<324x32xf32, #tpu.memory_space<vmem>>, vector<16x32xf32>
    tpu.vector_store %arg14[%c37, %c0_11], %20 {strides = array<i32>} : memref<324x32xf32, #tpu.memory_space<vmem>>, vector<16x32xf32>,
    %22 = vector.extract_strided_slice %8 {offsets = [80, 0], sizes = [16, 32], strides = [1, 1]} : vector<256x32xf32> to vector<16x32xf32>
    %23 = vector.extract_strided_slice %8 {offsets = [96, 0], sizes = [16, 32], strides = [1, 1]} : vector<256x32xf32> to vector<16x32xf32>
    %24 = arith.maximumf %22, %23 : vector<16x32xf32>
    %c55 = arith.constant 55 : index
    %c0_12 = arith.constant 0 : index
    %25 = vector.load %arg14[%c55, %c0_12] : memref<324x32xf32, #tpu.memory_space<vmem>>, vector<16x32xf32>
    tpu.vector_store %arg14[%c55, %c0_12], %24 {strides = array<i32>} : memref<324x32xf32, #tpu.memory_space<vmem>>, vector<16x32xf32>,
    %26 = vector.extract_strided_slice %8 {offsets = [112, 0], sizes = [16, 32], strides = [1, 1]} : vector<256x32xf32> to vector<16x32xf32>
    %27 = vector.extract_strided_slice %8 {offsets = [128, 0], sizes = [16, 32], strides = [1, 1]} : vector<256x32xf32> to vector<16x32xf32>
    %28 = arith.maximumf %26, %27 : vector<16x32xf32>
    %c73 = arith.constant 73 : index
    %c0_13 = arith.constant 0 : index
    %29 = vector.load %arg14[%c73, %c0_13] : memref<324x32xf32, #tpu.memory_space<vmem>>, vector<16x32xf32>
    tpu.vector_store %arg14[%c73, %c0_13], %28 {strides = array<i32>} : memref<324x32xf32, #tpu.memory_space<vmem>>, vector<16x32xf32>,
    %30 = vector.extract_strided_slice %8 {offsets = [144, 0], sizes = [16, 32], strides = [1, 1]} : vector<256x32xf32> to vector<16x32xf32>
    %31 = vector.extract_strided_slice %8 {offsets = [160, 0], sizes = [16, 32], strides = [1, 1]} : vector<256x32xf32> to vector<16x32xf32>
    %32 = arith.maximumf %30, %31 : vector<16x32xf32>
    %c91 = arith.constant 91 : index
    %c0_14 = arith.constant 0 : index
    %33 = vector.load %arg14[%c91, %c0_14] : memref<324x32xf32, #tpu.memory_space<vmem>>, vector<16x32xf32>
    tpu.vector_store %arg14[%c91, %c0_14], %32 {strides = array<i32>} : memref<324x32xf32, #tpu.memory_space<vmem>>, vector<16x32xf32>,
    %34 = vector.extract_strided_slice %8 {offsets = [176, 0], sizes = [16, 32], strides = [1, 1]} : vector<256x32xf32> to vector<16x32xf32>
    %35 = vector.extract_strided_slice %8 {offsets = [192, 0], sizes = [16, 32], strides = [1, 1]} : vector<256x32xf32> to vector<16x32xf32>
    %36 = arith.maximumf %34, %35 : vector<16x32xf32>
    %c109 = arith.constant 109 : index
    %c0_15 = arith.constant 0 : index
    %37 = vector.load %arg14[%c109, %c0_15] : memref<324x32xf32, #tpu.memory_space<vmem>>, vector<16x32xf32>
    tpu.vector_store %arg14[%c109, %c0_15], %36 {strides = array<i32>} : memref<324x32xf32, #tpu.memory_space<vmem>>, vector<16x32xf32>,
    %38 = vector.extract_strided_slice %8 {offsets = [208, 0], sizes = [16, 32], strides = [1, 1]} : vector<256x32xf32> to vector<16x32xf32>
    %39 = vector.extract_strided_slice %8 {offsets = [224, 0], sizes = [16, 32], strides = [1, 1]} : vector<256x32xf32> to vector<16x32xf32>
    %40 = arith.maximumf %38, %39 : vector<16x32xf32>
    %c127 = arith.constant 127 : index
    %c0_16 = arith.constant 0 : index
    %41 = vector.load %arg14[%c127, %c0_16] : memref<324x32xf32, #tpu.memory_space<vmem>>, vector<16x32xf32>
    tpu.vector_store %arg14[%c127, %c0_16], %40 {strides = array<i32>} : memref<324x32xf32, #tpu.memory_space<vmem>>, vector<16x32xf32>,
    %42 = vector.extract_strided_slice %8 {offsets = [240, 0], sizes = [16, 32], strides = [1, 1]} : vector<256x32xf32> to vector<16x32xf32>
    %c145 = arith.constant 145 : index
    %c0_17 = arith.constant 0 : index
    %43 = vector.load %arg14[%c145, %c0_17] : memref<324x32xf32, #tpu.memory_space<vmem>>, vector<16x32xf32>
    tpu.vector_store %arg14[%c145, %c0_17], %42 {strides = array<i32>} : memref<324x32xf32, #tpu.memory_space<vmem>>, vector<16x32xf32>,
    %44 = vector.extract_strided_slice %9 {offsets = [0, 0], sizes = [16, 32], strides = [1, 1]} : vector<256x32xf32> to vector<16x32xf32>
    %c163 = arith.constant 163 : index
    %c0_18 = arith.constant 0 : index
    %45 = vector.load %arg14[%c163, %c0_18] : memref<324x32xf32, #tpu.memory_space<vmem>>, vector<16x32xf32>
    tpu.vector_store %arg14[%c163, %c0_18], %44 {strides = array<i32>} : memref<324x32xf32, #tpu.memory_space<vmem>>, vector<16x32xf32>,
    %46 = vector.extract_strided_slice %9 {offsets = [16, 0], sizes = [16, 32], strides = [1, 1]} : vector<256x32xf32> to vector<16x32xf32>
    %47 = vector.extract_strided_slice %9 {offsets = [32, 0], sizes = [16, 32], strides = [1, 1]} : vector<256x32xf32> to vector<16x32xf32>
    %48 = arith.maximumf %46, %47 : vector<16x32xf32>
    %c181 = arith.constant 181 : index
    %c0_19 = arith.constant 0 : index
    %49 = vector.load %arg14[%c181, %c0_19] : memref<324x32xf32, #tpu.memory_space<vmem>>, vector<16x32xf32>
    tpu.vector_store %arg14[%c181, %c0_19], %48 {strides = array<i32>} : memref<324x32xf32, #tpu.memory_space<vmem>>, vector<16x32xf32>,
    %50 = vector.extract_strided_slice %9 {offsets = [48, 0], sizes = [16, 32], strides = [1, 1]} : vector<256x32xf32> to vector<16x32xf32>
    %51 = vector.extract_strided_slice %9 {offsets = [64, 0], sizes = [16, 32], strides = [1, 1]} : vector<256x32xf32> to vector<16x32xf32>
    %52 = arith.maximumf %50, %51 : vector<16x32xf32>
    %c199 = arith.constant 199 : index
    %c0_20 = arith.constant 0 : index
    %53 = vector.load %arg14[%c199, %c0_20] : memref<324x32xf32, #tpu.memory_space<vmem>>, vector<16x32xf32>
    tpu.vector_store %arg14[%c199, %c0_20], %52 {strides = array<i32>} : memref<324x32xf32, #tpu.memory_space<vmem>>, vector<16x32xf32>,
    %54 = vector.extract_strided_slice %9 {offsets = [80, 0], sizes = [16, 32], strides = [1, 1]} : vector<256x32xf32> to vector<16x32xf32>
    %55 = vector.extract_strided_slice %9 {offsets = [96, 0], sizes = [16, 32], strides = [1, 1]} : vector<256x32xf32> to vector<16x32xf32>
    %56 = arith.maximumf %54, %55 : vector<16x32xf32>
    %c217 = arith.constant 217 : index
    %c0_21 = arith.constant 0 : index
    %57 = vector.load %arg14[%c217, %c0_21] : memref<324x32xf32, #tpu.memory_space<vmem>>, vector<16x32xf32>
    tpu.vector_store %arg14[%c217, %c0_21], %56 {strides = array<i32>} : memref<324x32xf32, #tpu.memory_space<vmem>>, vector<16x32xf32>,
    %58 = vector.extract_strided_slice %9 {offsets = [112, 0], sizes = [16, 32], strides = [1, 1]} : vector<256x32xf32> to vector<16x32xf32>
    %59 = vector.extract_strided_slice %9 {offsets = [128, 0], sizes = [16, 32], strides = [1, 1]} : vector<256x32xf32> to vector<16x32xf32>
    %60 = arith.maximumf %58, %59 : vector<16x32xf32>
    %c235 = arith.constant 235 : index
    %c0_22 = arith.constant 0 : index
    %61 = vector.load %arg14[%c235, %c0_22] : memref<324x32xf32, #tpu.memory_space<vmem>>, vector<16x32xf32>
    tpu.vector_store %arg14[%c235, %c0_22], %60 {strides = array<i32>} : memref<324x32xf32, #tpu.memory_space<vmem>>, vector<16x32xf32>,
    %62 = vector.extract_strided_slice %9 {offsets = [144, 0], sizes = [16, 32], strides = [1, 1]} : vector<256x32xf32> to vector<16x32xf32>
    %63 = vector.extract_strided_slice %9 {offsets = [160, 0], sizes = [16, 32], strides = [1, 1]} : vector<256x32xf32> to vector<16x32xf32>
    %64 = arith.maximumf %62, %63 : vector<16x32xf32>
    %c253 = arith.constant 253 : index
    %c0_23 = arith.constant 0 : index
    %65 = vector.load %arg14[%c253, %c0_23] : memref<324x32xf32, #tpu.memory_space<vmem>>, vector<16x32xf32>
    tpu.vector_store %arg14[%c253, %c0_23], %64 {strides = array<i32>} : memref<324x32xf32, #tpu.memory_space<vmem>>, vector<16x32xf32>,
    %66 = vector.extract_strided_slice %9 {offsets = [176, 0], sizes = [16, 32], strides = [1, 1]} : vector<256x32xf32> to vector<16x32xf32>
    %67 = vector.extract_strided_slice %9 {offsets = [192, 0], sizes = [16, 32], strides = [1, 1]} : vector<256x32xf32> to vector<16x32xf32>
    %68 = arith.maximumf %66, %67 : vector<16x32xf32>
    %c271 = arith.constant 271 : index
    %c0_24 = arith.constant 0 : index
    %69 = vector.load %arg14[%c271, %c0_24] : memref<324x32xf32, #tpu.memory_space<vmem>>, vector<16x32xf32>
    tpu.vector_store %arg14[%c271, %c0_24], %68 {strides = array<i32>} : memref<324x32xf32, #tpu.memory_space<vmem>>, vector<16x32xf32>,
    %70 = vector.extract_strided_slice %9 {offsets = [208, 0], sizes = [16, 32], strides = [1, 1]} : vector<256x32xf32> to vector<16x32xf32>
    %71 = vector.extract_strided_slice %9 {offsets = [224, 0], sizes = [16, 32], strides = [1, 1]} : vector<256x32xf32> to vector<16x32xf32>
    %72 = arith.maximumf %70, %71 : vector<16x32xf32>
    %c289 = arith.constant 289 : index
    %c0_25 = arith.constant 0 : index
    %73 = vector.load %arg14[%c289, %c0_25] : memref<324x32xf32, #tpu.memory_space<vmem>>, vector<16x32xf32>
    tpu.vector_store %arg14[%c289, %c0_25], %72 {strides = array<i32>} : memref<324x32xf32, #tpu.memory_space<vmem>>, vector<16x32xf32>,
    %74 = vector.extract_strided_slice %9 {offsets = [240, 0], sizes = [16, 32], strides = [1, 1]} : vector<256x32xf32> to vector<16x32xf32>
    %c307 = arith.constant 307 : index
    %c0_26 = arith.constant 0 : index
    %75 = vector.load %arg14[%c307, %c0_26] : memref<324x32xf32, #tpu.memory_space<vmem>>, vector<16x32xf32>
    tpu.vector_store %arg14[%c307, %c0_26], %74 {strides = array<i32>} : memref<324x32xf32, #tpu.memory_space<vmem>>, vector<16x32xf32>,
    %c0_27 = arith.constant 0 : index
    %c0_28 = arith.constant 0 : index
    %76 = tpu.strided_load %arg14[%c0_27, %c0_28] {strides = array<i32: 2, 1>} : memref<324x32xf32, #tpu.memory_space<vmem>>, vector<162x32xf32>
    %c1_29 = arith.constant 1 : index
    %c0_30 = arith.constant 0 : index
    %77 = tpu.strided_load %arg14[%c1_29, %c0_30] {strides = array<i32: 2, 1>} : memref<324x32xf32, #tpu.memory_space<vmem>>, vector<162x32xf32>
    %78 = arith.maximumf %76, %77 : vector<162x32xf32>
    %79 = vector.extract_strided_slice %78 {offsets = [0, 0], sizes = [81, 32], strides = [1, 1]} : vector<162x32xf32> to vector<81x32xf32>
    %80 = vector.extract_strided_slice %78 {offsets = [81, 0], sizes = [81, 32], strides = [1, 1]} : vector<162x32xf32> to vector<81x32xf32>
    %cst_31 = arith.constant 0.000000e+00 : f32
    %81 = vector.broadcast %cst_31 : f32 to vector<9x32xf32>
    %82 = tpu.concatenate %79, %81, %80 in 0 : vector<81x32xf32>, vector<9x32xf32>, vector<81x32xf32> -> vector<171x32xf32>
    %83 = tpu.iota {dimensions = array<i32: 0>} : vector<9x1xi32>
    %c8_i32 = arith.constant 8 : i32
    %84 = vector.broadcast %c8_i32 : i32 to vector<9x1xi32>
    %85 = arith.cmpi ne, %83, %84 : vector<9x1xi32>
    %86 = arith.extui %85 : vector<9x1xi1> to vector<9x1xi32>
    %87 = arith.sitofp %86 : vector<9x1xi32> to vector<9x1xf32>
    %c0_i32 = arith.constant 0 : i32
    %88 = vector.broadcast %c0_i32 : i32 to vector<9x1xi32>
    %89 = arith.cmpi ne, %83, %88 : vector<9x1xi32>
    %90 = arith.extui %89 : vector<9x1xi1> to vector<9x1xi32>
    %91 = arith.sitofp %90 : vector<9x1xi32> to vector<9x1xf32>
    %92 = tpu.concatenate %87, %87, %87, %87, %87, %87, %87, %87, %87, %87, %87, %87, %87, %87, %87, %87 in 0 : vector<9x1xf32>, vector<9x1xf32>, vector<9x1xf32>, vector<9x1xf32>, vector<9x1xf32>, vector<9x1xf32>, vector<9x1xf32>, vector<9x1xf32>, vector<9x1xf32>, vector<9x1xf32>, vector<9x1xf32>, vector<9x1xf32>, vector<9x1xf32>, vector<9x1xf32>, vector<9x1xf32>, vector<9x1xf32> -> vector<144x1xf32>
    %93 = tpu.concatenate %87, %87, %87 in 0 : vector<9x1xf32>, vector<9x1xf32>, vector<9x1xf32> -> vector<27x1xf32>
    %94 = tpu.concatenate %92, %93 in 0 : vector<144x1xf32>, vector<27x1xf32> -> vector<171x1xf32>
    %95 = tpu.concatenate %91, %91, %91, %91, %91, %91, %91, %91, %91, %91, %91, %91, %91, %91, %91, %91 in 0 : vector<9x1xf32>, vector<9x1xf32>, vector<9x1xf32>, vector<9x1xf32>, vector<9x1xf32>, vector<9x1xf32>, vector<9x1xf32>, vector<9x1xf32>, vector<9x1xf32>, vector<9x1xf32>, vector<9x1xf32>, vector<9x1xf32>, vector<9x1xf32>, vector<9x1xf32>, vector<9x1xf32>, vector<9x1xf32> -> vector<144x1xf32>
    %96 = tpu.concatenate %91, %91, %91 in 0 : vector<9x1xf32>, vector<9x1xf32>, vector<9x1xf32> -> vector<27x1xf32>
    %97 = tpu.concatenate %95, %96 in 0 : vector<144x1xf32>, vector<27x1xf32> -> vector<171x1xf32>
    %98 = arith.truncf %82 : vector<171x32xf32> to vector<171x32xbf16>
    %99 = vector.broadcast %94 : vector<171x1xf32> to vector<171x32xf32>
    %100 = arith.mulf %82, %99 : vector<171x32xf32>
    %101 = arith.truncf %100 : vector<171x32xf32> to vector<171x32xbf16>
    %102 = vector.broadcast %97 : vector<171x1xf32> to vector<171x32xf32>
    %103 = arith.mulf %82, %102 : vector<171x32xf32>
    %104 = arith.truncf %103 : vector<171x32xf32> to vector<171x32xbf16>
    %cst_32 = arith.constant 0.000000e+00 : bf16
    %105 = vector.broadcast %cst_32 : bf16 to vector<10x32xbf16>
    %106 = tpu.concatenate %105, %101, %105 in 0 : vector<10x32xbf16>, vector<171x32xbf16>, vector<10x32xbf16> -> vector<191x32xbf16>
    %107 = tpu.concatenate %105, %98, %105 in 0 : vector<10x32xbf16>, vector<171x32xbf16>, vector<10x32xbf16> -> vector<191x32xbf16>
    %108 = tpu.concatenate %105, %104, %105 in 0 : vector<10x32xbf16>, vector<171x32xbf16>, vector<10x32xbf16> -> vector<191x32xbf16>
    %cst_33 = arith.constant 0.000000e+00 : f32
    %109 = vector.broadcast %cst_33 : f32 to vector<171x64xf32>
    %110 = vector.extract_strided_slice %106 {offsets = [0, 0], sizes = [171, 32], strides = [1, 1]} : vector<191x32xbf16> to vector<171x32xbf16>
    %c0_34 = arith.constant 0 : index
    %c0_35 = arith.constant 0 : index
    %111 = vector.load %arg3[%c0_34, %c0_35] : memref<288x64xbf16, #tpu.memory_space<vmem>>, vector<32x64xbf16>
    %cst_36 = arith.constant dense<0.000000e+00> : vector<171x64xf32>
    %112 = tpu.matmul %110, %111, %cst_36 {dimension_numbers = #tpu.dot_dimension_numbers<[1], [0], [0], [1], [0, 0, 1, 1], [], []>} : vector<171x32xbf16>, vector<32x64xbf16>, vector<171x64xf32> -> vector<171x64xf32>
    %113 = arith.addf %109, %112 : vector<171x64xf32>
    %114 = vector.extract_strided_slice %107 {offsets = [1, 0], sizes = [171, 32], strides = [1, 1]} : vector<191x32xbf16> to vector<171x32xbf16>
    %c32 = arith.constant 32 : index
    %c0_37 = arith.constant 0 : index
    %115 = vector.load %arg3[%c32, %c0_37] : memref<288x64xbf16, #tpu.memory_space<vmem>>, vector<32x64xbf16>
    %cst_38 = arith.constant dense<0.000000e+00> : vector<171x64xf32>
    %116 = tpu.matmul %114, %115, %cst_38 {dimension_numbers = #tpu.dot_dimension_numbers<[1], [0], [0], [1], [0, 0, 1, 1], [], []>} : vector<171x32xbf16>, vector<32x64xbf16>, vector<171x64xf32> -> vector<171x64xf32>
    %117 = arith.addf %113, %116 : vector<171x64xf32>
    %118 = vector.extract_strided_slice %108 {offsets = [2, 0], sizes = [171, 32], strides = [1, 1]} : vector<191x32xbf16> to vector<171x32xbf16>
    %c64 = arith.constant 64 : index
    %c0_39 = arith.constant 0 : index
    %119 = vector.load %arg3[%c64, %c0_39] : memref<288x64xbf16, #tpu.memory_space<vmem>>, vector<32x64xbf16>
    %cst_40 = arith.constant dense<0.000000e+00> : vector<171x64xf32>
    %120 = tpu.matmul %118, %119, %cst_40 {dimension_numbers = #tpu.dot_dimension_numbers<[1], [0], [0], [1], [0, 0, 1, 1], [], []>} : vector<171x32xbf16>, vector<32x64xbf16>, vector<171x64xf32> -> vector<171x64xf32>
    %121 = arith.addf %117, %120 : vector<171x64xf32>
    %122 = vector.extract_strided_slice %106 {offsets = [9, 0], sizes = [171, 32], strides = [1, 1]} : vector<191x32xbf16> to vector<171x32xbf16>
    %c96 = arith.constant 96 : index
    %c0_41 = arith.constant 0 : index
    %123 = vector.load %arg3[%c96, %c0_41] : memref<288x64xbf16, #tpu.memory_space<vmem>>, vector<32x64xbf16>
    %cst_42 = arith.constant dense<0.000000e+00> : vector<171x64xf32>
    %124 = tpu.matmul %122, %123, %cst_42 {dimension_numbers = #tpu.dot_dimension_numbers<[1], [0], [0], [1], [0, 0, 1, 1], [], []>} : vector<171x32xbf16>, vector<32x64xbf16>, vector<171x64xf32> -> vector<171x64xf32>
    %125 = arith.addf %121, %124 : vector<171x64xf32>
    %126 = vector.extract_strided_slice %107 {offsets = [10, 0], sizes = [171, 32], strides = [1, 1]} : vector<191x32xbf16> to vector<171x32xbf16>
    %c128 = arith.constant 128 : index
    %c0_43 = arith.constant 0 : index
    %127 = vector.load %arg3[%c128, %c0_43] : memref<288x64xbf16, #tpu.memory_space<vmem>>, vector<32x64xbf16>
    %cst_44 = arith.constant dense<0.000000e+00> : vector<171x64xf32>
    %128 = tpu.matmul %126, %127, %cst_44 {dimension_numbers = #tpu.dot_dimension_numbers<[1], [0], [0], [1], [0, 0, 1, 1], [], []>} : vector<171x32xbf16>, vector<32x64xbf16>, vector<171x64xf32> -> vector<171x64xf32>
    %129 = arith.addf %125, %128 : vector<171x64xf32>
    %130 = vector.extract_strided_slice %108 {offsets = [11, 0], sizes = [171, 32], strides = [1, 1]} : vector<191x32xbf16> to vector<171x32xbf16>
    %c160 = arith.constant 160 : index
    %c0_45 = arith.constant 0 : index
    %131 = vector.load %arg3[%c160, %c0_45] : memref<288x64xbf16, #tpu.memory_space<vmem>>, vector<32x64xbf16>
    %cst_46 = arith.constant dense<0.000000e+00> : vector<171x64xf32>
    %132 = tpu.matmul %130, %131, %cst_46 {dimension_numbers = #tpu.dot_dimension_numbers<[1], [0], [0], [1], [0, 0, 1, 1], [], []>} : vector<171x32xbf16>, vector<32x64xbf16>, vector<171x64xf32> -> vector<171x64xf32>
    %133 = arith.addf %129, %132 : vector<171x64xf32>
    %134 = vector.extract_strided_slice %106 {offsets = [18, 0], sizes = [171, 32], strides = [1, 1]} : vector<191x32xbf16> to vector<171x32xbf16>
    %c192 = arith.constant 192 : index
    %c0_47 = arith.constant 0 : index
    %135 = vector.load %arg3[%c192, %c0_47] : memref<288x64xbf16, #tpu.memory_space<vmem>>, vector<32x64xbf16>
    %cst_48 = arith.constant dense<0.000000e+00> : vector<171x64xf32>
    %136 = tpu.matmul %134, %135, %cst_48 {dimension_numbers = #tpu.dot_dimension_numbers<[1], [0], [0], [1], [0, 0, 1, 1], [], []>} : vector<171x32xbf16>, vector<32x64xbf16>, vector<171x64xf32> -> vector<171x64xf32>
    %137 = arith.addf %133, %136 : vector<171x64xf32>
    %138 = vector.extract_strided_slice %107 {offsets = [19, 0], sizes = [171, 32], strides = [1, 1]} : vector<191x32xbf16> to vector<171x32xbf16>
    %c224 = arith.constant 224 : index
    %c0_49 = arith.constant 0 : index
    %139 = vector.load %arg3[%c224, %c0_49] : memref<288x64xbf16, #tpu.memory_space<vmem>>, vector<32x64xbf16>
    %cst_50 = arith.constant dense<0.000000e+00> : vector<171x64xf32>
    %140 = tpu.matmul %138, %139, %cst_50 {dimension_numbers = #tpu.dot_dimension_numbers<[1], [0], [0], [1], [0, 0, 1, 1], [], []>} : vector<171x32xbf16>, vector<32x64xbf16>, vector<171x64xf32> -> vector<171x64xf32>
    %141 = arith.addf %137, %140 : vector<171x64xf32>
    %142 = vector.extract_strided_slice %108 {offsets = [20, 0], sizes = [171, 32], strides = [1, 1]} : vector<191x32xbf16> to vector<171x32xbf16>
    %c256 = arith.constant 256 : index
    %c0_51 = arith.constant 0 : index
    %143 = vector.load %arg3[%c256, %c0_51] : memref<288x64xbf16, #tpu.memory_space<vmem>>, vector<32x64xbf16>
    %cst_52 = arith.constant dense<0.000000e+00> : vector<171x64xf32>
    %144 = tpu.matmul %142, %143, %cst_52 {dimension_numbers = #tpu.dot_dimension_numbers<[1], [0], [0], [1], [0, 0, 1, 1], [], []>} : vector<171x32xbf16>, vector<32x64xbf16>, vector<171x64xf32> -> vector<171x64xf32>
    %145 = arith.addf %141, %144 : vector<171x64xf32>
    %c0_53 = arith.constant 0 : index
    %c0_54 = arith.constant 0 : index
    %146 = vector.load %arg4[%c0_53, %c0_54] : memref<1x64xf32, #tpu.memory_space<vmem>>, vector<1x64xf32>
    %147 = vector.broadcast %146 : vector<1x64xf32> to vector<171x64xf32>
    %148 = arith.addf %145, %147 : vector<171x64xf32>
    %cst_55 = arith.constant 0.000000e+00 : f32
    %149 = vector.broadcast %cst_55 : f32 to vector<171x64xf32>
    %150 = arith.maximumf %148, %149 : vector<171x64xf32>
    %151 = vector.extract_strided_slice %150 {offsets = [0, 0], sizes = [81, 64], strides = [1, 1]} : vector<171x64xf32> to vector<81x64xf32>
    %152 = vector.extract_strided_slice %150 {offsets = [90, 0], sizes = [81, 64], strides = [1, 1]} : vector<171x64xf32> to vector<81x64xf32>
    %cst_56 = arith.constant 0.000000e+00 : f32
    %153 = vector.broadcast %cst_56 : f32 to vector<100x64xf32>
    %c0_57 = arith.constant 0 : index
    %c0_58 = arith.constant 0 : index
    %154 = vector.load %arg15[%c0_57, %c0_58] : memref<100x64xf32, #tpu.memory_space<vmem>>, vector<100x64xf32>
    tpu.vector_store %arg15[%c0_57, %c0_58], %153 {strides = array<i32>} : memref<100x64xf32, #tpu.memory_space<vmem>>, vector<100x64xf32>,
    %155 = vector.extract_strided_slice %151 {offsets = [0, 0], sizes = [9, 64], strides = [1, 1]} : vector<81x64xf32> to vector<9x64xf32>
    %c1_59 = arith.constant 1 : index
    %c0_60 = arith.constant 0 : index
    %156 = vector.load %arg15[%c1_59, %c0_60] : memref<100x64xf32, #tpu.memory_space<vmem>>, vector<9x64xf32>
    tpu.vector_store %arg15[%c1_59, %c0_60], %155 {strides = array<i32>} : memref<100x64xf32, #tpu.memory_space<vmem>>, vector<9x64xf32>,
    %157 = vector.extract_strided_slice %151 {offsets = [9, 0], sizes = [9, 64], strides = [1, 1]} : vector<81x64xf32> to vector<9x64xf32>
    %158 = vector.extract_strided_slice %151 {offsets = [18, 0], sizes = [9, 64], strides = [1, 1]} : vector<81x64xf32> to vector<9x64xf32>
    %159 = arith.maximumf %157, %158 : vector<9x64xf32>
    %c11 = arith.constant 11 : index
    %c0_61 = arith.constant 0 : index
    %160 = vector.load %arg15[%c11, %c0_61] : memref<100x64xf32, #tpu.memory_space<vmem>>, vector<9x64xf32>
    tpu.vector_store %arg15[%c11, %c0_61], %159 {strides = array<i32>} : memref<100x64xf32, #tpu.memory_space<vmem>>, vector<9x64xf32>,
    %161 = vector.extract_strided_slice %151 {offsets = [27, 0], sizes = [9, 64], strides = [1, 1]} : vector<81x64xf32> to vector<9x64xf32>
    %162 = vector.extract_strided_slice %151 {offsets = [36, 0], sizes = [9, 64], strides = [1, 1]} : vector<81x64xf32> to vector<9x64xf32>
    %163 = arith.maximumf %161, %162 : vector<9x64xf32>
    %c21 = arith.constant 21 : index
    %c0_62 = arith.constant 0 : index
    %164 = vector.load %arg15[%c21, %c0_62] : memref<100x64xf32, #tpu.memory_space<vmem>>, vector<9x64xf32>
    tpu.vector_store %arg15[%c21, %c0_62], %163 {strides = array<i32>} : memref<100x64xf32, #tpu.memory_space<vmem>>, vector<9x64xf32>,
    %165 = vector.extract_strided_slice %151 {offsets = [45, 0], sizes = [9, 64], strides = [1, 1]} : vector<81x64xf32> to vector<9x64xf32>
    %166 = vector.extract_strided_slice %151 {offsets = [54, 0], sizes = [9, 64], strides = [1, 1]} : vector<81x64xf32> to vector<9x64xf32>
    %167 = arith.maximumf %165, %166 : vector<9x64xf32>
    %c31 = arith.constant 31 : index
    %c0_63 = arith.constant 0 : index
    %168 = vector.load %arg15[%c31, %c0_63] : memref<100x64xf32, #tpu.memory_space<vmem>>, vector<9x64xf32>
    tpu.vector_store %arg15[%c31, %c0_63], %167 {strides = array<i32>} : memref<100x64xf32, #tpu.memory_space<vmem>>, vector<9x64xf32>,
    %169 = vector.extract_strided_slice %151 {offsets = [63, 0], sizes = [9, 64], strides = [1, 1]} : vector<81x64xf32> to vector<9x64xf32>
    %170 = vector.extract_strided_slice %151 {offsets = [72, 0], sizes = [9, 64], strides = [1, 1]} : vector<81x64xf32> to vector<9x64xf32>
    %171 = arith.maximumf %169, %170 : vector<9x64xf32>
    %c41 = arith.constant 41 : index
    %c0_64 = arith.constant 0 : index
    %172 = vector.load %arg15[%c41, %c0_64] : memref<100x64xf32, #tpu.memory_space<vmem>>, vector<9x64xf32>
    tpu.vector_store %arg15[%c41, %c0_64], %171 {strides = array<i32>} : memref<100x64xf32, #tpu.memory_space<vmem>>, vector<9x64xf32>,
    %173 = vector.extract_strided_slice %152 {offsets = [0, 0], sizes = [9, 64], strides = [1, 1]} : vector<81x64xf32> to vector<9x64xf32>
    %c51 = arith.constant 51 : index
    %c0_65 = arith.constant 0 : index
    %174 = vector.load %arg15[%c51, %c0_65] : memref<100x64xf32, #tpu.memory_space<vmem>>, vector<9x64xf32>
    tpu.vector_store %arg15[%c51, %c0_65], %173 {strides = array<i32>} : memref<100x64xf32, #tpu.memory_space<vmem>>, vector<9x64xf32>,
    %175 = vector.extract_strided_slice %152 {offsets = [9, 0], sizes = [9, 64], strides = [1, 1]} : vector<81x64xf32> to vector<9x64xf32>
    %176 = vector.extract_strided_slice %152 {offsets = [18, 0], sizes = [9, 64], strides = [1, 1]} : vector<81x64xf32> to vector<9x64xf32>
    %177 = arith.maximumf %175, %176 : vector<9x64xf32>
    %c61 = arith.constant 61 : index
    %c0_66 = arith.constant 0 : index
    %178 = vector.load %arg15[%c61, %c0_66] : memref<100x64xf32, #tpu.memory_space<vmem>>, vector<9x64xf32>
    tpu.vector_store %arg15[%c61, %c0_66], %177 {strides = array<i32>} : memref<100x64xf32, #tpu.memory_space<vmem>>, vector<9x64xf32>,
    %179 = vector.extract_strided_slice %152 {offsets = [27, 0], sizes = [9, 64], strides = [1, 1]} : vector<81x64xf32> to vector<9x64xf32>
    %180 = vector.extract_strided_slice %152 {offsets = [36, 0], sizes = [9, 64], strides = [1, 1]} : vector<81x64xf32> to vector<9x64xf32>
    %181 = arith.maximumf %179, %180 : vector<9x64xf32>
    %c71 = arith.constant 71 : index
    %c0_67 = arith.constant 0 : index
    %182 = vector.load %arg15[%c71, %c0_67] : memref<100x64xf32, #tpu.memory_space<vmem>>, vector<9x64xf32>
    tpu.vector_store %arg15[%c71, %c0_67], %181 {strides = array<i32>} : memref<100x64xf32, #tpu.memory_space<vmem>>, vector<9x64xf32>,
    %183 = vector.extract_strided_slice %152 {offsets = [45, 0], sizes = [9, 64], strides = [1, 1]} : vector<81x64xf32> to vector<9x64xf32>
    %184 = vector.extract_strided_slice %152 {offsets = [54, 0], sizes = [9, 64], strides = [1, 1]} : vector<81x64xf32> to vector<9x64xf32>
    %185 = arith.maximumf %183, %184 : vector<9x64xf32>
    %c81 = arith.constant 81 : index
    %c0_68 = arith.constant 0 : index
    %186 = vector.load %arg15[%c81, %c0_68] : memref<100x64xf32, #tpu.memory_space<vmem>>, vector<9x64xf32>
    tpu.vector_store %arg15[%c81, %c0_68], %185 {strides = array<i32>} : memref<100x64xf32, #tpu.memory_space<vmem>>, vector<9x64xf32>,
    %187 = vector.extract_strided_slice %152 {offsets = [63, 0], sizes = [9, 64], strides = [1, 1]} : vector<81x64xf32> to vector<9x64xf32>
    %188 = vector.extract_strided_slice %152 {offsets = [72, 0], sizes = [9, 64], strides = [1, 1]} : vector<81x64xf32> to vector<9x64xf32>
    %189 = arith.maximumf %187, %188 : vector<9x64xf32>
    %c91_69 = arith.constant 91 : index
    %c0_70 = arith.constant 0 : index
    %190 = vector.load %arg15[%c91_69, %c0_70] : memref<100x64xf32, #tpu.memory_space<vmem>>, vector<9x64xf32>
    tpu.vector_store %arg15[%c91_69, %c0_70], %189 {strides = array<i32>} : memref<100x64xf32, #tpu.memory_space<vmem>>, vector<9x64xf32>,
    %c0_71 = arith.constant 0 : index
    %c0_72 = arith.constant 0 : index
    %191 = tpu.strided_load %arg15[%c0_71, %c0_72] {strides = array<i32: 2, 1>} : memref<100x64xf32, #tpu.memory_space<vmem>>, vector<50x64xf32>
    %c1_73 = arith.constant 1 : index
    %c0_74 = arith.constant 0 : index
    %192 = tpu.strided_load %arg15[%c1_73, %c0_74] {strides = array<i32: 2, 1>} : memref<100x64xf32, #tpu.memory_space<vmem>>, vector<50x64xf32>
    %193 = arith.maximumf %191, %192 : vector<50x64xf32>
    %194 = vector.extract_strided_slice %193 {offsets = [0, 0], sizes = [25, 64], strides = [1, 1]} : vector<50x64xf32> to vector<25x64xf32>
    %195 = vector.extract_strided_slice %193 {offsets = [25, 0], sizes = [25, 64], strides = [1, 1]} : vector<50x64xf32> to vector<25x64xf32>
    %cst_75 = arith.constant 0.000000e+00 : f32
    %196 = vector.broadcast %cst_75 : f32 to vector<5x64xf32>
    %197 = tpu.concatenate %194, %196, %195 in 0 : vector<25x64xf32>, vector<5x64xf32>, vector<25x64xf32> -> vector<55x64xf32>
    %198 = tpu.iota {dimensions = array<i32: 0>} : vector<5x1xi32>
    %c4_i32 = arith.constant 4 : i32
    %199 = vector.broadcast %c4_i32 : i32 to vector<5x1xi32>
    %200 = arith.cmpi ne, %198, %199 : vector<5x1xi32>
    %201 = arith.extui %200 : vector<5x1xi1> to vector<5x1xi32>
    %202 = arith.sitofp %201 : vector<5x1xi32> to vector<5x1xf32>
    %c0_i32_76 = arith.constant 0 : i32
    %203 = vector.broadcast %c0_i32_76 : i32 to vector<5x1xi32>
    %204 = arith.cmpi ne, %198, %203 : vector<5x1xi32>
    %205 = arith.extui %204 : vector<5x1xi1> to vector<5x1xi32>
    %206 = arith.sitofp %205 : vector<5x1xi32> to vector<5x1xf32>
    %207 = tpu.concatenate %202, %202, %202, %202, %202, %202, %202, %202, %202, %202, %202 in 0 : vector<5x1xf32>, vector<5x1xf32>, vector<5x1xf32>, vector<5x1xf32>, vector<5x1xf32>, vector<5x1xf32>, vector<5x1xf32>, vector<5x1xf32>, vector<5x1xf32>, vector<5x1xf32>, vector<5x1xf32> -> vector<55x1xf32>
    %208 = tpu.concatenate %206, %206, %206, %206, %206, %206, %206, %206, %206, %206, %206 in 0 : vector<5x1xf32>, vector<5x1xf32>, vector<5x1xf32>, vector<5x1xf32>, vector<5x1xf32>, vector<5x1xf32>, vector<5x1xf32>, vector<5x1xf32>, vector<5x1xf32>, vector<5x1xf32>, vector<5x1xf32> -> vector<55x1xf32>
    %cst_77 = arith.constant 1.000000e+00 : f32
    %209 = vector.broadcast %cst_77 : f32 to vector<25x1xf32>
    %cst_78 = arith.constant 0.000000e+00 : f32
    %210 = vector.broadcast %cst_78 : f32 to vector<5x1xf32>
    %211 = tpu.concatenate %209, %210, %209 in 0 : vector<25x1xf32>, vector<5x1xf32>, vector<25x1xf32> -> vector<55x1xf32>
    %212 = arith.truncf %197 : vector<55x64xf32> to vector<55x64xbf16>
    %213 = vector.broadcast %207 : vector<55x1xf32> to vector<55x64xf32>
    %214 = arith.mulf %197, %213 : vector<55x64xf32>
    %215 = arith.truncf %214 : vector<55x64xf32> to vector<55x64xbf16>
    %216 = vector.broadcast %208 : vector<55x1xf32> to vector<55x64xf32>
    %217 = arith.mulf %197, %216 : vector<55x64xf32>
    %218 = arith.truncf %217 : vector<55x64xf32> to vector<55x64xbf16>
    %cst_79 = arith.constant 0.000000e+00 : bf16
    %219 = vector.broadcast %cst_79 : bf16 to vector<6x64xbf16>
    %220 = tpu.concatenate %219, %215, %219 in 0 : vector<6x64xbf16>, vector<55x64xbf16>, vector<6x64xbf16> -> vector<67x64xbf16>
    %221 = tpu.concatenate %219, %212, %219 in 0 : vector<6x64xbf16>, vector<55x64xbf16>, vector<6x64xbf16> -> vector<67x64xbf16>
    %222 = tpu.concatenate %219, %218, %219 in 0 : vector<6x64xbf16>, vector<55x64xbf16>, vector<6x64xbf16> -> vector<67x64xbf16>
    %223 = vector.extract_strided_slice %220 {offsets = [0, 0], sizes = [55, 64], strides = [1, 1]} : vector<67x64xbf16> to vector<55x64xbf16>
    %224 = vector.extract_strided_slice %221 {offsets = [1, 0], sizes = [55, 64], strides = [1, 1]} : vector<67x64xbf16> to vector<55x64xbf16>
    %225 = vector.extract_strided_slice %222 {offsets = [2, 0], sizes = [55, 64], strides = [1, 1]} : vector<67x64xbf16> to vector<55x64xbf16>
    %226 = vector.extract_strided_slice %220 {offsets = [5, 0], sizes = [55, 64], strides = [1, 1]} : vector<67x64xbf16> to vector<55x64xbf16>
    %227 = vector.extract_strided_slice %221 {offsets = [6, 0], sizes = [55, 64], strides = [1, 1]} : vector<67x64xbf16> to vector<55x64xbf16>
    %228 = vector.extract_strided_slice %222 {offsets = [7, 0], sizes = [55, 64], strides = [1, 1]} : vector<67x64xbf16> to vector<55x64xbf16>
    %229 = vector.extract_strided_slice %220 {offsets = [10, 0], sizes = [55, 64], strides = [1, 1]} : vector<67x64xbf16> to vector<55x64xbf16>
    %230 = vector.extract_strided_slice %221 {offsets = [11, 0], sizes = [55, 64], strides = [1, 1]} : vector<67x64xbf16> to vector<55x64xbf16>
    %231 = vector.extract_strided_slice %222 {offsets = [12, 0], sizes = [55, 64], strides = [1, 1]} : vector<67x64xbf16> to vector<55x64xbf16>
    %232 = tpu.concatenate %223, %224, %225, %226, %227, %228, %229, %230, %231 in 1 : vector<55x64xbf16>, vector<55x64xbf16>, vector<55x64xbf16>, vector<55x64xbf16>, vector<55x64xbf16>, vector<55x64xbf16>, vector<55x64xbf16>, vector<55x64xbf16>, vector<55x64xbf16> -> vector<55x576xbf16>
    %c0_80 = arith.constant 0 : index
    %c0_81 = arith.constant 0 : index
    %233 = vector.load %arg5[%c0_80, %c0_81] : memref<576x128xbf16, #tpu.memory_space<vmem>>, vector<576x128xbf16>
    %cst_82 = arith.constant dense<0.000000e+00> : vector<55x128xf32>
    %234 = tpu.matmul %232, %233, %cst_82 {dimension_numbers = #tpu.dot_dimension_numbers<[1], [0], [0], [1], [0, 0, 1, 1], [], []>} : vector<55x576xbf16>, vector<576x128xbf16>, vector<55x128xf32> -> vector<55x128xf32>
    %c0_83 = arith.constant 0 : index
    %c0_84 = arith.constant 0 : index
    %235 = vector.load %arg6[%c0_83, %c0_84] : memref<1x128xf32, #tpu.memory_space<vmem>>, vector<1x128xf32>
    %236 = vector.broadcast %235 : vector<1x128xf32> to vector<55x128xf32>
    %237 = arith.addf %234, %236 : vector<55x128xf32>
    %cst_85 = arith.constant 0.000000e+00 : f32
    %238 = vector.broadcast %cst_85 : f32 to vector<55x128xf32>
    %239 = arith.maximumf %237, %238 : vector<55x128xf32>
    %240 = vector.broadcast %211 : vector<55x1xf32> to vector<55x128xf32>
    %241 = arith.mulf %239, %240 : vector<55x128xf32>
    %242 = arith.truncf %241 : vector<55x128xf32> to vector<55x128xbf16>
    %243 = vector.broadcast %207 : vector<55x1xf32> to vector<55x128xf32>
    %244 = arith.mulf %241, %243 : vector<55x128xf32>
    %245 = arith.truncf %244 : vector<55x128xf32> to vector<55x128xbf16>
    %246 = vector.broadcast %208 : vector<55x1xf32> to vector<55x128xf32>
    %247 = arith.mulf %241, %246 : vector<55x128xf32>
    %248 = arith.truncf %247 : vector<55x128xf32> to vector<55x128xbf16>
    %cst_86 = arith.constant 0.000000e+00 : bf16
    %249 = vector.broadcast %cst_86 : bf16 to vector<6x128xbf16>
    %250 = tpu.concatenate %249, %245, %249 in 0 : vector<6x128xbf16>, vector<55x128xbf16>, vector<6x128xbf16> -> vector<67x128xbf16>
    %251 = tpu.concatenate %249, %242, %249 in 0 : vector<6x128xbf16>, vector<55x128xbf16>, vector<6x128xbf16> -> vector<67x128xbf16>
    %252 = tpu.concatenate %249, %248, %249 in 0 : vector<6x128xbf16>, vector<55x128xbf16>, vector<6x128xbf16> -> vector<67x128xbf16>
    %253 = vector.extract_strided_slice %250 {offsets = [0, 0], sizes = [55, 128], strides = [1, 1]} : vector<67x128xbf16> to vector<55x128xbf16>
    %254 = vector.extract_strided_slice %251 {offsets = [1, 0], sizes = [55, 128], strides = [1, 1]} : vector<67x128xbf16> to vector<55x128xbf16>
    %255 = vector.extract_strided_slice %252 {offsets = [2, 0], sizes = [55, 128], strides = [1, 1]} : vector<67x128xbf16> to vector<55x128xbf16>
    %256 = vector.extract_strided_slice %250 {offsets = [5, 0], sizes = [55, 128], strides = [1, 1]} : vector<67x128xbf16> to vector<55x128xbf16>
    %257 = vector.extract_strided_slice %251 {offsets = [6, 0], sizes = [55, 128], strides = [1, 1]} : vector<67x128xbf16> to vector<55x128xbf16>
    %258 = vector.extract_strided_slice %252 {offsets = [7, 0], sizes = [55, 128], strides = [1, 1]} : vector<67x128xbf16> to vector<55x128xbf16>
    %259 = vector.extract_strided_slice %250 {offsets = [10, 0], sizes = [55, 128], strides = [1, 1]} : vector<67x128xbf16> to vector<55x128xbf16>
    %260 = vector.extract_strided_slice %251 {offsets = [11, 0], sizes = [55, 128], strides = [1, 1]} : vector<67x128xbf16> to vector<55x128xbf16>
    %261 = vector.extract_strided_slice %252 {offsets = [12, 0], sizes = [55, 128], strides = [1, 1]} : vector<67x128xbf16> to vector<55x128xbf16>
    %262 = tpu.concatenate %253, %254, %255, %256, %257, %258, %259, %260, %261 in 1 : vector<55x128xbf16>, vector<55x128xbf16>, vector<55x128xbf16>, vector<55x128xbf16>, vector<55x128xbf16>, vector<55x128xbf16>, vector<55x128xbf16>, vector<55x128xbf16>, vector<55x128xbf16> -> vector<55x1152xbf16>
    %c0_87 = arith.constant 0 : index
    %c0_88 = arith.constant 0 : index
    %263 = vector.load %arg7[%c0_87, %c0_88] : memref<1152x128xbf16, #tpu.memory_space<vmem>>, vector<1152x128xbf16>
    %cst_89 = arith.constant dense<0.000000e+00> : vector<55x128xf32>
    %264 = tpu.matmul %262, %263, %cst_89 {dimension_numbers = #tpu.dot_dimension_numbers<[1], [0], [0], [1], [0, 0, 1, 1], [], []>} : vector<55x1152xbf16>, vector<1152x128xbf16>, vector<55x128xf32> -> vector<55x128xf32>
    %c0_90 = arith.constant 0 : index
    %c0_91 = arith.constant 0 : index
    %265 = vector.load %arg8[%c0_90, %c0_91] : memref<1x128xf32, #tpu.memory_space<vmem>>, vector<1x128xf32>
    %266 = vector.broadcast %265 : vector<1x128xf32> to vector<55x128xf32>
    %267 = arith.addf %264, %266 : vector<55x128xf32>
    %cst_92 = arith.constant 0.000000e+00 : f32
    %268 = vector.broadcast %cst_92 : f32 to vector<55x128xf32>
    %269 = arith.maximumf %267, %268 : vector<55x128xf32>
    %270 = vector.broadcast %211 : vector<55x1xf32> to vector<55x128xf32>
    %271 = arith.mulf %269, %270 : vector<55x128xf32>
    %272 = arith.truncf %271 : vector<55x128xf32> to vector<55x128xbf16>
    %273 = vector.broadcast %207 : vector<55x1xf32> to vector<55x128xf32>
    %274 = arith.mulf %271, %273 : vector<55x128xf32>
    %275 = arith.truncf %274 : vector<55x128xf32> to vector<55x128xbf16>
    %276 = vector.broadcast %208 : vector<55x1xf32> to vector<55x128xf32>
    %277 = arith.mulf %271, %276 : vector<55x128xf32>
    %278 = arith.truncf %277 : vector<55x128xf32> to vector<55x128xbf16>
    %cst_93 = arith.constant 0.000000e+00 : bf16
    %279 = vector.broadcast %cst_93 : bf16 to vector<6x128xbf16>
    %280 = tpu.concatenate %279, %275, %279 in 0 : vector<6x128xbf16>, vector<55x128xbf16>, vector<6x128xbf16> -> vector<67x128xbf16>
    %281 = tpu.concatenate %279, %272, %279 in 0 : vector<6x128xbf16>, vector<55x128xbf16>, vector<6x128xbf16> -> vector<67x128xbf16>
    %282 = tpu.concatenate %279, %278, %279 in 0 : vector<6x128xbf16>, vector<55x128xbf16>, vector<6x128xbf16> -> vector<67x128xbf16>
    %283 = vector.extract_strided_slice %280 {offsets = [0, 0], sizes = [55, 128], strides = [1, 1]} : vector<67x128xbf16> to vector<55x128xbf16>
    %284 = vector.extract_strided_slice %281 {offsets = [1, 0], sizes = [55, 128], strides = [1, 1]} : vector<67x128xbf16> to vector<55x128xbf16>
    %285 = vector.extract_strided_slice %282 {offsets = [2, 0], sizes = [55, 128], strides = [1, 1]} : vector<67x128xbf16> to vector<55x128xbf16>
    %286 = vector.extract_strided_slice %280 {offsets = [5, 0], sizes = [55, 128], strides = [1, 1]} : vector<67x128xbf16> to vector<55x128xbf16>
    %287 = vector.extract_strided_slice %281 {offsets = [6, 0], sizes = [55, 128], strides = [1, 1]} : vector<67x128xbf16> to vector<55x128xbf16>
    %288 = vector.extract_strided_slice %282 {offsets = [7, 0], sizes = [55, 128], strides = [1, 1]} : vector<67x128xbf16> to vector<55x128xbf16>
    %289 = vector.extract_strided_slice %280 {offsets = [10, 0], sizes = [55, 128], strides = [1, 1]} : vector<67x128xbf16> to vector<55x128xbf16>
    %290 = vector.extract_strided_slice %281 {offsets = [11, 0], sizes = [55, 128], strides = [1, 1]} : vector<67x128xbf16> to vector<55x128xbf16>
    %291 = vector.extract_strided_slice %282 {offsets = [12, 0], sizes = [55, 128], strides = [1, 1]} : vector<67x128xbf16> to vector<55x128xbf16>
    %292 = tpu.concatenate %283, %284, %285, %286, %287, %288, %289, %290, %291 in 1 : vector<55x128xbf16>, vector<55x128xbf16>, vector<55x128xbf16>, vector<55x128xbf16>, vector<55x128xbf16>, vector<55x128xbf16>, vector<55x128xbf16>, vector<55x128xbf16>, vector<55x128xbf16> -> vector<55x1152xbf16>
    %c0_94 = arith.constant 0 : index
    %c0_95 = arith.constant 0 : index
    %293 = vector.load %arg9[%c0_94, %c0_95] : memref<1152x128xbf16, #tpu.memory_space<vmem>>, vector<1152x128xbf16>
    %cst_96 = arith.constant dense<0.000000e+00> : vector<55x128xf32>
    %294 = tpu.matmul %292, %293, %cst_96 {dimension_numbers = #tpu.dot_dimension_numbers<[1], [0], [0], [1], [0, 0, 1, 1], [], []>} : vector<55x1152xbf16>, vector<1152x128xbf16>, vector<55x128xf32> -> vector<55x128xf32>
    %c0_97 = arith.constant 0 : index
    %c0_98 = arith.constant 0 : index
    %295 = vector.load %arg10[%c0_97, %c0_98] : memref<1x128xf32, #tpu.memory_space<vmem>>, vector<1x128xf32>
    %296 = vector.broadcast %295 : vector<1x128xf32> to vector<55x128xf32>
    %297 = arith.addf %294, %296 : vector<55x128xf32>
    %cst_99 = arith.constant 0.000000e+00 : f32
    %298 = vector.broadcast %cst_99 : f32 to vector<55x128xf32>
    %299 = arith.maximumf %297, %298 : vector<55x128xf32>
    %300 = vector.extract_strided_slice %299 {offsets = [0, 0], sizes = [25, 128], strides = [1, 1]} : vector<55x128xf32> to vector<25x128xf32>
    %301 = vector.extract_strided_slice %299 {offsets = [30, 0], sizes = [25, 128], strides = [1, 1]} : vector<55x128xf32> to vector<25x128xf32>
    %cst_100 = arith.constant 0.000000e+00 : f32
    %302 = vector.broadcast %cst_100 : f32 to vector<36x128xf32>
    %c0_101 = arith.constant 0 : index
    %c0_102 = arith.constant 0 : index
    %303 = vector.load %arg16[%c0_101, %c0_102] : memref<36x128xf32, #tpu.memory_space<vmem>>, vector<36x128xf32>
    tpu.vector_store %arg16[%c0_101, %c0_102], %302 {strides = array<i32>} : memref<36x128xf32, #tpu.memory_space<vmem>>, vector<36x128xf32>,
    %304 = vector.extract_strided_slice %300 {offsets = [0, 0], sizes = [5, 128], strides = [1, 1]} : vector<25x128xf32> to vector<5x128xf32>
    %c1_103 = arith.constant 1 : index
    %c0_104 = arith.constant 0 : index
    %305 = vector.load %arg16[%c1_103, %c0_104] : memref<36x128xf32, #tpu.memory_space<vmem>>, vector<5x128xf32>
    tpu.vector_store %arg16[%c1_103, %c0_104], %304 {strides = array<i32>} : memref<36x128xf32, #tpu.memory_space<vmem>>, vector<5x128xf32>,
    %306 = vector.extract_strided_slice %300 {offsets = [5, 0], sizes = [5, 128], strides = [1, 1]} : vector<25x128xf32> to vector<5x128xf32>
    %307 = vector.extract_strided_slice %300 {offsets = [10, 0], sizes = [5, 128], strides = [1, 1]} : vector<25x128xf32> to vector<5x128xf32>
    %308 = arith.maximumf %306, %307 : vector<5x128xf32>
    %c7 = arith.constant 7 : index
    %c0_105 = arith.constant 0 : index
    %309 = vector.load %arg16[%c7, %c0_105] : memref<36x128xf32, #tpu.memory_space<vmem>>, vector<5x128xf32>
    tpu.vector_store %arg16[%c7, %c0_105], %308 {strides = array<i32>} : memref<36x128xf32, #tpu.memory_space<vmem>>, vector<5x128xf32>,
    %310 = vector.extract_strided_slice %300 {offsets = [15, 0], sizes = [5, 128], strides = [1, 1]} : vector<25x128xf32> to vector<5x128xf32>
    %311 = vector.extract_strided_slice %300 {offsets = [20, 0], sizes = [5, 128], strides = [1, 1]} : vector<25x128xf32> to vector<5x128xf32>
    %312 = arith.maximumf %310, %311 : vector<5x128xf32>
    %c13 = arith.constant 13 : index
    %c0_106 = arith.constant 0 : index
    %313 = vector.load %arg16[%c13, %c0_106] : memref<36x128xf32, #tpu.memory_space<vmem>>, vector<5x128xf32>
    tpu.vector_store %arg16[%c13, %c0_106], %312 {strides = array<i32>} : memref<36x128xf32, #tpu.memory_space<vmem>>, vector<5x128xf32>,
    %314 = vector.extract_strided_slice %301 {offsets = [0, 0], sizes = [5, 128], strides = [1, 1]} : vector<25x128xf32> to vector<5x128xf32>
    %c19_107 = arith.constant 19 : index
    %c0_108 = arith.constant 0 : index
    %315 = vector.load %arg16[%c19_107, %c0_108] : memref<36x128xf32, #tpu.memory_space<vmem>>, vector<5x128xf32>
    tpu.vector_store %arg16[%c19_107, %c0_108], %314 {strides = array<i32>} : memref<36x128xf32, #tpu.memory_space<vmem>>, vector<5x128xf32>,
    %316 = vector.extract_strided_slice %301 {offsets = [5, 0], sizes = [5, 128], strides = [1, 1]} : vector<25x128xf32> to vector<5x128xf32>
    %317 = vector.extract_strided_slice %301 {offsets = [10, 0], sizes = [5, 128], strides = [1, 1]} : vector<25x128xf32> to vector<5x128xf32>
    %318 = arith.maximumf %316, %317 : vector<5x128xf32>
    %c25 = arith.constant 25 : index
    %c0_109 = arith.constant 0 : index
    %319 = vector.load %arg16[%c25, %c0_109] : memref<36x128xf32, #tpu.memory_space<vmem>>, vector<5x128xf32>
    tpu.vector_store %arg16[%c25, %c0_109], %318 {strides = array<i32>} : memref<36x128xf32, #tpu.memory_space<vmem>>, vector<5x128xf32>,
    %320 = vector.extract_strided_slice %301 {offsets = [15, 0], sizes = [5, 128], strides = [1, 1]} : vector<25x128xf32> to vector<5x128xf32>
    %321 = vector.extract_strided_slice %301 {offsets = [20, 0], sizes = [5, 128], strides = [1, 1]} : vector<25x128xf32> to vector<5x128xf32>
    %322 = arith.maximumf %320, %321 : vector<5x128xf32>
    %c31_110 = arith.constant 31 : index
    %c0_111 = arith.constant 0 : index
    %323 = vector.load %arg16[%c31_110, %c0_111] : memref<36x128xf32, #tpu.memory_space<vmem>>, vector<5x128xf32>
    tpu.vector_store %arg16[%c31_110, %c0_111], %322 {strides = array<i32>} : memref<36x128xf32, #tpu.memory_space<vmem>>, vector<5x128xf32>,
    %c0_112 = arith.constant 0 : index
    %c0_113 = arith.constant 0 : index
    %324 = tpu.strided_load %arg16[%c0_112, %c0_113] {strides = array<i32: 2, 1>} : memref<36x128xf32, #tpu.memory_space<vmem>>, vector<18x128xf32>
    %c1_114 = arith.constant 1 : index
    %c0_115 = arith.constant 0 : index
    %325 = tpu.strided_load %arg16[%c1_114, %c0_115] {strides = array<i32: 2, 1>} : memref<36x128xf32, #tpu.memory_space<vmem>>, vector<18x128xf32>
    %326 = arith.maximumf %324, %325 : vector<18x128xf32>
    %327 = vector.extract_strided_slice %326 {offsets = [0, 0], sizes = [9, 128], strides = [1, 1]} : vector<18x128xf32> to vector<9x128xf32>
    %328 = vector.extract_strided_slice %326 {offsets = [9, 0], sizes = [9, 128], strides = [1, 1]} : vector<18x128xf32> to vector<9x128xf32>
    %cst_116 = arith.constant dense<0.000000e+00> : vector<128xf32>
    %329 = vector.multi_reduction <add>, %327, %cst_116 [0] : vector<9x128xf32> to vector<128xf32>
    %330 = vector.shape_cast %329 : vector<128xf32> to vector<1x128xf32>
    %cst_117 = arith.constant 9.000000e+00 : f32
    %331 = vector.broadcast %cst_117 : f32 to vector<1x128xf32>
    %332 = arith.divf %330, %331 : vector<1x128xf32>
    %cst_118 = arith.constant dense<0.000000e+00> : vector<128xf32>
    %333 = vector.multi_reduction <add>, %328, %cst_118 [0] : vector<9x128xf32> to vector<128xf32>
    %334 = vector.shape_cast %333 : vector<128xf32> to vector<1x128xf32>
    %cst_119 = arith.constant 9.000000e+00 : f32
    %335 = vector.broadcast %cst_119 : f32 to vector<1x128xf32>
    %336 = arith.divf %334, %335 : vector<1x128xf32>
    %337 = tpu.concatenate %332, %336 in 0 : vector<1x128xf32>, vector<1x128xf32> -> vector<2x128xf32>
    %338 = arith.truncf %337 : vector<2x128xf32> to vector<2x128xbf16>
    %c0_120 = arith.constant 0 : index
    %c0_121 = arith.constant 0 : index
    %339 = vector.load %arg11[%c0_120, %c0_121] : memref<128x128xbf16, #tpu.memory_space<vmem>>, vector<128x128xbf16>
    %cst_122 = arith.constant dense<0.000000e+00> : vector<2x128xf32>
    %340 = tpu.matmul %338, %339, %cst_122 {dimension_numbers = #tpu.dot_dimension_numbers<[1], [0], [0], [1], [0, 0, 1, 1], [], []>} : vector<2x128xbf16>, vector<128x128xbf16>, vector<2x128xf32> -> vector<2x128xf32>
    %c0_123 = arith.constant 0 : index
    %c0_124 = arith.constant 0 : index
    %341 = vector.load %arg12[%c0_123, %c0_124] : memref<1x128xf32, #tpu.memory_space<vmem>>, vector<1x128xf32>
    %342 = vector.broadcast %341 : vector<1x128xf32> to vector<2x128xf32>
    %343 = arith.addf %340, %342 : vector<2x128xf32>
    %c0_125 = arith.constant 0 : index
    %c0_126 = arith.constant 0 : index
    %344 = vector.load %arg13[%c0_125, %c0_126] : memref<2x128xf32, #tpu.memory_space<vmem>>, vector<2x128xf32>
    tpu.vector_store %arg13[%c0_125, %c0_126], %343 {strides = array<i32>} : memref<2x128xf32, #tpu.memory_space<vmem>>, vector<2x128xf32>,
    return
  }
}

</mosaic_0001>

<bundles_post_ra>
// kernel: alexnet_forward.1
= control target key start
LH: loop header
LB: loop body
LE: loop exit
PB: predicated region body
PF: predicated region fallthrough
CT: control target
= control target key end

     0   :  { %vm391_vm0 = vcmask 1041408   ;;  %v11962_v2 = vmov 0   ;;  %v885_v3 = vlaneseq  ;;  %v8144_v4 = vmov 0.0   ;;  %s11948_s0 = inlined_call_operand.vmem [shape: bf16[512,36], index: 0, kind: input, shape index: {}]   ;;  %s11949_s1 = inlined_call_operand.vmem [shape: bf16[36,32], index: 1, kind: input, shape index: {}]   ;;  %s11950_s2 = inlined_call_operand.vmem [shape: f32[1,32], index: 2, kind: input, shape index: {}]   ;;  %s11951_s3 = inlined_call_operand.vmem [shape: bf16[288,64], index: 3, kind: input, shape index: {}]   ;;  %s11952_s4 = inlined_call_operand.vmem [shape: f32[1,64], index: 4, kind: input, shape index: {}]   ;;  %s11953_s5 = inlined_call_operand.vmem [shape: bf16[576,128], index: 5, kind: input, shape index: {}]   ;;  %s11954_s6 = inlined_call_operand.vmem [shape: f32[1,128], index: 6, kind: input, shape index: {}]   ;;  %s11955_s7 = inlined_call_operand.vmem [shape: bf16[1152,128], index: 7, kind: input, shape index: {}]   ;;  %s11956_s8 = inlined_call_operand.vmem [shape: f32[1,128], index: 8, kind: input, shape index: {}]   ;;  %s11957_s9 = inlined_call_operand.vmem [shape: bf16[1152,128], index: 9, kind: input, shape index: {}]   ;;  %s11958_s10 = inlined_call_operand.vmem [shape: f32[1,128], index: 10, kind: input, shape index: {}]   ;;  %s11959_s11 = inlined_call_operand.vmem [shape: bf16[128,128], index: 11, kind: input, shape index: {}]   ;;  %s11960_s12 = inlined_call_operand.vmem [shape: f32[1,128], index: 12, kind: input, shape index: {}]   ;;  %s11961_s13 = inlined_call_operand.hbm [shape: f32[2,128], index: 13, kind: output, shape index: {}]  }
   0x1   :  { %v114_v0 = vld [vmem:[%s11949_s1 + $0x10] sm:$0x3]  ;;  %8047 = vset.pattern.permute.xlu1 %v11962_v2  ;;  %8036 = vset.pattern.permute.xlu0 %v11962_v2  ;;  %6496 = vst [vmem:[#allocation4] sm:$0xff] %v8144_v4 }
   0x2   :  { %v288_v1 = vunpack.c.l.b16 %v114_v0  ;;  %6497 = vst [vmem:[#allocation4 + $0x8] sm:$0xff] %v8144_v4  ;;  %8058 = vset.pattern.permute.xlu2 %v11962_v2  ;;  %v8227_v6 = vshrl.u32 %v885_v3, 7 }
   0x3   :  { %6498 = vst [vmem:[#allocation4 + $0x10] sm:$0xff] %v8144_v4 }
   0x4   :  { %v291_v5 = vpack.c.b16 %v288_v1, %v288_v1  ;;  %6499 = vst [vmem:[#allocation4 + $0x18] sm:$0xff] %v8144_v4 }
   0x6   :  { %v393_v7 = vsel %vm391_vm0, %v291_v5, 0 }
   0x7   :  { %18 = vsyncpa [#allocation6], 0  ;;  %400 = vmatpush.bf16.msra.mxu0 %v393_v7  ;;  %v7815_v8 = vld [vmem:[%s11949_s1 + $0x8] sm:$0xff]  ;;  %vm894_vm1 = vcmp.ne.s32.totalorder %v8227_v6, 0  ;;  %6500 = vst [vmem:[#allocation4 + $0x20] sm:$0xf] %v8144_v4 }
   0x8   :  { %v887_v9 = vadd.s32 8, %v8227_v6  ;;  %v8145_v10 = vmov 1.0   ;;  %vm850_vm2 = vcmask 1040384   ;;  %v8240_v12 = vsel %vm894_vm1, 1.0, %v8144_v4  ;;  %v7814_v15 = vld [vmem:[%s11949_s1] sm:$0xff]  ;;  %v7783_v21 = vld [vmem:[%s11948_s0 + $0x8] sm:$0xff] }
   0x9   :  { %v902_v11 = vrot.slane %v8145_v10, 7  ;;  %v8243_v13 = vrot.slane %v8240_v12, 7  ;;  %v7782_v20 = vld [vmem:[%s11948_s0] sm:$0xff]  ;;  %vm294_vm4 = vcmask 293888   ;;  %v7784_v22 = vld [vmem:[%s11948_s0 + $0x10] sm:$0xff]  ;;  %v7785_v23 = vld [vmem:[%s11948_s0 + $0x18] sm:$0xff] }
   0xa   :  { %vm889_vm3 = vcmp.ne.s32.totalorder %v887_v9, 8  ;;  %v907_v24 = vrot.slane %v8145_v10, 6  ;;  %v8275_v25 = vrot.slane %v8240_v12, 6  ;;  %v7786_v26 = vld [vmem:[%s11948_s0 + $0x20] sm:$0xff]  ;;  %v8281_v27 = vrot.slane %v8240_v12, 5  ;;  %v7787_v33 = vld [vmem:[%s11948_s0 + $0x28] sm:$0xff] }
   0xb   :  { %v8246_v14 = vsel %vm889_vm3, 1.0, %v8144_v4  ;;  %401 = vmatpush.bf16.msra.mxu0 %v7815_v8  ;;  %v984_v16 = vsel %vm850_vm2, 1.0, %v8243_v13  ;;  %vm912_vm5 = vcmask 1042432   ;;  %v952_v28 = vsel %vm850_vm2, %v8243_v13, %v902_v11  ;;  %v7788_v42 = vld [vmem:[%s11948_s0 + $0x30] sm:$0xff]  ;;  %v7789_v43 = vld [vmem:[%s11948_s0 + $0x38] sm:$0xff]  ;;  %v7790_v61 = vld [vmem:[%s11948_s0 + $0x40] sm:$0xff] }
   0xc   :  { %v941_v17 = vsel %vm850_vm2, %v8246_v14, %v902_v11  ;;  %v8037_v18 = vpack.i.bf16 %v984_v16, %v8240_v12  ;;  %v8287_v29 = vsel %vm391_vm0, %v8275_v25, %v907_v24  ;;  %v985_v30 = vsel %vm391_vm0, %v952_v28, %v8275_v25  ;;  %v8395_v60 = vld [vmem:[%s11950_s2] ss:$0 sm:$0xff]  ;;  %v7791_v7 = vld [vmem:[%s11948_s0 + $0x48] sm:$0xff]  ;;  %v7792_v16 = vld [vmem:[%s11948_s0 + $0x50] sm:$0xff]  ;;  %s8148_s19 = smov [#allocation5]   ;;  %s6671_s23 = sshll.u32 %s11961_s13, 4  ;;  %s6672_s23 = int_to_ptr.hbm [resolvable:$true] %s6671_s23 }
   0xd   :  { %v8048_v19 = vpack.i.bf16 %v941_v17, %v8145_v10  ;;  %v986_v31 = vsel %vm912_vm5, %v8287_v29, %v8281_v27  ;;  %v903_v34 = vrot.slane %v8246_v14, 7  ;;  %v908_v35 = vrot.slane %v8246_v14, 6  ;;  %v7816_v17 = vld [vmem:[%s11951_s3] sm:$0xff]  ;;  %s6669_s20 = sshll.u32 %s8148_s19, 4  ;;  %s6670_s20 = int_to_ptr.vmem [resolvable:$true] %s6669_s20 }
   0xe   :  { %8038 = vperm.xlu0 %8036, %v8037_v18   ;;  %v8042_v32 = vpack.i.bf16 %v986_v31, %v985_v30  ;;  %v913_v36 = vrot.slane %v8145_v10, 5  ;;  %vm628_vm6 = vcmask 261120   ;;  %v919_v44 = vrot.slane %v8145_v10, 4 }
   0xf   :  { %8049 = vperm.xlu1 %8047, %v8048_v19   ;;  %402 = vmatpush.bf16.msra.mxu0 %v7814_v15  ;;  %v904_v37 = vsel %vm850_vm2, %v902_v11, %v903_v34  ;;  %v8304_v38 = vsel %vm391_vm0, %v907_v24, %v908_v35  ;;  %629 = vst.msk [vmem:[#allocation2] sm:$0xff] %vm628_vm6, %v8144_v4  ;;  %v8357_v45 = vrot.slane %v8240_v12, 4  ;;  %v914_v46 = vrot.slane %v8246_v14, 5  ;;  %v7817_v11 = vld [vmem:[%s11951_s3 + $0x8] sm:$0xff] }
  0x10   :  { %v942_v39 = vsel %vm391_vm0, %v904_v37, %v907_v24  ;;  %v943_v40 = vsel %vm912_vm5, %v8304_v38, %v913_v36  ;;  %630 = vst.msk [vmem:[#allocation2 + $0x8] sm:$0xff] %vm628_vm6, %v8144_v4  ;;  %v920_v47 = vrot.slane %v8246_v14, 4  ;;  %vm918_vm7 = vcmask 1043456   ;;  %1694 = vmatpush.bf16.msra.mxu2 %v7817_v11 }
  0x11   :  { %v8059_v41 = vpack.i.bf16 %v943_v40, %v942_v39  ;;  %631 = vst.msk [vmem:[#allocation2 + $0x10] sm:$0xff] %vm628_vm6, %v8144_v4  ;;  %v8364_v48 = vrot.slane %v8240_v12, 3  ;;  %v8367_v49 = vrot.slane %v8145_v10, 3  ;;  %vm924_vm8 = vcmask 1044480  }
  0x12   :  { %6816 = vmatmul.msk.bf16.vlgmr.msra.gmra.mxu0 %vm294_vm4, %v7782_v20  ;;  %632 = vst.msk [vmem:[#allocation2 + $0x18] sm:$0xff] %vm628_vm6, %v8144_v4  ;;  %v962_v50 = vsel %vm912_vm5, %v8281_v27, %v913_v36  ;;  %v967_v51 = vsel %vm918_vm7, %v8357_v45, %v919_v44  ;;  %v915_v52 = vsel %vm912_vm5, %v913_v36, %v914_v46  ;;  %v7793_v36 = vld [vmem:[%s11948_s0 + $0x58] sm:$0xff]  ;;  %vm930_vm9 = vcmask 1045504  }
  0x13   :  { %8060 = vperm.xlu2 %8058, %v8059_v41   ;;  %633 = vst.msk [vmem:[#allocation2 + $0x20] sm:$0xff] %vm628_vm6, %v8144_v4  ;;  %v987_v53 = vsel %vm918_vm7, %v962_v50, %v8357_v45  ;;  %v988_v54 = vsel %vm924_vm8, %v967_v51, %v8364_v48  ;;  %v921_v55 = vsel %vm918_vm7, %v919_v44, %v920_v47  ;;  %v926_v51 = vrot.slane %v8246_v14, 3 }
  0x14   :  { %634 = vst.msk [vmem:[#allocation2 + $0x28] sm:$0xff] %vm628_vm6, %v8144_v4  ;;  %v944_v56 = vsel %vm918_vm7, %v915_v52, %v919_v44  ;;  %v8053_v57 = vpack.i.bf16 %v988_v54, %v987_v53  ;;  %v945_v58 = vsel %vm924_vm8, %v921_v55, %v8367_v49  ;;  %1695 = vmatpush.bf16.msra.mxu2 %v7816_v17  ;;  %v8479_v55 = vrot.slane %v8145_v10, 2 }
  0x15   :  { %635 = vst.msk [vmem:[#allocation2 + $0x30] sm:$0xff] %vm628_vm6, %v8144_v4  ;;  %v8069_v59 = vpack.i.bf16 %v945_v58, %v944_v56  ;;  %v927_v54 = vsel %vm924_vm8, %v8367_v49, %v926_v51  ;;  %vm936_vm10 = vcmask 1046528   ;;  %v8484_v58 = vrot.slane %v8145_v10, 1  ;;  %v7819_v51 = vld [vmem:[%s11951_s3 + $0x18] sm:$0xff] }
  0x16   :  { %8043 = vperm.xlu0 %8036, %v8042_v32   ;;  %636 = vst.msk [vmem:[#allocation2 + $0x38] sm:$0xff] %vm628_vm6, %v8144_v4  ;;  %1586 = vmatpush.bf16.msra.mxu1 %v7819_v51  ;;  %vm1448_vm11 = vsmask.f32 7424  ;;  %vm1914_vm12 = vsmask.f32 3328  ;;  %vm3257_vm15 = vcmp.ne.s32.totalorder %v8227_v6, 4 }
  0x17   :  { %637 = vst.msk [vmem:[#allocation2 + $0x40] sm:$0xff] %vm628_vm6, %v8144_v4  ;;  %8054 = vperm.xlu1 %8047, %v8053_v57   ;;  %vm1277_vm13 = vsmask.f32 2304  ;;  %vm12006_vm14 = vsmask.f32 6400  ;;  %vm669_vm1 = vcmask 257024  }
  0x18   :  { %638 = vst.msk [vmem:[#allocation2 + $0x48] sm:$0xff] %vm628_vm6, %v8144_v4  ;;  %vm9721_vm3 = vmand %vm912_vm5, %vm1277_vm13 }
  0x19   :  { %639 = vst.msk [vmem:[#allocation2 + $0x50] sm:$0xff] %vm628_vm6, %v8144_v4 }
  0x1a   :  { %640 = vst.msk [vmem:[#allocation2 + $0x58] sm:$0xff] %vm628_vm6, %v8144_v4 }
  0x1b   :  { %641 = vst.msk [vmem:[#allocation2 + $0x60] sm:$0xff] %vm628_vm6, %v8144_v4 }
  0x1c   :  { %642 = vst.msk [vmem:[#allocation2 + $0x68] sm:$0xff] %vm628_vm6, %v8144_v4 }
  0x1d   :  { %643 = vst.msk [vmem:[#allocation2 + $0x70] sm:$0xff] %vm628_vm6, %v8144_v4 }
  0x1e   :  { %644 = vst.msk [vmem:[#allocation2 + $0x78] sm:$0xff] %vm628_vm6, %v8144_v4  ;;  %8070 = vperm.xlu0 %8036, %v8069_v59   ;;  %v8487_v59 = vrot.slane %v8240_v12, 1 }
  0x1f   :  { %645 = vst.msk [vmem:[#allocation2 + $0x80] sm:$0xff] %vm628_vm6, %v8144_v4 }
  0x20   :  { %646 = vst.msk [vmem:[#allocation2 + $0x88] sm:$0xff] %vm628_vm6, %v8144_v4 }
  0x21   :  { %647 = vst.msk [vmem:[#allocation2 + $0x90] sm:$0xff] %vm628_vm6, %v8144_v4 }
  0x22   :  { %6817 = vmatmul.msk.bf16.gmra.mxu0 %vm294_vm4, %v7783_v21  ;;  %648 = vst.msk [vmem:[#allocation2 + $0x98] sm:$0xff] %vm628_vm6, %v8144_v4 }
  0x23   :  { %649 = vst.msk [vmem:[#allocation2 + $0xa0] sm:$0xff] %vm628_vm6, %v8144_v4 }
  0x24   :  { %650 = vst.msk [vmem:[#allocation2 + $0xa8] sm:$0xff] %vm628_vm6, %v8144_v4 }
  0x25   :  { %651 = vst.msk [vmem:[#allocation2 + $0xb0] sm:$0xff] %vm628_vm6, %v8144_v4 }
  0x26   :  { %652 = vst.msk [vmem:[#allocation2 + $0xb8] sm:$0xff] %vm628_vm6, %v8144_v4 }
  0x27   :  { %653 = vst.msk [vmem:[#allocation2 + $0xc0] sm:$0xff] %vm628_vm6, %v8144_v4 }
  0x28   :  { %654 = vst.msk [vmem:[#allocation2 + $0xc8] sm:$0xff] %vm628_vm6, %v8144_v4 }
  0x29   :  { %655 = vst.msk [vmem:[#allocation2 + $0xd0] sm:$0xff] %vm628_vm6, %v8144_v4 }
  0x2a   :  { %656 = vst.msk [vmem:[#allocation2 + $0xd8] sm:$0xff] %vm628_vm6, %v8144_v4 }
  0x2b   :  { %657 = vst.msk [vmem:[#allocation2 + $0xe0] sm:$0xff] %vm628_vm6, %v8144_v4 }
  0x2c   :  { %658 = vst.msk [vmem:[#allocation2 + $0xe8] sm:$0xff] %vm628_vm6, %v8144_v4 }
  0x2d   :  { %659 = vst.msk [vmem:[#allocation2 + $0xf0] sm:$0xff] %vm628_vm6, %v8144_v4 }
  0x2e   :  { %660 = vst.msk [vmem:[#allocation2 + $0xf8] sm:$0xff] %vm628_vm6, %v8144_v4 }
  0x2f   :  { %661 = vst.msk [vmem:[#allocation2 + $0x100] sm:$0xff] %vm628_vm6, %v8144_v4 }
  0x30   :  { %662 = vst.msk [vmem:[#allocation2 + $0x108] sm:$0xff] %vm628_vm6, %v8144_v4 }
  0x31   :  { %663 = vst.msk [vmem:[#allocation2 + $0x110] sm:$0xff] %vm628_vm6, %v8144_v4 }
  0x32   :  { %6818 = vmatmul.msk.bf16.gmra.mxu0 %vm294_vm4, %v7784_v22  ;;  %664 = vst.msk [vmem:[#allocation2 + $0x118] sm:$0xff] %vm628_vm6, %v8144_v4 }
  0x33   :  { %665 = vst.msk [vmem:[#allocation2 + $0x120] sm:$0xff] %vm628_vm6, %v8144_v4 }
  0x34   :  { %666 = vst.msk [vmem:[#allocation2 + $0x128] sm:$0xff] %vm628_vm6, %v8144_v4 }
  0x35   :  { %667 = vst.msk [vmem:[#allocation2 + $0x130] sm:$0xff] %vm628_vm6, %v8144_v4 }
  0x36   :  { %668 = vst.msk [vmem:[#allocation2 + $0x138] sm:$0xff] %vm628_vm6, %v8144_v4 }
  0x42   :  { %6819 = vmatmul.msk.bf16.gmra.mxu0 %vm294_vm4, %v7785_v23 }
  0x52   :  { %6820 = vmatmul.msk.bf16.gmra.mxu0 %vm294_vm4, %v7786_v26 }
  0x62   :  { %6821 = vmatmul.msk.bf16.gmra.mxu0 %vm294_vm4, %v7787_v33 }
  0x72   :  { %6822 = vmatmul.msk.bf16.gmra.mxu0 %vm294_vm4, %v7788_v42 }
  0x80   :  { %v8039_v35 = vpop.permute.xlu0 %8038 }
  0x81   :  { %v8050_v34 = vpop.permute.xlu1 %8049  ;;  %v8462_v41 = vunpack.i.l.bf16 %v8039_v35  ;;  %v8469_v44 = vunpack.i.h.bf16 %v8039_v35  ;;  %v7795_v35 = vld [vmem:[%s11948_s0 + $0x68] sm:$0xff] }
  0x82   :  { %6823 = vmatmul.msk.bf16.gmra.mxu0 %vm294_vm4, %v7789_v43  ;;  %v8460_v40 = vunpack.i.l.bf16 %v8050_v34  ;;  %v8465_v42 = vunpack.i.h.bf16 %v8050_v34  ;;  %v8521_v34 = vrot.slane %v8240_v12, 2 }
  0x8f   :  { %v404_v62 = vpop.f32.mrf.mxu0 }
  0x90   :  { %v405_v63 = vadd.f32 %v8395_v60, %v404_v62  ;;  %v946_v62 = vsel %vm930_vm9, %v927_v54, %v8479_v55  ;;  %v7796_v54 = vld [vmem:[%s11948_s0 + $0x70] sm:$0xff] }
  0x92   :  { %v564_v0 = vmax.f32 %v405_v63, 0.0  ;;  %6824 = vmatmul.msk.bf16.gmra.mxu0 %vm294_vm4, %v7790_v61 }
  0x94   :  { %671 = vst.msk [vmem:[#allocation2 + $0x1] sm:$0xff] %vm628_vm6, %v564_v0 }
  0x97   :  { %v406_v1 = vpop.f32.mrf.mxu0 }
  0x98   :  { %v407_v3 = vadd.f32 %v8395_v60, %v406_v1  ;;  %v982_v1 = vsel %vm936_vm10, %v8487_v59, %v8484_v58 }
  0x9a   :  { %v565_v5 = vmax.f32 %v407_v3, 0.0  ;;  %v8074_v3 = vpack.i.bf16 %v946_v62, %v982_v1  ;;  %v7820_v62 = vld [vmem:[%s11951_s3 + $0x20] sm:$0xff]  ;;  %v938_v1 = vrot.slane %v8246_v14, 1 }
  0x9c   :  { %672 = vst.msk [vmem:[#allocation2 + $0x9] sm:$0xff] %vm628_vm6, %v565_v5  ;;  %8075 = vperm.xlu1 %8047, %v8074_v3  }
  0x9f   :  { %v409_v8 = vpop.f32.mrf.mxu0 }
  0xa0   :  { %v410_v15 = vadd.f32 %v8395_v60, %v409_v8 }
  0xa2   :  { %6825 = vmatmul.msk.bf16.gmra.mxu0 %vm294_vm4, %v7791_v7  ;;  %v566_v20 = vmax.f32 %v410_v15, 0.0  ;;  %v7794_v15 = vld [vmem:[%s11948_s0 + $0x60] sm:$0xff] }
  0xa3   :  { %v735_v32 = vld [vmem:[#allocation2] ss:$2 sm:$0xff]  ;;  %v777_v33 = vld [vmem:[#allocation2 + $0x1] ss:$2 sm:$0xff] }
  0xa4   :  { %v8458_v39 = vmax.f32 %v735_v32, %v777_v33  ;;  %1148 = vperm.xlu1 %8047, %v8287_v29  }
  0xa6   :  { %v1060_v43 = vmul.f32 %v8460_v40, %v8458_v39  ;;  %v1151_v46 = vmul.f32 %v8462_v41, %v8458_v39 }
  0xa7   :  { %v411_v9 = vpop.f32.mrf.mxu0 }
  0xa8   :  { %v412_v23 = vadd.f32 %v8395_v60, %v411_v9  ;;  %v1082_v57 = vpack.c.bf16 %v1060_v43, %v1060_v43  ;;  %v1173_v61 = vpack.c.bf16 %v1151_v46, %v1151_v46 }
  0xaa   :  { %v567_v28 = vmax.f32 %v412_v23, 0.0  ;;  %v1217_v7 = vunpack.c.l.b16 %v1082_v57  ;;  %v8496_v8 = vunpack.c.l.b16 %v1173_v61  ;;  %v7818_v61 = vld [vmem:[%s11951_s3 + $0x10] sm:$0xff] }
  0xab   :  { %1587 = vmatpush.bf16.msra.mxu1 %v7818_v61 }
  0xaf   :  { %v414_v18 = vpop.f32.mrf.mxu0 }
  0xb0   :  { %v415_v19 = vadd.f32 %v8395_v60, %v414_v18 }
  0xb2   :  { %v568_v21 = vmax.f32 %v415_v19, 0.0  ;;  %6826 = vmatmul.msk.bf16.gmra.mxu0 %vm294_vm4, %v7792_v16 }
  0xb4   :  { %v673_v22 = vmax.f32 %v566_v20, %v568_v21 }
  0xb6   :  { %675 = vst.msk [vmem:[#allocation2 + $0x13] sm:$0xff] %vm628_vm6, %v673_v22 }
  0xb7   :  { %v416_v24 = vpop.f32.mrf.mxu0 }
  0xb8   :  { %v417_v26 = vadd.f32 %v8395_v60, %v416_v24 }
  0xba   :  { %v569_v30 = vmax.f32 %v417_v26, 0.0 }
  0xbc   :  { %v674_v31 = vmax.f32 %v567_v28, %v569_v30 }
  0xbe   :  { %676 = vst.msk [vmem:[#allocation2 + $0x1b] sm:$0xff] %vm628_vm6, %v674_v31 }
  0xbf   :  { %v419_v37 = vpop.f32.mrf.mxu0 }
  0xc0   :  { %v420_v11 = vadd.f32 %v8395_v60, %v419_v37  ;;  %v977_v37 = vsel %vm930_vm9, %v8521_v34, %v8479_v55 }
  0xc1   :  { %v990_v46 = vsel %vm936_vm10, %v977_v37, %v8487_v59  ;;  %v932_v37 = vrot.slane %v8246_v14, 2 }
  0xc2   :  { %6827 = vmatmul.msk.bf16.gmra.mxu0 %vm294_vm4, %v7793_v36  ;;  %v570_v21 = vmax.f32 %v420_v11, 0.0  ;;  %v972_v36 = vsel %vm924_vm8, %v8364_v48, %v8367_v49  ;;  %v7821_v49 = vld [vmem:[%s11951_s3 + $0x28] sm:$0xff] }
  0xc3   :  { %v989_v43 = vsel %vm930_vm9, %v972_v36, %v8521_v34  ;;  %1830 = vmatpush.bf16.msra.mxu3 %v7821_v49 }
  0xc5   :  { %v737_v47 = vld [vmem:[#allocation2 + $0x10] ss:$2 sm:$0xff]  ;;  %v779_v50 = vld [vmem:[#allocation2 + $0x11] ss:$2 sm:$0xff] }
  0xc6   :  { %v8474_v52 = vmax.f32 %v737_v47, %v779_v50  ;;  %v8064_v47 = vpack.i.bf16 %v990_v46, %v989_v43 }
  0xc7   :  { %v421_v53 = vpop.f32.mrf.mxu0  ;;  %1831 = vmatpush.bf16.msra.mxu3 %v7820_v62 }
  0xc8   :  { %v1061_v56 = vmul.f32 %v8465_v42, %v8474_v52  ;;  %v1152_v63 = vmul.f32 %v8469_v44, %v8474_v52  ;;  %v422_v26 = vadd.f32 %v8395_v60, %v421_v53  ;;  %8065 = vperm.xlu2 %8058, %v8064_v47  }
  0xca   :  { %v1083_v0 = vpack.c.bf16 %v1061_v56, %v1061_v56  ;;  %v1174_v5 = vpack.c.bf16 %v1152_v63, %v1152_v63  ;;  %v571_v31 = vmax.f32 %v422_v26, 0.0 }
  0xcc   :  { %v1218_v10 = vunpack.c.l.b16 %v1083_v0  ;;  %v8498_v9 = vunpack.c.l.b16 %v1174_v5  ;;  %v939_v5 = vsel %vm936_vm10, %v8484_v58, %v938_v1 }
  0xcd   :  { %1053 = vperm.xlu0 %8036, %v939_v5  }
  0xce   :  { %v1239_v16 = vpack.c.b16 %v1218_v10, %v1217_v7  ;;  %v1404_v18 = vpack.c.b16 %v8498_v9, %v8496_v8  ;;  %v992_v7 = vpack.c.bf16 %v8474_v52, %v8474_v52  ;;  %v991_v10 = vpack.c.bf16 %v8458_v39, %v8458_v39  ;;  %v7797_v39 = vld [vmem:[%s11948_s0 + $0x78] sm:$0xff] }
  0xcf   :  { %v424_v17 = vpop.f32.mrf.mxu0 }
  0xd0   :  { %v425_v19 = vadd.f32 %v8395_v60, %v424_v17  ;;  %v8507_v20 = vrot.slane %v1239_v16, 3  ;;  %v1303_v17 = vunpack.c.l.b16 %v992_v7  ;;  %v1415_v47 = vrot.slane %v1404_v18, 3 }
  0xd2   :  { %v572_v22 = vmax.f32 %v425_v19, 0.0  ;;  %6828 = vmatmul.msk.bf16.gmra.mxu0 %vm294_vm4, %v7794_v15  ;;  %v8512_v23 = vsel %vm924_vm8, 0, %v8507_v20  ;;  %v8598_v62 = vsel %vm924_vm8, 0, %v1415_v47 }
  0xd3   :  { %6877 = vmatmul.msk.bf16.vlgmr.msra.gmra.mxu2 %vm628_vm6, %v8512_v23 }
  0xd4   :  { %v677_v24 = vmax.f32 %v570_v21, %v572_v22  ;;  %v1302_v22 = vunpack.c.l.b16 %v991_v10 }
  0xd6   :  { %679 = vst.msk [vmem:[#allocation2 + $0x25] sm:$0xff] %vm628_vm6, %v677_v24  ;;  %v8566_v24 = vpop.permute.xlu0 %8043 }
  0xd7   :  { %v426_v28 = vpop.f32.mrf.mxu0  ;;  %v11967_v43 = vunpack.i.h.bf16 %v8566_v24 }
  0xd8   :  { %v427_v30 = vadd.f32 %v8395_v60, %v426_v28 }
  0xda   :  { %v573_v32 = vmax.f32 %v427_v30, 0.0  ;;  %v1324_v30 = vpack.c.b16 %v1303_v17, %v1302_v22  ;;  %v2306_v17 = vshrl.u32 %v8598_v62, 16 }
  0xdc   :  { %v678_v33 = vmax.f32 %v571_v31, %v573_v32  ;;  %v8568_v31 = vpop.permute.xlu2 %8060  ;;  %v8575_v32 = vunpack.i.l.bf16 %v8566_v24  ;;  %v1335_v36 = vrot.slane %v1324_v30, 3  ;;  %v1758_v30 = vrot.slane %v8598_v62, 1 }
  0xde   :  { %680 = vst.msk [vmem:[#allocation2 + $0x2d] sm:$0xff] %vm628_vm6, %v678_v33  ;;  %v8590_v49 = vsel %vm924_vm8, 0, %v1335_v36 }
  0xdf   :  { %v429_v29 = vpop.f32.mrf.mxu0  ;;  %v1451_v18 = vshll.u32 %v8590_v49, 16 }
  0xe0   :  { %v430_v53 = vadd.f32 %v8395_v60, %v429_v29  ;;  %v8578_v29 = vunpack.i.l.bf16 %v8568_v31 }
  0xe2   :  { %6829 = vmatmul.msk.bf16.gmra.mxu0 %vm294_vm4, %v7795_v35  ;;  %v574_v63 = vmax.f32 %v430_v53, 0.0  ;;  %v933_v53 = vsel %vm930_vm9, %v8479_v55, %v932_v37 }
  0xe5   :  { %v739_v26 = vld [vmem:[#allocation2 + $0x20] ss:$2 sm:$0xff]  ;;  %v781_v28 = vld [vmem:[#allocation2 + $0x21] ss:$2 sm:$0xff] }
  0xe6   :  { %v820_v33 = vmax.f32 %v739_v26, %v781_v28 }
  0xe7   :  { %v431_v50 = vpop.f32.mrf.mxu0 }
  0xe8   :  { %v432_v11 = vadd.f32 %v8395_v60, %v431_v50  ;;  %v1153_v46 = vmul.f32 %v8575_v32, %v820_v33  ;;  %v11968_v50 = vunpack.i.h.bf16 %v8568_v31  ;;  %v1062_v51 = vmul.f32 %v8578_v29, %v820_v33 }
  0xea   :  { %v575_v19 = vmax.f32 %v432_v11, 0.0  ;;  %v1175_v8 = vpack.c.bf16 %v1153_v46, %v1153_v46  ;;  %v1918_v11 = vshll.u32 %v8512_v23, 16 }
  0xef   :  { %v434_v56 = vpop.f32.mrf.mxu0 }
  0xf0   :  { %v435_v57 = vadd.f32 %v8395_v60, %v434_v56  ;;  %v947_v56 = vsel %vm936_vm10, %v933_v53, %v8484_v58  ;;  %v1915_v58 = vshrl.u32 %v8512_v23, 16  ;;  %v7798_v23 = vld [vmem:[%s11948_s0 + $0x80] sm:$0xff]  ;;  %v1920_v53 = vrot.slane %v1918_v11, 5 }
  0xf1   :  { %1049 = vperm.xlu2 %8058, %v947_v56   ;;  %v2309_v56 = vshll.u32 %v8598_v62, 16 }
  0xf2   :  { %v576_v0 = vmax.f32 %v435_v57, 0.0  ;;  %6830 = vmatmul.msk.bf16.gmra.mxu0 %vm294_vm4, %v7796_v54  ;;  %v993_v57 = vpack.c.bf16 %v820_v33, %v820_v33  ;;  %v1917_v33 = vrot.slane %v1915_v58, 4 }
  0xf4   :  { %v681_v3 = vmax.f32 %v574_v63, %v576_v0  ;;  %v1084_v63 = vpack.c.bf16 %v1062_v51, %v1062_v51 }
  0xf6   :  { %683 = vst.msk [vmem:[#allocation2 + $0x37] sm:$0xff] %vm628_vm6, %v681_v3  ;;  %v1304_v3 = vunpack.c.l.b16 %v993_v57 }
  0xf7   :  { %v436_v15 = vpop.f32.mrf.mxu0 }
  0xf8   :  { %v437_v16 = vadd.f32 %v8395_v60, %v436_v15  ;;  %v1384_v15 = vunpack.c.l.b16 %v1175_v8 }
  0xf9   :  { %1057 = vperm.xlu2 %8058, %v8304_v38  }
  0xfa   :  { %v577_v21 = vmax.f32 %v437_v16, 0.0  ;;  %v1453_v16 = vrot.slane %v1451_v18, 1 }
  0xfc   :  { %v682_v52 = vmax.f32 %v575_v19, %v577_v21  ;;  %v1219_v19 = vunpack.c.l.b16 %v1084_v63 }
  0xfd   :  { %v741_v54 = vld [vmem:[#allocation2 + $0x30] ss:$2 sm:$0xff] }
  0xfe   :  { %684 = vst.msk [vmem:[#allocation2 + $0x3f] sm:$0xff] %vm628_vm6, %v682_v52  ;;  %v1449_v52 = vshrl.u32 %v8590_v49, 16 }
  0xff   :  { %v439_v35 = vpop.f32.mrf.mxu0 }
 0x100   :  { %v440_v28 = vadd.f32 %v8395_v60, %v439_v35  ;;  %v1454_v35 = vor.u32 %v1453_v16, %v1449_v52  ;;  %v2311_v52 = vrot.slane %v2309_v56, 6 }
 0x102   :  { %6831 = vmatmul.msk.bf16.gmra.mxu0 %vm294_vm4, %v7797_v39  ;;  %v2148_v39 = vrot.slane %v8590_v49, 5  ;;  %v578_v18 = vmax.f32 %v440_v28, 0.0 }
 0x105   :  { %v783_v14 = vld [vmem:[#allocation2 + $0x31] ss:$2 sm:$0xff] }
 0x106   :  { %v821_v61 = vmax.f32 %v741_v54, %v783_v14  ;;  %v2308_v14 = vrot.slane %v2306_v17, 5 }
 0x107   :  { %v441_v9 = vpop.f32.mrf.mxu0 }
 0x108   :  { %v1063_v0 = vmul.f32 %v11968_v50, %v821_v61  ;;  %v994_v55 = vpack.c.bf16 %v821_v61, %v821_v61  ;;  %v1154_v1 = vmul.f32 %v11967_v43, %v821_v61 }
 0x10a   :  { %v1085_v5 = vpack.c.bf16 %v1063_v0, %v1063_v0  ;;  %v1305_v7 = vunpack.c.l.b16 %v994_v55  ;;  %v1176_v10 = vpack.c.bf16 %v1154_v1, %v1154_v1 }
 0x10c   :  { %v1220_v21 = vunpack.c.l.b16 %v1085_v5  ;;  %v1325_v22 = vpack.c.b16 %v1305_v7, %v1304_v3  ;;  %v1385_v26 = vunpack.c.l.b16 %v1176_v10  ;;  %v442_v10 = vadd.f32 %v8395_v60, %v441_v9 }
 0x10e   :  { %v1240_v37 = vpack.c.b16 %v1220_v21, %v1219_v19  ;;  %v8614_v46 = vrot.slane %v1325_v22, 3  ;;  %v1405_v51 = vpack.c.b16 %v1385_v26, %v1384_v15  ;;  %v1921_v22 = vor.u32 %v1920_v53, %v1917_v33 }
 0x10f   :  { %v444_v54 = vpop.f32.mrf.mxu0  ;;  %v2312_v33 = vor.u32 %v2311_v52, %v2308_v14  ;;  %v7800_v14 = vld [vmem:[%s11948_s0 + $0x90] sm:$0xff] }
 0x110   :  { %v445_v57 = vadd.f32 %v8395_v60, %v444_v54  ;;  %v8619_v49 = vrot.slane %v1240_v37, 3  ;;  %v8623_v61 = vsel %vm924_vm8, %v1335_v36, %v8614_v46  ;;  %v8625_v8 = vrot.slane %v1405_v51, 3 }
 0x111   :  { %v1456_v38 = vshll.u32 %v8623_v61, 16  ;;  %v1460_v63 = vshrl.u32 %v8623_v61, 16  ;;  %v2149_v55 = vrot.slane %v8623_v61, 5  ;;  %v579_v54 = vmax.f32 %v442_v10, 0.0  ;;  %v7802_v61 = vld [vmem:[%s11948_s0 + $0xa0] sm:$0xff] }
 0x112   :  { %v580_v0 = vmax.f32 %v445_v57, 0.0  ;;  %6832 = vmatmul.msk.bf16.gmra.mxu0 %vm294_vm4, %v7798_v23  ;;  %v8633_v62 = vsel %vm924_vm8, %v8507_v20, %v8619_v49  ;;  %v8637_v36 = vsel %vm924_vm8, %v1415_v47, %v8625_v8 }
 0x113   :  { %6878 = vmatmul.msk.bf16.gmra.mxu2 %vm628_vm6, %v8633_v62  ;;  %v1922_v1 = vshrl.u32 %v8633_v62, 16  ;;  %v1925_v58 = vshll.u32 %v8633_v62, 16  ;;  %v8644_v3 = vrot.slane %v1456_v38, 1  ;;  %v8646_v7 = vrot.slane %v1456_v38, 2 }
 0x114   :  { %v685_v5 = vmax.f32 %v578_v18, %v580_v0  ;;  %v1759_v20 = vrot.slane %v8637_v36, 1  ;;  %v8651_v47 = vrot.slane %v1460_v63, 1  ;;  %v8666_v9 = vsel %vm912_vm5, %v2148_v39, %v2149_v55  ;;  %v7799_v18 = vld [vmem:[%s11948_s0 + $0x88] sm:$0xff] }
 0x115   :  { %v1924_v11 = vrot.slane %v1922_v1, 4  ;;  %v1927_v15 = vrot.slane %v1925_v58, 5  ;;  %v1459_v16 = vsel %vm1448_vm11, %v1454_v35, %v8644_v3  ;;  %v2314_v21 = vshrl.u32 %v8637_v36, 16 }
 0x116   :  { %687 = vst.msk [vmem:[#allocation2 + $0x49] sm:$0xff] %vm628_vm6, %v685_v5  ;;  %6858 = vmatmul.msk.bf16.vlgmr.msra.gmra.mxu1 %vm628_vm6, %v1459_v16  ;;  %v1760_v17 = vsel %vm936_vm10, %v1758_v30, %v1759_v20  ;;  %v2707_v19 = vor.u32 %v8646_v7, %v8651_v47  ;;  %v2317_v23 = vshll.u32 %v8637_v36, 16  ;;  %v2548_v43 = vrot.slane %v8633_v62, 1 }
 0x117   :  { %6896 = vmatmul.msk.bf16.vlgmr.msra.gmra.mxu3 %vm628_vm6, %v1760_v17  ;;  %v446_v26 = vpop.f32.mrf.mxu0  ;;  %v8670_v28 = vor.u32 %v1927_v15, %v1924_v11  ;;  %v2316_v37 = vrot.slane %v2314_v21, 5  ;;  %v8695_v15 = vpop.permute.xlu1 %8054 }
 0x118   :  { %v447_v30 = vadd.f32 %v8395_v60, %v446_v26  ;;  %v2319_v39 = vrot.slane %v2317_v23, 6  ;;  %v11964_v52 = vunpack.i.l.bf16 %v8695_v15 }
 0x119   :  { %v8676_v51 = vsel %vm1914_vm12, %v1921_v22, %v8670_v28  ;;  %v8697_v22 = vpop.permute.xlu0 %8070 }
 0x11a   :  { %v581_v35 = vmax.f32 %v447_v30, 0.0  ;;  %v8678_v53 = vor.u32 %v2319_v39, %v2316_v37  ;;  %v11965_v37 = vunpack.i.l.bf16 %v8697_v22 }
 0x11c   :  { %v686_v57 = vmax.f32 %v579_v54, %v581_v35  ;;  %v8682_v56 = vsel %vm1277_vm13, %v2312_v33, %v8678_v53 }
 0x11d   :  { %v743_v16 = vld [vmem:[#allocation2 + $0x40] ss:$2 sm:$0xff]  ;;  %v785_v17 = vld [vmem:[#allocation2 + $0x41] ss:$2 sm:$0xff] }
 0x11e   :  { %688 = vst.msk [vmem:[#allocation2 + $0x51] sm:$0xff] %vm628_vm6, %v686_v57  ;;  %v822_v23 = vmax.f32 %v743_v16, %v785_v17  ;;  %v11971_v57 = vunpack.i.h.bf16 %v8695_v15 }
 0x11f   :  { %v449_v38 = vpop.f32.mrf.mxu0 }
 0x120   :  { %v450_v1 = vadd.f32 %v8395_v60, %v449_v38  ;;  %v1155_v33 = vmul.f32 %v11964_v52, %v822_v23  ;;  %v1064_v38 = vmul.f32 %v11965_v37, %v822_v23 }
 0x122   :  { %6833 = vmatmul.msk.bf16.gmra.mxu0 %vm294_vm4, %v7799_v18  ;;  %v582_v10 = vmax.f32 %v450_v1, 0.0  ;;  %v11966_v18 = vunpack.i.h.bf16 %v8697_v22  ;;  %v1086_v17 = vpack.c.bf16 %v1064_v38, %v1064_v38 }
 0x124   :  { %v1221_v2 = vunpack.c.l.b16 %v1086_v17 }
 0x127   :  { %v451_v0 = vpop.f32.mrf.mxu0 }
 0x128   :  { %v452_v26 = vadd.f32 %v8395_v60, %v451_v0 }
 0x12a   :  { %v583_v54 = vmax.f32 %v452_v26, 0.0 }
 0x12f   :  { %v454_v58 = vpop.f32.mrf.mxu0 }
 0x130   :  { %v455_v5 = vadd.f32 %v8395_v60, %v454_v58  ;;  %v995_v58 = vpack.c.bf16 %v822_v23, %v822_v23 }
 0x132   :  { %v584_v11 = vmax.f32 %v455_v5, 0.0  ;;  %6834 = vmatmul.msk.bf16.gmra.mxu0 %vm294_vm4, %v7800_v14  ;;  %v7801_v5 = vld [vmem:[%s11948_s0 + $0x98] sm:$0xff] }
 0x134   :  { %v689_v21 = vmax.f32 %v582_v10, %v584_v11  ;;  %v1177_v11 = vpack.c.bf16 %v1155_v33, %v1155_v33 }
 0x136   :  { %691 = vst.msk [vmem:[#allocation2 + $0x5b] sm:$0xff] %vm628_vm6, %v689_v21 }
 0x137   :  { %v456_v30 = vpop.f32.mrf.mxu0 }
 0x138   :  { %v457_v39 = vadd.f32 %v8395_v60, %v456_v30 }
 0x13a   :  { %v585_v35 = vmax.f32 %v457_v39, 0.0  ;;  %v1306_v39 = vunpack.c.l.b16 %v995_v58 }
 0x13c   :  { %v690_v0 = vmax.f32 %v583_v54, %v585_v35 }
 0x13d   :  { %v745_v1 = vld [vmem:[#allocation2 + $0x50] ss:$2 sm:$0xff]  ;;  %v787_v14 = vld [vmem:[#allocation2 + $0x51] ss:$2 sm:$0xff] }
 0x13e   :  { %692 = vst.msk [vmem:[#allocation2 + $0x63] sm:$0xff] %vm628_vm6, %v690_v0  ;;  %v823_v10 = vmax.f32 %v745_v1, %v787_v14  ;;  %v1386_v0 = vunpack.c.l.b16 %v1177_v11 }
 0x13f   :  { %v459_v16 = vpop.f32.mrf.mxu0 }
 0x140   :  { %v1065_v21 = vmul.f32 %v11966_v18, %v823_v10  ;;  %v996_v26 = vpack.c.bf16 %v823_v10, %v823_v10  ;;  %v1156_v30 = vmul.f32 %v11971_v57, %v823_v10  ;;  %v1462_v10 = vor.u32 %v1460_v63, %v8644_v3 }
 0x141   :  { %v460_v62 = vadd.f32 %v8395_v60, %v459_v16 }
 0x142   :  { %6835 = vmatmul.msk.bf16.gmra.mxu0 %vm294_vm4, %v7801_v5  ;;  %v1087_v23 = vpack.c.bf16 %v1065_v21, %v1065_v21  ;;  %v1307_v54 = vunpack.c.l.b16 %v996_v26  ;;  %v1178_v35 = vpack.c.bf16 %v1156_v30, %v1156_v30 }
 0x144   :  { %v1222_v52 = vunpack.c.l.b16 %v1087_v23  ;;  %v1326_v1 = vpack.c.b16 %v1307_v54, %v1306_v39  ;;  %v1387_v33 = vunpack.c.l.b16 %v1178_v35 }
 0x146   :  { %v1241_v14 = vpack.c.b16 %v1222_v52, %v1221_v2  ;;  %v8719_v38 = vrot.slane %v1326_v1, 3  ;;  %v1406_v37 = vpack.c.b16 %v1387_v33, %v1386_v0 }
 0x147   :  { %v461_v18 = vpop.f32.mrf.mxu0 }
 0x148   :  { %v8722_v50 = vrot.slane %v1241_v14, 3  ;;  %v8727_v58 = vsel %vm924_vm8, %v8614_v46, %v8719_v38  ;;  %v8729_v5 = vrot.slane %v1406_v37, 3 }
 0x149   :  { %v1464_v2 = vshll.u32 %v8727_v58, 16  ;;  %v1468_v52 = vshrl.u32 %v8727_v58, 16  ;;  %v2151_v11 = vrot.slane %v8727_v58, 5 }
 0x14a   :  { %v8741_v17 = vsel %vm924_vm8, %v8619_v49, %v8722_v50  ;;  %v8746_v46 = vsel %vm924_vm8, %v8625_v8, %v8729_v5 }
 0x14b   :  { %6879 = vmatmul.msk.bf16.gmra.mxu2 %vm628_vm6, %v8741_v17  ;;  %v1930_v63 = vshrl.u32 %v8741_v17, 16  ;;  %v1933_v3 = vshll.u32 %v8741_v17, 16  ;;  %v2549_v37 = vrot.slane %v8741_v17, 1  ;;  %v1466_v16 = vrot.slane %v1464_v2, 1 }
 0x14c   :  { %v2709_v21 = vrot.slane %v1464_v2, 2  ;;  %v1761_v49 = vrot.slane %v8746_v46, 1  ;;  %v2708_v26 = vrot.slane %v1468_v52, 1  ;;  %v8759_v8 = vsel %vm912_vm5, %v2149_v55, %v2151_v11 }
 0x14d   :  { %v1932_v30 = vrot.slane %v1930_v63, 4  ;;  %v1935_v39 = vrot.slane %v1933_v3, 5  ;;  %v1467_v23 = vsel %vm1448_vm11, %v1462_v10, %v1466_v16  ;;  %v8762_v54 = vor.u32 %v1468_v52, %v1466_v16 }
 0x14e   :  { %6859 = vmatmul.msk.bf16.gmra.mxu1 %vm628_vm6, %v1467_v23  ;;  %v1762_v35 = vsel %vm936_vm10, %v1759_v20, %v1761_v49  ;;  %v8773_v55 = vor.u32 %v2709_v21, %v2708_v26  ;;  %v2323_v0 = vshrl.u32 %v8746_v46, 16  ;;  %v2326_v1 = vshll.u32 %v8746_v46, 16 }
 0x14f   :  { %6897 = vmatmul.msk.bf16.gmra.mxu3 %vm628_vm6, %v1762_v35  ;;  %v464_v33 = vpop.f32.mrf.mxu0  ;;  %v8778_v14 = vor.u32 %v1935_v39, %v1932_v30  ;;  %v8783_v10 = vsel %vm936_vm10, %v2548_v43, %v2549_v37  ;;  %v2890_v20 = vrot.slane %v8637_v36, 2  ;;  %v2891_v2 = vrot.slane %v8746_v46, 2 }
 0x150   :  { %12010 = vst [vmem:[#allocation8_spill] sm:$0xff] %v8783_v10  ;;  %v465_v52 = vadd.f32 %v8395_v60, %v464_v33  ;;  %v2325_v63 = vrot.slane %v2323_v0, 5  ;;  %v2328_v3 = vrot.slane %v2326_v1, 6  ;;  %v8793_v16 = vsel %vm12006_vm14, %v2707_v19, %v8773_v55 }
 0x151   :  { %12011 = vst [vmem:[#allocation9_spill] sm:$0xff] %v8793_v16  ;;  %v8798_v43 = vsel %vm1914_vm12, %v8670_v28, %v8778_v14  ;;  %v8803_v36 = vsel %vm930_vm9, %v2890_v20, %v2891_v2  ;;  %v586_v21 = vmax.f32 %v460_v62, 0.0  ;;  %v462_v19 = vadd.f32 %v8395_v60, %v461_v18 }
 0x152   :  { %12012 = vst [vmem:[#allocation10_spill] sm:$0xff] %v8803_v36  ;;  %v588_v26 = vmax.f32 %v465_v52, 0.0  ;;  %6836 = vmatmul.msk.bf16.gmra.mxu0 %vm294_vm4, %v7802_v61  ;;  %v8806_v30 = vor.u32 %v2328_v3, %v2325_v63  ;;  %v7803_v61 = vld [vmem:[%s11948_s0 + $0xa8] sm:$0xff] }
 0x153   :  { %v587_v23 = vmax.f32 %v462_v19, 0.0 }
 0x154   :  { %v693_v7 = vmax.f32 %v586_v21, %v588_v26  ;;  %v8811_v47 = vsel %vm1277_vm13, %v8678_v53, %v8806_v30  ;;  %v8823_v53 = vsel %vm3257_vm15, 1.0, %v8144_v4  ;;  %vm12008_vm15 = vcmask 517120  }
 0x155   :  { %v3261_v18 = vrot.slane %v8823_v53, 3  ;;  %v11972_v1 = vrot.slane %v8823_v53, 2  ;;  %v3273_v33 = vrot.slane %v8823_v53, 5  ;;  %v3263_v20 = vrot.slane %v8823_v53, 6 }
 0x156   :  { %695 = vst.msk [vmem:[#allocation2 + $0x6d] sm:$0xff] %vm628_vm6, %v693_v7  ;;  %v3265_v52 = vrot.slane %v8823_v53, 1  ;;  %v11973_v63 = vrot.slane %v8823_v53, 4 }
 0x157   :  { %v466_v28 = vpop.f32.mrf.mxu0  ;;  %v3275_v6 = vsel %vm924_vm8, %v8823_v53, %v3261_v18  ;;  %v3281_v4 = vsel %vm912_vm5, %v11972_v1, %v3273_v33  ;;  %v3276_v21 = vsel %vm391_vm0, %v3261_v18, %v3263_v20  ;;  %v3285_v33 = vsel %vm918_vm7, %v8487_v59, %v8357_v45 }
 0x158   :  { %v467_v39 = vadd.f32 %v8395_v60, %v466_v28  ;;  %v3278_v26 = vsel %vm918_vm7, %v3265_v52, %v11973_v63  ;;  %v8079_v7 = vpack.i.bf16 %v3281_v4, %v3275_v6  ;;  %v3277_v28 = vsel %vm936_vm10, %v3276_v21, %v3265_v52 }
 0x159   :  { %v8084_v19 = vpack.i.bf16 %v3278_v26, %v3276_v21  ;;  %v8860_v21 = vpop.permute.xlu2 %8065  ;;  %vm3106_vm7 = vcmask 516096  }
 0x15a   :  { %v589_v62 = vmax.f32 %v467_v39, 0.0  ;;  %8080 = vperm.xlu0 %8036, %v8079_v7   ;;  %v3282_v39 = vsel %vm924_vm8, %v8240_v12, %v8364_v48 }
 0x15b   :  { %8085 = vperm.xlu1 %8047, %v8084_v19  }
 0x15c   :  { %v694_v35 = vmax.f32 %v587_v23, %v589_v62  ;;  %v3283_v23 = vsel %vm391_vm0, %v8364_v48, %v8275_v25  ;;  %v8858_v48 = vpop.permute.xlu1 %8075 }
 0x15d   :  { %v3284_v18 = vsel %vm936_vm10, %v3283_v23, %v8487_v59  ;;  %v789_v4 = vld [vmem:[#allocation2 + $0x61] ss:$2 sm:$0xff]  ;;  %v3288_v59 = vsel %vm912_vm5, %v8521_v34, %v8281_v27  ;;  %v11970_v19 = vunpack.i.h.bf16 %v8858_v48  ;;  %v11974_v27 = vunpack.i.h.bf16 %v8860_v21 }
 0x15e   :  { %696 = vst.msk [vmem:[#allocation2 + $0x75] sm:$0xff] %vm628_vm6, %v694_v35  ;;  %v7804_v35 = vld [vmem:[%s11948_s0 + $0xb0] sm:$0xff]  ;;  %v8094_v12 = vpack.i.bf16 %v3285_v33, %v3284_v18 }
 0x15f   :  { %v469_v0 = vpop.f32.mrf.mxu0 }
 0x160   :  { %v470_v62 = vadd.f32 %v8395_v60, %v469_v0  ;;  %v747_v0 = vld [vmem:[#allocation2 + $0x60] ss:$2 sm:$0xff] }
 0x162   :  { %6837 = vmatmul.msk.bf16.gmra.mxu0 %vm294_vm4, %v7803_v61  ;;  %v8089_v61 = vpack.i.bf16 %v3282_v39, %v3277_v28  ;;  %v590_v6 = vmax.f32 %v470_v62, 0.0  ;;  %v824_v28 = vmax.f32 %v747_v0, %v789_v4  ;;  %v11969_v39 = vunpack.i.l.bf16 %v8860_v21  ;;  %v7805_v4 = vld [vmem:[%s11948_s0 + $0xb8] sm:$0xff] }
 0x163   :  { %8095 = vperm.xlu1 %8047, %v8094_v12  }
 0x164   :  { %8090 = vperm.xlu0 %8036, %v8089_v61  }
 0x167   :  { %v471_v3 = vpop.f32.mrf.mxu0 }
 0x168   :  { %v472_v7 = vadd.f32 %v8395_v60, %v471_v3  ;;  %v1066_v3 = vmul.f32 %v11970_v19, %v824_v28 }
 0x16a   :  { %v591_v18 = vmax.f32 %v472_v7, 0.0 }
 0x16f   :  { %v474_v20 = vpop.f32.mrf.mxu0 }
 0x170   :  { %v475_v52 = vadd.f32 %v8395_v60, %v474_v20  ;;  %v1157_v20 = vmul.f32 %v11969_v39, %v824_v28 }
 0x172   :  { %v592_v25 = vmax.f32 %v475_v52, 0.0  ;;  %6838 = vmatmul.msk.bf16.gmra.mxu0 %vm294_vm4, %v7804_v35  ;;  %v8099_v35 = vpack.i.bf16 %v3283_v23, %v3288_v59  ;;  %v997_v52 = vpack.c.bf16 %v824_v28, %v824_v28  ;;  %v1179_v7 = vpack.c.bf16 %v1157_v20, %v1157_v20 }
 0x174   :  { %v697_v26 = vmax.f32 %v590_v6, %v592_v25  ;;  %8100 = vperm.xlu1 %8047, %v8099_v35   ;;  %v8875_v6 = vpop.permute.xlu2 %1049  ;;  %v749_v25 = vld [vmem:[#allocation2 + $0x70] ss:$2 sm:$0xff]  ;;  %v1388_v19 = vunpack.c.l.b16 %v1179_v7  ;;  %v11977_v7 = vunpack.i.l.bf16 %v8858_v48 }
 0x176   :  { %699 = vst.msk [vmem:[#allocation2 + $0x7f] sm:$0xff] %vm628_vm6, %v697_v26  ;;  %v1088_v26 = vpack.c.bf16 %v1066_v3, %v1066_v3 }
 0x177   :  { %v476_v62 = vpop.f32.mrf.mxu0 }
 0x178   :  { %v477_v61 = vadd.f32 %v8395_v60, %v476_v62 }
 0x17a   :  { %v593_v33 = vmax.f32 %v477_v61, 0.0 }
 0x17c   :  { %v698_v12 = vmax.f32 %v591_v18, %v593_v33  ;;  %v1308_v18 = vunpack.c.l.b16 %v997_v52 }
 0x17d   :  { %v791_v0 = vld [vmem:[#allocation2 + $0x71] ss:$2 sm:$0xff] }
 0x17e   :  { %700 = vst.msk [vmem:[#allocation2 + $0x87] sm:$0xff] %vm628_vm6, %v698_v12  ;;  %v825_v23 = vmax.f32 %v749_v25, %v791_v0  ;;  %v1223_v0 = vunpack.c.l.b16 %v1088_v26 }
 0x17f   :  { %v479_v59 = vpop.f32.mrf.mxu0 }
 0x180   :  { %v998_v62 = vpack.c.bf16 %v825_v23, %v825_v23  ;;  %v1067_v35 = vmul.f32 %v8875_v6, %v825_v23  ;;  %v1158_v28 = vmul.f32 %v11974_v27, %v825_v23  ;;  %v480_v61 = vadd.f32 %v8395_v60, %v479_v59 }
 0x182   :  { %v1089_v33 = vpack.c.bf16 %v1067_v35, %v1067_v35  ;;  %v1180_v39 = vpack.c.bf16 %v1158_v28, %v1158_v28  ;;  %v1309_v12 = vunpack.c.l.b16 %v998_v62  ;;  %v594_v25 = vmax.f32 %v480_v61, 0.0  ;;  %6839 = vmatmul.msk.bf16.gmra.mxu0 %vm294_vm4, %v7805_v4 }
 0x184   :  { %v1224_v3 = vunpack.c.l.b16 %v1089_v33  ;;  %v1327_v20 = vpack.c.b16 %v1309_v12, %v1308_v18  ;;  %v1389_v57 = vunpack.c.l.b16 %v1180_v39  ;;  %701 = vst.msk [vmem:[#allocation2 + $0x91] sm:$0xff] %vm628_vm6, %v594_v25 }
 0x185   :  { %v751_v62 = vld [vmem:[#allocation2 + $0x80] ss:$2 sm:$0xff]  ;;  %v793_v35 = vld [vmem:[#allocation2 + $0x81] ss:$2 sm:$0xff] }
 0x186   :  { %v1242_v1 = vpack.c.b16 %v1224_v3, %v1223_v0  ;;  %v8887_v63 = vrot.slane %v1327_v20, 3  ;;  %v1407_v23 = vpack.c.b16 %v1389_v57, %v1388_v19  ;;  %v826_v28 = vmax.f32 %v751_v62, %v793_v35  ;;  %v7806_v0 = vld [vmem:[%s11948_s0 + $0xc0] sm:$0xff] }
 0x187   :  { %v481_v27 = vpop.f32.mrf.mxu0 }
 0x188   :  { %v8889_v59 = vrot.slane %v1242_v1, 3  ;;  %v8891_v52 = vrot.slane %v1407_v23, 3  ;;  %v482_v4 = vadd.f32 %v8395_v60, %v481_v27  ;;  %v8897_v26 = vsel %vm924_vm8, %v8719_v38, %v8887_v63  ;;  %v8929_v23 = vpop.permute.xlu0 %1053 }
 0x189   :  { %v1472_v57 = vshll.u32 %v8897_v26, 16  ;;  %v11980_v3 = vshrl.u32 %v8897_v26, 16  ;;  %v1068_v58 = vmul.f32 %v8929_v23, %v826_v28  ;;  %v999_v17 = vpack.c.bf16 %v826_v28, %v826_v28 }
 0x18a   :  { %v8902_v39 = vsel %vm924_vm8, %v8722_v50, %v8889_v59  ;;  %v595_v1 = vmax.f32 %v482_v4, 0.0  ;;  %v8915_v50 = vsel %vm924_vm8, %v8729_v5, %v8891_v52  ;;  %v11979_v5 = vrot.slane %v8897_v26, 5 }
 0x18b   :  { %6880 = vmatmul.msk.bf16.gmra.mxu2 %vm628_vm6, %v8902_v39  ;;  %v1938_v19 = vshrl.u32 %v8902_v39, 16  ;;  %v1941_v27 = vshll.u32 %v8902_v39, 16  ;;  %v8910_v38 = vrot.slane %v1472_v57, 1  ;;  %v11975_v33 = vrot.slane %v8902_v39, 1 }
 0x18c   :  { %702 = vst.msk [vmem:[#allocation2 + $0x99] sm:$0xff] %vm628_vm6, %v595_v1  ;;  %v11976_v12 = vrot.slane %v8915_v50, 1  ;;  %v2332_v20 = vshrl.u32 %v8915_v50, 16  ;;  %v2335_v4 = vshll.u32 %v8915_v50, 16  ;;  %v2713_v1 = vrot.slane %v1472_v57, 2 }
 0x18d   :  { %v1940_v61 = vrot.slane %v1938_v19, 4  ;;  %v1943_v18 = vrot.slane %v1941_v27, 5  ;;  %v1475_v25 = vsel %vm1448_vm11, %v8762_v54, %v8910_v38  ;;  %v8947_v27 = vsel %vm912_vm5, %v2151_v11, %v11979_v5 }
 0x18e   :  { %6860 = vmatmul.msk.bf16.gmra.mxu1 %vm628_vm6, %v1475_v25  ;;  %v1764_v54 = vsel %vm936_vm10, %v1761_v49, %v11976_v12  ;;  %v2334_v25 = vrot.slane %v2332_v20, 5  ;;  %v2712_v57 = vrot.slane %v11980_v3, 1  ;;  %v1159_v11 = vmul.f32 %v11977_v7, %v826_v28  ;;  %v1697_v20 = vpop.f32.mrf.mxu2 }
 0x18f   :  { %v484_v62 = vpop.f32.mrf.mxu0  ;;  %v8937_v35 = vor.u32 %v1943_v18, %v1940_v61  ;;  %6898 = vmatmul.msk.bf16.gmra.mxu3 %vm628_vm6, %v1764_v54  ;;  %v2337_v61 = vrot.slane %v2335_v4, 6 }
 0x190   :  { %v485_v19 = vadd.f32 %v8395_v60, %v484_v62  ;;  %v8961_v60 = vsel %vm936_vm10, %v2549_v37, %v11975_v33  ;;  %v8970_v4 = vor.u32 %v2713_v1, %v2712_v57  ;;  %v1090_v1 = vpack.c.bf16 %v1068_v58, %v1068_v58 }
 0x191   :  { %v8952_v49 = vsel %vm1914_vm12, %v8778_v14, %v8937_v35  ;;  %12013 = vst [vmem:[#allocation11_spill] sm:$0xff] %v8961_v60  ;;  %v11978_v14 = vrot.slane %v8915_v50, 2  ;;  %v8968_v62 = vor.u32 %v2337_v61, %v2334_v25  ;;  %v1181_v61 = vpack.c.bf16 %v1159_v11, %v1159_v11 }
 0x192   :  { %v596_v18 = vmax.f32 %v485_v19, 0.0  ;;  %6840 = vmatmul.msk.bf16.gmra.mxu0 %vm294_vm4, %v7806_v0  ;;  %v8988_v28 = vsel %vm12006_vm14, %v8773_v55, %v8970_v4  ;;  %v3269_v57 = vrot.slane %v8823_v53, 7  ;;  %v12016_v55 = vrot.slane %v8823_v53, 4 }
 0x193   :  { %v1589_v54 = vpop.f32.mrf.mxu1  ;;  %v753_v33 = vld [vmem:[#allocation2 + $0x90] ss:$2 sm:$0xff]  ;;  %v795_v12 = vld [vmem:[#allocation2 + $0x91] ss:$2 sm:$0xff]  ;;  %v8978_v0 = vsel %vm930_vm9, %v2891_v2, %v11978_v14  ;;  %v8983_v25 = vsel %vm1277_vm13, %v8806_v30, %v8968_v62  ;;  %12015 = vst [vmem:[#allocation13_spill] sm:$0xff] %v8988_v28  ;;  %v12017_v14 = vrot.slane %v8823_v53, 2 }
 0x194   :  { %703 = vst.msk [vmem:[#allocation2 + $0xa3] sm:$0xff] %vm628_vm6, %v596_v18  ;;  %v1698_v37 = vadd.f32 %v1697_v20, %v1589_v54  ;;  %v827_v19 = vmax.f32 %v753_v33, %v795_v12  ;;  %v1310_v12 = vunpack.c.l.b16 %v999_v17  ;;  %v8996_v30 = vld [vmem:[%s11950_s2] ss:$0 sm:$0xff]  ;;  %v3279_v58 = vsel %vm850_vm2, %v12016_v55, %v3269_v57  ;;  %v7807_v53 = vld [vmem:[%s11948_s0 + $0xc8] sm:$0xff] }
 0x195   :  { %12014 = vst [vmem:[#allocation12_spill] sm:$0xff] %v8978_v0  ;;  %v3280_v5 = vsel %vm930_vm9, %v3279_v58, %v12017_v14  ;;  %v1390_v17 = vunpack.c.l.b16 %v1181_v61  ;;  %v3286_v14 = vsel %vm850_vm2, %v8357_v45, %v8243_v13 }
 0x196   :  { %v1069_v46 = vmul.f32 %v8460_v40, %v827_v19  ;;  %v1000_v2 = vpack.c.bf16 %v827_v19, %v827_v19  ;;  %v1160_v33 = vmul.f32 %v8462_v41, %v827_v19  ;;  %v1225_v19 = vunpack.c.l.b16 %v1090_v1  ;;  %3315 = vperm.xlu2 %8058, %v3280_v5  }
 0x197   :  { %v486_v18 = vpop.f32.mrf.mxu0 }
 0x198   :  { %v487_v20 = vadd.f32 %v8996_v30, %v486_v18  ;;  %v1091_v11 = vpack.c.bf16 %v1069_v46, %v1069_v46  ;;  %v1311_v54 = vunpack.c.l.b16 %v1000_v2  ;;  %v1182_v7 = vpack.c.bf16 %v1160_v33, %v1160_v33 }
 0x19a   :  { %v597_v3 = vmax.f32 %v487_v20, 0.0  ;;  %v1833_v0 = vpop.f32.mrf.mxu3  ;;  %v1226_v36 = vunpack.c.l.b16 %v1091_v11  ;;  %v1328_v18 = vpack.c.b16 %v1311_v54, %v1310_v12  ;;  %v1391_v10 = vunpack.c.l.b16 %v1182_v7 }
 0x19b   :  { %v9005_v60 = vadd.f32 %v1833_v0, %v1698_v37  ;;  %v12020_v20 = vrot.slane %v8897_v26, 5 }
 0x19c   :  { %704 = vst.msk [vmem:[#allocation2 + $0xab] sm:$0xff] %vm628_vm6, %v597_v3  ;;  %v1243_v57 = vpack.c.b16 %v1226_v36, %v1225_v19  ;;  %v9008_v46 = vrot.slane %v1328_v18, 3  ;;  %v1408_v2 = vpack.c.b16 %v1391_v10, %v1390_v17  ;;  %v3287_v3 = vsel %vm930_vm9, %v3286_v14, %v8521_v34 }
 0x19d   :  { %12018 = vst [vmem:[#allocation14_spill] sm:$0xff] %v9005_v60  ;;  %v12019_v34 = vshrl.u32 %v8897_v26, 16  ;;  %v12021_v17 = vrot.slane %v8915_v50, 1 }
 0x19e   :  { %v9016_v37 = vrot.slane %v1243_v57, 3  ;;  %v9021_v7 = vsel %vm924_vm8, %v8887_v63, %v9008_v46  ;;  %v9023_v36 = vrot.slane %v1408_v2, 3  ;;  %3359 = vperm.xlu2 %8058, %v3287_v3  }
 0x19f   :  { %v489_v5 = vpop.f32.mrf.mxu0  ;;  %v1480_v10 = vshll.u32 %v9021_v7, 16  ;;  %v11982_v0 = vrot.slane %v9021_v7, 5  ;;  %v1478_v61 = vor.u32 %v12019_v34, %v8910_v38  ;;  %v1484_v26 = vshrl.u32 %v9021_v7, 16 }
 0x1a0   :  { %v9032_v13 = vsel %vm924_vm8, %v8889_v59, %v9016_v37  ;;  %v9037_v45 = vsel %vm924_vm8, %v8891_v52, %v9023_v36 }
 0x1a1   :  { %6881 = vmatmul.msk.bf16.gmra.mxu2 %vm628_vm6, %v9032_v13  ;;  %v1946_v63 = vshrl.u32 %v9032_v13, 16  ;;  %v1949_v1 = vshll.u32 %v9032_v13, 16  ;;  %v9047_v59 = vrot.slane %v1480_v10, 1  ;;  %v11981_v33 = vrot.slane %v9037_v45, 1 }
 0x1a2   :  { %6841 = vmatmul.msk.bf16.gmra.mxu0 %vm294_vm4, %v7807_v53  ;;  %v9055_v55 = vsel %vm912_vm5, %v12020_v20, %v11982_v0  ;;  %v2341_v38 = vshrl.u32 %v9037_v45, 16  ;;  %v2344_v57 = vshll.u32 %v9037_v45, 16  ;;  %v2717_v60 = vrot.slane %v1480_v10, 2 }
 0x1a3   :  { %v755_v12 = vld [vmem:[#allocation2 + $0xa0] ss:$2 sm:$0xff]  ;;  %v797_v52 = vld [vmem:[#allocation2 + $0xa1] ss:$2 sm:$0xff]  ;;  %v1948_v58 = vrot.slane %v1946_v63, 4  ;;  %v1951_v11 = vrot.slane %v1949_v1, 5  ;;  %v1483_v19 = vsel %vm1448_vm11, %v1478_v61, %v9047_v59  ;;  %v1766_v18 = vsel %vm936_vm10, %v12021_v17, %v11981_v33 }
 0x1a4   :  { %v9057_v54 = vmax.f32 %v755_v12, %v797_v52  ;;  %6861 = vmatmul.msk.bf16.gmra.mxu1 %vm628_vm6, %v1483_v19  ;;  %6899 = vmatmul.msk.bf16.gmra.mxu3 %vm628_vm6, %v1766_v18  ;;  %v2343_v3 = vrot.slane %v2341_v38, 5  ;;  %v2346_v12 = vrot.slane %v2344_v57, 6  ;;  %v490_v52 = vadd.f32 %v8996_v30, %v489_v5 }
 0x1a5   :  { %v9074_v14 = vor.u32 %v1951_v11, %v1948_v58  ;;  %v2716_v33 = vrot.slane %v1484_v26, 1 }
 0x1a6   :  { %v11983_v2 = vrot.slane %v9057_v54, 7  ;;  %v883_v53 = vsel %vm850_vm2, %v9057_v54, 0.0  ;;  %v9090_v5 = vor.u32 %v2346_v12, %v2343_v3 }
 0x1a7   :  { %v491_v63 = vpop.f32.mrf.mxu0  ;;  %v1001_v1 = vpack.c.bf16 %v883_v53, %v883_v53  ;;  %v1070_v34 = vmul.f32 %v8465_v42, %v883_v53  ;;  %v1161_v61 = vmul.f32 %v8469_v44, %v883_v53  ;;  %v9086_v58 = vsel %vm1914_vm12, %v8937_v35, %v9074_v14 }
 0x1a8   :  { %v884_v19 = vsel %vm391_vm0, 0.0, %v11983_v2  ;;  %v9095_v35 = vsel %vm1277_vm13, %v8968_v62, %v9090_v5 }
 0x1a9   :  { %v1002_v11 = vpack.c.bf16 %v884_v19, %v884_v19  ;;  %v1071_v38 = vmul.f32 %v8578_v29, %v884_v19  ;;  %v1092_v17 = vpack.c.bf16 %v1070_v34, %v1070_v34  ;;  %v1162_v18 = vmul.f32 %v8575_v32, %v884_v19 }
 0x1aa   :  { %v1183_v57 = vpack.c.bf16 %v1161_v61, %v1161_v61  ;;  %v1312_v53 = vunpack.c.l.b16 %v1001_v1  ;;  %v12022_v34 = vrot.slane %v9032_v13, 1  ;;  %v12023_v19 = vrot.slane %v8902_v39, 1 }
 0x1ab   :  { %v1093_v0 = vpack.c.bf16 %v1071_v38, %v1071_v38  ;;  %v1184_v20 = vpack.c.bf16 %v1162_v18, %v1162_v18  ;;  %v1227_v28 = vunpack.c.l.b16 %v1092_v17  ;;  %v1313_v2 = vunpack.c.l.b16 %v1002_v11  ;;  %v7808_v11 = vld [vmem:[%s11948_s0 + $0xd0] sm:$0xff] }
 0x1ac   :  { %v1392_v16 = vunpack.c.l.b16 %v1183_v57  ;;  %v9102_v1 = vsel %vm936_vm10, %v12023_v19, %v12022_v34  ;;  %v2895_v38 = vrot.slane %v9037_v45, 2  ;;  %v2718_v17 = vor.u32 %v2717_v60, %v2716_v33 }
 0x1ad   :  { %12024 = vst [vmem:[#allocation15_spill] sm:$0xff] %v9102_v1  ;;  %v1228_v3 = vunpack.c.l.b16 %v1093_v0  ;;  %v1393_v61 = vunpack.c.l.b16 %v1184_v20  ;;  %v1329_v12 = vpack.c.b16 %v1313_v2, %v1312_v53  ;;  %v12025_v39 = vrot.slane %v8915_v50, 2 }
 0x1ae   :  { %v9118_v2 = vsel %vm12006_vm14, %v8970_v4, %v2718_v17  ;;  %v598_v20 = vmax.f32 %v490_v52, 0.0  ;;  %v492_v52 = vadd.f32 %v8996_v30, %v491_v63 }
 0x1af   :  { %v494_v62 = vpop.f32.mrf.mxu0  ;;  %v1244_v18 = vpack.c.b16 %v1228_v3, %v1227_v28  ;;  %v9108_v10 = vrot.slane %v1329_v12, 3  ;;  %v1409_v57 = vpack.c.b16 %v1393_v61, %v1392_v16  ;;  %v9113_v34 = vsel %vm930_vm9, %v12025_v39, %v2895_v38  ;;  %12027 = vst [vmem:[#allocation17_spill] sm:$0xff] %v9118_v2 }
 0x1b0   :  { %12026 = vst [vmem:[#allocation16_spill] sm:$0xff] %v9113_v34  ;;  %v495_v0 = vadd.f32 %v8996_v30, %v494_v62 }
 0x1b1   :  { %v9120_v53 = vrot.slane %v1244_v18, 3  ;;  %v9125_v60 = vsel %vm924_vm8, %v9008_v46, %v9108_v10  ;;  %v9127_v16 = vrot.slane %v1409_v57, 3  ;;  %v1486_v46 = vor.u32 %v1484_v26, %v9047_v59 }
 0x1b2   :  { %v600_v50 = vmax.f32 %v495_v0, 0.0  ;;  %6842 = vmatmul.msk.bf16.gmra.mxu0 %vm294_vm4, %v7808_v11  ;;  %v1488_v28 = vshll.u32 %v9125_v60, 16  ;;  %v1492_v33 = vshrl.u32 %v9125_v60, 16  ;;  %v11984_v4 = vrot.slane %v9125_v60, 5 }
 0x1b3   :  { %v9137_v19 = vsel %vm924_vm8, %v9016_v37, %v9120_v53  ;;  %v9143_v3 = vsel %vm924_vm8, %v9023_v36, %v9127_v16  ;;  %v12028_v59 = vrot.slane %v9021_v7, 5  ;;  %v12029_v11 = vrot.slane %v9037_v45, 1 }
 0x1b4   :  { %v705_v61 = vmax.f32 %v598_v20, %v600_v50  ;;  %6882 = vmatmul.msk.bf16.gmra.mxu2 %vm628_vm6, %v9137_v19  ;;  %v1954_v12 = vshrl.u32 %v9137_v19, 16  ;;  %v1957_v63 = vshll.u32 %v9137_v19, 16  ;;  %v1490_v62 = vrot.slane %v1488_v28, 1 }
 0x1b5   :  { %v11986_v37 = vrot.slane %v9143_v3, 1  ;;  %v9156_v36 = vsel %vm912_vm5, %v12028_v59, %v11984_v4  ;;  %v2350_v26 = vshrl.u32 %v9143_v3, 16  ;;  %v2353_v39 = vshll.u32 %v9143_v3, 16 }
 0x1b6   :  { %707 = vst.msk [vmem:[#allocation2 + $0xb5] sm:$0xff] %vm628_vm6, %v705_v61  ;;  %v1956_v18 = vrot.slane %v1954_v12, 4  ;;  %v1959_v57 = vrot.slane %v1957_v63, 5  ;;  %v2720_v0 = vrot.slane %v1492_v33, 1  ;;  %v1491_v50 = vsel %vm1448_vm11, %v1486_v46, %v1490_v62 }
 0x1b7   :  { %v496_v20 = vpop.f32.mrf.mxu0  ;;  %v1768_v7 = vsel %vm936_vm10, %v12029_v11, %v11986_v37  ;;  %v9167_v59 = vor.u32 %v1492_v33, %v1490_v62  ;;  %v2352_v4 = vrot.slane %v2350_v26, 5  ;;  %6862 = vmatmul.msk.bf16.gmra.mxu1 %vm628_vm6, %v1491_v50  ;;  %v2355_v12 = vrot.slane %v2353_v39, 6 }
 0x1b8   :  { %v497_v34 = vadd.f32 %v8996_v30, %v496_v20  ;;  %6900 = vmatmul.msk.bf16.gmra.mxu3 %vm628_vm6, %v1768_v7  ;;  %v9172_v61 = vor.u32 %v1959_v57, %v1956_v18  ;;  %v2721_v63 = vrot.slane %v1488_v28, 2  ;;  %v599_v46 = vmax.f32 %v492_v52, 0.0  ;;  %v9212_v52 = vpop.f32.mrf.mxu1  ;;  %v7810_v7 = vld [vmem:[%s11948_s0 + $0xe0] sm:$0xff] }
 0x1b9   :  { %v12030_v1 = vrot.slane %v9137_v19, 1  ;;  %v12031_v45 = vrot.slane %v9032_v13, 1  ;;  %v11985_v33 = vrot.slane %v9143_v3, 2  ;;  %v9187_v18 = vor.u32 %v2355_v12, %v2352_v4  ;;  %12038 = vst [vmem:[#allocation24_spill] sm:$0xff] %v9212_v52 }
 0x1ba   :  { %v601_v62 = vmax.f32 %v497_v34, 0.0  ;;  %v9185_v26 = vsel %vm1914_vm12, %v9074_v14, %v9172_v61  ;;  %v9189_v57 = vor.u32 %v2721_v63, %v2720_v0  ;;  %v7809_v14 = vld [vmem:[%s11948_s0 + $0xd8] sm:$0xff] }
 0x1bb   :  { %v9179_v11 = vsel %vm936_vm10, %v12031_v45, %v12030_v1  ;;  %12033 = vst [vmem:[#allocation19_spill] sm:$0xff] %v9185_v26  ;;  %v9194_v28 = vsel %vm930_vm9, %v2895_v38, %v11985_v33  ;;  %v9199_v1 = vsel %vm1277_vm13, %v9090_v5, %v9187_v18  ;;  %v9210_v38 = vpop.f32.mrf.mxu2  ;;  %v9214_v5 = vpop.f32.mrf.mxu3 }
 0x1bc   :  { %12032 = vst [vmem:[#allocation18_spill] sm:$0xff] %v9179_v11  ;;  %v706_v13 = vmax.f32 %v599_v46, %v601_v62  ;;  %v9203_v34 = vsel %vm12006_vm14, %v2718_v17, %v9189_v57 }
 0x1bd   :  { %12034 = vst [vmem:[#allocation20_spill] sm:$0xff] %v9194_v28 }
 0x1be   :  { %12035 = vst [vmem:[#allocation21_spill] sm:$0xff] %v9199_v1 }
 0x1bf   :  { %12036 = vst [vmem:[#allocation22_spill] sm:$0xff] %v9203_v34  ;;  %v499_v4 = vpop.f32.mrf.mxu0 }
 0x1c0   :  { %708 = vst.msk [vmem:[#allocation2 + $0xbd] sm:$0xff] %vm628_vm6, %v706_v13  ;;  %v500_v50 = vadd.f32 %v8996_v30, %v499_v4 }
 0x1c1   :  { %12037 = vst [vmem:[#allocation23_spill] sm:$0xff] %v9210_v38 }
 0x1c2   :  { %6843 = vmatmul.msk.bf16.gmra.mxu0 %vm294_vm4, %v7809_v14  ;;  %12039 = vst [vmem:[#allocation25_spill] sm:$0xff] %v9214_v5  ;;  %v602_v46 = vmax.f32 %v500_v50, 0.0 }
 0x1c3   :  { %v1702_v0 = vpop.f32.mrf.mxu2 }
 0x1c7   :  { %v501_v39 = vpop.f32.mrf.mxu0  ;;  %v799_v37 = vld [vmem:[#allocation2 + $0xb1] ss:$2 sm:$0xff] }
 0x1c8   :  { %v502_v33 = vadd.f32 %v8996_v30, %v501_v39  ;;  %v12041_v39 = vrot.slane %v9057_v54, 7 }
 0x1ca   :  { %v603_v28 = vmax.f32 %v502_v33, 0.0 }
 0x1cb   :  { %v1594_v20 = vpop.f32.mrf.mxu1 }
 0x1cc   :  { %v1703_v17 = vadd.f32 %v1702_v0, %v1594_v20  ;;  %v757_v20 = vld [vmem:[#allocation2 + $0xb0] ss:$2 sm:$0xff] }
 0x1cf   :  { %v504_v12 = vpop.f32.mrf.mxu0 }
 0x1d0   :  { %v505_v63 = vadd.f32 %v8996_v30, %v504_v12  ;;  %v829_v12 = vmax.f32 %v757_v20, %v799_v37  ;;  %v12042_v37 = vunpack.i.h.bf16 %v8568_v31 }
 0x1d2   :  { %v604_v45 = vmax.f32 %v505_v63, 0.0  ;;  %v1838_v62 = vpop.f32.mrf.mxu3  ;;  %6844 = vmatmul.msk.bf16.gmra.mxu0 %vm294_vm4, %v7810_v7  ;;  %v852_v63 = vrot.slane %v829_v12, 7 }
 0x1d3   :  { %v9222_v13 = vadd.f32 %v1838_v62, %v1703_v17  ;;  %v7811_v17 = vld [vmem:[%s11948_s0 + $0xe8] sm:$0xff] }
 0x1d4   :  { %v709_v14 = vmax.f32 %v602_v46, %v604_v45  ;;  %v853_v46 = vsel %vm850_vm2, %v12041_v39, %v852_v63 }
 0x1d5   :  { %12040 = vst [vmem:[#allocation26_spill] sm:$0xff] %v9222_v13  ;;  %v1003_v20 = vpack.c.bf16 %v853_v46, %v853_v46 }
 0x1d6   :  { %711 = vst.msk [vmem:[#allocation2 + $0xc7] sm:$0xff] %vm628_vm6, %v709_v14  ;;  %v12043_v14 = vunpack.i.h.bf16 %v8566_v24 }
 0x1d7   :  { %v506_v4 = vpop.f32.mrf.mxu0  ;;  %v1314_v2 = vunpack.c.l.b16 %v1003_v20 }
 0x1d8   :  { %v507_v0 = vadd.f32 %v8996_v30, %v506_v4  ;;  %v1163_v4 = vmul.f32 %v12043_v14, %v853_v46 }
 0x1da   :  { %v605_v11 = vmax.f32 %v507_v0, 0.0  ;;  %v1185_v31 = vpack.c.bf16 %v1163_v4, %v1163_v4 }
 0x1dc   :  { %v710_v50 = vmax.f32 %v603_v28, %v605_v11  ;;  %v1072_v11 = vmul.f32 %v12042_v37, %v853_v46  ;;  %v7812_v46 = vld [vmem:[%s11948_s0 + $0xf0] sm:$0xff]  ;;  %v1394_v13 = vunpack.c.l.b16 %v1185_v31 }
 0x1dd   :  { %v759_v45 = vld [vmem:[#allocation2 + $0xc0] ss:$2 sm:$0xff] }
 0x1de   :  { %712 = vst.msk [vmem:[#allocation2 + $0xcf] sm:$0xff] %vm628_vm6, %v710_v50  ;;  %v1094_v50 = vpack.c.bf16 %v1072_v11, %v1072_v11 }
 0x1df   :  { %v509_v7 = vpop.f32.mrf.mxu0 }
 0x1e2   :  { %6845 = vmatmul.msk.bf16.gmra.mxu0 %vm294_vm4, %v7811_v17  ;;  %v12044_v17 = vunpack.i.l.bf16 %v8697_v22 }
 0x1e5   :  { %v801_v62 = vld [vmem:[#allocation2 + $0xc1] ss:$2 sm:$0xff] }
 0x1e6   :  { %v830_v33 = vmax.f32 %v759_v45, %v801_v62  ;;  %v12045_v45 = vunpack.i.l.bf16 %v8695_v15 }
 0x1e7   :  { %v511_v28 = vpop.f32.mrf.mxu0 }
 0x1e8   :  { %v9239_v0 = vrot.slane %v830_v33, 7  ;;  %v510_v33 = vadd.f32 %v8996_v30, %v509_v7 }
 0x1ea   :  { %v855_v12 = vsel %vm850_vm2, %v852_v63, %v9239_v0  ;;  %v1229_v63 = vunpack.c.l.b16 %v1094_v50  ;;  %v606_v20 = vmax.f32 %v510_v33, 0.0 }
 0x1eb   :  { %v1004_v54 = vpack.c.bf16 %v855_v12, %v855_v12  ;;  %v1073_v39 = vmul.f32 %v12044_v17, %v855_v12  ;;  %v1164_v62 = vmul.f32 %v12045_v45, %v855_v12 }
 0x1ed   :  { %v1095_v37 = vpack.c.bf16 %v1073_v39, %v1073_v39  ;;  %v1186_v34 = vpack.c.bf16 %v1164_v62, %v1164_v62  ;;  %v1315_v24 = vunpack.c.l.b16 %v1004_v54 }
 0x1ef   :  { %v514_v11 = vpop.f32.mrf.mxu0  ;;  %v1230_v14 = vunpack.c.l.b16 %v1095_v37  ;;  %v1395_v5 = vunpack.c.l.b16 %v1186_v34  ;;  %v1330_v17 = vpack.c.b16 %v1315_v24, %v1314_v2 }
 0x1f0   :  { %v515_v38 = vadd.f32 %v8996_v30, %v514_v11 }
 0x1f1   :  { %v1245_v12 = vpack.c.b16 %v1230_v14, %v1229_v63  ;;  %v9252_v4 = vrot.slane %v1330_v17, 3  ;;  %v1410_v39 = vpack.c.b16 %v1395_v5, %v1394_v13  ;;  %v512_v5 = vadd.f32 %v8996_v30, %v511_v28 }
 0x1f2   :  { %v608_v54 = vmax.f32 %v515_v38, 0.0  ;;  %6846 = vmatmul.msk.bf16.gmra.mxu0 %vm294_vm4, %v7812_v46 }
 0x1f3   :  { %v9255_v7 = vrot.slane %v1245_v12, 3  ;;  %v9260_v50 = vsel %vm924_vm8, %v9108_v10, %v9252_v4  ;;  %v9262_v45 = vrot.slane %v1410_v39, 3 }
 0x1f4   :  { %v713_v2 = vmax.f32 %v606_v20, %v608_v54  ;;  %v1496_v34 = vshll.u32 %v9260_v50, 16  ;;  %v11987_v62 = vrot.slane %v9260_v50, 5  ;;  %v11991_v10 = vshrl.u32 %v9260_v50, 16 }
 0x1f5   :  { %v9270_v38 = vsel %vm924_vm8, %v9120_v53, %v9255_v7  ;;  %v9275_v13 = vsel %vm924_vm8, %v9127_v16, %v9262_v45  ;;  %v12046_v16 = vrot.slane %v9125_v60, 5  ;;  %v607_v20 = vmax.f32 %v512_v5, 0.0 }
 0x1f6   :  { %715 = vst.msk [vmem:[#allocation2 + $0xd9] sm:$0xff] %vm628_vm6, %v713_v2  ;;  %6883 = vmatmul.msk.bf16.gmra.mxu2 %vm628_vm6, %v9270_v38  ;;  %v1962_v31 = vshrl.u32 %v9270_v38, 16  ;;  %v1965_v28 = vshll.u32 %v9270_v38, 16  ;;  %v11989_v37 = vrot.slane %v9270_v38, 1  ;;  %v9284_v53 = vrot.slane %v1496_v34, 1 }
 0x1f7   :  { %v516_v24 = vpop.f32.mrf.mxu0  ;;  %v11990_v33 = vrot.slane %v9275_v13, 1  ;;  %v9292_v46 = vsel %vm912_vm5, %v12046_v16, %v11987_v62  ;;  %v2359_v63 = vshrl.u32 %v9275_v13, 16  ;;  %v2362_v11 = vshll.u32 %v9275_v13, 16 }
 0x1f8   :  { %v1964_v14 = vrot.slane %v1962_v31, 4  ;;  %v1967_v17 = vrot.slane %v1965_v28, 5  ;;  %v517_v12 = vadd.f32 %v8996_v30, %v516_v24  ;;  %v1499_v39 = vsel %vm1448_vm11, %v9167_v59, %v9284_v53 }
 0x1f9   :  { %6863 = vmatmul.msk.bf16.gmra.mxu1 %vm628_vm6, %v1499_v39  ;;  %v12047_v60 = vrot.slane %v9143_v3, 1  ;;  %v2361_v2 = vrot.slane %v2359_v63, 5  ;;  %v2364_v16 = vrot.slane %v2362_v11, 6  ;;  %v2724_v28 = vrot.slane %v11991_v10, 1 }
 0x1fa   :  { %v609_v62 = vmax.f32 %v517_v12, 0.0  ;;  %v9307_v31 = vor.u32 %v1967_v17, %v1964_v14  ;;  %v2725_v59 = vrot.slane %v1496_v34, 2  ;;  %v12048_v24 = vrot.slane %v9137_v19, 1  ;;  %v7813_v34 = vld [vmem:[%s11948_s0 + $0xf8] sm:$0xff] }
 0x1fb   :  { %v1770_v54 = vsel %vm936_vm10, %v12047_v60, %v11990_v33  ;;  %v9311_v5 = vor.u32 %v2364_v16, %v2361_v2  ;;  %v11988_v63 = vrot.slane %v9275_v13, 2  ;;  %v9361_v2 = vpop.f32.mrf.mxu1 }
 0x1fc   :  { %6901 = vmatmul.msk.bf16.gmra.mxu3 %vm628_vm6, %v1770_v54  ;;  %v9318_v39 = vsel %vm936_vm10, %v12048_v24, %v11989_v37  ;;  %v714_v11 = vmax.f32 %v607_v20, %v609_v62  ;;  %v9324_v14 = vsel %vm1914_vm12, %v9172_v61, %v9307_v31  ;;  %v9326_v17 = vor.u32 %v2725_v59, %v2724_v28  ;;  %v7825_v61 = vld [vmem:[%s11951_s3 + $0x48] sm:$0xff]  ;;  %v7827_v20 = vld [vmem:[%s11951_s3 + $0x58] sm:$0xff]  ;;  %v9359_v54 = vpop.f32.mrf.mxu2  ;;  %v9363_v28 = vpop.f32.mrf.mxu3 }
 0x1fd   :  { %12049 = vst [vmem:[#allocation27_spill] sm:$0xff] %v9318_v39  ;;  %v9334_v19 = vsel %vm1277_vm13, %v9187_v18, %v9311_v5  ;;  %v12052_v62 = vrot.slane %v9143_v3, 2  ;;  %v7823_v18 = vld [vmem:[%s11951_s3 + $0x38] sm:$0xff]  ;;  %2222 = vmatpush.bf16.msrb.mxu2 %v7825_v61  ;;  %2463 = vmatpush.bf16.msrb.mxu3 %v7827_v20 }
 0x1fe   :  { %12050 = vst [vmem:[#allocation28_spill] sm:$0xff] %v9324_v14  ;;  %v9356_v3 = vsel %vm12006_vm14, %v9189_v57, %v9326_v17  ;;  %2062 = vmatpush.bf16.msrb.mxu1 %v7823_v18  ;;  %v761_v61 = vld [vmem:[#allocation2 + $0xd0] ss:$2 sm:$0xff]  ;;  %v803_v20 = vld [vmem:[#allocation2 + $0xd1] ss:$2 sm:$0xff] }
 0x1ff   :  { %12051 = vst [vmem:[#allocation29_spill] sm:$0xff] %v9334_v19  ;;  %v9341_v12 = vsel %vm930_vm9, %v12052_v62, %v11988_v63  ;;  %v519_v60 = vpop.f32.mrf.mxu0  ;;  %v831_v33 = vmax.f32 %v761_v61, %v803_v20 }
 0x200   :  { %12053 = vst [vmem:[#allocation30_spill] sm:$0xff] %v9341_v12  ;;  %v520_v62 = vadd.f32 %v8996_v30, %v519_v60 }
 0x201   :  { %716 = vst.msk [vmem:[#allocation2 + $0xe1] sm:$0xff] %vm628_vm6, %v714_v11 }
 0x202   :  { %12054 = vst [vmem:[#allocation31_spill] sm:$0xff] %v9356_v3  ;;  %6847 = vmatmul.msk.bf16.gmra.mxu0 %vm294_vm4, %v7813_v34  ;;  %v610_v18 = vmax.f32 %v520_v62, 0.0  ;;  %vm3090_vm4 = vcmask 523264  }
 0x203   :  { %12055 = vst [vmem:[#allocation32_spill] sm:$0xff] %v9359_v54 }
 0x204   :  { %12056 = vst [vmem:[#allocation33_spill] sm:$0xff] %v9361_v2  ;;  %v1707_v59 = vpop.f32.mrf.mxu2 }
 0x205   :  { %12057 = vst [vmem:[#allocation34_spill] sm:$0xff] %v9363_v28 }
 0x207   :  { %v521_v16 = vpop.f32.mrf.mxu0 }
 0x208   :  { %v522_v39 = vadd.f32 %v8996_v30, %v521_v16 }
 0x20b   :  { %v1599_v24 = vpop.f32.mrf.mxu1 }
 0x20c   :  { %v1708_v11 = vadd.f32 %v1707_v59, %v1599_v24  ;;  %v856_v59 = vrot.slane %v831_v33, 7  ;;  %v611_v24 = vmax.f32 %v522_v39, 0.0  ;;  %v12062_v39 = vunpack.i.h.bf16 %v8695_v15 }
 0x20f   :  { %v524_v57 = vpop.f32.mrf.mxu0 }
 0x210   :  { %v525_v63 = vadd.f32 %v8996_v30, %v524_v57  ;;  %v9372_v57 = vpop.f32.mrf.mxu2 }
 0x211   :  { %12059 = vst [vmem:[#allocation36_spill] sm:$0xff] %v9372_v57 }
 0x212   :  { %v612_v37 = vmax.f32 %v525_v63, 0.0  ;;  %v1843_v34 = vpop.f32.mrf.mxu3  ;;  %v857_v63 = vsel %vm850_vm2, %v9239_v0, %v856_v59 }
 0x213   :  { %v9367_v12 = vadd.f32 %v1843_v34, %v1708_v11  ;;  %v9374_v54 = vpop.f32.mrf.mxu1  ;;  %v1005_v34 = vpack.c.bf16 %v857_v63, %v857_v63 }
 0x214   :  { %v717_v10 = vmax.f32 %v610_v18, %v612_v37  ;;  %12060 = vst [vmem:[#allocation37_spill] sm:$0xff] %v9374_v54 }
 0x215   :  { %12058 = vst [vmem:[#allocation35_spill] sm:$0xff] %v9367_v12  ;;  %v1316_v54 = vunpack.c.l.b16 %v1005_v34 }
 0x216   :  { %719 = vst.msk [vmem:[#allocation2 + $0xeb] sm:$0xff] %vm628_vm6, %v717_v10  ;;  %v12061_v10 = vunpack.i.h.bf16 %v8697_v22 }
 0x217   :  { %v526_v3 = vpop.f32.mrf.mxu0 }
 0x218   :  { %v527_v60 = vadd.f32 %v8996_v30, %v526_v3  ;;  %v1074_v33 = vmul.f32 %v12061_v10, %v857_v63  ;;  %v1165_v3 = vmul.f32 %v12062_v39, %v857_v63 }
 0x21a   :  { %v613_v28 = vmax.f32 %v527_v60, 0.0  ;;  %v9385_v18 = vpop.f32.mrf.mxu3  ;;  %v1712_v60 = vpop.f32.mrf.mxu2  ;;  %v1187_v15 = vpack.c.bf16 %v1165_v3, %v1165_v3 }
 0x21b   :  { %12063 = vst [vmem:[#allocation38_spill] sm:$0xff] %v9385_v18 }
 0x21c   :  { %v718_v37 = vmax.f32 %v611_v24, %v613_v28  ;;  %v1096_v28 = vpack.c.bf16 %v1074_v33, %v1074_v33 }
 0x21d   :  { %v763_v11 = vld [vmem:[#allocation2 + $0xe0] ss:$2 sm:$0xff]  ;;  %v805_v62 = vld [vmem:[#allocation2 + $0xe1] ss:$2 sm:$0xff] }
 0x21e   :  { %720 = vst.msk [vmem:[#allocation2 + $0xf3] sm:$0xff] %vm628_vm6, %v718_v37  ;;  %v832_v16 = vmax.f32 %v763_v11, %v805_v62  ;;  %v12064_v11 = vunpack.i.h.bf16 %v8858_v48  ;;  %v12065_v62 = vunpack.i.l.bf16 %v8860_v21  ;;  %v1231_v63 = vunpack.c.l.b16 %v1096_v28 }
 0x21f   :  { %v529_v61 = vpop.f32.mrf.mxu0 }
 0x220   :  { %v9383_v20 = vrot.slane %v832_v16, 7 }
 0x221   :  { %v1604_v24 = vpop.f32.mrf.mxu1 }
 0x222   :  { %v859_v0 = vsel %vm850_vm2, %v856_v59, %v9383_v20  ;;  %v1713_v39 = vadd.f32 %v1712_v60, %v1604_v24  ;;  %v1396_v59 = vunpack.c.l.b16 %v1187_v15 }
 0x223   :  { %v1006_v37 = vpack.c.bf16 %v859_v0, %v859_v0  ;;  %v1075_v22 = vmul.f32 %v12064_v11, %v859_v0  ;;  %v1166_v10 = vmul.f32 %v12065_v62, %v859_v0 }
 0x225   :  { %v1097_v16 = vpack.c.bf16 %v1075_v22, %v1075_v22  ;;  %v1188_v57 = vpack.c.bf16 %v1166_v10, %v1166_v10  ;;  %v1317_v18 = vunpack.c.l.b16 %v1006_v37 }
 0x227   :  { %v531_v12 = vpop.f32.mrf.mxu0  ;;  %v1232_v2 = vunpack.c.l.b16 %v1097_v16  ;;  %v1397_v33 = vunpack.c.l.b16 %v1188_v57  ;;  %v1331_v52 = vpack.c.b16 %v1317_v18, %v1316_v54  ;;  %v1848_v19 = vpop.f32.mrf.mxu3  ;;  %v12066_v57 = vshrl.u32 %v9260_v50, 16 }
 0x228   :  { %v9395_v26 = vadd.f32 %v1848_v19, %v1713_v39  ;;  %v9411_v18 = vpop.f32.mrf.mxu2 }
 0x229   :  { %v1246_v14 = vpack.c.b16 %v1232_v2, %v1231_v63  ;;  %v9393_v1 = vrot.slane %v1331_v52, 3  ;;  %v1411_v11 = vpack.c.b16 %v1397_v33, %v1396_v59  ;;  %v1502_v54 = vor.u32 %v12066_v57, %v9284_v53  ;;  %12067 = vst [vmem:[#allocation39_spill] sm:$0xff] %v9411_v18  ;;  %v9414_v19 = vpop.f32.mrf.mxu1 }
 0x22a   :  { %12068 = vst [vmem:[#allocation40_spill] sm:$0xff] %v9414_v19  ;;  %v12070_v33 = vrot.slane %v9275_v13, 1 }
 0x22b   :  { %v9397_v0 = vrot.slane %v1246_v14, 3  ;;  %v9402_v3 = vsel %vm924_vm8, %v9252_v4, %v9393_v1  ;;  %v9404_v34 = vrot.slane %v1411_v11, 3  ;;  %v530_v14 = vadd.f32 %v8996_v30, %v529_v61 }
 0x22c   :  { %v1504_v2 = vshll.u32 %v9402_v3, 16  ;;  %v11992_v52 = vrot.slane %v9402_v3, 5  ;;  %v1508_v53 = vshrl.u32 %v9402_v3, 16 }
 0x22d   :  { %v9419_v4 = vsel %vm924_vm8, %v9255_v7, %v9397_v0  ;;  %v9424_v28 = vsel %vm924_vm8, %v9262_v45, %v9404_v34  ;;  %v12069_v45 = vrot.slane %v9260_v50, 5 }
 0x22e   :  { %6884 = vmatmul.msk.bf16.gmra.mxu2 %vm628_vm6, %v9419_v4  ;;  %v1970_v60 = vshrl.u32 %v9419_v4, 16  ;;  %v1973_v61 = vshll.u32 %v9419_v4, 16  ;;  %v1506_v37 = vrot.slane %v1504_v2, 1  ;;  %v11994_v7 = vrot.slane %v9424_v28, 1 }
 0x22f   :  { %v534_v22 = vpop.f32.mrf.mxu0  ;;  %v9438_v62 = vsel %vm912_vm5, %v12069_v45, %v11992_v52  ;;  %v2368_v10 = vshrl.u32 %v9424_v28, 16  ;;  %v2371_v15 = vshll.u32 %v9424_v28, 16  ;;  %v614_v52 = vmax.f32 %v530_v14, 0.0 }
 0x230   :  { %v1972_v39 = vrot.slane %v1970_v60, 4  ;;  %v1975_v16 = vrot.slane %v1973_v61, 5  ;;  %v535_v63 = vadd.f32 %v8996_v30, %v534_v22  ;;  %v1507_v59 = vsel %vm1448_vm11, %v1502_v54, %v1506_v37  ;;  %v9455_v54 = vpop.f32.mrf.mxu3 }
 0x231   :  { %6864 = vmatmul.msk.bf16.gmra.mxu1 %vm628_vm6, %v1507_v59  ;;  %v1772_v50 = vsel %vm936_vm10, %v12070_v33, %v11994_v7  ;;  %v9450_v11 = vor.u32 %v1508_v53, %v1506_v37  ;;  %v2370_v57 = vrot.slane %v2368_v10, 5  ;;  %v2373_v45 = vrot.slane %v2371_v15, 6  ;;  %12071 = vst [vmem:[#allocation41_spill] sm:$0xff] %v9455_v54 }
 0x232   :  { %v616_v24 = vmax.f32 %v535_v63, 0.0  ;;  %6902 = vmatmul.msk.bf16.gmra.mxu3 %vm628_vm6, %v1772_v50  ;;  %v9453_v60 = vor.u32 %v1975_v16, %v1972_v39  ;;  %v2728_v61 = vrot.slane %v1508_v53, 1  ;;  %v2729_v59 = vrot.slane %v1504_v2, 2  ;;  %v1717_v53 = vpop.f32.mrf.mxu2 }
 0x233   :  { %v9457_v22 = vor.u32 %v2373_v45, %v2370_v57  ;;  %v12072_v18 = vrot.slane %v9419_v4, 1  ;;  %v12073_v33 = vrot.slane %v9270_v38, 1  ;;  %v11993_v14 = vrot.slane %v9424_v28, 2 }
 0x234   :  { %v721_v10 = vmax.f32 %v614_v52, %v616_v24  ;;  %v9470_v15 = vsel %vm1914_vm12, %v9307_v31, %v9453_v60  ;;  %v1609_v39 = vpop.f32.mrf.mxu1  ;;  %v9477_v16 = vor.u32 %v2729_v59, %v2728_v61  ;;  %v12075_v38 = vrot.slane %v9275_v13, 2 }
 0x235   :  { %v9464_v37 = vsel %vm936_vm10, %v12073_v33, %v12072_v18  ;;  %v9475_v2 = vsel %vm1277_vm13, %v9311_v5, %v9457_v22  ;;  %v532_v18 = vadd.f32 %v8996_v30, %v531_v12  ;;  %v1718_v31 = vadd.f32 %v1717_v53, %v1609_v39 }
 0x236   :  { %12074 = vst [vmem:[#allocation42_spill] sm:$0xff] %v9464_v37  ;;  %v9484_v52 = vsel %vm930_vm9, %v12075_v38, %v11993_v14  ;;  %v9491_v5 = vsel %vm12006_vm14, %v9326_v17, %v9477_v16 }
 0x237   :  { %12076 = vst [vmem:[#allocation43_spill] sm:$0xff] %v9484_v52  ;;  %v536_v24 = vpop.f32.mrf.mxu0  ;;  %v615_v50 = vmax.f32 %v532_v18, 0.0 }
 0x238   :  { %723 = vst.msk [vmem:[#allocation2 + $0xfd] sm:$0xff] %vm628_vm6, %v721_v10  ;;  %v537_v63 = vadd.f32 %v8996_v30, %v536_v24 }
 0x239   :  { %12077 = vst [vmem:[#allocation44_spill] sm:$0xff] %v9491_v5 }
 0x23a   :  { %v617_v57 = vmax.f32 %v537_v63, 0.0 }
 0x23b   :  { %v1853_v45 = vpop.f32.mrf.mxu3 }
 0x23c   :  { %v722_v13 = vmax.f32 %v615_v50, %v617_v57  ;;  %v9494_v61 = vadd.f32 %v1853_v45, %v1718_v31  ;;  %v7824_v31 = vld [vmem:[%s11951_s3 + $0x40] sm:$0xff]  ;;  %v7826_v50 = vld [vmem:[%s11951_s3 + $0x50] sm:$0xff] }
 0x23d   :  { %v7822_v57 = vld [vmem:[%s11951_s3 + $0x30] sm:$0xff]  ;;  %2223 = vmatpush.bf16.msrb.mxu2 %v7824_v31  ;;  %2464 = vmatpush.bf16.msrb.mxu3 %v7826_v50 }
 0x23e   :  { %12078 = vst [vmem:[#allocation45_spill] sm:$0xff] %v9494_v61  ;;  %2063 = vmatpush.bf16.msrb.mxu1 %v7822_v57 }
 0x23f   :  { %724 = vst.msk [vmem:[#allocation2 + $0x105] sm:$0xff] %vm628_vm6, %v722_v13  ;;  %v539_v12 = vpop.f32.mrf.mxu0  ;;  %v765_v39 = vld [vmem:[#allocation2 + $0xf0] ss:$2 sm:$0xff]  ;;  %v807_v17 = vld [vmem:[#allocation2 + $0xf1] ss:$2 sm:$0xff] }
 0x240   :  { %v540_v33 = vadd.f32 %v8996_v30, %v539_v12  ;;  %v833_v24 = vmax.f32 %v765_v39, %v807_v17 }
 0x242   :  { %v618_v38 = vmax.f32 %v540_v33, 0.0  ;;  %v860_v13 = vrot.slane %v833_v24, 7  ;;  %v12079_v24 = vunpack.i.h.bf16 %v8860_v21 }
 0x244   :  { %v861_v33 = vsel %vm850_vm2, %v9383_v20, %v860_v13 }
 0x245   :  { %v1007_v50 = vpack.c.bf16 %v861_v33, %v861_v33 }
 0x247   :  { %v541_v59 = vpop.f32.mrf.mxu0 }
 0x248   :  { %v542_v63 = vadd.f32 %v8996_v30, %v541_v59 }
 0x24a   :  { %v619_v12 = vmax.f32 %v542_v63, 0.0 }
 0x24f   :  { %v544_v10 = vpop.f32.mrf.mxu0 }
 0x250   :  { %v545_v53 = vadd.f32 %v8996_v30, %v544_v10 }
 0x252   :  { %v620_v14 = vmax.f32 %v545_v53, 0.0  ;;  %v767_v53 = vld [vmem:[#allocation2 + $0x100] ss:$2 sm:$0xff] }
 0x254   :  { %v725_v18 = vmax.f32 %v618_v38, %v620_v14  ;;  %v1076_v38 = vmul.f32 %v8875_v6, %v861_v33 }
 0x256   :  { %727 = vst.msk [vmem:[#allocation2 + $0x10f] sm:$0xff] %vm628_vm6, %v725_v18  ;;  %v1098_v57 = vpack.c.bf16 %v1076_v38, %v1076_v38 }
 0x257   :  { %v546_v45 = vpop.f32.mrf.mxu0 }
 0x258   :  { %v547_v14 = vadd.f32 %v8996_v30, %v546_v45  ;;  %v1167_v45 = vmul.f32 %v12079_v24, %v861_v33  ;;  %v1233_v21 = vunpack.c.l.b16 %v1098_v57  ;;  %v9553_v57 = vpop.f32.mrf.mxu1 }
 0x259   :  { %12083 = vst [vmem:[#allocation48_spill] sm:$0xff] %v9553_v57 }
 0x25a   :  { %v621_v59 = vmax.f32 %v547_v14, 0.0 }
 0x25c   :  { %v726_v10 = vmax.f32 %v619_v12, %v621_v59  ;;  %v12080_v12 = vunpack.i.l.bf16 %v8858_v48 }
 0x25d   :  { %v809_v39 = vld [vmem:[#allocation2 + $0x101] ss:$2 sm:$0xff] }
 0x25e   :  { %728 = vst.msk [vmem:[#allocation2 + $0x117] sm:$0xff] %vm628_vm6, %v726_v10  ;;  %v834_v17 = vmax.f32 %v767_v53, %v809_v39  ;;  %v1189_v10 = vpack.c.bf16 %v1167_v45, %v1167_v45  ;;  %v1318_v39 = vunpack.c.l.b16 %v1007_v50  ;;  %v9535_v50 = vld [vmem:[#allocation4] sm:$0xff] }
 0x25f   :  { %v549_v18 = vpop.f32.mrf.mxu0  ;;  %12081 = vst [vmem:[#allocation46_spill] sm:$0xff] %v9535_v50 }
 0x260   :  { %v9517_v31 = vrot.slane %v834_v17, 7  ;;  %v1398_v52 = vunpack.c.l.b16 %v1189_v10  ;;  %670 = vst.msk [vmem:[#allocation2 + $0x140] sm:$0xf] %vm669_vm1, %v9535_v50  ;;  %v12084_v10 = vrot.slane %v9402_v3, 5  ;;  %vm12007_vm1 = vcmask 523265  }
 0x262   :  { %v863_v63 = vsel %vm850_vm2, %v860_v13, %v9517_v31 }
 0x263   :  { %v1008_v20 = vpack.c.bf16 %v863_v63, %v863_v63  ;;  %v1077_v14 = vmul.f32 %v8929_v23, %v863_v63  ;;  %v1168_v59 = vmul.f32 %v12080_v12, %v863_v63  ;;  %v9551_v63 = vpop.f32.mrf.mxu2 }
 0x264   :  { %12082 = vst [vmem:[#allocation47_spill] sm:$0xff] %v9551_v63 }
 0x265   :  { %v1099_v53 = vpack.c.bf16 %v1077_v14, %v1077_v14  ;;  %v1190_v6 = vpack.c.bf16 %v1168_v59, %v1168_v59  ;;  %v1319_v7 = vunpack.c.l.b16 %v1008_v20 }
 0x267   :  { %v551_v24 = vpop.f32.mrf.mxu0  ;;  %v1234_v17 = vunpack.c.l.b16 %v1099_v53  ;;  %v1399_v33 = vunpack.c.l.b16 %v1190_v6  ;;  %v1332_v37 = vpack.c.b16 %v1319_v7, %v1318_v39 }
 0x269   :  { %v1247_v5 = vpack.c.b16 %v1234_v17, %v1233_v21  ;;  %v9524_v13 = vrot.slane %v1332_v37, 3  ;;  %v1412_v38 = vpack.c.b16 %v1399_v33, %v1398_v52  ;;  %v550_v37 = vadd.f32 %v8996_v30, %v549_v18 }
 0x26b   :  { %v9526_v23 = vrot.slane %v1247_v5, 3  ;;  %v9531_v48 = vsel %vm924_vm8, %v9393_v1, %v9524_v13  ;;  %v9533_v45 = vrot.slane %v1412_v38, 3  ;;  %v622_v33 = vmax.f32 %v550_v37, 0.0 }
 0x26c   :  { %v1512_v7 = vshll.u32 %v9531_v48, 16  ;;  %v11995_v5 = vrot.slane %v9531_v48, 5  ;;  %v11998_v59 = vshrl.u32 %v9531_v48, 16  ;;  %v12085_v38 = vrot.slane %v9424_v28, 1 }
 0x26d   :  { %v9543_v52 = vsel %vm924_vm8, %v9397_v0, %v9526_v23  ;;  %v9548_v1 = vsel %vm924_vm8, %v9404_v34, %v9533_v45 }
 0x26e   :  { %6885 = vmatmul.msk.bf16.gmra.mxu2 %vm628_vm6, %v9543_v52  ;;  %v1978_v18 = vshrl.u32 %v9543_v52, 16  ;;  %v1981_v20 = vshll.u32 %v9543_v52, 16  ;;  %v9559_v0 = vrot.slane %v1512_v7, 1  ;;  %v11996_v34 = vrot.slane %v9548_v1, 1 }
 0x26f   :  { %v554_v12 = vpop.f32.mrf.mxu0  ;;  %v9569_v53 = vsel %vm912_vm5, %v12084_v10, %v11995_v5  ;;  %v2733_v37 = vrot.slane %v1512_v7, 2  ;;  %v12086_v10 = vrot.slane %v9543_v52, 1 }
 0x270   :  { %v1980_v6 = vrot.slane %v1978_v18, 4  ;;  %v1983_v39 = vrot.slane %v1981_v20, 5  ;;  %v555_v21 = vadd.f32 %v8996_v30, %v554_v12  ;;  %v1515_v17 = vsel %vm1448_vm11, %v9450_v11, %v9559_v0 }
 0x271   :  { %6865 = vmatmul.msk.bf16.gmra.mxu1 %vm628_vm6, %v1515_v17  ;;  %v1774_v3 = vsel %vm936_vm10, %v12085_v38, %v11996_v34  ;;  %v2377_v20 = vshrl.u32 %v9548_v1, 16  ;;  %v2380_v12 = vshll.u32 %v9548_v1, 16  ;;  %v2732_v11 = vrot.slane %v11998_v59, 1  ;;  %v9601_v34 = vpop.f32.mrf.mxu3 }
 0x272   :  { %v624_v14 = vmax.f32 %v555_v21, 0.0  ;;  %6903 = vmatmul.msk.bf16.gmra.mxu3 %vm628_vm6, %v1774_v3  ;;  %v9582_v18 = vor.u32 %v1983_v39, %v1980_v6  ;;  %v12087_v17 = vrot.slane %v9419_v4, 1  ;;  %v11997_v21 = vrot.slane %v9548_v1, 2  ;;  %12089 = vst [vmem:[#allocation50_spill] sm:$0xff] %v9601_v34 }
 0x273   :  { %v2379_v39 = vrot.slane %v2377_v20, 5  ;;  %v2382_v3 = vrot.slane %v2380_v12, 6  ;;  %v9603_v7 = vor.u32 %v2733_v37, %v2732_v11  ;;  %v12090_v4 = vrot.slane %v9424_v28, 2  ;;  %v769_v37 = vld [vmem:[#allocation2 + $0x110] ss:$2 sm:$0xff] }
 0x274   :  { %v9593_v5 = vsel %vm936_vm10, %v12087_v17, %v12086_v10  ;;  %v729_v38 = vmax.f32 %v622_v33, %v624_v14  ;;  %v9599_v6 = vsel %vm1914_vm12, %v9453_v60, %v9582_v18  ;;  %v1722_v17 = vpop.f32.mrf.mxu2  ;;  %v552_v14 = vadd.f32 %v8996_v30, %v551_v24 }
 0x275   :  { %12088 = vst [vmem:[#allocation49_spill] sm:$0xff] %v9593_v5  ;;  %v9610_v10 = vsel %vm930_vm9, %v12090_v4, %v11997_v21  ;;  %v9614_v33 = vor.u32 %v2382_v3, %v2379_v39  ;;  %v9619_v11 = vsel %vm12006_vm14, %v9477_v16, %v9603_v7  ;;  %v811_v4 = vld [vmem:[#allocation2 + $0x111] ss:$2 sm:$0xff] }
 0x276   :  { %12091 = vst [vmem:[#allocation51_spill] sm:$0xff] %v9610_v10  ;;  %v1614_v60 = vpop.f32.mrf.mxu1  ;;  %v835_v39 = vmax.f32 %v769_v37, %v811_v4 }
 0x277   :  { %731 = vst.msk [vmem:[#allocation2 + $0x121] sm:$0xff] %vm628_vm6, %v729_v38  ;;  %v1723_v20 = vadd.f32 %v1722_v17, %v1614_v60  ;;  %v556_v12 = vpop.f32.mrf.mxu0  ;;  %v9625_v24 = vsel %vm1277_vm13, %v9457_v22, %v9614_v33  ;;  %v623_v38 = vmax.f32 %v552_v14, 0.0 }
 0x278   :  { %12092 = vst [vmem:[#allocation52_spill] sm:$0xff] %v9619_v11  ;;  %v557_v28 = vadd.f32 %v8996_v30, %v556_v12  ;;  %v864_v59 = vrot.slane %v835_v39, 7 }
 0x27a   :  { %v625_v21 = vmax.f32 %v557_v28, 0.0  ;;  %v865_v10 = vsel %vm850_vm2, %v9517_v31, %v864_v59 }
 0x27b   :  { %v1169_v4 = vmul.f32 %v8462_v41, %v865_v10  ;;  %v1009_v39 = vpack.c.bf16 %v865_v10, %v865_v10 }
 0x27c   :  { %v730_v3 = vmax.f32 %v623_v38, %v625_v21  ;;  %v1078_v21 = vmul.f32 %v8460_v40, %v865_v10 }
 0x27d   :  { %v1191_v40 = vpack.c.bf16 %v1169_v4, %v1169_v4 }
 0x27e   :  { %732 = vst.msk [vmem:[#allocation2 + $0x129] sm:$0xff] %vm628_vm6, %v730_v3 }
 0x27f   :  { %v1858_v17 = vpop.f32.mrf.mxu3  ;;  %v559_v16 = vpop.f32.mrf.mxu0 }
 0x280   :  { %v9628_v60 = vadd.f32 %v1858_v17, %v1723_v20  ;;  %v560_v12 = vadd.f32 %v8996_v30, %v559_v16  ;;  %v8114_v20 = vld [vmem:[%s11950_s2] ss:$0 sm:$0xff]  ;;  %v1100_v17 = vpack.c.bf16 %v1078_v21, %v1078_v21 }
 0x282   :  { %12093 = vst [vmem:[#allocation53_spill] sm:$0xff] %v9628_v60  ;;  %v626_v50 = vmax.f32 %v560_v12, 0.0  ;;  %v1235_v11 = vunpack.c.l.b16 %v1100_v17 }
 0x284   :  { %733 = vst.msk [vmem:[#allocation2 + $0x133] sm:$0xff] %vm628_vm6, %v626_v50 }
 0x285   :  { %v771_v22 = vld [vmem:[#allocation2 + $0x120] ss:$2 sm:$0xff]  ;;  %v813_v14 = vld [vmem:[#allocation2 + $0x121] ss:$2 sm:$0xff] }
 0x286   :  { %v836_v28 = vmax.f32 %v771_v22, %v813_v14  ;;  %v1320_v14 = vunpack.c.l.b16 %v1009_v39 }
 0x287   :  { %v561_v37 = vpop.f32.mrf.mxu0 }
 0x288   :  { %v562_v38 = vadd.f32 %v8114_v20, %v561_v37  ;;  %v866_v30 = vrot.slane %v836_v28, 7  ;;  %v1400_v28 = vunpack.c.l.b16 %v1191_v40 }
 0x28a   :  { %v627_v3 = vmax.f32 %v562_v38, 0.0  ;;  %v867_v31 = vsel %vm850_vm2, %v864_v59, %v866_v30 }
 0x28b   :  { %v1010_v50 = vpack.c.bf16 %v867_v31, %v867_v31  ;;  %v1079_v16 = vmul.f32 %v8465_v42, %v867_v31  ;;  %v1170_v12 = vmul.f32 %v8469_v44, %v867_v31 }
 0x28c   :  { %734 = vst.msk [vmem:[#allocation2 + $0x13b] sm:$0xff] %vm628_vm6, %v627_v3 }
 0x28d   :  { %v1101_v41 = vpack.c.bf16 %v1079_v16, %v1079_v16  ;;  %v1192_v22 = vpack.c.bf16 %v1170_v12, %v1170_v12  ;;  %v1321_v5 = vunpack.c.l.b16 %v1010_v50  ;;  %v12094_v50 = vshrl.u32 %v9531_v48, 16 }
 0x28f   :  { %v1236_v37 = vunpack.c.l.b16 %v1101_v41  ;;  %v1401_v10 = vunpack.c.l.b16 %v1192_v22  ;;  %v1333_v20 = vpack.c.b16 %v1321_v5, %v1320_v14 }
 0x291   :  { %v1248_v38 = vpack.c.b16 %v1236_v37, %v1235_v11  ;;  %v9643_v59 = vrot.slane %v1333_v20, 3  ;;  %v1413_v21 = vpack.c.b16 %v1401_v10, %v1400_v28 }
 0x293   :  { %v9645_v60 = vrot.slane %v1248_v38, 3  ;;  %v9650_v42 = vsel %vm924_vm8, %v9524_v13, %v9643_v59  ;;  %v9652_v44 = vrot.slane %v1413_v21, 3  ;;  %v773_v4 = vld [vmem:[#allocation2 + $0x130] ss:$2 sm:$0xff]  ;;  %v815_v39 = vld [vmem:[#allocation2 + $0x131] ss:$2 sm:$0xff]  ;;  %v1518_v13 = vor.u32 %v12094_v50, %v9559_v0 }
 0x294   :  { %v1520_v3 = vshll.u32 %v9650_v42, 16  ;;  %v775_v31 = vld [vmem:[#allocation2 + $0x140] ss:$2 sm:$0x3]  ;;  %v837_v17 = vmax.f32 %v773_v4, %v815_v39  ;;  %v12001_v5 = vrot.slane %v9650_v42, 5  ;;  %v12096_v4 = vrot.slane %v9548_v1, 1 }
 0x295   :  { %v9659_v11 = vsel %vm924_vm8, %v9526_v23, %v9645_v60  ;;  %v9667_v16 = vsel %vm924_vm8, %v9533_v45, %v9652_v44  ;;  %v817_v12 = vld [vmem:[#allocation2 + $0x141] ss:$2 sm:$0x3]  ;;  %v12003_v23 = vshrl.u32 %v9650_v42, 16  ;;  %v12095_v45 = vrot.slane %v9531_v48, 5 }
 0x296   :  { %6886 = vmatmul.msk.bf16.gmra.mxu2 %vm628_vm6, %v9659_v11  ;;  %v1986_v40 = vshrl.u32 %v9659_v11, 16  ;;  %v1989_v41 = vshll.u32 %v9659_v11, 16  ;;  %v9673_v22 = vrot.slane %v1520_v3, 1  ;;  %v12002_v14 = vrot.slane %v9667_v16, 1 }
 0x297   :  { %v838_v0 = vmax.f32 %v775_v31, %v817_v12  ;;  %v868_v37 = vrot.slane %v837_v17, 7  ;;  %v9682_v28 = vsel %vm912_vm5, %v12095_v45, %v12001_v5  ;;  %v2386_v17 = vshrl.u32 %v9667_v16, 16  ;;  %v1058_v45 = vpop.permute.xlu2 %1057 }
 0x298   :  { %v1988_v10 = vrot.slane %v1986_v40, 4  ;;  %v1991_v20 = vrot.slane %v1989_v41, 5  ;;  %v1523_v21 = vsel %vm1448_vm11, %v1518_v13, %v9673_v22  ;;  %v1776_v39 = vsel %vm936_vm10, %v12096_v4, %v12002_v14  ;;  %v1149_v41 = vpop.permute.xlu1 %1148 }
 0x299   :  { %6866 = vmatmul.msk.bf16.gmra.mxu1 %vm628_vm6, %v1523_v21  ;;  %v869_v48 = vsel %vm850_vm2, %v866_v30, %v868_v37  ;;  %v870_v31 = vrot.slane %v838_v0, 7  ;;  %6904 = vmatmul.msk.bf16.gmra.mxu3 %vm628_vm6, %v1776_v39  ;;  %v2388_v5 = vrot.slane %v2386_v17, 5  ;;  %v2389_v4 = vshll.u32 %v9667_v16, 16 }
 0x29a   :  { %v1011_v50 = vpack.c.bf16 %v869_v48, %v869_v48  ;;  %v1080_v12 = vmul.f32 %v8578_v29, %v869_v48  ;;  %v1171_v13 = vmul.f32 %v8575_v32, %v869_v48  ;;  %v9698_v40 = vor.u32 %v1991_v20, %v1988_v10 }
 0x29b   :  { %v871_v21 = vsel %vm850_vm2, %v868_v37, %v870_v31  ;;  %v2736_v30 = vrot.slane %v12003_v23, 1  ;;  %v2391_v10 = vrot.slane %v2389_v4, 6  ;;  %v2737_v23 = vrot.slane %v1520_v3, 2 }
 0x29c   :  { %v1012_v0 = vpack.c.bf16 %v871_v21, %v871_v21  ;;  %v1081_v14 = vmul.f32 %v1058_v45, %v871_v21  ;;  %v1102_v39 = vpack.c.bf16 %v1080_v12, %v1080_v12  ;;  %v1172_v38 = vmul.f32 %v1149_v41, %v871_v21 }
 0x29d   :  { %v1193_v34 = vpack.c.bf16 %v1171_v13, %v1171_v13  ;;  %v1322_v29 = vunpack.c.l.b16 %v1011_v50  ;;  %v9707_v32 = vsel %vm1914_vm12, %v9582_v18, %v9698_v40  ;;  %v9709_v63 = vor.u32 %v2391_v10, %v2388_v5 }
 0x29e   :  { %v1103_v20 = vpack.c.bf16 %v1081_v14, %v1081_v14  ;;  %v1194_v37 = vpack.c.bf16 %v1172_v38, %v1172_v38  ;;  %v1237_v48 = vunpack.c.l.b16 %v1102_v39  ;;  %v1323_v31 = vunpack.c.l.b16 %v1012_v0 }
 0x29f   :  { %v1402_v17 = vunpack.c.l.b16 %v1193_v34  ;;  %v12097_v45 = vrot.slane %v9659_v11, 1  ;;  %v12098_v12 = vrot.slane %v9543_v52, 1  ;;  %v12004_v21 = vrot.slane %v9667_v16, 2 }
 0x2a0   :  { %v1238_v13 = vunpack.c.l.b16 %v1103_v20  ;;  %v1403_v41 = vunpack.c.l.b16 %v1194_v37  ;;  %v1334_v18 = vpack.c.b16 %v1323_v31, %v1322_v29  ;;  %v9728_v34 = vsel %vm1277_vm13, %v9614_v33, %v9709_v63 }
 0x2a1   :  { %v9716_v50 = vsel %vm936_vm10, %v12098_v12, %v12097_v45  ;;  %v9730_v52 = vor.u32 %v2737_v23, %v2736_v30  ;;  %v12102_v4 = vrot.slane %v9548_v1, 2 }
 0x2a2   :  { %12099 = vst [vmem:[#allocation54_spill] sm:$0xff] %v9716_v50  ;;  %v1249_v3 = vpack.c.b16 %v1238_v13, %v1237_v48  ;;  %v1354_v5 = vrot.slane %v1334_v18, 3  ;;  %v1414_v38 = vpack.c.b16 %v1403_v41, %v1402_v17  ;;  %v9753_v48 = vpop.f32.mrf.mxu2  ;;  %v12107_v17 = vshrl.u32 %v9650_v42, 16  ;;  %v7831_v18 = vld [vmem:[%s11951_s3 + $0x78] sm:$0xff] }
 0x2a3   :  { %v9737_v0 = vsel %vm930_vm9, %v12102_v4, %v12004_v21  ;;  %v9742_v39 = vsel %vm12006_vm14, %v9603_v7, %v9730_v52  ;;  %12105 = vst [vmem:[#allocation57_spill] sm:$0xff] %v9753_v48  ;;  %v9755_v7 = vpop.f32.mrf.mxu1  ;;  %2804 = vmatpush.bf16.msra.mxu2 %v7831_v18 }
 0x2a4   :  { %12103 = vst [vmem:[#allocation55_spill] sm:$0xff] %v9737_v0  ;;  %v1270_v29 = vrot.slane %v1249_v3, 3  ;;  %v9746_v33 = vsel %vm924_vm8, %v9643_v59, %v1354_v5  ;;  %v1434_v23 = vrot.slane %v1414_v38, 3  ;;  %v1359_v30 = vsel %vm9721_vm3, %v1354_v5, 0 }
 0x2a5   :  { %12104 = vst [vmem:[#allocation56_spill] sm:$0xff] %v9742_v39  ;;  %v1528_v10 = vshll.u32 %v9746_v33, 16  ;;  %v12005_v1 = vshrl.u32 %v9746_v33, 16  ;;  %v2167_v20 = vrot.slane %v9746_v33, 5  ;;  %v2169_v37 = vrot.slane %v1359_v30, 5 }
 0x2a6   :  { %12106 = vst [vmem:[#allocation58_spill] sm:$0xff] %v9755_v7  ;;  %v9759_v31 = vsel %vm924_vm8, %v9645_v60, %v1270_v29  ;;  %v9763_v59 = vsel %vm9721_vm3, %v1270_v29, 0  ;;  %v1526_v45 = vor.u32 %v12107_v17, %v9673_v22  ;;  %v9770_v12 = vsel %vm924_vm8, %v9652_v44, %v1434_v23 }
 0x2a7   :  { %6887 = vmatmul.msk.bf16.gmra.mxu2 %vm628_vm6, %v9759_v31  ;;  %v1994_v13 = vshrl.u32 %v9759_v31, 16  ;;  %v1997_v60 = vshll.u32 %v9759_v31, 16  ;;  %v1530_v41 = vrot.slane %v1528_v10, 1  ;;  %v9781_v3 = vsel %vm9721_vm3, %v1434_v23, 0 }
 0x2a8   :  { %v2565_v22 = vrot.slane %v9759_v31, 1  ;;  %v1777_v44 = vrot.slane %v9770_v12, 1  ;;  %v12108_v5 = vrot.slane %v9650_v42, 5  ;;  %v9791_v4 = vsel %vm912_vm5, %v2167_v20, %v2169_v37  ;;  %v7833_v37 = vld [vmem:[%s11951_s3 + $0x88] sm:$0xff] }
 0x2a9   :  { %v1996_v29 = vrot.slane %v1994_v13, 4  ;;  %v1999_v17 = vrot.slane %v1997_v60, 5  ;;  %v1531_v21 = vsel %vm1448_vm11, %v1526_v45, %v1530_v41  ;;  %v2740_v14 = vrot.slane %v12005_v1, 1  ;;  %2962 = vmatpush.bf16.msra.mxu3 %v7833_v37 }
 0x2aa   :  { %v9788_v38 = vsel %vm912_vm5, %v12108_v5, %v2167_v20  ;;  %6867 = vmatmul.msk.bf16.gmra.mxu1 %vm628_vm6, %v1531_v21  ;;  %v12109_v23 = vrot.slane %v9667_v16, 1  ;;  %v2395_v31 = vshrl.u32 %v9770_v12, 16  ;;  %v2398_v5 = vshll.u32 %v9770_v12, 16  ;;  %v7829_v21 = vld [vmem:[%s11951_s3 + $0x68] sm:$0xff]  ;;  %v1727_v7 = vpop.f32.mrf.mxu2 }
 0x2ab   :  { %v2003_v20 = vshrl.u32 %v9763_v59, 16  ;;  %v2000_v45 = vor.u32 %v1999_v17, %v1996_v29  ;;  %v2006_v13 = vshll.u32 %v9763_v59, 16  ;;  %v2404_v60 = vshrl.u32 %v9781_v3, 16  ;;  %2620 = vmatpush.bf16.msra.mxu1 %v7829_v21 }
 0x2ac   :  { %v1778_v42 = vsel %vm936_vm10, %v12109_v23, %v1777_v44  ;;  %v2407_v18 = vshll.u32 %v9781_v3, 16  ;;  %v2397_v23 = vrot.slane %v2395_v31, 5  ;;  %v2400_v1 = vrot.slane %v2398_v5, 6 }
 0x2ad   :  { %6905 = vmatmul.msk.bf16.gmra.mxu3 %vm628_vm6, %v1778_v42  ;;  %v2005_v0 = vrot.slane %v2003_v20, 4  ;;  %v2741_v50 = vrot.slane %v1528_v10, 2  ;;  %v9813_v42 = vpop.f32.mrf.mxu3  ;;  %v9817_v39 = vsel %vm1914_vm12, %v9698_v40, %v2000_v45  ;;  %v2008_v48 = vrot.slane %v2006_v13, 5 }
 0x2ae   :  { %12110 = vst [vmem:[#allocation59_spill] sm:$0xff] %v9813_v42  ;;  %v2406_v29 = vrot.slane %v2404_v60, 5  ;;  %v2409_v17 = vrot.slane %v2407_v18, 6  ;;  %v1619_v57 = vpop.f32.mrf.mxu1  ;;  %v2401_v61 = vor.u32 %v2400_v1, %v2397_v23  ;;  %v2745_v19 = vshrl.u32 %v1359_v30, 16 }
 0x2af   :  { %v2742_v54 = vor.u32 %v2741_v50, %v2740_v14  ;;  %v2748_v31 = vshll.u32 %v1359_v30, 16  ;;  %v1728_v5 = vadd.f32 %v1727_v7, %v1619_v57  ;;  %v2009_v20 = vor.u32 %v2008_v48, %v2005_v0 }
 0x2b0   :  { %v2410_v10 = vor.u32 %v2409_v17, %v2406_v29  ;;  %v12111_v42 = vrot.slane %v9659_v11, 1  ;;  %v9826_v40 = vsel %vm1277_vm13, %v9709_v63, %v2401_v61  ;;  %v2747_v1 = vrot.slane %v2745_v19, 1  ;;  %v12117_v29 = vld [vmem:[#allocation29_spill] sm:$0xff] }
 0x2b1   :  { %v9830_v21 = vsel %vm12006_vm14, %v9730_v52, %v2742_v54  ;;  %v2750_v50 = vrot.slane %v2748_v31, 2  ;;  %v9833_v30 = vsel %vm1914_vm12, %v2000_v45, %v2009_v20  ;;  %v2907_v11 = vrot.slane %v9770_v12, 2 }
 0x2b2   :  { %v9822_v37 = vsel %vm936_vm10, %v12111_v42, %v2565_v22  ;;  %v9836_v57 = vsel %vm1277_vm13, %v2401_v61, %v2410_v10  ;;  %v2567_v0 = vrot.slane %v9763_v59, 1  ;;  %v2909_v63 = vrot.slane %v9781_v3, 2  ;;  %v12116_v42 = vld [vmem:[#allocation28_spill] sm:$0xff] }
 0x2b3   :  { %v9840_v48 = vor.u32 %v2750_v50, %v2747_v1  ;;  %v12112_v7 = vrot.slane %v9667_v16, 2  ;;  %v12113_v16 = vshrl.u32 %v9746_v33, 16  ;;  %v12115_v33 = vld [vmem:[#allocation21_spill] sm:$0xff]  ;;  %vm3103_vm12 = vcmask 519168  }
 0x2b4   :  { %v9851_v19 = vsel %vm936_vm10, %v2565_v22, %v2567_v0  ;;  %v9860_v12 = vsel %vm930_vm9, %v2907_v11, %v2909_v63  ;;  %v7841_v22 = vld [vmem:[%s11953_s5 + $0x38] sm:$0xff]  ;;  %vm3144_vm3 = vcmask 521216  }
 0x2b5   :  { %v9846_v52 = vsel %vm930_vm9, %v12112_v7, %v2907_v11  ;;  %v9855_v61 = vsel %vm12006_vm14, %v2742_v54, %v9840_v48  ;;  %v1863_v14 = vpop.f32.mrf.mxu3  ;;  %v1534_v13 = vor.u32 %v12113_v16, %v1530_v41  ;;  %4033 = vmatpush.bf16.msrb.mxu0 %v7841_v22  ;;  %vm3155_vm14 = vcmask 523271  }
 0x2b6   :  { %v9862_v45 = vadd.f32 %v1863_v14, %v1728_v5  ;;  %v9884_v54 = vpop.f32.mrf.mxu1 }
 0x2b7   :  { %6934 = vmatmul.msk.bf16.vlgmr.msrb.gmra.mxu2 %vm628_vm6, %v8666_v9  ;;  %v9882_v9 = vpop.f32.mrf.mxu2 }
 0x2ba   :  { %6868 = vmatmul.msk.bf16.gmra.mxu1 %vm628_vm6, %v1534_v13 }
 0x2bd   :  { %6906 = vmatmul.msk.bf16.gmra.mxu3 %vm628_vm6, %v1777_v44 }
 0x2c7   :  { %6935 = vmatmul.msk.bf16.gmra.mxu2 %vm628_vm6, %v8759_v8 }
 0x2ca   :  { %6915 = vmatmul.msk.bf16.vlgmr.msrb.gmra.mxu1 %vm628_vm6, %v8676_v51  ;;  %v9892_v51 = vpop.f32.mrf.mxu3 }
 0x2cd   :  { %6953 = vmatmul.msk.bf16.vlgmr.msrb.gmra.mxu3 %vm628_vm6, %v8682_v56  ;;  %v1732_v56 = vpop.f32.mrf.mxu2 }
 0x2d7   :  { %6936 = vmatmul.msk.bf16.gmra.mxu2 %vm628_vm6, %v8947_v27 }
 0x2da   :  { %6916 = vmatmul.msk.bf16.gmra.mxu1 %vm628_vm6, %v8798_v43 }
 0x2dd   :  { %6954 = vmatmul.msk.bf16.gmra.mxu3 %vm628_vm6, %v8811_v47 }
 0x2e7   :  { %6937 = vmatmul.msk.bf16.gmra.mxu2 %vm628_vm6, %v9055_v55  ;;  %v7832_v55 = vld [vmem:[%s11951_s3 + $0x80] sm:$0xff] }
 0x2e8   :  { %2963 = vmatpush.bf16.msra.mxu3 %v7832_v55 }
 0x2ea   :  { %6917 = vmatmul.msk.bf16.gmra.mxu1 %vm628_vm6, %v8952_v49  ;;  %v9902_v49 = vpop.f32.mrf.mxu2 }
 0x2ed   :  { %6955 = vmatmul.msk.bf16.gmra.mxu3 %vm628_vm6, %v8983_v25  ;;  %v7830_v25 = vld [vmem:[%s11951_s3 + $0x70] sm:$0xff] }
 0x2ee   :  { %v1624_v8 = vpop.f32.mrf.mxu1  ;;  %2805 = vmatpush.bf16.msra.mxu2 %v7830_v25 }
 0x2ef   :  { %v1733_v43 = vadd.f32 %v1732_v56, %v1624_v8 }
 0x2f5   :  { %v1868_v27 = vpop.f32.mrf.mxu3 }
 0x2f6   :  { %v9894_v47 = vadd.f32 %v1868_v27, %v1733_v43  ;;  %v9919_v41 = vpop.f32.mrf.mxu1 }
 0x2f7   :  { %6938 = vmatmul.msk.bf16.gmra.mxu2 %vm628_vm6, %v9156_v36  ;;  %v7828_v36 = vld [vmem:[%s11951_s3 + $0x60] sm:$0xff]  ;;  %s8146_s3 = smov 64  }
 0x2f8   :  { %2621 = vmatpush.bf16.msra.mxu1 %v7828_v36 }
 0x2fa   :  { %6918 = vmatmul.msk.bf16.gmra.mxu1 %vm628_vm6, %v9086_v58  ;;  %v1737_v58 = vpop.f32.mrf.mxu2 }
 0x2fd   :  { %6956 = vmatmul.msk.bf16.gmra.mxu3 %vm628_vm6, %v9095_v35  ;;  %v12114_v35 = vld [vmem:[#allocation19_spill] sm:$0xff]  ;;  %v9924_v60 = vpop.f32.mrf.mxu3 }
 0x302   :  { %v1739_v44 = vpop.f32.mrf.mxu2 }
 0x307   :  { %6939 = vmatmul.msk.bf16.gmra.mxu2 %vm628_vm6, %v9292_v46 }
 0x30a   :  { %6919 = vmatmul.msk.bf16.gmra.mxu1 %vm628_vm6, %v12114_v35 }
 0x30d   :  { %6957 = vmatmul.msk.bf16.gmra.mxu3 %vm628_vm6, %v12115_v33 }
 0x316   :  { %v1629_v18 = vpop.f32.mrf.mxu1 }
 0x317   :  { %v1738_v23 = vadd.f32 %v1737_v58, %v1629_v18  ;;  %6940 = vmatmul.msk.bf16.gmra.mxu2 %vm628_vm6, %v9438_v62 }
 0x319   :  { %v1742_v46 = vpop.f32.mrf.mxu2 }
 0x31a   :  { %6920 = vmatmul.msk.bf16.gmra.mxu1 %vm628_vm6, %v12116_v42 }
 0x31c   :  { %v1873_v17 = vpop.f32.mrf.mxu3 }
 0x31d   :  { %6958 = vmatmul.msk.bf16.gmra.mxu3 %vm628_vm6, %v12117_v29  ;;  %v9932_v31 = vadd.f32 %v1873_v17, %v1738_v23  ;;  %v12119_v23 = vld [vmem:[#allocation24_spill] sm:$0xff]  ;;  %v12121_v29 = vld [vmem:[#allocation25_spill] sm:$0xff] }
 0x31e   :  { %v1631_v5 = vpop.f32.mrf.mxu1 }
 0x31f   :  { %v1740_v20 = vadd.f32 %v1739_v44, %v1631_v5 }
 0x321   :  { %v1744_v10 = vpop.f32.mrf.mxu2 }
 0x324   :  { %v1875_v1 = vpop.f32.mrf.mxu3 }
 0x325   :  { %v9934_v50 = vadd.f32 %v1875_v1, %v1740_v20 }
 0x327   :  { %v1634_v11 = vpop.f32.mrf.mxu1  ;;  %6941 = vmatmul.msk.bf16.gmra.mxu2 %vm628_vm6, %v9569_v53 }
 0x328   :  { %v1743_v62 = vadd.f32 %v1742_v46, %v1634_v11  ;;  %v12120_v46 = vld [vmem:[#allocation23_spill] sm:$0xff] }
 0x329   :  { %v1700_v42 = vadd.f32 %v12120_v46, %v12119_v23 }
 0x32a   :  { %v1747_v7 = vpop.f32.mrf.mxu2  ;;  %6921 = vmatmul.msk.bf16.gmra.mxu1 %vm628_vm6, %v9470_v15 }
 0x32b   :  { %v1889_v17 = vadd.f32 %v12121_v29, %v1700_v42  ;;  %v12128_v42 = vld [vmem:[#allocation37_spill] sm:$0xff]  ;;  %v12129_v29 = vld [vmem:[#allocation36_spill] sm:$0xff] }
 0x32d   :  { %6959 = vmatmul.msk.bf16.gmra.mxu3 %vm628_vm6, %v9475_v2 }
 0x32f   :  { %v1636_v13 = vpop.f32.mrf.mxu1 }
 0x330   :  { %v1878_v14 = vpop.f32.mrf.mxu3  ;;  %v1745_v56 = vadd.f32 %v1744_v10, %v1636_v13 }
 0x331   :  { %v9942_v16 = vadd.f32 %v1878_v14, %v1743_v62  ;;  %v12122_v14 = vld [vmem:[#allocation26_spill] sm:$0xff] }
 0x332   :  { %v1749_v8 = vpop.f32.mrf.mxu2 }
 0x337   :  { %v1639_v25 = vpop.f32.mrf.mxu1  ;;  %6942 = vmatmul.msk.bf16.gmra.mxu2 %vm628_vm6, %v9682_v28  ;;  %v12118_v28 = vld [vmem:[#allocation14_spill] sm:$0xff] }
 0x338   :  { %v1880_v43 = vpop.f32.mrf.mxu3  ;;  %v1748_v53 = vadd.f32 %v1747_v7, %v1639_v25  ;;  %v12124_v25 = vld [vmem:[#allocation32_spill] sm:$0xff] }
 0x339   :  { %v9944_v27 = vadd.f32 %v1880_v43, %v1745_v56  ;;  %v12123_v43 = vld [vmem:[#allocation33_spill] sm:$0xff] }
 0x33a   :  { %6922 = vmatmul.msk.bf16.gmra.mxu1 %vm628_vm6, %v9599_v6  ;;  %v2225_v15 = vpop.f32.mrf.mxu2 }
 0x33d   :  { %6960 = vmatmul.msk.bf16.gmra.mxu3 %vm628_vm6, %v9625_v24 }
 0x33f   :  { %v1641_v36 = vpop.f32.mrf.mxu1 }
 0x340   :  { %v1883_v2 = vpop.f32.mrf.mxu3  ;;  %v1750_v58 = vadd.f32 %v1749_v8, %v1641_v36 }
 0x341   :  { %v9952_v55 = vadd.f32 %v1883_v2, %v1748_v53  ;;  %v1705_v53 = vadd.f32 %v12124_v25, %v12123_v43  ;;  %v12132_v43 = vld [vmem:[#allocation8_spill] sm:$0xff] }
 0x342   :  { %v2227_v35 = vpop.f32.mrf.mxu2 }
 0x347   :  { %v2065_v44 = vpop.f32.mrf.mxu1  ;;  %6943 = vmatmul.msk.bf16.gmra.mxu2 %vm628_vm6, %v9788_v38  ;;  %v7840_v38 = vld [vmem:[%s11953_s5 + $0x30] sm:$0xff] }
 0x348   :  { %v1885_v33 = vpop.f32.mrf.mxu3  ;;  %v2120_v18 = vadd.f32 %v2065_v44, %v12118_v28  ;;  %4034 = vmatpush.bf16.msrb.mxu0 %v7840_v38 }
 0x349   :  { %v9954_v22 = vadd.f32 %v1885_v33, %v1750_v58 }
 0x34a   :  { %6923 = vmatmul.msk.bf16.gmra.mxu1 %vm628_vm6, %v9707_v32  ;;  %v2230_v6 = vpop.f32.mrf.mxu2  ;;  %v2280_v24 = vadd.f32 %v2225_v15, %v2120_v18  ;;  %v12125_v15 = vld [vmem:[#allocation34_spill] sm:$0xff] }
 0x34b   :  { %v1891_v2 = vadd.f32 %v12125_v15, %v1705_v53  ;;  %v12133_v53 = vld [vmem:[#allocation10_spill] sm:$0xff]  ;;  %v12134_v15 = vld [vmem:[#allocation40_spill] sm:$0xff] }
 0x34d   :  { %6961 = vmatmul.msk.bf16.gmra.mxu3 %vm628_vm6, %v9728_v34 }
 0x34f   :  { %v2067_v10 = vpop.f32.mrf.mxu1 }
 0x350   :  { %v2466_v5 = vpop.f32.mrf.mxu3  ;;  %v2121_v1 = vadd.f32 %v2067_v10, %v1889_v17  ;;  %v1710_v17 = vadd.f32 %v12129_v29, %v12128_v42  ;;  %v12138_v42 = vld [vmem:[#allocation45_spill] sm:$0xff] }
 0x351   :  { %v9966_v20 = vadd.f32 %v2466_v5, %v2280_v24  ;;  %v12130_v5 = vld [vmem:[#allocation38_spill] sm:$0xff] }
 0x352   :  { %v2232_v32 = vpop.f32.mrf.mxu2  ;;  %v2281_v11 = vadd.f32 %v2227_v35, %v2121_v1  ;;  %v1893_v10 = vadd.f32 %v12130_v5, %v1710_v17  ;;  %v12139_v5 = vld [vmem:[#allocation11_spill] sm:$0xff] }
 0x357   :  { %v2070_v34 = vpop.f32.mrf.mxu1  ;;  %6944 = vmatmul.msk.bf16.gmra.mxu2 %vm628_vm6, %v9791_v4 }
 0x358   :  { %v2468_v62 = vpop.f32.mrf.mxu3  ;;  %v2122_v13 = vadd.f32 %v2070_v34, %v12122_v14 }
 0x359   :  { %v9971_v7 = vadd.f32 %v2468_v62, %v2281_v11 }
 0x35a   :  { %6924 = vmatmul.msk.bf16.gmra.mxu1 %vm628_vm6, %v9817_v39  ;;  %v2235_v56 = vpop.f32.mrf.mxu2  ;;  %v2282_v8 = vadd.f32 %v2230_v6, %v2122_v13  ;;  %v12126_v6 = vld [vmem:[#allocation9_spill] sm:$0xff] }
 0x35d   :  { %6962 = vmatmul.msk.bf16.gmra.mxu3 %vm628_vm6, %v9826_v40  ;;  %v12127_v40 = vld [vmem:[#allocation35_spill] sm:$0xff] }
 0x35f   :  { %v2072_v35 = vpop.f32.mrf.mxu1 }
 0x360   :  { %v2471_v36 = vpop.f32.mrf.mxu3  ;;  %v2123_v4 = vadd.f32 %v2072_v35, %v1891_v2  ;;  %v12135_v2 = vld [vmem:[#allocation39_spill] sm:$0xff]  ;;  %v12136_v35 = vld [vmem:[#allocation41_spill] sm:$0xff] }
 0x361   :  { %v9983_v58 = vadd.f32 %v2471_v36, %v2282_v8  ;;  %v1715_v36 = vadd.f32 %v12135_v2, %v12134_v15 }
 0x362   :  { %v2237_v33 = vpop.f32.mrf.mxu2  ;;  %v2283_v44 = vadd.f32 %v2232_v32, %v2123_v4 }
 0x363   :  { %v1895_v4 = vadd.f32 %v12136_v35, %v1715_v36  ;;  %v12144_v35 = vld [vmem:[#allocation22_spill] sm:$0xff] }
 0x367   :  { %v2075_v39 = vpop.f32.mrf.mxu1  ;;  %6991 = vmatmul.msk.bf16.vlgmr.msra.gmra.mxu2 %vm628_vm6, %v12126_v6 }
 0x368   :  { %v2473_v28 = vpop.f32.mrf.mxu3  ;;  %v2124_v24 = vadd.f32 %v2075_v39, %v12127_v40 }
 0x369   :  { %v9985_v18 = vadd.f32 %v2473_v28, %v2283_v44 }
 0x36a   :  { %6925 = vmatmul.msk.bf16.gmra.mxu1 %vm628_vm6, %v9833_v30  ;;  %v2240_v23 = vpop.f32.mrf.mxu2  ;;  %v2284_v46 = vadd.f32 %v2235_v56, %v2124_v24  ;;  %v12131_v56 = vld [vmem:[#allocation13_spill] sm:$0xff] }
 0x36d   :  { %6963 = vmatmul.msk.bf16.gmra.mxu3 %vm628_vm6, %v9836_v57 }
 0x36f   :  { %v2077_v32 = vpop.f32.mrf.mxu1 }
 0x370   :  { %v2476_v38 = vpop.f32.mrf.mxu3  ;;  %v2125_v11 = vadd.f32 %v2077_v32, %v1893_v10  ;;  %v12141_v32 = vld [vmem:[#allocation48_spill] sm:$0xff] }
 0x371   :  { %v9997_v1 = vadd.f32 %v2476_v38, %v2284_v46  ;;  %v12140_v38 = vld [vmem:[#allocation12_spill] sm:$0xff] }
 0x372   :  { %v2242_v62 = vpop.f32.mrf.mxu2  ;;  %v2285_v34 = vadd.f32 %v2237_v33, %v2125_v11  ;;  %v12142_v11 = vld [vmem:[#allocation47_spill] sm:$0xff] }
 0x377   :  { %v2080_v30 = vpop.f32.mrf.mxu1  ;;  %6992 = vmatmul.msk.bf16.gmra.mxu2 %vm628_vm6, %v12131_v56 }
 0x378   :  { %v2478_v14 = vpop.f32.mrf.mxu3  ;;  %v2126_v57 = vadd.f32 %v2080_v30, %v9395_v26 }
 0x379   :  { %v9999_v13 = vadd.f32 %v2478_v14, %v2285_v34  ;;  %v12143_v34 = vld [vmem:[#allocation50_spill] sm:$0xff] }
 0x37a   :  { %v2245_v8 = vpop.f32.mrf.mxu2  ;;  %6972 = vmatmul.msk.bf16.vlgmr.msra.gmra.mxu1 %vm628_vm6, %v12132_v43  ;;  %v2286_v25 = vadd.f32 %v2240_v23, %v2126_v57  ;;  %v12137_v23 = vld [vmem:[#allocation17_spill] sm:$0xff] }
 0x37b   :  { %v7839_v43 = vld [vmem:[%s11953_s5 + $0x28] sm:$0xff] }
 0x37c   :  { %4035 = vmatpush.bf16.msrb.mxu0 %v7839_v43 }
 0x37d   :  { %7010 = vmatmul.msk.bf16.vlgmr.msra.gmra.mxu3 %vm628_vm6, %v12133_v53 }
 0x37f   :  { %v2082_v28 = vpop.f32.mrf.mxu1 }
 0x380   :  { %v2481_v33 = vpop.f32.mrf.mxu3  ;;  %v2127_v39 = vadd.f32 %v2082_v28, %v1895_v4  ;;  %v12145_v4 = vld [vmem:[#allocation53_spill] sm:$0xff] }
 0x381   :  { %v10011_v44 = vadd.f32 %v2481_v33, %v2286_v25 }
 0x382   :  { %v2247_v6 = vpop.f32.mrf.mxu2  ;;  %v2287_v26 = vadd.f32 %v2242_v62, %v2127_v39  ;;  %v1720_v62 = vadd.f32 %v12142_v11, %v12141_v32  ;;  %v12146_v39 = vld [vmem:[#allocation15_spill] sm:$0xff] }
 0x384   :  { %v1897_v14 = vadd.f32 %v12143_v34, %v1720_v62 }
 0x387   :  { %v2085_v46 = vpop.f32.mrf.mxu1  ;;  %6993 = vmatmul.msk.bf16.gmra.mxu2 %vm628_vm6, %v12137_v23  ;;  %v12149_v23 = vld [vmem:[#allocation57_spill] sm:$0xff] }
 0x388   :  { %v2483_v40 = vpop.f32.mrf.mxu3  ;;  %v2128_v29 = vadd.f32 %v2085_v46, %v12138_v42  ;;  %v12148_v46 = vld [vmem:[#allocation58_spill] sm:$0xff]  ;;  %v12150_v42 = vld [vmem:[#allocation59_spill] sm:$0xff] }
 0x389   :  { %v10013_v24 = vadd.f32 %v2483_v40, %v2287_v26  ;;  %v12147_v40 = vld [vmem:[#allocation16_spill] sm:$0xff] }
 0x38a   :  { %v2250_v17 = vpop.f32.mrf.mxu2  ;;  %6973 = vmatmul.msk.bf16.gmra.mxu1 %vm628_vm6, %v12139_v5  ;;  %v2288_v10 = vadd.f32 %v2245_v8, %v2128_v29 }
 0x38d   :  { %7011 = vmatmul.msk.bf16.gmra.mxu3 %vm628_vm6, %v12140_v38 }
 0x38f   :  { %v2087_v57 = vpop.f32.mrf.mxu1 }
 0x390   :  { %v2486_v30 = vpop.f32.mrf.mxu3  ;;  %v2129_v25 = vadd.f32 %v2087_v57, %v1897_v14 }
 0x391   :  { %v10025_v56 = vadd.f32 %v2486_v30, %v2288_v10 }
 0x392   :  { %v2252_v53 = vpop.f32.mrf.mxu2  ;;  %v2289_v8 = vadd.f32 %v2247_v6, %v2129_v25  ;;  %v1725_v6 = vadd.f32 %v12149_v23, %v12148_v46  ;;  %v12152_v25 = vld [vmem:[#allocation18_spill] sm:$0xff] }
 0x394   :  { %v1899_v29 = vadd.f32 %v12150_v42, %v1725_v6 }
 0x397   :  { %v2090_v36 = vpop.f32.mrf.mxu1  ;;  %6994 = vmatmul.msk.bf16.gmra.mxu2 %vm628_vm6, %v12144_v35 }
 0x398   :  { %v2488_v15 = vpop.f32.mrf.mxu3  ;;  %v2130_v33 = vadd.f32 %v2090_v36, %v12145_v4 }
 0x399   :  { %v10030_v2 = vadd.f32 %v2488_v15, %v2289_v8  ;;  %v12153_v15 = vld [vmem:[#allocation20_spill] sm:$0xff] }
 0x39a   :  { %v2255_v28 = vpop.f32.mrf.mxu2  ;;  %6974 = vmatmul.msk.bf16.gmra.mxu1 %vm628_vm6, %v12146_v39  ;;  %v2290_v26 = vadd.f32 %v2250_v17, %v2130_v33  ;;  %v12151_v17 = vld [vmem:[#allocation31_spill] sm:$0xff] }
 0x39d   :  { %7012 = vmatmul.msk.bf16.gmra.mxu3 %vm628_vm6, %v12147_v40 }
 0x39f   :  { %v2092_v38 = vpop.f32.mrf.mxu1 }
 0x3a0   :  { %v2491_v5 = vpop.f32.mrf.mxu3  ;;  %v2131_v32 = vadd.f32 %v2092_v38, %v1899_v29  ;;  %v1735_v29 = vadd.f32 %v9902_v49, %v9919_v41  ;;  %v12158_v49 = vld [vmem:[#allocation42_spill] sm:$0xff] }
 0x3a1   :  { %v10042_v10 = vadd.f32 %v2491_v5, %v2290_v26 }
 0x3a2   :  { %v2257_v11 = vpop.f32.mrf.mxu2  ;;  %v2291_v62 = vadd.f32 %v2252_v53, %v2131_v32  ;;  %v1730_v53 = vadd.f32 %v9882_v9, %v9884_v54  ;;  %v12155_v9 = vld [vmem:[#allocation27_spill] sm:$0xff]  ;;  %v1903_v5 = vadd.f32 %v9924_v60, %v1735_v29 }
 0x3a3   :  { %v12159_v60 = vld [vmem:[#allocation43_spill] sm:$0xff] }
 0x3a4   :  { %v1901_v36 = vadd.f32 %v9892_v51, %v1730_v53  ;;  %v12156_v51 = vld [vmem:[#allocation30_spill] sm:$0xff] }
 0x3a7   :  { %v2095_v30 = vpop.f32.mrf.mxu1  ;;  %6995 = vmatmul.msk.bf16.gmra.mxu2 %vm628_vm6, %v12151_v17 }
 0x3a8   :  { %v2493_v34 = vpop.f32.mrf.mxu3  ;;  %v2132_v57 = vadd.f32 %v2095_v30, %v9862_v45 }
 0x3a9   :  { %v10044_v14 = vadd.f32 %v2493_v34, %v2291_v62 }
 0x3aa   :  { %v2260_v43 = vpop.f32.mrf.mxu2  ;;  %6975 = vmatmul.msk.bf16.gmra.mxu1 %vm628_vm6, %v12152_v25  ;;  %v2292_v8 = vadd.f32 %v2255_v28, %v2132_v57  ;;  %v12154_v28 = vld [vmem:[#allocation44_spill] sm:$0xff] }
 0x3ad   :  { %7013 = vmatmul.msk.bf16.gmra.mxu3 %vm628_vm6, %v12153_v15 }
 0x3af   :  { %v2097_v33 = vpop.f32.mrf.mxu1 }
 0x3b0   :  { %v2496_v35 = vpop.f32.mrf.mxu3  ;;  %v2133_v39 = vadd.f32 %v2097_v33, %v1901_v36 }
 0x3b1   :  { %v10056_v4 = vadd.f32 %v2496_v35, %v2292_v8  ;;  %v7838_v35 = vld [vmem:[%s11953_s5 + $0x20] sm:$0xff] }
 0x3b2   :  { %v2262_v26 = vpop.f32.mrf.mxu2  ;;  %v2293_v45 = vadd.f32 %v2257_v11, %v2133_v39  ;;  %4036 = vmatpush.bf16.msrb.mxu0 %v7838_v35 }
 0x3b7   :  { %v2100_v23 = vpop.f32.mrf.mxu1  ;;  %6996 = vmatmul.msk.bf16.gmra.mxu2 %vm628_vm6, %v12154_v28 }
 0x3b8   :  { %v2498_v40 = vpop.f32.mrf.mxu3  ;;  %v2134_v6 = vadd.f32 %v2100_v23, %v9894_v47  ;;  %v12160_v23 = vld [vmem:[#allocation56_spill] sm:$0xff] }
 0x3b9   :  { %v10058_v46 = vadd.f32 %v2498_v40, %v2293_v45 }
 0x3ba   :  { %v2265_v42 = vpop.f32.mrf.mxu2  ;;  %6976 = vmatmul.msk.bf16.gmra.mxu1 %vm628_vm6, %v12155_v9  ;;  %v2294_v54 = vadd.f32 %v2260_v43, %v2134_v6  ;;  %v12157_v43 = vld [vmem:[#allocation52_spill] sm:$0xff] }
 0x3bd   :  { %7014 = vmatmul.msk.bf16.gmra.mxu3 %vm628_vm6, %v12156_v51 }
 0x3bf   :  { %v2102_v11 = vpop.f32.mrf.mxu1 }
 0x3c0   :  { %v2501_v38 = vpop.f32.mrf.mxu3  ;;  %v2135_v62 = vadd.f32 %v2102_v11, %v1903_v5 }
 0x3c1   :  { %v10070_v32 = vadd.f32 %v2501_v38, %v2294_v54  ;;  %v12162_v54 = vld [vmem:[#allocation51_spill] sm:$0xff] }
 0x3c2   :  { %v2267_v34 = vpop.f32.mrf.mxu2  ;;  %v2295_v47 = vadd.f32 %v2262_v26, %v2135_v62  ;;  %v12163_v62 = vld [vmem:[#allocation46_spill] sm:$0xff] }
 0x3c3   :  { %3091 = vst.msk [vmem:[#allocation3] sm:$0xff] %vm3090_vm4, %v12163_v62 }
 0x3c4   :  { %3092 = vst.msk [vmem:[#allocation3 + $0x8] sm:$0xff] %vm3090_vm4, %v12163_v62 }
 0x3c5   :  { %3093 = vst.msk [vmem:[#allocation3 + $0x10] sm:$0xff] %vm3090_vm4, %v12163_v62 }
 0x3c6   :  { %3094 = vst.msk [vmem:[#allocation3 + $0x18] sm:$0xff] %vm3090_vm4, %v12163_v62 }
 0x3c7   :  { %v2105_v57 = vpop.f32.mrf.mxu1  ;;  %6997 = vmatmul.msk.bf16.gmra.mxu2 %vm628_vm6, %v12157_v43  ;;  %3095 = vst.msk [vmem:[#allocation3 + $0x20] sm:$0xff] %vm3090_vm4, %v12163_v62 }
 0x3c8   :  { %v2503_v30 = vpop.f32.mrf.mxu3  ;;  %v2136_v25 = vadd.f32 %v2105_v57, %v9932_v31  ;;  %3096 = vst.msk [vmem:[#allocation3 + $0x28] sm:$0xff] %vm3090_vm4, %v12163_v62 }
 0x3c9   :  { %v10072_v17 = vadd.f32 %v2503_v30, %v2295_v47  ;;  %v12164_v30 = vld [vmem:[#allocation54_spill] sm:$0xff]  ;;  %3097 = vst.msk [vmem:[#allocation3 + $0x30] sm:$0xff] %vm3090_vm4, %v12163_v62 }
 0x3ca   :  { %v2270_v8 = vpop.f32.mrf.mxu2  ;;  %6977 = vmatmul.msk.bf16.gmra.mxu1 %vm628_vm6, %v12158_v49  ;;  %v2296_v41 = vadd.f32 %v2265_v42, %v2136_v25  ;;  %v12161_v42 = vld [vmem:[#allocation49_spill] sm:$0xff]  ;;  %3098 = vst.msk [vmem:[#allocation3 + $0x38] sm:$0xff] %vm3090_vm4, %v12163_v62  ;;  %v8115_v25 = vld [vmem:[#allocation4] sm:$0xff] }
 0x3cb   :  { %3099 = vst.msk [vmem:[#allocation3 + $0x40] sm:$0xff] %vm3090_vm4, %v12163_v62 }
 0x3cc   :  { %3100 = vst.msk [vmem:[#allocation3 + $0x48] sm:$0xff] %vm3090_vm4, %v12163_v62 }
 0x3cd   :  { %7015 = vmatmul.msk.bf16.gmra.mxu3 %vm628_vm6, %v12159_v60  ;;  %3101 = vst.msk [vmem:[#allocation3 + $0x50] sm:$0xff] %vm3090_vm4, %v8115_v25 }
 0x3ce   :  { %3102 = vst.msk [vmem:[#allocation3 + $0x58] sm:$0xff] %vm3090_vm4, %v8115_v25 }
 0x3cf   :  { %v2107_v36 = vpop.f32.mrf.mxu1  ;;  %3104 = vst.msk [vmem:[#allocation3 + $0x60] sm:$0xf] %vm3103_vm12, %v8115_v25 }
 0x3d0   :  { %v2506_v15 = vpop.f32.mrf.mxu3  ;;  %v2137_v33 = vadd.f32 %v2107_v36, %v9934_v50 }
 0x3d1   :  { %v10081_v53 = vadd.f32 %v2506_v15, %v2296_v41 }
 0x3d2   :  { %v2272_v31 = vpop.f32.mrf.mxu2  ;;  %v2297_v39 = vadd.f32 %v2267_v34, %v2137_v33 }
 0x3d7   :  { %v2110_v40 = vpop.f32.mrf.mxu1  ;;  %6998 = vmatmul.msk.bf16.gmra.mxu2 %vm628_vm6, %v12160_v23 }
 0x3d8   :  { %v2508_v26 = vpop.f32.mrf.mxu3  ;;  %v2138_v28 = vadd.f32 %v2110_v40, %v9942_v16 }
 0x3d9   :  { %v10087_v45 = vadd.f32 %v2508_v26, %v2297_v39 }
 0x3da   :  { %v2275_v6 = vpop.f32.mrf.mxu2  ;;  %6978 = vmatmul.msk.bf16.gmra.mxu1 %vm628_vm6, %v12161_v42  ;;  %v2298_v9 = vadd.f32 %v2270_v8, %v2138_v28 }
 0x3dd   :  { %7016 = vmatmul.msk.bf16.gmra.mxu3 %vm628_vm6, %v12162_v54 }
 0x3df   :  { %v2112_v29 = vpop.f32.mrf.mxu1 }
 0x3e0   :  { %v2511_v50 = vpop.f32.mrf.mxu3  ;;  %v2139_v5 = vadd.f32 %v2112_v29, %v9944_v27 }
 0x3e1   :  { %v10096_v51 = vadd.f32 %v2511_v50, %v2298_v9 }
 0x3e2   :  { %v10099_v38 = vpop.f32.mrf.mxu2  ;;  %v2299_v11 = vadd.f32 %v2272_v31, %v2139_v5  ;;  %v10148_v31 = vld [vmem:[%s11952_s4] ss:$0 sm:$0xff] }
 0x3e7   :  { %v2115_v47 = vpop.f32.mrf.mxu1  ;;  %6999 = vmatmul.msk.bf16.gmra.mxu2 %vm628_vm6, %v9830_v21  ;;  %v12165_v21 = vld [vmem:[#allocation55_spill] sm:$0xff] }
 0x3e8   :  { %v2513_v16 = vpop.f32.mrf.mxu3  ;;  %v2140_v27 = vadd.f32 %v2115_v47, %v9952_v55 }
 0x3e9   :  { %v10107_v34 = vadd.f32 %v2513_v16, %v2299_v11 }
 0x3ea   :  { %6979 = vmatmul.msk.bf16.gmra.mxu1 %vm628_vm6, %v12164_v30  ;;  %v2807_v57 = vpop.f32.mrf.mxu2  ;;  %v2300_v43 = vadd.f32 %v2275_v6, %v2140_v27 }
 0x3ed   :  { %7017 = vmatmul.msk.bf16.gmra.mxu3 %vm628_vm6, %v12165_v21 }
 0x3ef   :  { %v10133_v49 = vpop.f32.mrf.mxu1 }
 0x3f0   :  { %v2516_v55 = vpop.f32.mrf.mxu3 }
 0x3f1   :  { %v10131_v8 = vadd.f32 %v2516_v55, %v2300_v43 }
 0x3f2   :  { %v2809_v41 = vpop.f32.mrf.mxu2 }
 0x3f7   :  { %v2623_v15 = vpop.f32.mrf.mxu1  ;;  %7000 = vmatmul.msk.bf16.gmra.mxu2 %vm628_vm6, %v9855_v61 }
 0x3f8   :  { %v10136_v60 = vpop.f32.mrf.mxu3  ;;  %v2678_v36 = vadd.f32 %v2623_v15, %v9966_v20 }
 0x3fa   :  { %6980 = vmatmul.msk.bf16.gmra.mxu1 %vm628_vm6, %v9822_v37  ;;  %v2812_v35 = vpop.f32.mrf.mxu2  ;;  %v2862_v33 = vadd.f32 %v2807_v57, %v2678_v36 }
 0x3fd   :  { %7018 = vmatmul.msk.bf16.gmra.mxu3 %vm628_vm6, %v9846_v52 }
 0x3ff   :  { %v2625_v40 = vpop.f32.mrf.mxu1 }
 0x400   :  { %v2965_v39 = vpop.f32.mrf.mxu3  ;;  %v2679_v20 = vadd.f32 %v2625_v40, %v9971_v7 }
 0x401   :  { %v3020_v26 = vadd.f32 %v2965_v39, %v2862_v33 }
 0x402   :  { %v2814_v23 = vpop.f32.mrf.mxu2  ;;  %v2863_v37 = vadd.f32 %v2809_v41, %v2679_v20 }
 0x403   :  { %v3046_v61 = vadd.f32 %v10148_v31, %v3020_v26 }
 0x405   :  { %v3068_v28 = vmax.f32 %v3046_v61, 0.0 }
 0x407   :  { %3105 = vst.msk [vmem:[#allocation3 + $0x1] sm:$0xff] %vm3090_vm4, %v3068_v28  ;;  %v2628_v42 = vpop.f32.mrf.mxu1  ;;  %7001 = vmatmul.msk.bf16.gmra.mxu2 %vm628_vm6, %v9840_v48 }
 0x408   :  { %v2967_v6 = vpop.f32.mrf.mxu3  ;;  %v2680_v7 = vadd.f32 %v2628_v42, %v9983_v58  ;;  %v7837_v58 = vld [vmem:[%s11953_s5 + $0x18] sm:$0xff] }
 0x409   :  { %v3021_v52 = vadd.f32 %v2967_v6, %v2863_v37  ;;  %4037 = vmatpush.bf16.msrb.mxu0 %v7837_v58 }
 0x40a   :  { %6981 = vmatmul.msk.bf16.gmra.mxu1 %vm628_vm6, %v9851_v19  ;;  %v2817_v54 = vpop.f32.mrf.mxu2  ;;  %v2864_v5 = vadd.f32 %v2812_v35, %v2680_v7 }
 0x40b   :  { %v3047_v9 = vadd.f32 %v10148_v31, %v3021_v52 }
 0x40d   :  { %v3069_v50 = vmax.f32 %v3047_v9, 0.0  ;;  %7019 = vmatmul.msk.bf16.gmra.mxu3 %vm628_vm6, %v9860_v12 }
 0x40f   :  { %3107 = vst.msk [vmem:[#allocation3 + $0x9] sm:$0x1] %vm3106_vm7, %v3069_v50  ;;  %v2630_v48 = vpop.f32.mrf.mxu1  ;;  %vm3142_vm7 = vcmask 523269  }
 0x410   :  { %v2970_v29 = vpop.f32.mrf.mxu3  ;;  %v2681_v62 = vadd.f32 %v2630_v48, %v9985_v18 }
 0x411   :  { %v3022_v11 = vadd.f32 %v2970_v29, %v2864_v5 }
 0x412   :  { %v2819_v16 = vpop.f32.mrf.mxu2  ;;  %v2865_v47 = vadd.f32 %v2814_v23, %v2681_v62 }
 0x413   :  { %v3048_v19 = vadd.f32 %v10148_v31, %v3022_v11 }
 0x415   :  { %v3070_v57 = vmax.f32 %v3048_v19, 0.0 }
 0x417   :  { %v2633_v30 = vpop.f32.mrf.mxu1  ;;  %v3110_v25 = vrot.slane %v3070_v57, 1 }
 0x418   :  { %v2972_v27 = vpop.f32.mrf.mxu3  ;;  %v2682_v55 = vadd.f32 %v2633_v30, %v9997_v1 }
 0x419   :  { %v3023_v12 = vadd.f32 %v2972_v27, %v2865_v47  ;;  %v10189_v27 = vpop.permute.xlu0 %8080 }
 0x41a   :  { %6982 = vmatmul.msk.bf16.gmra.mxu1 %vm628_vm6, %v2567_v0  ;;  %v2822_v18 = vpop.f32.mrf.mxu2  ;;  %v2866_v33 = vadd.f32 %v2817_v54, %v2682_v55  ;;  %v10192_v55 = vpop.permute.xlu1 %8085 }
 0x41b   :  { %v3049_v43 = vadd.f32 %v10148_v31, %v3023_v12 }
 0x41d   :  { %v3071_v21 = vmax.f32 %v3049_v43, 0.0  ;;  %7020 = vmatmul.msk.bf16.gmra.mxu3 %vm628_vm6, %v2909_v63  ;;  %vm3130_vm6 = vcmask 523267  }
 0x41f   :  { %v3111_v41 = vrot.slane %v3071_v21, 1  ;;  %v2635_v59 = vpop.f32.mrf.mxu1 }
 0x420   :  { %v2975_v15 = vpop.f32.mrf.mxu3  ;;  %v2683_v1 = vadd.f32 %v2635_v59, %v9999_v13 }
 0x421   :  { %v3112_v36 = vsel %vm936_vm10, %v3110_v25, %v3111_v41  ;;  %v3116_v35 = vmax.f32 %v3070_v57, %v3111_v41  ;;  %v3024_v0 = vadd.f32 %v2975_v15, %v2866_v33 }
 0x422   :  { %v3115_v39 = vmax.f32 %v3069_v50, %v3112_v36  ;;  %v2824_v3 = vpop.f32.mrf.mxu2  ;;  %v2867_v26 = vadd.f32 %v2819_v16, %v2683_v1 }
 0x423   :  { %3120 = vst.msk [vmem:[#allocation3 + $0x12] sm:$0x3] %vm12008_vm15, %v3116_v35  ;;  %v3050_v63 = vadd.f32 %v10148_v31, %v3024_v0  ;;  %vm3160_vm15 = vcmask 518144  }
 0x424   :  { %3118 = vst.msk [vmem:[#allocation3 + $0xa] sm:$0xfe] %vm12007_vm1, %v3115_v39  ;;  %v8091_v39 = vpop.permute.xlu0 %8090  ;;  %vm3158_vm1 = vcmask 523266  }
 0x425   :  { %v3072_v23 = vmax.f32 %v3050_v63, 0.0  ;;  %v10201_v63 = vunpack.i.h.bf16 %v8091_v39 }
 0x427   :  { %v2638_v20 = vpop.f32.mrf.mxu1  ;;  %v3123_v42 = vrot.slane %v3072_v23, 1 }
 0x428   :  { %v2977_v40 = vpop.f32.mrf.mxu3  ;;  %v2684_v52 = vadd.f32 %v2638_v20, %v10011_v44 }
 0x429   :  { %v3025_v61 = vadd.f32 %v2977_v40, %v2867_v26 }
 0x42a   :  { %v10181_v37 = vpop.f32.mrf.mxu2  ;;  %v2868_v7 = vadd.f32 %v2822_v18, %v2684_v52 }
 0x42b   :  { %v3051_v28 = vadd.f32 %v10148_v31, %v3025_v61  ;;  %v3206_v35 = vld [vmem:[#allocation3] ss:$2 sm:$0xff]  ;;  %v3220_v33 = vld [vmem:[#allocation3 + $0x1] ss:$2 sm:$0xff] }
 0x42c   :  { %v3233_v1 = vmax.f32 %v3206_v35, %v3220_v33 }
 0x42d   :  { %v3073_v6 = vmax.f32 %v3051_v28, 0.0 }
 0x42f   :  { %v3124_v9 = vrot.slane %v3073_v6, 1  ;;  %v2640_v29 = vpop.f32.mrf.mxu1 }
 0x430   :  { %v2980_v13 = vpop.f32.mrf.mxu3  ;;  %v2685_v11 = vadd.f32 %v2640_v29, %v10013_v24 }
 0x431   :  { %v3125_v54 = vsel %vm936_vm10, %v3123_v42, %v3124_v9  ;;  %v3129_v50 = vmax.f32 %v3072_v23, %v3124_v9  ;;  %v3026_v48 = vadd.f32 %v2980_v13, %v2868_v7  ;;  %v3372_v23 = vmul.f32 %v10201_v63, %v3233_v1 }
 0x432   :  { %v3128_v5 = vmax.f32 %v3071_v21, %v3125_v54  ;;  %v2829_v62 = vpop.f32.mrf.mxu2  ;;  %v2869_v16 = vadd.f32 %v2824_v3, %v2685_v11  ;;  %v10199_v3 = vunpack.i.l.bf16 %v10189_v27  ;;  %v3291_v54 = vpack.c.bf16 %v3233_v1, %v3233_v1 }
 0x433   :  { %3132 = vst.msk [vmem:[#allocation3 + $0x1a] sm:$0xf] %vm3103_vm12, %v3129_v50  ;;  %v3052_v44 = vadd.f32 %v10148_v31, %v3026_v48  ;;  %v10210_v50 = vunpack.i.l.bf16 %v8091_v39  ;;  %v3379_v11 = vpack.c.bf16 %v3372_v23, %v3372_v23 }
 0x434   :  { %3131 = vst.msk [vmem:[#allocation3 + $0x12] sm:$0xf8] %vm3130_vm6, %v3128_v5  ;;  %v3328_v28 = vmul.f32 %v10199_v3, %v3233_v1 }
 0x435   :  { %v3074_v12 = vmax.f32 %v3052_v44, 0.0  ;;  %v10218_v35 = vunpack.c.l.b16 %v3379_v11 }
 0x437   :  { %v2643_v58 = vpop.f32.mrf.mxu1  ;;  %v3135_v18 = vrot.slane %v3074_v12, 1 }
 0x438   :  { %v2982_v19 = vpop.f32.mrf.mxu3 }
 0x439   :  { %v3027_v47 = vadd.f32 %v2982_v19, %v2869_v16 }
 0x43a   :  { %v2832_v57 = vpop.f32.mrf.mxu2 }
 0x43b   :  { %v3053_v30 = vadd.f32 %v10148_v31, %v3027_v47  ;;  %v3208_v9 = vld [vmem:[#allocation3 + $0x10] ss:$2 sm:$0xff] }
 0x43d   :  { %v3075_v43 = vmax.f32 %v3053_v30, 0.0 }
 0x43f   :  { %v3136_v21 = vrot.slane %v3075_v43, 1  ;;  %v2645_v15 = vpop.f32.mrf.mxu1 }
 0x440   :  { %v2985_v24 = vpop.f32.mrf.mxu3  ;;  %v2687_v59 = vadd.f32 %v2645_v15, %v10030_v2  ;;  %v2686_v2 = vadd.f32 %v2643_v58, %v10025_v56  ;;  %v3423_v58 = vunpack.c.l.b16 %v3291_v54 }
 0x441   :  { %v3137_v25 = vsel %vm936_vm10, %v3135_v18, %v3136_v21  ;;  %v3141_v41 = vmax.f32 %v3074_v12, %v3136_v21 }
 0x442   :  { %v3140_v36 = vmax.f32 %v3073_v6, %v3137_v25  ;;  %v2834_v0 = vpop.f32.mrf.mxu2  ;;  %v2871_v26 = vadd.f32 %v2829_v62, %v2687_v59  ;;  %v10206_v6 = vpop.permute.xlu1 %8095  ;;  %v3335_v62 = vpack.c.bf16 %v3328_v28, %v3328_v28  ;;  %v2870_v56 = vadd.f32 %v10181_v37, %v2686_v2 }
 0x443   :  { %3145 = vst.msk [vmem:[#allocation3 + $0x22] sm:$0x3f] %vm3144_vm3, %v3141_v41  ;;  %v10213_v7 = vunpack.i.l.bf16 %v10206_v6 }
 0x444   :  { %3143 = vst.msk [vmem:[#allocation3 + $0x1a] sm:$0xe0] %vm3142_vm7, %v3140_v36  ;;  %v3028_v12 = vadd.f32 %v2985_v24, %v2870_v56  ;;  %v10222_v59 = vunpack.c.l.b16 %v3335_v62 }
 0x446   :  { %v3054_v1 = vadd.f32 %v10148_v31, %v3028_v12 }
 0x447   :  { %v2648_v20 = vpop.f32.mrf.mxu1 }
 0x448   :  { %v2987_v40 = vpop.f32.mrf.mxu3  ;;  %v2688_v42 = vadd.f32 %v2648_v20, %v10042_v10 }
 0x449   :  { %v3029_v61 = vadd.f32 %v2987_v40, %v2871_v26 }
 0x44a   :  { %v2837_v29 = vpop.f32.mrf.mxu2  ;;  %v2872_v47 = vadd.f32 %v2832_v57, %v2688_v42  ;;  %v3076_v42 = vmax.f32 %v3054_v1, 0.0 }
 0x44b   :  { %v3055_v52 = vadd.f32 %v10148_v31, %v3029_v61  ;;  %v3222_v13 = vld [vmem:[#allocation3 + $0x11] ss:$2 sm:$0xff] }
 0x44c   :  { %v3234_v5 = vmax.f32 %v3208_v9, %v3222_v13 }
 0x44d   :  { %v3077_v48 = vmax.f32 %v3055_v52, 0.0 }
 0x44e   :  { %v3292_v44 = vpack.c.bf16 %v3234_v5, %v3234_v5  ;;  %v3373_v16 = vmul.f32 %v10213_v7, %v3234_v5  ;;  %v3329_v10 = vmul.f32 %v10210_v50, %v3234_v5 }
 0x44f   :  { %v3148_v19 = vrot.slane %v3077_v48, 1  ;;  %v2650_v36 = vpop.f32.mrf.mxu1 }
 0x450   :  { %v2990_v30 = vpop.f32.mrf.mxu3  ;;  %v3424_v18 = vunpack.c.l.b16 %v3292_v44  ;;  %v3380_v21 = vpack.c.bf16 %v3373_v16, %v3373_v16  ;;  %v3336_v25 = vpack.c.bf16 %v3329_v10, %v3329_v10  ;;  %v2689_v24 = vadd.f32 %v2650_v36, %v10044_v14  ;;  %v7836_v44 = vld [vmem:[%s11953_s5 + $0x10] sm:$0xff] }
 0x451   :  { %v3153_v41 = vmax.f32 %v3075_v43, %v3148_v19  ;;  %v3030_v15 = vadd.f32 %v2990_v30, %v2872_v47  ;;  %4038 = vmatpush.bf16.msrb.mxu0 %v7836_v44 }
 0x452   :  { %v3430_v37 = vpack.c.b16 %v3424_v18, %v3423_v58  ;;  %v10220_v33 = vunpack.c.l.b16 %v3380_v21  ;;  %v10224_v39 = vunpack.c.l.b16 %v3336_v25  ;;  %v2839_v20 = vpop.f32.mrf.mxu2  ;;  %v2873_v2 = vadd.f32 %v2834_v0, %v2689_v24 }
 0x453   :  { %3156 = vst.msk [vmem:[#allocation3 + $0x22] sm:$0x80] %vm3155_vm14, %v3153_v41  ;;  %v3056_v57 = vadd.f32 %v10148_v31, %v3030_v15 }
 0x454   :  { %v10230_v43 = vrot.slane %v3430_v37, 5  ;;  %v3459_v26 = vpack.c.b16 %v10220_v33, %v10218_v35  ;;  %v3400_v40 = vpack.c.b16 %v10224_v39, %v10222_v59 }
 0x455   :  { %v3078_v61 = vmax.f32 %v3056_v57, 0.0 }
 0x456   :  { %v10238_v23 = vsel %vm912_vm5, 0, %v10230_v43 }
 0x457   :  { %v3149_v28 = vrot.slane %v3078_v61, 1  ;;  %v3474_v14 = vshrl.u32 %v10238_v23, 16  ;;  %v3476_v52 = vshll.u32 %v10238_v23, 16  ;;  %v2653_v5 = vpop.f32.mrf.mxu1 }
 0x458   :  { %v2992_v9 = vpop.f32.mrf.mxu3  ;;  %v2690_v56 = vadd.f32 %v2653_v5, %v10056_v4 }
 0x459   :  { %v3150_v13 = vsel %vm936_vm10, %v3148_v19, %v3149_v28  ;;  %v3031_v54 = vadd.f32 %v2992_v9, %v2873_v2  ;;  %v10245_v11 = vrot.slane %v3474_v14, 5  ;;  %v10251_v0 = vrot.slane %v3476_v52, 6 }
 0x45a   :  { %v3154_v48 = vmax.f32 %v3076_v42, %v3150_v13  ;;  %v2874_v19 = vadd.f32 %v2837_v29, %v2690_v56  ;;  %v2842_v47 = vpop.f32.mrf.mxu2 }
 0x45b   :  { %v3057_v62 = vadd.f32 %v10148_v31, %v3031_v54  ;;  %v3630_v10 = vor.u32 %v10251_v0, %v10245_v11 }
 0x45c   :  { %3157 = vst.msk [vmem:[#allocation3 + $0x2a] sm:$0xff] %vm3090_vm4, %v3154_v48 }
 0x45d   :  { %v3079_v16 = vmax.f32 %v3057_v62, 0.0 }
 0x45f   :  { %3159 = vst.msk [vmem:[#allocation3 + $0x31] sm:$0xfc] %vm3158_vm1, %v3079_v16  ;;  %v2655_v12 = vpop.f32.mrf.mxu1 }
 0x460   :  { %v2995_v4 = vpop.f32.mrf.mxu3  ;;  %v2691_v21 = vadd.f32 %v2655_v12, %v10058_v46 }
 0x461   :  { %v3032_v58 = vadd.f32 %v2995_v4, %v2874_v19  ;;  %v10271_v4 = vpop.permute.xlu2 %3315 }
 0x462   :  { %v2875_v41 = vadd.f32 %v2839_v20, %v2691_v21  ;;  %v2844_v36 = vpop.f32.mrf.mxu2 }
 0x463   :  { %v3058_v30 = vadd.f32 %v10148_v31, %v3032_v58  ;;  %v3224_v21 = vld [vmem:[#allocation3 + $0x21] ss:$2 sm:$0xff] }
 0x465   :  { %v3080_v18 = vmax.f32 %v3058_v30, 0.0  ;;  %v3210_v30 = vld [vmem:[#allocation3 + $0x20] ss:$2 sm:$0xff] }
 0x467   :  { %3161 = vst.msk [vmem:[#allocation3 + $0x39] sm:$0x7] %vm3160_vm15, %v3080_v18  ;;  %v2658_v15 = vpop.f32.mrf.mxu1  ;;  %vm12168_vm15 = vsmask.f32 6400 }
 0x468   :  { %v2997_v25 = vpop.f32.mrf.mxu3  ;;  %v2692_v57 = vadd.f32 %v2658_v15, %v10070_v32  ;;  %vm10451_vm1 = vmand %vm936_vm10, %vm12168_vm15 }
 0x469   :  { %v3033_v37 = vadd.f32 %v2997_v25, %v2875_v41 }
 0x46a   :  { %v2876_v24 = vadd.f32 %v2842_v47, %v2692_v57  ;;  %v2847_v9 = vpop.f32.mrf.mxu2 }
 0x46b   :  { %v3059_v29 = vadd.f32 %v10148_v31, %v3033_v37  ;;  %v10277_v37 = vmax.f32 %v3210_v30, %v3224_v21 }
 0x46d   :  { %v3081_v2 = vmax.f32 %v3059_v29, 0.0  ;;  %v7849_v29 = vld [vmem:[%s11953_s5 + $0x78] sm:$0xff] }
 0x46e   :  { %8022 = vmatpush.bf16.msrb.mxu3 %v7849_v29  ;;  %4061 = vmatpush.bf16.msrb.mxu1 %v7849_v29 }
 0x46f   :  { %v2660_v28 = vpop.f32.mrf.mxu1  ;;  %v3164_v54 = vrot.slane %v3081_v2, 1 }
 0x470   :  { %v3000_v1 = vpop.f32.mrf.mxu3  ;;  %v2693_v46 = vadd.f32 %v2660_v28, %v10072_v17  ;;  %v10289_v28 = vunpack.i.h.bf16 %v10206_v6 }
 0x471   :  { %v3034_v61 = vadd.f32 %v3000_v1, %v2876_v24 }
 0x472   :  { %v2877_v32 = vadd.f32 %v2844_v36, %v2693_v46  ;;  %v10269_v47 = vpop.f32.mrf.mxu2 }
 0x473   :  { %v3060_v42 = vadd.f32 %v10148_v31, %v3034_v61 }
 0x475   :  { %v3082_v13 = vmax.f32 %v3060_v42, 0.0 }
 0x477   :  { %v3165_v20 = vrot.slane %v3082_v13, 1  ;;  %v2663_v56 = vpop.f32.mrf.mxu1 }
 0x478   :  { %v3002_v5 = vpop.f32.mrf.mxu3  ;;  %v2694_v19 = vadd.f32 %v2663_v56, %v10081_v53  ;;  %v3374_v56 = vmul.f32 %v10289_v28, %v10277_v37 }
 0x479   :  { %v3166_v48 = vsel %vm936_vm10, %v3164_v54, %v3165_v20  ;;  %v3170_v62 = vmax.f32 %v3081_v2, %v3165_v20  ;;  %v3035_v16 = vadd.f32 %v3002_v5, %v2877_v32  ;;  %v10300_v5 = vpop.permute.xlu2 %3359 }
 0x47a   :  { %v3169_v44 = vmax.f32 %v3080_v18, %v3166_v48  ;;  %v2878_v58 = vadd.f32 %v2847_v9, %v2694_v19  ;;  %v3293_v9 = vpack.c.bf16 %v10277_v37, %v10277_v37  ;;  %v2852_v46 = vpop.f32.mrf.mxu2  ;;  %v3381_v21 = vpack.c.bf16 %v3374_v56, %v3374_v56 }
 0x47b   :  { %3172 = vst.msk [vmem:[#allocation3 + $0x42] sm:$0xf] %vm3103_vm12, %v3170_v62  ;;  %v3061_v17 = vadd.f32 %v10148_v31, %v3035_v16  ;;  %vm12167_vm12 = vcmask 523265  }
 0x47c   :  { %3171 = vst.msk [vmem:[#allocation3 + $0x3a] sm:$0xf8] %vm3130_vm6, %v3169_v44  ;;  %vm3521_vm6 = vsmask.f32 5376 }
 0x47d   :  { %v3083_v18 = vmax.f32 %v3061_v17, 0.0  ;;  %v3425_v17 = vunpack.c.l.b16 %v3293_v9 }
 0x47f   :  { %v2665_v41 = vpop.f32.mrf.mxu1  ;;  %v3175_v2 = vrot.slane %v3083_v18, 1 }
 0x480   :  { %v3005_v12 = vpop.f32.mrf.mxu3 }
 0x481   :  { %v3036_v25 = vadd.f32 %v3005_v12, %v2878_v58 }
 0x482   :  { %v2854_v9 = vpop.f32.mrf.mxu2 }
 0x483   :  { %v10275_v15 = vadd.f32 %v10148_v31, %v3036_v25  ;;  %v3212_v36 = vld [vmem:[#allocation3 + $0x30] ss:$2 sm:$0xff]  ;;  %v3226_v53 = vld [vmem:[#allocation3 + $0x31] ss:$2 sm:$0xff] }
 0x484   :  { %v10279_v57 = vmax.f32 %v3212_v36, %v3226_v53 }
 0x485   :  { %v3084_v24 = vmax.f32 %v10275_v15, 0.0 }
 0x486   :  { %v3244_v1 = vrot.slane %v10279_v57, 3  ;;  %v3255_v61 = vsel %vm850_vm2, %v10279_v57, 0.0 }
 0x487   :  { %v3176_v42 = vrot.slane %v3084_v24, 1  ;;  %v2668_v62 = vpop.f32.mrf.mxu1 }
 0x488   :  { %v3007_v54 = vpop.f32.mrf.mxu3  ;;  %v10298_v20 = vsel %vm930_vm9, %v3255_v61, %v3244_v1  ;;  %v2696_v19 = vadd.f32 %v2668_v62, %v10096_v51 }
 0x489   :  { %v3177_v48 = vsel %vm936_vm10, %v3175_v2, %v3176_v42  ;;  %v3181_v6 = vmax.f32 %v3083_v18, %v3176_v42  ;;  %v3294_v32 = vpack.c.bf16 %v10298_v20, %v10298_v20  ;;  %v3375_v16 = vmul.f32 %v10300_v5, %v10298_v20 }
 0x48a   :  { %v3180_v44 = vmax.f32 %v3082_v13, %v3177_v48  ;;  %v2880_v25 = vadd.f32 %v2852_v46, %v2696_v19  ;;  %v3478_v13 = vrot.slane %v3476_v52, 1  ;;  %v3454_v2 = vunpack.c.l.b16 %v3381_v21  ;;  %v2857_v11 = vpop.f32.mrf.mxu2 }
 0x48b   :  { %3183 = vst.msk [vmem:[#allocation3 + $0x4a] sm:$0x3f] %vm3144_vm3, %v3181_v6  ;;  %v3426_v58 = vunpack.c.l.b16 %v3294_v32  ;;  %v3382_v12 = vpack.c.bf16 %v3375_v16, %v3375_v16  ;;  %v2695_v42 = vadd.f32 %v2665_v41, %v10087_v45  ;;  %v7835_v45 = vld [vmem:[%s11953_s5 + $0x8] sm:$0xff]  ;;  %v7857_v41 = vld [vmem:[%s11953_s5 + $0xb8] sm:$0xff]  ;;  %vm3573_vm3 = vsmask.f32 4352 }
 0x48c   :  { %3182 = vst.msk [vmem:[#allocation3 + $0x42] sm:$0xe0] %vm3142_vm7, %v3180_v44  ;;  %v3479_v32 = vor.u32 %v3478_v13, %v3474_v14  ;;  %4039 = vmatpush.bf16.msrb.mxu0 %v7835_v45  ;;  %4089 = vmatpush.bf16.msrb.mxu2 %v7857_v41 }
 0x48d   :  { %v3431_v30 = vpack.c.b16 %v3426_v58, %v3425_v17  ;;  %v3455_v36 = vunpack.c.l.b16 %v3382_v12  ;;  %v2879_v14 = vadd.f32 %v10269_v47, %v2695_v42  ;;  %v7847_v17 = vld [vmem:[%s11953_s5 + $0x68] sm:$0xff]  ;;  %v3463_v58 = vrot.slane %v3459_v26, 5  ;;  %v7856_v47 = vld [vmem:[%s11953_s5 + $0xb0] sm:$0xff] }
 0x48f   :  { %v10312_v18 = vrot.slane %v3431_v30, 5  ;;  %v2670_v61 = vpop.f32.mrf.mxu1  ;;  %v3460_v52 = vpack.c.b16 %v3455_v36, %v3454_v2  ;;  %v3037_v36 = vadd.f32 %v3007_v54, %v2879_v14  ;;  %v10377_v54 = vsel %vm912_vm5, 0, %v3463_v58 }
 0x490   :  { %v3010_v53 = vpop.f32.mrf.mxu3  ;;  %v2697_v62 = vadd.f32 %v2670_v61, %v10107_v34  ;;  %4090 = vmatpush.bf16.msrb.mxu2 %v7856_v47  ;;  %v3514_v42 = vrot.slane %v10377_v54, 1 }
 0x491   :  { %v3038_v29 = vadd.f32 %v3010_v53, %v2880_v25  ;;  %v10319_v51 = vsel %vm912_vm5, %v10230_v43, %v10312_v18  ;;  %v7848_v43 = vld [vmem:[%s11953_s5 + $0x70] sm:$0xff]  ;;  %v10354_v21 = vrot.slane %v3460_v52, 5 }
 0x492   :  { %v3481_v46 = vshll.u32 %v10319_v51, 16  ;;  %v3485_v48 = vshrl.u32 %v10319_v51, 16  ;;  %8023 = vmatpush.bf16.msrb.mxu3 %v7848_v43  ;;  %v2881_v30 = vadd.f32 %v2854_v9, %v2697_v62  ;;  %4062 = vmatpush.bf16.msrb.mxu1 %v7848_v43  ;;  %v3567_v13 = vrot.slane %v10319_v51, 3 }
 0x493   :  { %v3064_v6 = vadd.f32 %v10148_v31, %v3038_v29  ;;  %v2141_v29 = vadd.f32 %v10133_v49, %v9954_v22  ;;  %v3566_v22 = vrot.slane %v10238_v23, 3  ;;  %v3063_v49 = vadd.f32 %v10148_v31, %v3037_v36 }
 0x494   :  { %v10328_v56 = vrot.slane %v3481_v46, 1  ;;  %v3631_v34 = vrot.slane %v3485_v48, 5  ;;  %v3632_v16 = vrot.slane %v3481_v46, 6  ;;  %v3660_v23 = vrot.slane %v10377_v54, 6 }
 0x495   :  { %v3086_v44 = vmax.f32 %v3064_v6, 0.0  ;;  %v10385_v2 = vsel %vm924_vm8, %v3566_v22, %v3567_v13  ;;  %v2301_v46 = vadd.f32 %v10099_v38, %v2141_v29  ;;  %v3085_v52 = vmax.f32 %v3063_v49, 0.0 }
 0x496   :  { %v3484_v19 = vsel %vm1448_vm11, %v3479_v32, %v10328_v56  ;;  %v10356_v25 = vor.u32 %v3632_v16, %v3631_v34  ;;  %8024 = vmatpush.bf16.msrb.mxu3 %v7847_v17  ;;  %4063 = vmatpush.bf16.msrb.mxu1 %v7847_v17 }
 0x497   :  { %v3186_v12 = vrot.slane %v3086_v44, 1  ;;  %3504 = vrot.lane.b32.xlu0 %v3484_v19, %s8146_s3  ;;  %v2673_v26 = vpop.f32.mrf.mxu1  ;;  %v2542_v43 = vadd.f32 %v10136_v60, %v2301_v46  ;;  %v2859_v19 = vpop.f32.mrf.mxu2 }
 0x498   :  { %v3012_v53 = vpop.f32.mrf.mxu3  ;;  %v10368_v61 = vsel %vm1277_vm13, %v3630_v10, %v10356_v25  ;;  %v2698_v10 = vadd.f32 %v2673_v26, %v10131_v8 }
 0x499   :  { %v3191_v35 = vmax.f32 %v3084_v24, %v3186_v12  ;;  %v3039_v33 = vadd.f32 %v3012_v53, %v2881_v30  ;;  %v10374_v24 = vsel %vm912_vm5, %v3463_v58, %v10354_v21  ;;  %v3214_v53 = vld [vmem:[#allocation3 + $0x40] ss:$2 sm:$0xff] }
 0x49a   :  { %v3515_v9 = vrot.slane %v10374_v24, 1  ;;  %v3661_v62 = vrot.slane %v10374_v24, 6  ;;  %v2882_v41 = vadd.f32 %v2857_v11, %v2698_v10  ;;  %v10411_v10 = vunpack.i.h.bf16 %v10192_v55 }
 0x49b   :  { %3193 = vst.msk [vmem:[#allocation3 + $0x4a] sm:$0x80] %vm3155_vm14, %v3191_v35  ;;  %v3065_v15 = vadd.f32 %v10148_v31, %v3039_v33  ;;  %v3228_v35 = vld [vmem:[#allocation3 + $0x41] ss:$2 sm:$0xff]  ;;  %vm12166_vm14 = vcmask 517120  }
 0x49c   :  { %v10395_v8 = vsel %vm936_vm10, %v3514_v42, %v3515_v9  ;;  %v10402_v38 = vsel %vm391_vm0, %v3660_v23, %v3661_v62  ;;  %v3237_v22 = vmax.f32 %v3214_v53, %v3228_v35  ;;  %v8101_v42 = vpop.permute.xlu1 %8100  ;;  %v3330_v46 = vmul.f32 %v10411_v10, %v10277_v37 }
 0x49d   :  { %v3087_v0 = vmax.f32 %v3065_v15, 0.0  ;;  %v10424_v23 = vunpack.i.h.bf16 %v10189_v27  ;;  %v10431_v27 = vunpack.i.l.bf16 %v10192_v55  ;;  %v7855_v55 = vld [vmem:[%s11953_s5 + $0xa8] sm:$0xff] }
 0x49e   :  { %v3245_v11 = vrot.slane %v3237_v22, 3  ;;  %4091 = vmatpush.bf16.msrb.mxu2 %v7855_v55  ;;  %v3585_v55 = vshll.u32 %v10374_v24, 16 }
 0x49f   :  { %v3187_v6 = vrot.slane %v3087_v0, 1  ;;  %v2675_v34 = vpop.f32.mrf.mxu1 }
 0x4a0   :  { %v3015_v32 = vpop.f32.mrf.mxu3  ;;  %v2699_v14 = vadd.f32 %v2675_v34, %v2542_v43 }
 0x4a1   :  { %v3188_v45 = vsel %vm936_vm10, %v3186_v12, %v3187_v6  ;;  %v3040_v16 = vadd.f32 %v3015_v32, %v2882_v41  ;;  %v3246_v6 = vsel %vm924_vm8, %v3244_v1, %v3245_v11  ;;  %v3337_v1 = vpack.c.bf16 %v3330_v46, %v3330_v46 }
 0x4a2   :  { %v3192_v44 = vmax.f32 %v3085_v52, %v3188_v45  ;;  %v2883_v58 = vadd.f32 %v2859_v19, %v2699_v14  ;;  %v10426_v52 = vunpack.i.l.bf16 %v8101_v42  ;;  %v3332_v57 = vmul.f32 %v10424_v23, %v3246_v6 }
 0x4a3   :  { %v3066_v17 = vadd.f32 %v10148_v31, %v3040_v16  ;;  %v10433_v19 = vunpack.i.h.bf16 %v8101_v42 }
 0x4a4   :  { %3194 = vst.msk [vmem:[#allocation3 + $0x52] sm:$0xff] %vm3090_vm4, %v3192_v44  ;;  %v3376_v34 = vmul.f32 %v10426_v52, %v3246_v6 }
 0x4a5   :  { %v3088_v47 = vmax.f32 %v3066_v17, 0.0  ;;  %v3295_v17 = vpack.c.bf16 %v3246_v6, %v3246_v6 }
 0x4a7   :  { %v3197_v33 = vrot.slane %v3088_v47, 1 }
 0x4a8   :  { %v3017_v30 = vpop.f32.mrf.mxu3 }
 0x4a9   :  { %v3041_v60 = vadd.f32 %v3017_v30, %v2883_v58 }
 0x4ab   :  { %v3067_v12 = vadd.f32 %v10148_v31, %v3041_v60  ;;  %v3331_v31 = vmul.f32 %v10271_v4, %v10298_v20  ;;  %v3339_v60 = vpack.c.bf16 %v3332_v57, %v3332_v57 }
 0x4ad   :  { %v3089_v36 = vmax.f32 %v3067_v12, 0.0  ;;  %v3338_v32 = vpack.c.bf16 %v3331_v31, %v3331_v31  ;;  %v3383_v12 = vpack.c.bf16 %v3376_v34, %v3376_v34 }
 0x4af   :  { %v3198_v26 = vrot.slane %v3089_v36, 1  ;;  %v3396_v14 = vunpack.c.l.b16 %v3338_v32 }
 0x4b1   :  { %v3199_v29 = vsel %vm936_vm10, %v3197_v33, %v3198_v26  ;;  %v3203_v15 = vmax.f32 %v3088_v47, %v3198_v26  ;;  %v3395_v47 = vunpack.c.l.b16 %v3337_v1  ;;  %v3574_v1 = vshrl.u32 %v10377_v54, 16 }
 0x4b2   :  { %v3202_v49 = vmax.f32 %v3087_v0, %v3199_v29  ;;  %v7846_v0 = vld [vmem:[%s11953_s5 + $0x60] sm:$0xff] }
 0x4b3   :  { %3205 = vst.msk [vmem:[#allocation3 + $0x62] sm:$0x3] %vm12166_vm14, %v3203_v15  ;;  %8025 = vmatpush.bf16.msrb.mxu3 %v7846_v0  ;;  %4064 = vmatpush.bf16.msrb.mxu1 %v7846_v0  ;;  %v3401_v15 = vpack.c.b16 %v3396_v14, %v3395_v47  ;;  %v3397_v0 = vunpack.c.l.b16 %v3339_v60  ;;  %v3577_v14 = vshll.u32 %v10377_v54, 16  ;;  %v3582_v54 = vshrl.u32 %v10374_v24, 16 }
 0x4b4   :  { %3204 = vst.msk [vmem:[#allocation3 + $0x5a] sm:$0xfe] %vm12167_vm12, %v3202_v49  ;;  %v3427_v49 = vunpack.c.l.b16 %v3295_v17 }
 0x4bb   :  { %v3216_v43 = vld [vmem:[#allocation3 + $0x50] ss:$2 sm:$0xff]  ;;  %v3230_v20 = vld [vmem:[#allocation3 + $0x51] ss:$2 sm:$0xff] }
 0x4bc   :  { %v3238_v45 = vmax.f32 %v3216_v43, %v3230_v20  ;;  %v3218_v37 = vld [vmem:[#allocation3 + $0x60] ss:$2 sm:$0x3]  ;;  %v3232_v41 = vld [vmem:[#allocation3 + $0x61] ss:$2 sm:$0x3] }
 0x4bd   :  { %v3239_v44 = vmax.f32 %v3218_v37, %v3232_v41 }
 0x4be   :  { %v3247_v16 = vrot.slane %v3238_v45, 3  ;;  %v3456_v45 = vunpack.c.l.b16 %v3383_v12  ;;  %v3405_v12 = vrot.slane %v3401_v15, 5 }
 0x4bf   :  { %v3249_v58 = vrot.slane %v3239_v44, 3 }
 0x4c0   :  { %v3248_v30 = vsel %vm924_vm8, %v3245_v11, %v3247_v16 }
 0x4c1   :  { %v3296_v36 = vpack.c.bf16 %v3248_v30, %v3248_v30  ;;  %v3250_v53 = vsel %vm924_vm8, %v3247_v16, %v3249_v58  ;;  %v3333_v35 = vmul.f32 %v10199_v3, %v3248_v30  ;;  %v3377_v33 = vmul.f32 %v10201_v63, %v3248_v30 }
 0x4c2   :  { %v3297_v26 = vpack.c.bf16 %v3250_v53, %v3250_v53  ;;  %v3334_v29 = vmul.f32 %v10431_v27, %v3250_v53  ;;  %v3378_v22 = vmul.f32 %v10433_v19, %v3250_v53  ;;  %v3487_v58 = vor.u32 %v3485_v48, %v10328_v56 }
 0x4c3   :  { %v3428_v11 = vunpack.c.l.b16 %v3296_v36  ;;  %v3340_v31 = vpack.c.bf16 %v3333_v35, %v3333_v35  ;;  %v3384_v42 = vpack.c.bf16 %v3377_v33, %v3377_v33 }
 0x4c4   :  { %v3429_v46 = vunpack.c.l.b16 %v3297_v26  ;;  %v3341_v6 = vpack.c.bf16 %v3334_v29, %v3334_v29  ;;  %v3385_v32 = vpack.c.bf16 %v3378_v22, %v3378_v22 }
 0x4c5   :  { %v3432_v43 = vpack.c.b16 %v3428_v11, %v3427_v49  ;;  %v3398_v20 = vunpack.c.l.b16 %v3340_v31  ;;  %v3457_v37 = vunpack.c.l.b16 %v3384_v42 }
 0x4c6   :  { %v3433_v41 = vpack.c.b16 %v3429_v46, %v3429_v46  ;;  %v3399_v57 = vunpack.c.l.b16 %v3341_v6  ;;  %v3458_v34 = vunpack.c.l.b16 %v3385_v32  ;;  %v3584_v6 = vrot.slane %v3582_v54, 3 }
 0x4c7   :  { %v3437_v44 = vrot.slane %v3432_v43, 5  ;;  %v3402_v16 = vpack.c.b16 %v3398_v20, %v3397_v0  ;;  %v3461_v17 = vpack.c.b16 %v3457_v37, %v3456_v45 }
 0x4c8   :  { %v3439_v60 = vrot.slane %v3433_v41, 5  ;;  %v3403_v47 = vpack.c.b16 %v3399_v57, %v3399_v57  ;;  %v3462_v35 = vpack.c.b16 %v3458_v34, %v3458_v34  ;;  %v3587_v34 = vrot.slane %v3585_v55, 4 }
 0x4c9   :  { %v10457_v36 = vsel %vm912_vm5, %v10312_v18, %v3437_v44  ;;  %v3407_v53 = vrot.slane %v3402_v16, 5  ;;  %v3466_v15 = vrot.slane %v3461_v17, 5  ;;  %v7845_v16 = vld [vmem:[%s11953_s5 + $0x58] sm:$0xff] }
 0x4ca   :  { %v3489_v33 = vshll.u32 %v10457_v36, 16  ;;  %v3440_v48 = vsel %vm912_vm5, %v3437_v44, %v3439_v60  ;;  %v3409_v56 = vrot.slane %v3403_v47, 5  ;;  %v3493_v29 = vshrl.u32 %v10457_v36, 16  ;;  %v7834_v44 = vld [vmem:[%s11953_s5] sm:$0xff]  ;;  %8026 = vmatpush.bf16.msrb.mxu3 %v7845_v16  ;;  %4065 = vmatpush.bf16.msrb.mxu1 %v7845_v16 }
 0x4cb   :  { %v10465_v26 = vsel %vm10451_vm1, %v3440_v48, 0  ;;  %v10469_v18 = vsel %vm912_vm5, %v3405_v12, %v3407_v53  ;;  %v3468_v0 = vrot.slane %v3462_v35, 5  ;;  %v3467_v60 = vsel %vm912_vm5, %v10354_v21, %v3466_v15  ;;  %4040 = vmatpush.bf16.msrb.mxu0 %v7834_v44 }
 0x4cc   :  { %v3491_v22 = vrot.slane %v3489_v33, 1  ;;  %v3497_v49 = vshll.u32 %v10465_v26, 16  ;;  %v3410_v11 = vsel %vm912_vm5, %v3407_v53, %v3409_v56  ;;  %v3539_v31 = vshrl.u32 %v10469_v18, 16 }
 0x4cd   :  { %v10478_v42 = vsel %vm10451_vm1, %v3410_v11, 0  ;;  %v3542_v46 = vshll.u32 %v10469_v18, 16  ;;  %v3579_v35 = vrot.slane %v3577_v14, 4  ;;  %v3404_v48 = vrot.slane %v3400_v40, 5 }
 0x4ce   :  { %v3492_v32 = vsel %vm1448_vm11, %v3487_v58, %v3491_v22  ;;  %v3495_v43 = vor.u32 %v3493_v29, %v3491_v22  ;;  %v3499_v20 = vrot.slane %v3497_v49, 1  ;;  %v3541_v45 = vrot.slane %v3539_v31, 2 }
 0x4cf   :  { %3506 = vrot.lane.b32.xlu2 %v3492_v32, %s8146_s3  ;;  %v3544_v37 = vrot.slane %v3542_v46, 3  ;;  %v3548_v41 = vshrl.u32 %v10478_v42, 16  ;;  %v3551_v57 = vshll.u32 %v10478_v42, 16  ;;  %v3576_v58 = vrot.slane %v3574_v1, 3  ;;  %v7844_v32 = vld [vmem:[%s11953_s5 + $0x50] sm:$0xff] }
 0x4d0   :  { %v3500_v17 = vsel %vm1448_vm11, %v3495_v43, %v3499_v20  ;;  %v3469_v56 = vsel %vm912_vm5, %v3466_v15, %v3468_v0  ;;  %v3588_v55 = vor.u32 %v3587_v34, %v3584_v6  ;;  %v3517_v22 = vrot.slane %v3467_v60, 1  ;;  %v7854_v0 = vld [vmem:[%s11953_s5 + $0xa0] sm:$0xff]  ;;  %8027 = vmatpush.bf16.msrb.mxu3 %v7844_v32  ;;  %4066 = vmatpush.bf16.msrb.mxu1 %v7844_v32 }
 0x4d1   :  { %3508 = vrot.lane.b32.xlu1 %v3500_v17, %s8146_s3  ;;  %v10499_v47 = vor.u32 %v3544_v37, %v3541_v45  ;;  %v3550_v53 = vrot.slane %v3548_v41, 2  ;;  %v3553_v54 = vrot.slane %v3551_v57, 3  ;;  %v10507_v21 = vsel %vm10451_vm1, %v3469_v56, 0  ;;  %4092 = vmatpush.bf16.msrb.mxu2 %v7854_v0 }
 0x4d2   :  { %v3591_v11 = vshrl.u32 %v3467_v60, 16  ;;  %v3594_v14 = vshll.u32 %v3467_v60, 16  ;;  %v10510_v31 = vsel %vm912_vm5, %v3404_v48, %v3405_v12  ;;  %v3580_v39 = vor.u32 %v3579_v35, %v3576_v58 }
 0x4d3   :  { %v3554_v1 = vor.u32 %v3553_v54, %v3550_v53  ;;  %v3519_v40 = vrot.slane %v10507_v21, 1  ;;  %v3569_v15 = vrot.slane %v10457_v36, 3  ;;  %v10520_v6 = vsel %vm912_vm5, 0, %v3404_v48 }
 0x4d4   :  { %v3589_v46 = vsel %vm3573_vm3, %v3580_v39, %v3588_v55  ;;  %v3530_v12 = vshrl.u32 %v10510_v31, 16  ;;  %v3593_v45 = vrot.slane %v3591_v11, 3  ;;  %v3596_v37 = vrot.slane %v3594_v14, 4 }
 0x4d5   :  { %v3555_v59 = vsel %vm3521_vm6, %v10499_v47, %v3554_v1  ;;  %v10532_v43 = vsel %vm936_vm10, %v3517_v22, %v3519_v40  ;;  %v10537_v41 = vsel %vm924_vm8, %v3567_v13, %v3569_v15  ;;  %v10542_v57 = vsel %vm936_vm10, %v3515_v9, %v3517_v22 }
 0x4d6   :  { %3560 = vrot.lane.b32.xlu0 %v3555_v59, %s8146_s3  ;;  %v3533_v34 = vshll.u32 %v10510_v31, 16  ;;  %v3571_v44 = vrot.slane %v10465_v26, 3  ;;  %v3663_v16 = vrot.slane %v3467_v60, 6  ;;  %v3665_v17 = vrot.slane %v10507_v21, 6 }
 0x4d7   :  { %3562 = vrot.lane.b32.xlu2 %v3554_v1, %s8146_s3  ;;  %v3501_v51 = vshrl.u32 %v10465_v26, 16  ;;  %v3522_v13 = vshrl.u32 %v10520_v6, 16  ;;  %v3525_v58 = vshll.u32 %v10520_v6, 16  ;;  %v3597_v35 = vor.u32 %v3596_v37, %v3593_v45 }
 0x4d8   :  { %v10554_v9 = vsel %vm924_vm8, %v3569_v15, %v3571_v44  ;;  %v10559_v53 = vsel %vm391_vm0, %v3661_v62, %v3663_v16  ;;  %v10564_v60 = vsel %vm391_vm0, %v3663_v16, %v3665_v17  ;;  %v3600_v48 = vshrl.u32 %v10507_v21, 16 }
 0x4d9   :  { %3608 = vrot.lane.b32.xlu1 %v3589_v46, %s8146_s3  ;;  %v3503_v54 = vor.u32 %v3501_v51, %v3499_v20  ;;  %v3603_v56 = vshll.u32 %v10507_v21, 16  ;;  %v3532_v1 = vrot.slane %v3530_v12, 2  ;;  %v3535_v22 = vrot.slane %v3533_v34, 3  ;;  %v7877_v21 = vld [vmem:[%s11955_s7 + $0x38] sm:$0xff] }
 0x4da   :  { %v3635_v24 = vrot.slane %v3493_v29, 5  ;;  %v3636_v62 = vrot.slane %v3489_v33, 6  ;;  %v3524_v11 = vrot.slane %v3522_v13, 2  ;;  %v3527_v20 = vrot.slane %v3525_v58, 3  ;;  %v7852_v13 = vld [vmem:[%s11953_s5 + $0x90] sm:$0xff] }
 0x4db   :  { %v3598_v14 = vsel %vm3573_vm3, %v3588_v55, %v3597_v35  ;;  %v3602_v59 = vrot.slane %v3600_v48, 3  ;;  %v3605_v39 = vrot.slane %v3603_v56, 4  ;;  %v3536_v15 = vor.u32 %v3535_v22, %v3532_v1  ;;  %v7869_v22 = vld [vmem:[%s11953_s5 + $0x118] sm:$0xff] }
 0x4dc   :  { %v3637_v46 = vor.u32 %v3636_v62, %v3635_v24  ;;  %v3528_v12 = vor.u32 %v3527_v20, %v3524_v11  ;;  %v3639_v32 = vrot.slane %v3501_v51, 5  ;;  %v3640_v36 = vrot.slane %v3497_v49, 6  ;;  %v7843_v49 = vld [vmem:[%s11953_s5 + $0x48] sm:$0xff]  ;;  %4149 = vmatpush.bf16.msra.mxu0 %v7869_v22  ;;  %v7842_v24 = vld [vmem:[%s11953_s5 + $0x40] sm:$0xff]  ;;  %v7868_v11 = vld [vmem:[%s11953_s5 + $0x110] sm:$0xff] }
 0x4dd   :  { %v3606_v0 = vor.u32 %v3605_v39, %v3602_v59  ;;  %v12171_v33 = vmov 0   ;;  %v3546_v51 = vsel %vm3521_vm6, %v3536_v15, %v10499_v47  ;;  %8028 = vmatpush.bf16.msrb.mxu3 %v7843_v49  ;;  %4067 = vmatpush.bf16.msrb.mxu1 %v7843_v49  ;;  %v7851_v62 = vld [vmem:[%s11953_s5 + $0x88] sm:$0xff]  ;;  %v7865_v59 = vld [vmem:[%s11953_s5 + $0xf8] sm:$0xff]  ;;  %v7850_v39 = vld [vmem:[%s11953_s5 + $0x80] sm:$0xff]  ;;  %v3619_v22 = vrot.slane %v10520_v6, 5 }
 0x4de   :  { %3510 = vrot.lane.b32.xlu0 %v3503_v54, %s8146_s3  ;;  %v3537_v29 = vsel %vm3521_vm6, %v3528_v12, %v3536_v15  ;;  %v10585_v55 = vrot.slane %v12171_v33, 5  ;;  %v10588_v45 = vrot.slane %v12171_v33, 6  ;;  %v3641_v34 = vor.u32 %v3640_v36, %v3639_v32  ;;  %v7864_v15 = vld [vmem:[%s11953_s5 + $0xf0] sm:$0xff]  ;;  %v7867_v12 = vld [vmem:[%s11953_s5 + $0x108] sm:$0xff]  ;;  %v7866_v36 = vld [vmem:[%s11953_s5 + $0x100] sm:$0xff] }
 0x4df   :  { %3651 = vrot.lane.b32.xlu2 %v10368_v61, %s8146_s3  ;;  %v3638_v61 = vsel %vm1277_vm13, %v10356_v25, %v3637_v46  ;;  %v3607_v37 = vsel %vm3573_vm3, %v3597_v35, %v3606_v0  ;;  %v7853_v25 = vld [vmem:[%s11953_s5 + $0x98] sm:$0xff]  ;;  %v8116_v35 = vld [vmem:[#allocation4] sm:$0xff] }
 0x4e0   :  { %v10600_v16 = vor.u32 %v10588_v45, %v10585_v55  ;;  %4093 = vmatpush.bf16.msrb.mxu2 %v7853_v25  ;;  %v3642_v58 = vsel %vm1277_vm13, %v3637_v46, %v3641_v34  ;;  %v3289_v47 = vsel %vm850_vm2, 1.0, %v8116_v35  ;;  %4150 = vmatpush.bf16.msra.mxu0 %v7868_v11  ;;  %v7863_v46 = vld [vmem:[%s11953_s5 + $0xe8] sm:$0xff]  ;;  %v7860_v32 = vld [vmem:[%s11953_s5 + $0xd0] sm:$0xff] }
 0x4e1   :  { %3610 = vrot.lane.b32.xlu1 %v3598_v14, %s8146_s3  ;;  %v3290_v48 = vsel %vm930_vm9, %v3289_v47, 1.0  ;;  %8029 = vmatpush.bf16.msrb.mxu3 %v7842_v24  ;;  %vm10842_vm9 = vmneg %vm912_vm5 }
 0x4e2   :  { %v3650_v54 = vsel %vm1277_vm13, %v3641_v34, %v10600_v16  ;;  %4068 = vmatpush.bf16.msrb.mxu1 %v7842_v24  ;;  %v7858_v34 = vld [vmem:[%s11953_s5 + $0xc0] sm:$0xff] }
 0x4e4   :  { %4094 = vmatpush.bf16.msrb.mxu2 %v7852_v13  ;;  %4151 = vmatpush.bf16.msra.mxu0 %v7867_v12 }
 0x4e5   :  { %4117 = vmatpush.bf16.msra.mxu3 %v7865_v59 }
 0x4e6   :  { %3556 = vrot.lane.b32.xlu0 %v3537_v29, %s8146_s3  ;;  %v7861_v29 = vld [vmem:[%s11953_s5 + $0xd8] sm:$0xff]  ;;  %5084 = vmatpush.bf16.msra.mxu1 %v7877_v21 }
 0x4e7   :  { %3653 = vrot.lane.b32.xlu2 %v3638_v61, %s8146_s3  ;;  %v7859_v61 = vld [vmem:[%s11953_s5 + $0xc8] sm:$0xff] }
 0x4e8   :  { %4095 = vmatpush.bf16.msrb.mxu2 %v7851_v62  ;;  %4152 = vmatpush.bf16.msra.mxu0 %v7866_v36 }
 0x4e9   :  { %3612 = vrot.lane.b32.xlu1 %v3607_v37, %s8146_s3  ;;  %4118 = vmatpush.bf16.msra.mxu3 %v7864_v15  ;;  %v3668_v15 = vsel %vm391_vm0, %v3665_v17, %v10588_v45  ;;  %v10721_v17 = vld [vmem:[%s11954_s6] ss:$0 sm:$0xff] }
 0x4ec   :  { %4096 = vmatpush.bf16.msrb.mxu2 %v7850_v39 }
 0x4ed   :  { %4119 = vmatpush.bf16.msra.mxu3 %v7863_v46 }
 0x4ee   :  { %3558 = vrot.lane.b32.xlu0 %v3546_v51, %s8146_s3 }
 0x4ef   :  { %3655 = vrot.lane.b32.xlu2 %v3642_v58, %s8146_s3 }
 0x4f1   :  { %3657 = vrot.lane.b32.xlu1 %v3650_v54, %s8146_s3 }
 0x4f6   :  { %3614 = vrot.lane.b32.xlu0 %v3606_v0, %s8146_s3  ;;  %v7862_v0 = vld [vmem:[%s11953_s5 + $0xe0] sm:$0xff] }
 0x4f7   :  { %4187 = vperm.xlu2 %8058, %v3290_v48   ;;  %4120 = vmatpush.bf16.msra.mxu3 %v7862_v0 }
 0x4fb   :  { %4121 = vmatpush.bf16.msra.mxu3 %v7861_v29 }
 0x4ff   :  { %4122 = vmatpush.bf16.msra.mxu3 %v7860_v32 }
 0x503   :  { %4123 = vmatpush.bf16.msra.mxu3 %v7859_v61  ;;  %v7876_v61 = vld [vmem:[%s11955_s7 + $0x30] sm:$0xff] }
 0x504   :  { %5085 = vmatpush.bf16.msra.mxu1 %v7876_v61 }
 0x507   :  { %4124 = vmatpush.bf16.msra.mxu3 %v7858_v34 }
 0x509   :  { %v3505_v56 = vpop.permute.xlu0 %3504 }
 0x50a   :  { %v3670_v1 = vsel %vm3090_vm4, %v10520_v6, %v3505_v56 }
 0x50b   :  { %4041 = vmatmul.bf16.vlgmr.msrb.gmra.mxu0 %v3670_v1  ;;  %v3620_v1 = vrot.slane %v10510_v31, 5 }
 0x529   :  { %v3507_v20 = vpop.permute.xlu2 %3506 }
 0x52a   :  { %v3673_v14 = vsel %vm3090_vm4, %v10510_v31, %v3507_v20 }
 0x52b   :  { %4046 = vmatmul.bf16.gmra.mxu0 %v3673_v14 }
 0x531   :  { %v3563_v35 = vpop.permute.xlu2 %3562 }
 0x539   :  { %v3652_v24 = vpop.permute.xlu2 %3651 }
 0x541   :  { %v3654_v6 = vpop.permute.xlu2 %3653 }
 0x543   :  { %v3509_v33 = vpop.permute.xlu1 %3508 }
 0x544   :  { %v3676_v37 = vsel %vm3090_vm4, %v10469_v18, %v3509_v33 }
 0x545   :  { %4051 = vmatmul.bf16.gmra.mxu0 %v3676_v37 }
 0x548   :  { %v3561_v25 = vpop.permute.xlu0 %3560 }
 0x549   :  { %v3691_v49 = vsel %vm3090_vm4, %v10532_v43, %v3561_v25  ;;  %v3695_v43 = vsel %vm3090_vm4, %v3519_v40, %v3563_v35 }
 0x54a   :  { %4079 = vmatmul.bf16.vlgmr.msrb.gmra.mxu3 %v3691_v49 }
 0x54b   :  { %v3609_v51 = vpop.permute.xlu1 %3608 }
 0x54c   :  { %v3699_v13 = vsel %vm3090_vm4, %v10385_v2, %v3609_v51 }
 0x54d   :  { %4097 = vmatmul.bf16.vlgmr.msrb.gmra.mxu2 %v3699_v13  ;;  %v7875_v13 = vld [vmem:[%s11955_s7 + $0x28] sm:$0xff] }
 0x54e   :  { %5086 = vmatpush.bf16.msra.mxu1 %v7875_v13 }
 0x550   :  { %v3511_v58 = vpop.permute.xlu0 %3510 }
 0x551   :  { %v3679_v54 = vsel %vm3090_vm4, %v10478_v42, %v3511_v58 }
 0x553   :  { %v3611_v48 = vpop.permute.xlu1 %3610 }
 0x554   :  { %v3703_v2 = vsel %vm3090_vm4, %v10537_v41, %v3611_v48 }
 0x555   :  { %4056 = vmatmul.bf16.gmra.mxu0 %v3679_v54  ;;  %v7874_v54 = vld [vmem:[%s11955_s7 + $0x20] sm:$0xff] }
 0x556   :  { %5087 = vmatpush.bf16.msra.mxu1 %v7874_v54 }
 0x558   :  { %v3557_v47 = vpop.permute.xlu0 %3556 }
 0x559   :  { %v3683_v56 = vsel %vm3090_vm4, %v10395_v8, %v3557_v47  ;;  %v3621_v8 = vsel %vm912_vm5, %v3619_v22, %v3620_v1  ;;  %v7872_v22 = vld [vmem:[%s11955_s7 + $0x10] sm:$0xff] }
 0x55a   :  { %4069 = vmatmul.bf16.vlgmr.msrb.gmra.mxu1 %v3683_v56  ;;  %4084 = vmatmul.bf16.gmra.mxu3 %v3695_v43  ;;  %v3715_v11 = vsel %vm3090_vm4, %v3621_v8, %v3652_v24  ;;  %v7885_v8 = vld [vmem:[%s11955_s7 + $0x78] sm:$0xff] }
 0x55b   :  { %v3613_v40 = vpop.permute.xlu1 %3612  ;;  %5112 = vmatpush.bf16.msra.mxu2 %v7885_v8  ;;  %v7880_v8 = vld [vmem:[%s11955_s7 + $0x50] sm:$0xff] }
 0x55c   :  { %v3707_v31 = vsel %vm3090_vm4, %v10554_v9, %v3613_v40  ;;  %v3624_v9 = vrot.slane %v10478_v42, 5 }
 0x55d   :  { %4102 = vmatmul.bf16.gmra.mxu2 %v3703_v2  ;;  %v7873_v2 = vld [vmem:[%s11955_s7 + $0x18] sm:$0xff] }
 0x55e   :  { %v3627_v42 = vsel %vm912_vm5, %v3624_v9, %v10585_v55  ;;  %5088 = vmatpush.bf16.msra.mxu1 %v7873_v2 }
 0x560   :  { %v3559_v62 = vpop.permute.xlu0 %3558 }
 0x561   :  { %v3687_v20 = vsel %vm3090_vm4, %v10542_v57, %v3559_v62 }
 0x562   :  { %5089 = vmatpush.bf16.msra.mxu1 %v7872_v22 }
 0x563   :  { %v3658_v26 = vpop.permute.xlu1 %3657 }
 0x565   :  { %7166 = vmatmul.msk.bf16.vlgmr.msra.gmra.mxu0 %vm3090_vm4, %v10402_v38  ;;  %v3622_v38 = vrot.slane %v10469_v18, 5  ;;  %v3656_v18 = vpop.permute.xlu2 %3655 }
 0x567   :  { %v3623_v41 = vsel %vm912_vm5, %v3620_v1, %v3622_v38 }
 0x568   :  { %v3615_v14 = vpop.permute.xlu0 %3614  ;;  %v3719_v59 = vsel %vm3090_vm4, %v3623_v41, %v3654_v6  ;;  %v7884_v6 = vld [vmem:[%s11955_s7 + $0x70] sm:$0xff] }
 0x569   :  { %v3711_v57 = vsel %vm3090_vm4, %v3571_v44, %v3615_v14  ;;  %v3727_v44 = vsel %vm3090_vm4, %v3627_v42, %v3658_v26  ;;  %v7892_v41 = vld [vmem:[%s11955_s7 + $0xb0] sm:$0xff]  ;;  %5113 = vmatpush.bf16.msra.mxu2 %v7884_v6  ;;  %v7891_v26 = vld [vmem:[%s11955_s7 + $0xa8] sm:$0xff] }
 0x56a   :  { %4074 = vmatmul.bf16.gmra.mxu1 %v3687_v20  ;;  %4125 = vmatmul.bf16.vlgmr.msra.gmra.mxu3 %v3715_v11  ;;  %v7893_v11 = vld [vmem:[%s11955_s7 + $0xb8] sm:$0xff]  ;;  %v7900_v42 = vld [vmem:[%s11955_s7 + $0xf0] sm:$0xff] }
 0x56b   :  { %5140 = vmatpush.bf16.msrb.mxu3 %v7893_v11  ;;  %v7888_v11 = vld [vmem:[%s11955_s7 + $0x90] sm:$0xff] }
 0x56c   :  { %v7908_v6 = vld [vmem:[%s11955_s7 + $0x130] sm:$0xff] }
 0x56d   :  { %4107 = vmatmul.bf16.gmra.mxu2 %v3707_v31 }
 0x56f   :  { %5141 = vmatpush.bf16.msrb.mxu3 %v7892_v41 }
 0x573   :  { %5142 = vmatpush.bf16.msrb.mxu3 %v7891_v26 }
 0x575   :  { %7167 = vmatmul.msk.bf16.gmra.mxu0 %vm3090_vm4, %v10559_v53  ;;  %v3625_v53 = vsel %vm912_vm5, %v3622_v38, %v3624_v9  ;;  %v7871_v38 = vld [vmem:[%s11955_s7 + $0x8] sm:$0xff] }
 0x576   :  { %v3723_v39 = vsel %vm3090_vm4, %v3625_v53, %v3656_v18  ;;  %5090 = vmatpush.bf16.msra.mxu1 %v7871_v38  ;;  %v7897_v38 = vld [vmem:[%s11955_s7 + $0xd8] sm:$0xff] }
 0x57a   :  { %4130 = vmatmul.bf16.gmra.mxu3 %v3719_v59  ;;  %v7901_v59 = vld [vmem:[%s11955_s7 + $0xf8] sm:$0xff] }
 0x57b   :  { %5168 = vmatpush.bf16.msrb.mxu0 %v7901_v59 }
 0x57d   :  { %4112 = vmatmul.bf16.gmra.mxu2 %v3711_v57  ;;  %v7870_v57 = vld [vmem:[%s11955_s7] sm:$0xff] }
 0x57e   :  { %5091 = vmatpush.bf16.msra.mxu1 %v7870_v57 }
 0x57f   :  { %5169 = vmatpush.bf16.msrb.mxu0 %v7900_v42 }
 0x585   :  { %7168 = vmatmul.msk.bf16.gmra.mxu0 %vm3090_vm4, %v10564_v60 }
 0x588   :  { %v4042_v60 = vpop.f32.mrf.mxu0 }
 0x589   :  { %v4043_v62 = vadd.f32 %v10721_v17, %v4042_v60 }
 0x58a   :  { %4135 = vmatmul.bf16.gmra.mxu3 %v3723_v39 }
 0x590   :  { %v4044_v46 = vpop.f32.mrf.mxu0 }
 0x591   :  { %v4045_v53 = vadd.f32 %v10721_v17, %v4044_v46 }
 0x595   :  { %7169 = vmatmul.msk.bf16.gmra.mxu0 %vm3090_vm4, %v3668_v15  ;;  %v7883_v15 = vld [vmem:[%s11955_s7 + $0x68] sm:$0xff] }
 0x596   :  { %5114 = vmatpush.bf16.msra.mxu2 %v7883_v15 }
 0x59a   :  { %4140 = vmatmul.bf16.gmra.mxu3 %v3727_v44 }
 0x5a8   :  { %v10711_v12 = vpop.f32.mrf.mxu0 }
 0x5b0   :  { %v10713_v0 = vpop.f32.mrf.mxu0 }
 0x5c2   :  { %v4052_v29 = vpop.f32.mrf.mxu0 }
 0x5c3   :  { %v4053_v36 = vadd.f32 %v10721_v17, %v4052_v29 }
 0x5ca   :  { %v10723_v32 = vpop.f32.mrf.mxu0 }
 0x5cd   :  { %v4080_v33 = vpop.f32.mrf.mxu3 }
 0x5ce   :  { %v10729_v37 = vadd.f32 %v4080_v33, %v4053_v36  ;;  %v7882_v36 = vld [vmem:[%s11955_s7 + $0x60] sm:$0xff] }
 0x5cf   :  { %v7890_v33 = vld [vmem:[%s11955_s7 + $0xa0] sm:$0xff]  ;;  %5115 = vmatpush.bf16.msra.mxu2 %v7882_v36 }
 0x5d0   :  { %v4098_v34 = vpop.f32.mrf.mxu2  ;;  %5143 = vmatpush.bf16.msrb.mxu3 %v7890_v33  ;;  %v7896_v33 = vld [vmem:[%s11955_s7 + $0xd0] sm:$0xff] }
 0x5d2   :  { %v4057_v25 = vpop.f32.mrf.mxu0 }
 0x5d3   :  { %v4058_v35 = vadd.f32 %v10721_v17, %v4057_v25 }
 0x5d5   :  { %v10731_v49 = vpop.f32.mrf.mxu3 }
 0x5d7   :  { %v4070_v48 = vpop.f32.mrf.mxu1 }
 0x5d8   :  { %v4100_v51 = vpop.f32.mrf.mxu2  ;;  %v4071_v40 = vadd.f32 %v4070_v48, %v4043_v62  ;;  %v7881_v48 = vld [vmem:[%s11955_s7 + $0x58] sm:$0xff] }
 0x5d9   :  { %5116 = vmatpush.bf16.msra.mxu2 %v7881_v48 }
 0x5da   :  { %v4059_v58 = vpop.f32.mrf.mxu0  ;;  %v4099_v9 = vadd.f32 %v4098_v34, %v4071_v40  ;;  %v7899_v34 = vld [vmem:[%s11955_s7 + $0xe8] sm:$0xff] }
 0x5db   :  { %v4048_v58 = vadd.f32 %v10721_v17, %v10711_v12  ;;  %5170 = vmatpush.bf16.msrb.mxu0 %v7899_v34  ;;  %v7898_v12 = vld [vmem:[%s11955_s7 + $0xe0] sm:$0xff] }
 0x5dd   :  { %v4085_v47 = vpop.f32.mrf.mxu3  ;;  %5117 = vmatpush.bf16.msra.mxu2 %v7880_v8 }
 0x5de   :  { %v10740_v56 = vadd.f32 %v4085_v47, %v4058_v35  ;;  %v7909_v35 = vld [vmem:[%s11955_s7 + $0x138] sm:$0xff] }
 0x5df   :  { %v4072_v20 = vpop.f32.mrf.mxu1  ;;  %5196 = vmatpush.bf16.msrb.mxu1 %v7909_v35  ;;  %5171 = vmatpush.bf16.msrb.mxu0 %v7898_v12 }
 0x5e0   :  { %v10742_v43 = vpop.f32.mrf.mxu2  ;;  %v4073_v44 = vadd.f32 %v4072_v20, %v4045_v53  ;;  %v4050_v53 = vadd.f32 %v10721_v17, %v10713_v0  ;;  %v7887_v0 = vld [vmem:[%s11955_s7 + $0x88] sm:$0xff] }
 0x5e2   :  { %v4154_v1 = vpop.f32.mrf.mxu0  ;;  %v4101_v25 = vadd.f32 %v4100_v51, %v4073_v44  ;;  %v7889_v51 = vld [vmem:[%s11955_s7 + $0x98] sm:$0xff] }
 0x5e3   :  { %5144 = vmatpush.bf16.msrb.mxu3 %v7889_v51  ;;  %5197 = vmatpush.bf16.msrb.mxu1 %v7908_v6 }
 0x5e4   :  { %5172 = vmatpush.bf16.msrb.mxu0 %v7897_v38 }
 0x5e5   :  { %v4087_v24 = vpop.f32.mrf.mxu3 }
 0x5e7   :  { %v4075_v46 = vpop.f32.mrf.mxu1  ;;  %5145 = vmatpush.bf16.msrb.mxu3 %v7888_v11 }
 0x5e8   :  { %v10757_v31 = vpop.f32.mrf.mxu2  ;;  %v4076_v2 = vadd.f32 %v4075_v46, %v4048_v58  ;;  %5173 = vmatpush.bf16.msrb.mxu0 %v7896_v33 }
 0x5ea   :  { %v4156_v14 = vpop.f32.mrf.mxu0 }
 0x5eb   :  { %5146 = vmatpush.bf16.msrb.mxu3 %v7887_v0 }
 0x5ed   :  { %v4126_v18 = vpop.f32.mrf.mxu3 }
 0x5ee   :  { %v4127_v39 = vadd.f32 %v4126_v18, %v4099_v9  ;;  %v4104_v18 = vadd.f32 %v10742_v43, %v4076_v2  ;;  %v7879_v43 = vld [vmem:[%s11955_s7 + $0x48] sm:$0xff] }
 0x5ef   :  { %5118 = vmatpush.bf16.msra.mxu2 %v7879_v43 }
 0x5f0   :  { %v4155_v60 = vadd.f32 %v4154_v1, %v4127_v39  ;;  %v10784_v29 = vpop.f32.mrf.mxu2 }
 0x5f2   :  { %v4159_v21 = vpop.f32.mrf.mxu0  ;;  %v4173_v61 = vmax.f32 %v4155_v60, 0.0 }
 0x5f4   :  { %v4204_v47 = vmul.f32 %v10199_v3, %v4173_v61  ;;  %v4197_v24 = vpack.c.bf16 %v4173_v61, %v4173_v61  ;;  %v4218_v62 = vmul.f32 %v10201_v63, %v4173_v61 }
 0x5f5   :  { %v4128_v13 = vpop.f32.mrf.mxu3 }
 0x5f6   :  { %v4129_v54 = vadd.f32 %v4128_v13, %v4101_v25  ;;  %v4211_v41 = vpack.c.bf16 %v4204_v47, %v4204_v47  ;;  %v4225_v39 = vpack.c.bf16 %v4218_v62, %v4218_v62  ;;  %v4271_v15 = vunpack.c.l.b16 %v4197_v24  ;;  %v7895_v24 = vld [vmem:[%s11955_s7 + $0xc8] sm:$0xff] }
 0x5f7   :  { %5174 = vmatpush.bf16.msrb.mxu0 %v7895_v24 }
 0x5f8   :  { %v4157_v1 = vadd.f32 %v4156_v14, %v4129_v54  ;;  %v10810_v22 = vpop.f32.mrf.mxu2  ;;  %v4077_v14 = vpop.f32.mrf.mxu1  ;;  %v4239_v61 = vunpack.c.l.b16 %v4211_v41  ;;  %v4300_v35 = vunpack.c.l.b16 %v4225_v39  ;;  %v4055_v41 = vadd.f32 %v10721_v17, %v10723_v32 }
 0x5f9   :  { %v4078_v36 = vadd.f32 %v4077_v14, %v4050_v53  ;;  %v4109_v17 = vadd.f32 %v10784_v29, %v10729_v37 }
 0x5fa   :  { %v4174_v40 = vmax.f32 %v4157_v1, 0.0  ;;  %v4161_v20 = vpop.f32.mrf.mxu0  ;;  %v7886_v1 = vld [vmem:[%s11955_s7 + $0x80] sm:$0xff] }
 0x5fb   :  { %v4106_v2 = vadd.f32 %v10757_v31, %v4078_v36  ;;  %5147 = vmatpush.bf16.msrb.mxu3 %v7886_v1 }
 0x5fc   :  { %v4198_v59 = vpack.c.bf16 %v4174_v40, %v4174_v40  ;;  %v4205_v57 = vmul.f32 %v10210_v50, %v4174_v40  ;;  %v4219_v9 = vmul.f32 %v10213_v7, %v4174_v40  ;;  %v7907_v40 = vld [vmem:[%s11955_s7 + $0x128] sm:$0xff] }
 0x5fd   :  { %v4131_v26 = vpop.f32.mrf.mxu3  ;;  %5198 = vmatpush.bf16.msrb.mxu1 %v7907_v40 }
 0x5fe   :  { %v4212_v42 = vpack.c.bf16 %v4205_v57, %v4205_v57  ;;  %v4226_v44 = vpack.c.bf16 %v4219_v9, %v4219_v9  ;;  %v4272_v60 = vunpack.c.l.b16 %v4198_v59  ;;  %v4132_v46 = vadd.f32 %v4131_v26, %v4104_v18  ;;  %v7894_v57 = vld [vmem:[%s11955_s7 + $0xc0] sm:$0xff] }
 0x5ff   :  { %5175 = vmatpush.bf16.msrb.mxu0 %v7894_v57 }
 0x600   :  { %v4240_v34 = vunpack.c.l.b16 %v4212_v42  ;;  %v4278_v25 = vpack.c.b16 %v4272_v60, %v4271_v15  ;;  %v4301_v13 = vunpack.c.l.b16 %v4226_v44  ;;  %v4160_v58 = vadd.f32 %v4159_v21, %v4132_v46  ;;  %v4113_v54 = vpop.f32.mrf.mxu2  ;;  %v7878_v21 = vld [vmem:[%s11955_s7 + $0x40] sm:$0xff]  ;;  %v10887_v60 = vpop.permute.xlu2 %4187 }
 0x601   :  { %5119 = vmatpush.bf16.msra.mxu2 %v7878_v21  ;;  %v4083_v15 = vadd.f32 %v10731_v49, %v4055_v41  ;;  %v10896_v37 = vadd.f32 %v4113_v54, %v10740_v56 }
 0x602   :  { %v4246_v47 = vpack.c.b16 %v4240_v34, %v4239_v61  ;;  %v10839_v48 = vrot.slane %v4278_v25, 5  ;;  %v4164_v51 = vpop.f32.mrf.mxu0  ;;  %v4307_v11 = vpack.c.b16 %v4301_v13, %v4300_v35  ;;  %v4175_v31 = vmax.f32 %v4160_v58, 0.0 }
 0x604   :  { %v10856_v62 = vrot.slane %v4246_v47, 5  ;;  %v10860_v8 = vsel %vm912_vm5, 0, %v10839_v48  ;;  %v10875_v9 = vrot.slane %v4307_v11, 5  ;;  %v4199_v18 = vpack.c.bf16 %v4175_v31, %v4175_v31  ;;  %v7905_v47 = vld [vmem:[%s11955_s7 + $0x118] sm:$0xff] }
 0x605   :  { %v4133_v38 = vpop.f32.mrf.mxu3  ;;  %v4322_v14 = vshrl.u32 %v10860_v8, 16  ;;  %v4324_v59 = vshll.u32 %v10860_v8, 16  ;;  %v4220_v26 = vmul.f32 %v10289_v28, %v4175_v31  ;;  %v4206_v46 = vmul.f32 %v10411_v10, %v4175_v31 }
 0x606   :  { %v4134_v6 = vadd.f32 %v4133_v38, %v4106_v2  ;;  %7459 = vmatmul.msk.bf16.vlgmr.msra.gmra.mxu1 %vm10842_vm9, %v10856_v62  ;;  %v10885_v44 = vsel %vm912_vm5, 0, %v10856_v62  ;;  %v4273_v36 = vunpack.c.l.b16 %v4199_v18  ;;  %v10901_v43 = vsel %vm912_vm5, 0, %v10875_v9 }
 0x607   :  { %v10891_v49 = vrot.slane %v4322_v14, 5  ;;  %v10893_v61 = vrot.slane %v4324_v59, 6  ;;  %v4227_v0 = vpack.c.bf16 %v4220_v26, %v4220_v26  ;;  %v4369_v34 = vshrl.u32 %v10885_v44, 16 }
 0x608   :  { %v4162_v53 = vadd.f32 %v4161_v20, %v4134_v6  ;;  %v4115_v39 = vpop.f32.mrf.mxu2  ;;  %v4111_v20 = vadd.f32 %v10810_v22, %v4083_v15  ;;  %v7906_v22 = vld [vmem:[%s11955_s7 + $0x120] sm:$0xff]  ;;  %v4372_v25 = vshll.u32 %v10885_v44, 16  ;;  %v4213_v2 = vpack.c.bf16 %v4206_v46, %v4206_v46 }
 0x609   :  { %v4474_v56 = vor.u32 %v10893_v61, %v10891_v49  ;;  %5199 = vmatpush.bf16.msrb.mxu1 %v7906_v22  ;;  %v4326_v21 = vrot.slane %v4324_v59, 1  ;;  %v4358_v1 = vrot.slane %v10901_v43, 1  ;;  %v4420_v24 = vshrl.u32 %v10901_v43, 16 }
 0x60a   :  { %v4176_v32 = vmax.f32 %v4162_v53, 0.0  ;;  %v10881_v42 = vpop.f32.mrf.mxu0  ;;  %v4302_v6 = vunpack.c.l.b16 %v4227_v0  ;;  %v10917_v41 = vrot.slane %v4369_v34, 2  ;;  %v10919_v57 = vrot.slane %v4372_v25, 3 }
 0x60b   :  { %v4423_v18 = vshll.u32 %v10901_v43, 16  ;;  %v4409_v46 = vrot.slane %v10860_v8, 3 }
 0x60c   :  { %v4193_v29 = vmul.f32 %v10887_v60, %v4176_v32  ;;  %v4327_v32 = vor.u32 %v4326_v21, %v4322_v14 }
 0x60d   :  { %v4136_v33 = vpop.f32.mrf.mxu3  ;;  %5200 = vmatpush.bf16.msrb.mxu1 %v7905_v47  ;;  %v10939_v47 = vrot.slane %v4423_v18, 4 }
 0x60e   :  { %v4200_v13 = vpack.c.bf16 %v4193_v29, %v4193_v29  ;;  %v4207_v58 = vmul.f32 %v4193_v29, %v10271_v4  ;;  %v4221_v54 = vmul.f32 %v4193_v29, %v10300_v5  ;;  %v4137_v35 = vadd.f32 %v4136_v33, %v4109_v17  ;;  %v7904_v17 = vld [vmem:[%s11955_s7 + $0x110] sm:$0xff] }
 0x60f   :  { %v10928_v29 = vrot.slane %v4420_v24, 3 }
 0x610   :  { %v4228_v11 = vpack.c.bf16 %v4221_v54, %v4221_v54  ;;  %v4274_v31 = vunpack.c.l.b16 %v4200_v13  ;;  %v4165_v40 = vadd.f32 %v4164_v51, %v4137_v35  ;;  %v4214_v38 = vpack.c.bf16 %v4207_v58, %v4207_v58 }
 0x611   :  { %v4241_v51 = vunpack.c.l.b16 %v4213_v2  ;;  %v4375_v58 = vor.u32 %v10919_v57, %v10917_v41  ;;  %v4460_v54 = vrot.slane %v10885_v44, 5  ;;  %5201 = vmatpush.bf16.msrb.mxu1 %v7904_v17 }
 0x612   :  { %v4279_v53 = vpack.c.b16 %v4274_v31, %v4273_v36  ;;  %v4303_v39 = vunpack.c.l.b16 %v4228_v11  ;;  %v4177_v15 = vmax.f32 %v4165_v40, 0.0  ;;  %v10922_v26 = vpop.f32.mrf.mxu0  ;;  %v4242_v59 = vunpack.c.l.b16 %v4214_v38 }
 0x614   :  { %v10930_v22 = vrot.slane %v4279_v53, 5  ;;  %v4308_v0 = vpack.c.b16 %v4303_v39, %v4302_v6  ;;  %v4201_v36 = vpack.c.bf16 %v4177_v15, %v4177_v15  ;;  %v4208_v33 = vmul.f32 %v10424_v23, %v4177_v15  ;;  %v7903_v39 = vld [vmem:[%s11955_s7 + $0x108] sm:$0xff] }
 0x615   :  { %v4222_v34 = vmul.f32 %v10426_v52, %v4177_v15  ;;  %v4138_v25 = vpop.f32.mrf.mxu3  ;;  %v4247_v13 = vpack.c.b16 %v4242_v59, %v4241_v51  ;;  %5202 = vmatpush.bf16.msrb.mxu1 %v7903_v39 }
 0x616   :  { %v10937_v14 = vrot.slane %v4308_v0, 5  ;;  %v4215_v8 = vpack.c.bf16 %v4208_v33, %v4208_v33  ;;  %v4139_v35 = vadd.f32 %v4138_v25, %v4111_v20  ;;  %v10946_v24 = vsel %vm912_vm5, %v10839_v48, %v10930_v22 }
 0x617   :  { %v4229_v2 = vpack.c.bf16 %v4222_v34, %v4222_v34  ;;  %v10941_v21 = vrot.slane %v4247_v13, 5  ;;  %v4275_v31 = vunpack.c.l.b16 %v4201_v36  ;;  %v4329_v40 = vshll.u32 %v10946_v24, 16 }
 0x618   :  { %v4167_v44 = vadd.f32 %v10881_v42, %v4139_v35  ;;  %v10954_v20 = vsel %vm912_vm5, %v10875_v9, %v10937_v14  ;;  %v10956_v38 = vunpack.c.l.b16 %v4215_v8  ;;  %v4333_v41 = vshrl.u32 %v10946_v24, 16 }
 0x619   :  { %v10961_v6 = vsel %vm912_vm5, %v10856_v62, %v10941_v21  ;;  %v12009_v48 = vrot.slane %v10954_v20, 1  ;;  %v4304_v57 = vunpack.c.l.b16 %v4229_v2  ;;  %v4331_v15 = vrot.slane %v4329_v40, 1 }
 0x61a   :  { %v4178_v42 = vmax.f32 %v4167_v44, 0.0  ;;  %v4377_v18 = vshrl.u32 %v10961_v6, 16  ;;  %v4380_v53 = vshll.u32 %v10961_v6, 16  ;;  %5097 = vmatmul.bf16.gmra.mxu1 %v10961_v6  ;;  %v4171_v9 = vpop.f32.mrf.mxu0  ;;  %v4461_v62 = vrot.slane %v10961_v6, 5  ;;  %v7919_v6 = vld [vmem:[%s11955_s7 + $0x188] sm:$0xff] }
 0x61b   :  { %v4360_v59 = vsel %vm936_vm10, %v4358_v1, %v12009_v48  ;;  %v4410_v17 = vrot.slane %v10946_v24, 3  ;;  %v4332_v25 = vsel %vm1448_vm11, %v4327_v32, %v4331_v15  ;;  %v4475_v8 = vrot.slane %v4333_v41, 5  ;;  %v7925_v32 = vld [vmem:[%s11955_s7 + $0x1b8] sm:$0xff]  ;;  %v7931_v24 = vld [vmem:[%s11955_s7 + $0x1e8] sm:$0xff] }
 0x61c   :  { %v4202_v51 = vpack.c.bf16 %v4178_v42, %v4178_v42  ;;  %v4209_v0 = vmul.f32 %v10199_v3, %v4178_v42  ;;  %v4223_v36 = vmul.f32 %v10201_v63, %v4178_v42  ;;  %v4379_v33 = vrot.slane %v4377_v18, 2  ;;  %5148 = vmatmul.bf16.vlgmr.msrb.gmra.mxu3 %v4360_v59  ;;  %5120 = vmatmul.bf16.vlgmr.msra.gmra.mxu2 %v4332_v25  ;;  %v7917_v42 = vld [vmem:[%s11955_s7 + $0x178] sm:$0xff] }
 0x61d   :  { %v4382_v34 = vrot.slane %v4380_v53, 3  ;;  %v4141_v13 = vpop.f32.mrf.mxu3  ;;  %v10982_v35 = vsel %vm924_vm8, %v4409_v46, %v4410_v17  ;;  %v4428_v53 = vshrl.u32 %v10954_v20, 16  ;;  %v4431_v46 = vshll.u32 %v10954_v20, 16  ;;  %5224 = vmatpush.bf16.msrb.mxu2 %v7917_v42  ;;  %5252 = vmatpush.bf16.msra.mxu3 %v7925_v32 }
 0x61e   :  { %v4216_v1 = vpack.c.bf16 %v4209_v0, %v4209_v0  ;;  %v4230_v2 = vpack.c.bf16 %v4223_v36, %v4223_v36  ;;  %v4276_v44 = vunpack.c.l.b16 %v4202_v51  ;;  %v4142_v9 = vadd.f32 %v4141_v13, %v10896_v37 }
 0x61f   :  { %v10991_v18 = vor.u32 %v4382_v34, %v4379_v33  ;;  %v10998_v39 = vsel %vm912_vm5, %v4460_v54, %v4461_v62  ;;  %v4430_v33 = vrot.slane %v4428_v53, 3  ;;  %v4433_v34 = vrot.slane %v4431_v46, 4 }
 0x620   :  { %v4244_v37 = vunpack.c.l.b16 %v4216_v1  ;;  %v4280_v59 = vpack.c.b16 %v4276_v44, %v4275_v31  ;;  %v4305_v51 = vunpack.c.l.b16 %v4230_v2  ;;  %v4170_v0 = vadd.f32 %v10922_v26, %v4142_v9  ;;  %v7902_v31 = vld [vmem:[%s11955_s7 + $0x100] sm:$0xff]  ;;  %v7916_v26 = vld [vmem:[%s11955_s7 + $0x170] sm:$0xff] }
 0x621   :  { %v4384_v36 = vsel %vm3521_vm6, %v4375_v58, %v10991_v18  ;;  %v4476_v25 = vrot.slane %v4329_v40, 6  ;;  %v7924_v58 = vld [vmem:[%s11955_s7 + $0x1b0] sm:$0xff]  ;;  %v4335_v40 = vor.u32 %v4333_v41, %v4331_v15  ;;  %v11020_v1 = vor.u32 %v4433_v34, %v4430_v33  ;;  %5203 = vmatpush.bf16.msrb.mxu1 %v7902_v31  ;;  %5225 = vmatpush.bf16.msrb.mxu2 %v7916_v26  ;;  %v7915_v41 = vld [vmem:[%s11955_s7 + $0x168] sm:$0xff] }
 0x622   :  { %v11003_v13 = vrot.slane %v4280_v59, 5  ;;  %v4309_v11 = vpack.c.b16 %v4305_v51, %v4304_v57  ;;  %v4179_v48 = vmax.f32 %v4170_v0, 0.0  ;;  %5176 = vmatmul.bf16.vlgmr.msrb.gmra.mxu0 %v4384_v36  ;;  %v4248_v54 = vpack.c.b16 %v4244_v37, %v10956_v38  ;;  %v7933_v57 = vld [vmem:[%s11955_s7 + $0x1f8] sm:$0xff]  ;;  %5253 = vmatpush.bf16.msra.mxu3 %v7924_v58 }
 0x623   :  { %v4426_v38 = vor.u32 %v10939_v47, %v10928_v29  ;;  %v11022_v2 = vor.u32 %v4476_v25, %v4475_v8  ;;  %5280 = vmatpush.bf16.msra.mxu0 %v7933_v57  ;;  %v7923_v47 = vld [vmem:[%s11955_s7 + $0x1a8] sm:$0xff] }
 0x624   :  { %v11024_v44 = vrot.slane %v4309_v11, 5  ;;  %v4203_v9 = vpack.c.bf16 %v4179_v48, %v4179_v48  ;;  %v4210_v42 = vmul.f32 %v10431_v27, %v4179_v48  ;;  %v4224_v32 = vmul.f32 %v10433_v19, %v4179_v48  ;;  %v7932_v11 = vld [vmem:[%s11955_s7 + $0x1f0] sm:$0xff] }
 0x625   :  { %v4143_v15 = vpop.f32.mrf.mxu3  ;;  %v4253_v53 = vrot.slane %v4248_v54, 5  ;;  %v11034_v29 = vsel %vm912_vm5, %v10930_v22, %v11003_v13  ;;  %v11044_v48 = vsel %vm3573_vm3, %v4426_v38, %v11020_v1  ;;  %v11051_v22 = vsel %vm1277_vm13, %v4474_v56, %v11022_v2  ;;  %5226 = vmatpush.bf16.msrb.mxu2 %v7915_v41  ;;  %v7914_v38 = vld [vmem:[%s11955_s7 + $0x160] sm:$0xff] }
 0x626   :  { %v4217_v8 = vpack.c.bf16 %v4210_v42, %v4210_v42  ;;  %v4231_v46 = vpack.c.bf16 %v4224_v32, %v4224_v32  ;;  %v4277_v37 = vunpack.c.l.b16 %v4203_v9  ;;  %v4337_v59 = vshll.u32 %v11034_v29, 16  ;;  %5254 = vmatpush.bf16.msra.mxu3 %v7923_v47  ;;  %v7922_v9 = vld [vmem:[%s11955_s7 + $0x1a0] sm:$0xff]  ;;  %v7941_v47 = vld [vmem:[%s11955_s7 + $0x238] sm:$0xff] }
 0x627   :  { %v11056_v51 = vsel %vm912_vm5, %v10941_v21, %v4253_v53  ;;  %v11061_v0 = vsel %vm912_vm5, %v10937_v14, %v11024_v44  ;;  %v4341_v36 = vshrl.u32 %v11034_v29, 16  ;;  %v4412_v49 = vrot.slane %v11034_v29, 3  ;;  %5281 = vmatpush.bf16.msra.mxu0 %v7932_v11  ;;  %5308 = vmatpush.bf16.msra.mxu1 %v7941_v47 }
 0x628   :  { %v4245_v61 = vunpack.c.l.b16 %v4217_v8  ;;  %v4281_v56 = vpack.c.b16 %v4277_v37, %v4277_v37  ;;  %v4306_v33 = vunpack.c.l.b16 %v4231_v46  ;;  %v4386_v34 = vshrl.u32 %v11056_v51, 16 }
 0x629   :  { %v4389_v25 = vshll.u32 %v11056_v51, 16  ;;  %v4339_v21 = vrot.slane %v4337_v59, 1  ;;  %v4361_v54 = vrot.slane %v11061_v0, 1  ;;  %v11073_v14 = vsel %vm924_vm8, %v4410_v17, %v4412_v49  ;;  %5227 = vmatpush.bf16.msrb.mxu2 %v7914_v38 }
 0x62a   :  { %v4249_v31 = vpack.c.b16 %v4245_v61, %v4245_v61  ;;  %v4287_v26 = vrot.slane %v4281_v56, 5  ;;  %v4310_v58 = vpack.c.b16 %v4306_v33, %v4306_v33  ;;  %v4388_v57 = vrot.slane %v4386_v34, 2  ;;  %5102 = vmatmul.bf16.gmra.mxu1 %v11056_v51  ;;  %5255 = vmatpush.bf16.msra.mxu3 %v7922_v9 }
 0x62b   :  { %v4391_v17 = vrot.slane %v4389_v25, 3  ;;  %v4340_v42 = vsel %vm1448_vm11, %v4335_v40, %v4339_v21  ;;  %v12174_v32 = vrot.slane %v10954_v20, 1  ;;  %v4343_v15 = vor.u32 %v4341_v36, %v4339_v21  ;;  %5282 = vmatpush.bf16.msra.mxu0 %v7931_v24 }
 0x62c   :  { %v4316_v11 = vrot.slane %v4310_v58, 5  ;;  %v4255_v8 = vrot.slane %v4249_v31, 5  ;;  %v4288_v46 = vsel %vm912_vm5, %v11003_v13, %v4287_v26  ;;  %v4437_v40 = vshrl.u32 %v11061_v0, 16  ;;  %5125 = vmatmul.bf16.gmra.mxu2 %v4340_v42  ;;  %v7913_v31 = vld [vmem:[%s11955_s7 + $0x158] sm:$0xff] }
 0x62d   :  { %v4362_v41 = vsel %vm936_vm10, %v12174_v32, %v4361_v54  ;;  %v4392_v37 = vor.u32 %v4391_v17, %v4388_v57  ;;  %v11099_v61 = vsel %vm10451_vm1, %v4288_v46, 0  ;;  %v4440_v56 = vshll.u32 %v11061_v0, 16  ;;  %v7921_v26 = vld [vmem:[%s11955_s7 + $0x198] sm:$0xff]  ;;  %5228 = vmatpush.bf16.msrb.mxu2 %v7913_v31 }
 0x62e   :  { %5153 = vmatmul.bf16.gmra.mxu3 %v4362_v41  ;;  %v4463_v33 = vrot.slane %v11056_v51, 5  ;;  %v4256_v34 = vsel %vm912_vm5, %v4253_v53, %v4255_v8  ;;  %v4345_v25 = vshll.u32 %v11099_v61, 16  ;;  %v4317_v13 = vsel %vm912_vm5, %v11024_v44, %v4316_v11  ;;  %v7930_v53 = vld [vmem:[%s11955_s7 + $0x1e0] sm:$0xff] }
 0x62f   :  { %v4349_v21 = vshrl.u32 %v11099_v61, 16  ;;  %v4393_v51 = vsel %vm3521_vm6, %v10991_v18, %v4392_v37  ;;  %v11121_v44 = vsel %vm10451_vm1, %v4256_v34, 0  ;;  %v11125_v58 = vsel %vm10451_vm1, %v4317_v13, 0  ;;  %5256 = vmatpush.bf16.msra.mxu3 %v7921_v26  ;;  %5283 = vmatpush.bf16.msra.mxu0 %v7930_v53  ;;  %v7912_v34 = vld [vmem:[%s11955_s7 + $0x150] sm:$0xff]  ;;  %v7911_v26 = vld [vmem:[%s11955_s7 + $0x148] sm:$0xff] }
 0x630   :  { %v4414_v57 = vrot.slane %v11099_v61, 3  ;;  %v4395_v38 = vshrl.u32 %v11121_v44, 16  ;;  %v4398_v9 = vshll.u32 %v11121_v44, 16  ;;  %v11130_v24 = vrot.slane %v4345_v25, 1 }
 0x631   :  { %v4363_v17 = vrot.slane %v11125_v58, 1  ;;  %v4439_v42 = vrot.slane %v4437_v40, 3  ;;  %v4442_v32 = vrot.slane %v4440_v56, 4  ;;  %v4493_v41 = vrot.slane %v10954_v20, 6  ;;  %v7929_v20 = vld [vmem:[%s11955_s7 + $0x1d8] sm:$0xff]  ;;  %5229 = vmatpush.bf16.msrb.mxu2 %v7912_v34 }
 0x632   :  { %v11136_v18 = vsel %vm924_vm8, %v4412_v49, %v4414_v57  ;;  %5181 = vmatmul.bf16.gmra.mxu0 %v4393_v51  ;;  %v4397_v47 = vrot.slane %v4395_v38, 2  ;;  %v4400_v11 = vrot.slane %v4398_v9, 3  ;;  %v4348_v8 = vsel %vm1448_vm11, %v4343_v15, %v11130_v24  ;;  %v7920_v49 = vld [vmem:[%s11955_s7 + $0x190] sm:$0xff] }
 0x633   :  { %v4364_v46 = vsel %vm936_vm10, %v4361_v54, %v4363_v17  ;;  %v4483_v40 = vrot.slane %v4349_v21, 5  ;;  %v7940_v15 = vld [vmem:[%s11955_s7 + $0x230] sm:$0xff]  ;;  %v4443_v54 = vor.u32 %v4442_v32, %v4439_v42  ;;  %v11161_v56 = vsel %vm912_vm5, %v4461_v62, %v4463_v33  ;;  %5257 = vmatpush.bf16.msra.mxu3 %v7920_v49  ;;  %5284 = vmatpush.bf16.msra.mxu0 %v7929_v20 }
 0x634   :  { %v4479_v13 = vrot.slane %v4341_v36, 5  ;;  %v4401_v31 = vor.u32 %v4400_v11, %v4397_v47  ;;  %v4480_v53 = vrot.slane %v4337_v59, 6  ;;  %v4446_v51 = vshrl.u32 %v11125_v58, 16  ;;  %v7928_v62 = vld [vmem:[%s11955_s7 + $0x1d0] sm:$0xff]  ;;  %5309 = vmatpush.bf16.msra.mxu1 %v7940_v15 }
 0x635   :  { %v4449_v38 = vshll.u32 %v11125_v58, 16  ;;  %v4444_v36 = vsel %vm3573_vm3, %v11020_v1, %v4443_v54  ;;  %v4465_v29 = vrot.slane %v11121_v44, 5  ;;  %v4484_v59 = vrot.slane %v4345_v25, 6  ;;  %5230 = vmatpush.bf16.msrb.mxu2 %v7911_v26  ;;  %v7926_v26 = vld [vmem:[%s11955_s7 + $0x1c0] sm:$0xff] }
 0x636   :  { %v12175_v9 = vrot.slane %v10901_v43, 6  ;;  %v4402_v32 = vsel %vm3521_vm6, %v4392_v37, %v4401_v31  ;;  %v4481_v47 = vor.u32 %v4480_v53, %v4479_v13  ;;  %v4448_v11 = vrot.slane %v4446_v51, 3  ;;  %v7939_v13 = vld [vmem:[%s11955_s7 + $0x228] sm:$0xff]  ;;  %v7936_v53 = vld [vmem:[%s11955_s7 + $0x210] sm:$0xff] }
 0x637   :  { %v4451_v34 = vrot.slane %v4449_v38, 4  ;;  %v4466_v49 = vsel %vm912_vm5, %v4463_v33, %v4465_v29  ;;  %v4485_v20 = vor.u32 %v4484_v59, %v4483_v40  ;;  %v4495_v1 = vrot.slane %v11061_v0, 6  ;;  %5258 = vmatpush.bf16.msra.mxu3 %v7919_v6  ;;  %5285 = vmatpush.bf16.msra.mxu0 %v7928_v62  ;;  %v7910_v33 = vld [vmem:[%s11955_s7 + $0x140] sm:$0xff] }
 0x638   :  { %v4494_v42 = vsel %vm391_vm0, %v12175_v9, %v4493_v41  ;;  %v4482_v25 = vsel %vm1277_vm13, %v11022_v2, %v4481_v47  ;;  %v4497_v9 = vrot.slane %v11125_v58, 6  ;;  %v7918_v0 = vld [vmem:[%s11955_s7 + $0x180] sm:$0xff]  ;;  %v7927_v2 = vld [vmem:[%s11955_s7 + $0x1c8] sm:$0xff]  ;;  %5310 = vmatpush.bf16.msra.mxu1 %v7939_v13 }
 0x639   :  { %v4452_v43 = vor.u32 %v4451_v34, %v4448_v11  ;;  %v4486_v37 = vsel %vm1277_vm13, %v4481_v47, %v4485_v20  ;;  %v4496_v15 = vsel %vm391_vm0, %v4493_v41, %v4495_v1  ;;  %5231 = vmatpush.bf16.msrb.mxu2 %v7910_v33 }
 0x63a   :  { %5107 = vmatmul.bf16.gmra.mxu1 %v11121_v44  ;;  %v4498_v41 = vsel %vm391_vm0, %v4495_v1, %v4497_v9 }
 0x63b   :  { %v4453_v40 = vsel %vm3573_vm3, %v4443_v54, %v4452_v43  ;;  %5259 = vmatpush.bf16.msra.mxu3 %v7918_v0  ;;  %5286 = vmatpush.bf16.msra.mxu0 %v7927_v2  ;;  %v7938_v54 = vld [vmem:[%s11955_s7 + $0x220] sm:$0xff] }
 0x63c   :  { %5130 = vmatmul.bf16.gmra.mxu2 %v4348_v8  ;;  %5311 = vmatpush.bf16.msra.mxu1 %v7938_v54  ;;  %v4351_v8 = vor.u32 %v4349_v21, %v11130_v24  ;;  %v7934_v21 = vld [vmem:[%s11955_s7 + $0x200] sm:$0xff]  ;;  %v7949_v54 = vld [vmem:[%s11957_s9 + $0x38] sm:$0xff] }
 0x63d   :  { %6237 = vmatpush.bf16.msra.mxu2 %v7949_v54  ;;  %v7944_v54 = vld [vmem:[%s11957_s9 + $0x10] sm:$0xff] }
 0x63e   :  { %5158 = vmatmul.bf16.gmra.mxu3 %v4364_v46  ;;  %v7937_v46 = vld [vmem:[%s11955_s7 + $0x218] sm:$0xff] }
 0x63f   :  { %5287 = vmatpush.bf16.msra.mxu0 %v7926_v26 }
 0x640   :  { %5312 = vmatpush.bf16.msra.mxu1 %v7937_v46 }
 0x642   :  { %5186 = vmatmul.bf16.gmra.mxu0 %v4402_v32 }
 0x644   :  { %5313 = vmatpush.bf16.msra.mxu1 %v7936_v53 }
 0x64a   :  { %5204 = vmatmul.bf16.vlgmr.msrb.gmra.mxu1 %v10982_v35  ;;  %v7935_v35 = vld [vmem:[%s11955_s7 + $0x208] sm:$0xff] }
 0x64b   :  { %5314 = vmatpush.bf16.msra.mxu1 %v7935_v35 }
 0x64c   :  { %5135 = vmatmul.bf16.gmra.mxu2 %v4351_v8 }
 0x64e   :  { %5163 = vmatmul.bf16.gmra.mxu3 %v4363_v17 }
 0x64f   :  { %5315 = vmatpush.bf16.msra.mxu1 %v7934_v21  ;;  %v7948_v21 = vld [vmem:[%s11957_s9 + $0x30] sm:$0xff] }
 0x650   :  { %6238 = vmatpush.bf16.msra.mxu2 %v7948_v21 }
 0x652   :  { %5191 = vmatmul.bf16.gmra.mxu0 %v4401_v31 }
 0x65a   :  { %5209 = vmatmul.bf16.gmra.mxu1 %v11073_v14  ;;  %v4487_v14 = vsel %vm1277_vm13, %v4485_v20, %v10600_v16 }
 0x65c   :  { %5232 = vmatmul.bf16.vlgmr.msrb.gmra.mxu2 %v11044_v48  ;;  %v4467_v48 = vsel %vm912_vm5, %v4465_v29, %v10585_v55 }
 0x65e   :  { %5260 = vmatmul.bf16.vlgmr.msra.gmra.mxu3 %v10998_v39 }
 0x662   :  { %5288 = vmatmul.bf16.vlgmr.msra.gmra.mxu0 %v11051_v22 }
 0x66a   :  { %5214 = vmatmul.bf16.gmra.mxu1 %v11136_v18 }
 0x66c   :  { %5237 = vmatmul.bf16.gmra.mxu2 %v4444_v36 }
 0x66e   :  { %5265 = vmatmul.bf16.gmra.mxu3 %v11161_v56 }
 0x672   :  { %5293 = vmatmul.bf16.gmra.mxu0 %v4482_v25 }
 0x67a   :  { %5219 = vmatmul.bf16.gmra.mxu1 %v4414_v57  ;;  %v11254_v57 = vld [vmem:[%s11956_s8] ss:$0 sm:$0xff] }
 0x67c   :  { %5242 = vmatmul.bf16.gmra.mxu2 %v4453_v40 }
 0x67e   :  { %5270 = vmatmul.bf16.gmra.mxu3 %v4466_v49 }
 0x682   :  { %5298 = vmatmul.bf16.gmra.mxu0 %v4486_v37 }
 0x683   :  { %v5093_v39 = vpop.f32.mrf.mxu1 }
 0x684   :  { %v5094_v44 = vadd.f32 %v11254_v57, %v5093_v39 }
 0x68a   :  { %5316 = vmatmul.bf16.vlgmr.msra.gmra.mxu1 %v4494_v42 }
 0x68b   :  { %v11247_v22 = vpop.f32.mrf.mxu1 }
 0x68c   :  { %5247 = vmatmul.bf16.gmra.mxu2 %v4452_v43 }
 0x68e   :  { %5275 = vmatmul.bf16.gmra.mxu3 %v4467_v48 }
 0x692   :  { %5303 = vmatmul.bf16.gmra.mxu0 %v4487_v14 }
 0x697   :  { %v5098_v61 = vpop.f32.mrf.mxu1 }
 0x698   :  { %v5099_v32 = vadd.f32 %v11254_v57, %v5098_v61 }
 0x69a   :  { %5321 = vmatmul.bf16.gmra.mxu1 %v4496_v15  ;;  %v4499_v15 = vsel %vm391_vm0, %v4497_v9, %v10588_v45 }
 0x69f   :  { %v5177_v24 = vpop.f32.mrf.mxu0  ;;  %v11256_v17 = vpop.f32.mrf.mxu1 }
 0x6a0   :  { %v5149_v18 = vpop.f32.mrf.mxu3  ;;  %v5121_v56 = vpop.f32.mrf.mxu2 }
 0x6a1   :  { %v5122_v31 = vadd.f32 %v5121_v56, %v5094_v44  ;;  %v7947_v56 = vld [vmem:[%s11957_s9 + $0x28] sm:$0xff] }
 0x6a2   :  { %6239 = vmatpush.bf16.msra.mxu2 %v7947_v56 }
 0x6a3   :  { %v5150_v51 = vadd.f32 %v5149_v18, %v5122_v31 }
 0x6a5   :  { %v5178_v38 = vadd.f32 %v5177_v24, %v5150_v51 }
 0x6a7   :  { %v11259_v6 = vpop.f32.mrf.mxu0  ;;  %v5103_v62 = vpop.f32.mrf.mxu1 }
 0x6a8   :  { %v11261_v36 = vpop.f32.mrf.mxu3  ;;  %v11263_v29 = vpop.f32.mrf.mxu2  ;;  %v5104_v2 = vadd.f32 %v11254_v57, %v5103_v62 }
 0x6aa   :  { %5326 = vmatmul.bf16.gmra.mxu1 %v4498_v41 }
 0x6af   :  { %v5182_v59 = vpop.f32.mrf.mxu0  ;;  %v11265_v42 = vpop.f32.mrf.mxu1 }
 0x6b0   :  { %v5126_v11 = vpop.f32.mrf.mxu2 }
 0x6b1   :  { %v5154_v47 = vpop.f32.mrf.mxu3  ;;  %v5127_v34 = vadd.f32 %v5126_v11, %v5099_v32 }
 0x6b3   :  { %v5155_v49 = vadd.f32 %v5154_v47, %v5127_v34  ;;  %v7946_v47 = vld [vmem:[%s11957_s9 + $0x20] sm:$0xff] }
 0x6b4   :  { %6240 = vmatpush.bf16.msra.mxu2 %v7946_v47  ;;  %v7964_v47 = vld [vmem:[%s11957_s9 + $0xb0] sm:$0xff] }
 0x6b5   :  { %v5183_v20 = vadd.f32 %v5182_v59, %v5155_v49 }
 0x6b7   :  { %v11268_v1 = vpop.f32.mrf.mxu0  ;;  %v5108_v25 = vpop.f32.mrf.mxu1 }
 0x6b8   :  { %v11272_v37 = vpop.f32.mrf.mxu2  ;;  %v5109_v14 = vadd.f32 %v11254_v57, %v5108_v25 }
 0x6b9   :  { %v11270_v43 = vpop.f32.mrf.mxu3 }
 0x6ba   :  { %5331 = vmatmul.bf16.gmra.mxu1 %v4499_v15  ;;  %v7945_v15 = vld [vmem:[%s11957_s9 + $0x18] sm:$0xff] }
 0x6bb   :  { %6241 = vmatpush.bf16.msra.mxu2 %v7945_v15 }
 0x6bf   :  { %v5187_v33 = vpop.f32.mrf.mxu0  ;;  %v5110_v0 = vpop.f32.mrf.mxu1  ;;  %6242 = vmatpush.bf16.msra.mxu2 %v7944_v54 }
 0x6c0   :  { %v5131_v41 = vpop.f32.mrf.mxu2 }
 0x6c1   :  { %v5159_v40 = vpop.f32.mrf.mxu3  ;;  %v5132_v13 = vadd.f32 %v5131_v41, %v5104_v2 }
 0x6c3   :  { %v5160_v26 = vadd.f32 %v5159_v40, %v5132_v13 }
 0x6c5   :  { %v5188_v46 = vadd.f32 %v5187_v33, %v5160_v26 }
 0x6c7   :  { %v11282_v8 = vpop.f32.mrf.mxu0  ;;  %v5205_v58 = vpop.f32.mrf.mxu1 }
 0x6c8   :  { %v5206_v53 = vadd.f32 %v5205_v58, %v5178_v38  ;;  %v11286_v35 = vpop.f32.mrf.mxu2 }
 0x6c9   :  { %v11284_v9 = vpop.f32.mrf.mxu3 }
 0x6cf   :  { %v5192_v39 = vpop.f32.mrf.mxu0  ;;  %v5207_v48 = vpop.f32.mrf.mxu1 }
 0x6d0   :  { %v5136_v24 = vpop.f32.mrf.mxu2 }
 0x6d1   :  { %v5164_v61 = vpop.f32.mrf.mxu3  ;;  %v5137_v44 = vadd.f32 %v5136_v24, %v5109_v14 }
 0x6d3   :  { %v5165_v18 = vadd.f32 %v5164_v61, %v5137_v44 }
 0x6d5   :  { %v5193_v31 = vadd.f32 %v5192_v39, %v5165_v18 }
 0x6d7   :  { %v5194_v51 = vpop.f32.mrf.mxu0  ;;  %v5210_v38 = vpop.f32.mrf.mxu1 }
 0x6d8   :  { %v11295_v62 = vadd.f32 %v5210_v38, %v5183_v20  ;;  %v5138_v32 = vpop.f32.mrf.mxu2  ;;  %v7943_v51 = vld [vmem:[%s11957_s9 + $0x8] sm:$0xff]  ;;  %v7957_v38 = vld [vmem:[%s11957_s9 + $0x78] sm:$0xff] }
 0x6d9   :  { %v5166_v59 = vpop.f32.mrf.mxu3  ;;  %6243 = vmatpush.bf16.msra.mxu2 %v7943_v51  ;;  %6265 = vmatpush.bf16.msrb.mxu3 %v7957_v38 }
 0x6df   :  { %v5289_v11 = vpop.f32.mrf.mxu0  ;;  %v11300_v34 = vpop.f32.mrf.mxu1 }
 0x6e0   :  { %v5233_v25 = vpop.f32.mrf.mxu2 }
 0x6e1   :  { %v5261_v49 = vpop.f32.mrf.mxu3  ;;  %v5234_v56 = vadd.f32 %v5233_v25, %v5206_v53  ;;  %v7956_v53 = vld [vmem:[%s11957_s9 + $0x70] sm:$0xff] }
 0x6e2   :  { %6266 = vmatpush.bf16.msrb.mxu3 %v7956_v53 }
 0x6e3   :  { %v5262_v15 = vadd.f32 %v5261_v49, %v5234_v56 }
 0x6e7   :  { %v5291_v33 = vpop.f32.mrf.mxu0  ;;  %v5215_v20 = vpop.f32.mrf.mxu1 }
 0x6e8   :  { %v11305_v0 = vadd.f32 %v5215_v20, %v5188_v46  ;;  %v5235_v40 = vpop.f32.mrf.mxu2  ;;  %v5096_v46 = vadd.f32 %v11254_v57, %v11247_v22  ;;  %v7965_v22 = vld [vmem:[%s11957_s9 + $0xb8] sm:$0xff] }
 0x6e9   :  { %v5263_v2 = vpop.f32.mrf.mxu3  ;;  %6293 = vmatpush.bf16.msrb.mxu0 %v7965_v22  ;;  %v7973_v20 = vld [vmem:[%s11957_s9 + $0xf8] sm:$0xff] }
 0x6ea   :  { %v5124_v44 = vadd.f32 %v11263_v29, %v5096_v46  ;;  %v7942_v29 = vld [vmem:[%s11957_s9] sm:$0xff]  ;;  %6321 = vmatpush.bf16.msrb.mxu1 %v7973_v20  ;;  %v7963_v46 = vld [vmem:[%s11957_s9 + $0xa8] sm:$0xff] }
 0x6eb   :  { %6244 = vmatpush.bf16.msra.mxu2 %v7942_v29 }
 0x6ec   :  { %v5152_v18 = vadd.f32 %v11261_v36, %v5124_v44  ;;  %v5290_v44 = vadd.f32 %v5289_v11, %v5262_v15  ;;  %v5106_v11 = vadd.f32 %v11254_v57, %v11265_v42 }
 0x6ed   :  { %6294 = vmatpush.bf16.msrb.mxu0 %v7964_v47 }
 0x6ee   :  { %v5180_v25 = vadd.f32 %v11259_v6, %v5152_v18  ;;  %v7972_v6 = vld [vmem:[%s11957_s9 + $0xf0] sm:$0xff]  ;;  %v5134_v15 = vadd.f32 %v11286_v35, %v5106_v11  ;;  %v7953_v35 = vld [vmem:[%s11957_s9 + $0x58] sm:$0xff] }
 0x6ef   :  { %v11307_v41 = vpop.f32.mrf.mxu0  ;;  %v11309_v13 = vpop.f32.mrf.mxu1  ;;  %6322 = vmatpush.bf16.msrb.mxu1 %v7972_v6  ;;  %v7961_v6 = vld [vmem:[%s11957_s9 + $0x98] sm:$0xff] }
 0x6f0   :  { %v5238_v58 = vpop.f32.mrf.mxu2  ;;  %v5208_v54 = vadd.f32 %v5207_v48, %v5180_v25  ;;  %v5101_v48 = vadd.f32 %v11254_v57, %v11256_v17  ;;  %v7954_v25 = vld [vmem:[%s11957_s9 + $0x60] sm:$0xff] }
 0x6f1   :  { %v11311_v26 = vpop.f32.mrf.mxu3  ;;  %6295 = vmatpush.bf16.msrb.mxu0 %v7963_v46 }
 0x6f2   :  { %v5236_v49 = vadd.f32 %v5235_v40, %v5208_v54  ;;  %v5129_v22 = vadd.f32 %v11272_v37, %v5101_v48  ;;  %v5239_v40 = vadd.f32 %v5238_v58, %v11295_v62  ;;  %v7962_v37 = vld [vmem:[%s11957_s9 + $0xa0] sm:$0xff] }
 0x6f4   :  { %v5264_v29 = vadd.f32 %v5263_v2, %v5236_v49  ;;  %v5157_v17 = vadd.f32 %v11270_v43, %v5129_v22  ;;  %v7971_v2 = vld [vmem:[%s11957_s9 + $0xe8] sm:$0xff]  ;;  %v7970_v49 = vld [vmem:[%s11957_s9 + $0xe0] sm:$0xff] }
 0x6f5   :  { %6296 = vmatpush.bf16.msrb.mxu0 %v7962_v37  ;;  %6323 = vmatpush.bf16.msrb.mxu1 %v7971_v2 }
 0x6f6   :  { %v5292_v47 = vadd.f32 %v5291_v33, %v5264_v29  ;;  %v7981_v33 = vld [vmem:[%s11957_s9 + $0x138] sm:$0xff]  ;;  %v5185_v54 = vadd.f32 %v11268_v1, %v5157_v17  ;;  %v5162_v1 = vadd.f32 %v11284_v9, %v5134_v15  ;;  %v7960_v9 = vld [vmem:[%s11957_s9 + $0x90] sm:$0xff] }
 0x6f7   :  { %v11316_v21 = vpop.f32.mrf.mxu0  ;;  %v5220_v39 = vpop.f32.mrf.mxu1  ;;  %6349 = vmatpush.bf16.msrb.mxu2 %v7981_v33 }
 0x6f8   :  { %v11320_v14 = vadd.f32 %v5220_v39, %v5193_v31  ;;  %v11324_v24 = vpop.f32.mrf.mxu2  ;;  %v7955_v39 = vld [vmem:[%s11957_s9 + $0x68] sm:$0xff]  ;;  %v5190_v2 = vadd.f32 %v11282_v8, %v5162_v1 }
 0x6f9   :  { %v11322_v61 = vpop.f32.mrf.mxu3  ;;  %6267 = vmatpush.bf16.msrb.mxu3 %v7955_v39  ;;  %v5267_v39 = vadd.f32 %v11311_v26, %v5239_v40  ;;  %v5213_v26 = vadd.f32 %v11300_v34, %v5185_v54  ;;  %6297 = vmatpush.bf16.msrb.mxu0 %v7961_v6  ;;  %v7951_v54 = vld [vmem:[%s11957_s9 + $0x48] sm:$0xff] }
 0x6fa   :  { %6324 = vmatpush.bf16.msrb.mxu1 %v7970_v49  ;;  %v7959_v8 = vld [vmem:[%s11957_s9 + $0x88] sm:$0xff] }
 0x6fb   :  { %v5241_v40 = vadd.f32 %v11324_v24, %v5213_v26 }
 0x6fd   :  { %6268 = vmatpush.bf16.msrb.mxu3 %v7954_v25  ;;  %v5269_v6 = vadd.f32 %v11322_v61, %v5241_v40  ;;  %6298 = vmatpush.bf16.msrb.mxu0 %v7960_v9 }
 0x6ff   :  { %v11337_v31 = vpop.f32.mrf.mxu0  ;;  %v5222_v59 = vpop.f32.mrf.mxu1 }
 0x700   :  { %v11341_v36 = vpop.f32.mrf.mxu2 }
 0x701   :  { %v11339_v32 = vpop.f32.mrf.mxu3  ;;  %6269 = vmatpush.bf16.msrb.mxu3 %v7953_v35  ;;  %6299 = vmatpush.bf16.msrb.mxu0 %v7959_v8 }
 0x707   :  { %v11367_v18 = vpop.f32.mrf.mxu0  ;;  %v5317_v56 = vpop.f32.mrf.mxu1 }
 0x708   :  { %v5318_v51 = vadd.f32 %v5317_v56, %v5290_v44  ;;  %v11372_v59 = vpop.f32.mrf.mxu2  ;;  %v7980_v56 = vld [vmem:[%s11957_s9 + $0x130] sm:$0xff] }
 0x709   :  { %v11369_v38 = vpop.f32.mrf.mxu3  ;;  %6350 = vmatpush.bf16.msrb.mxu2 %v7980_v56 }
 0x70a   :  { %v5336_v53 = vmax.f32 %v5318_v51, 0.0 }
 0x70c   :  { %v5357_v57 = vmul.f32 %v10199_v3, %v5336_v53  ;;  %v5371_v42 = vmul.f32 %v10201_v63, %v5336_v53  ;;  %v5350_v44 = vpack.c.bf16 %v5336_v53, %v5336_v53  ;;  %v7952_v53 = vld [vmem:[%s11957_s9 + $0x50] sm:$0xff] }
 0x70d   :  { %6270 = vmatpush.bf16.msrb.mxu3 %v7952_v53 }
 0x70e   :  { %v5364_v51 = vpack.c.bf16 %v5357_v57, %v5357_v57  ;;  %v5378_v22 = vpack.c.bf16 %v5371_v42, %v5371_v42 }
 0x70f   :  { %v11390_v43 = vpop.f32.mrf.mxu0  ;;  %v5319_v62 = vpop.f32.mrf.mxu1 }
 0x710   :  { %v5320_v58 = vadd.f32 %v5319_v62, %v5292_v47  ;;  %v5248_v46 = vpop.f32.mrf.mxu2  ;;  %v5295_v47 = vadd.f32 %v11307_v41, %v5267_v39  ;;  %v5392_v24 = vunpack.c.l.b16 %v5364_v51  ;;  %v5453_v15 = vunpack.c.l.b16 %v5378_v22 }
 0x711   :  { %v11395_v20 = vpop.f32.mrf.mxu3  ;;  %v5218_v39 = vadd.f32 %v11309_v13, %v5190_v2  ;;  %6271 = vmatpush.bf16.msrb.mxu3 %v7951_v54  ;;  %v7977_v54 = vld [vmem:[%s11957_s9 + $0x118] sm:$0xff] }
 0x712   :  { %v5337_v48 = vmax.f32 %v5320_v58, 0.0 }
 0x713   :  { %v5246_v61 = vadd.f32 %v11372_v59, %v5218_v39  ;;  %v7967_v59 = vld [vmem:[%s11957_s9 + $0xc8] sm:$0xff] }
 0x714   :  { %v5351_v29 = vpack.c.bf16 %v5337_v48, %v5337_v48  ;;  %v5358_v11 = vmul.f32 %v10210_v50, %v5337_v48  ;;  %v5372_v17 = vmul.f32 %v10213_v7, %v5337_v48  ;;  %v7969_v50 = vld [vmem:[%s11957_s9 + $0xd8] sm:$0xff]  ;;  %v5424_v7 = vunpack.c.l.b16 %v5350_v44  ;;  %v7968_v44 = vld [vmem:[%s11957_s9 + $0xd0] sm:$0xff] }
 0x715   :  { %6325 = vmatpush.bf16.msrb.mxu1 %v7969_v50  ;;  %v5244_v48 = vadd.f32 %v11341_v36, %v11305_v0  ;;  %v7950_v0 = vld [vmem:[%s11957_s9 + $0x40] sm:$0xff]  ;;  %v5274_v50 = vadd.f32 %v11369_v38, %v5246_v61 }
 0x716   :  { %v5365_v34 = vpack.c.bf16 %v5358_v11, %v5358_v11  ;;  %v5379_v25 = vpack.c.bf16 %v5372_v17, %v5372_v17  ;;  %v5425_v37 = vunpack.c.l.b16 %v5351_v29  ;;  %v5249_v29 = vadd.f32 %v5248_v46, %v11320_v14  ;;  %v7958_v36 = vld [vmem:[%s11957_s9 + $0x80] sm:$0xff]  ;;  %v7979_v11 = vld [vmem:[%s11957_s9 + $0x128] sm:$0xff]  ;;  %6272 = vmatpush.bf16.msrb.mxu3 %v7950_v0 }
 0x717   :  { %v5306_v41 = vpop.f32.mrf.mxu0  ;;  %v5322_v57 = vpop.f32.mrf.mxu1  ;;  %v5272_v14 = vadd.f32 %v11339_v32, %v5244_v48  ;;  %v5297_v17 = vadd.f32 %v11316_v21, %v5269_v6  ;;  %6351 = vmatpush.bf16.msrb.mxu2 %v7979_v11  ;;  %6300 = vmatpush.bf16.msrb.mxu0 %v7958_v36 }
 0x718   :  { %v5393_v42 = vunpack.c.l.b16 %v5365_v34  ;;  %v5431_v62 = vpack.c.b16 %v5425_v37, %v5424_v7  ;;  %v5454_v33 = vunpack.c.l.b16 %v5379_v25  ;;  %v5323_v58 = vadd.f32 %v5322_v57, %v5295_v47  ;;  %v5250_v49 = vpop.f32.mrf.mxu2 }
 0x719   :  { %v5278_v35 = vpop.f32.mrf.mxu3  ;;  %6326 = vmatpush.bf16.msrb.mxu1 %v7968_v44  ;;  %v5277_v32 = vadd.f32 %v11395_v20, %v5249_v29  ;;  %v5300_v20 = vadd.f32 %v11337_v31, %v5272_v14  ;;  %v5302_v41 = vadd.f32 %v11367_v18, %v5274_v50  ;;  %v7978_v31 = vld [vmem:[%s11957_s9 + $0x120] sm:$0xff]  ;;  %v7976_v14 = vld [vmem:[%s11957_s9 + $0x110] sm:$0xff] }
 0x71a   :  { %v5399_v56 = vpack.c.b16 %v5393_v42, %v5392_v24  ;;  %v11440_v1 = vrot.slane %v5431_v62, 5  ;;  %v5460_v13 = vpack.c.b16 %v5454_v33, %v5453_v15  ;;  %v5338_v26 = vmax.f32 %v5323_v58, 0.0 }
 0x71b   :  { %v11494_v57 = vadd.f32 %v11390_v43, %v5277_v32  ;;  %6352 = vmatpush.bf16.msrb.mxu2 %v7978_v31 }
 0x71c   :  { %v11443_v51 = vrot.slane %v5399_v56, 5  ;;  %v11447_v22 = vsel %vm912_vm5, 0, %v11440_v1  ;;  %v11463_v46 = vrot.slane %v5460_v13, 5  ;;  %v5373_v40 = vmul.f32 %v10289_v28, %v5338_v26  ;;  %v7966_v28 = vld [vmem:[%s11957_s9 + $0xc0] sm:$0xff] }
 0x71d   :  { %v5477_v53 = vshll.u32 %v11447_v22, 16  ;;  %v5475_v9 = vshrl.u32 %v11447_v22, 16  ;;  %6327 = vmatpush.bf16.msrb.mxu1 %v7967_v59  ;;  %v5352_v34 = vpack.c.bf16 %v5338_v26, %v5338_v26  ;;  %v5359_v25 = vmul.f32 %v10411_v10, %v5338_v26 }
 0x71e   :  { %7749 = vmatmul.msk.bf16.vlgmr.msra.gmra.mxu2 %vm10842_vm9, %v11443_v51  ;;  %v11476_v12 = vsel %vm912_vm5, 0, %v11443_v51  ;;  %v11483_v21 = vsel %vm912_vm5, 0, %v11463_v46  ;;  %v5380_v37 = vpack.c.bf16 %v5373_v40, %v5373_v40  ;;  %v5562_v44 = vrot.slane %v11447_v22, 3 }
 0x71f   :  { %v5324_v47 = vpop.f32.mrf.mxu1  ;;  %v11487_v2 = vrot.slane %v5475_v9, 5  ;;  %v11489_v24 = vrot.slane %v5477_v53, 6  ;;  %v5522_v42 = vshrl.u32 %v11476_v12, 16  ;;  %v5525_v10 = vshll.u32 %v11476_v12, 16  ;;  %6353 = vmatpush.bf16.msrb.mxu2 %v7977_v54 }
 0x720   :  { %v5325_v7 = vadd.f32 %v5324_v47, %v5297_v17  ;;  %v5573_v62 = vshrl.u32 %v11483_v21, 16  ;;  %v5576_v33 = vshll.u32 %v11483_v21, 16  ;;  %v5426_v18 = vunpack.c.l.b16 %v5352_v34 }
 0x721   :  { %6328 = vmatpush.bf16.msrb.mxu1 %v7966_v28  ;;  %v5366_v39 = vpack.c.bf16 %v5359_v25, %v5359_v25  ;;  %v5455_v6 = vunpack.c.l.b16 %v5380_v37  ;;  %v5479_v8 = vrot.slane %v5477_v53, 1  ;;  %v11511_v61 = vrot.slane %v5522_v42, 2 }
 0x722   :  { %v5339_v38 = vmax.f32 %v5325_v7, 0.0  ;;  %v11517_v29 = vrot.slane %v5576_v33, 4  ;;  %v5511_v40 = vrot.slane %v11483_v21, 1  ;;  %v5613_v47 = vrot.slane %v11476_v12, 5 }
 0x723   :  { %v5394_v17 = vunpack.c.l.b16 %v5366_v39  ;;  %v5480_v53 = vor.u32 %v5479_v8, %v5475_v9  ;;  %v5645_v25 = vrot.slane %v11483_v21, 6  ;;  %6354 = vmatpush.bf16.msrb.mxu2 %v7976_v14 }
 0x724   :  { %v5346_v15 = vmul.f32 %v5339_v38, %v10887_v60  ;;  %v5627_v60 = vor.u32 %v11489_v24, %v11487_v2  ;;  %v7987_v2 = vld [vmem:[%s11957_s9 + $0x168] sm:$0xff] }
 0x726   :  { %v5353_v58 = vpack.c.bf16 %v5346_v15, %v5346_v15  ;;  %v5360_v43 = vmul.f32 %v5346_v15, %v10271_v4  ;;  %v5374_v35 = vmul.f32 %v5346_v15, %v10300_v5  ;;  %v11513_v4 = vrot.slane %v5525_v10, 3 }
 0x727   :  { %v5327_v49 = vpop.f32.mrf.mxu1  ;;  %v11515_v5 = vrot.slane %v5573_v62, 3 }
 0x728   :  { %v5367_v48 = vpack.c.bf16 %v5360_v43, %v5360_v43  ;;  %v5381_v56 = vpack.c.bf16 %v5374_v35, %v5374_v35  ;;  %v5427_v13 = vunpack.c.l.b16 %v5353_v58  ;;  %v5328_v26 = vadd.f32 %v5327_v49, %v5300_v20 }
 0x729   :  { %v5528_v20 = vor.u32 %v11513_v4, %v11511_v61 }
 0x72a   :  { %v5395_v0 = vunpack.c.l.b16 %v5367_v48  ;;  %v5432_v36 = vpack.c.b16 %v5427_v13, %v5426_v18  ;;  %v5456_v59 = vunpack.c.l.b16 %v5381_v56  ;;  %v5340_v11 = vmax.f32 %v5328_v26, 0.0 }
 0x72c   :  { %v11524_v50 = vrot.slane %v5432_v36, 5  ;;  %v5461_v32 = vpack.c.b16 %v5456_v59, %v5455_v6  ;;  %v5354_v7 = vpack.c.bf16 %v5340_v11, %v5340_v11  ;;  %v5361_v28 = vmul.f32 %v10424_v23, %v5340_v11  ;;  %v7997_v36 = vld [vmem:[%s11957_s9 + $0x1b8] sm:$0xff] }
 0x72d   :  { %v5375_v34 = vmul.f32 %v10426_v52, %v5340_v11  ;;  %v5400_v38 = vpack.c.b16 %v5395_v0, %v5394_v17  ;;  %v5579_v23 = vor.u32 %v11517_v29, %v11515_v5  ;;  %v7989_v0 = vld [vmem:[%s11957_s9 + $0x178] sm:$0xff]  ;;  %6405 = vmatpush.bf16.msra.mxu0 %v7997_v36 }
 0x72e   :  { %v11531_v37 = vrot.slane %v5461_v32, 5  ;;  %v5368_v9 = vpack.c.bf16 %v5361_v28, %v5361_v28  ;;  %v11536_v12 = vsel %vm912_vm5, %v11440_v1, %v11524_v50  ;;  %v5428_v33 = vunpack.c.l.b16 %v5354_v7  ;;  %6377 = vmatpush.bf16.msra.mxu3 %v7989_v0 }
 0x72f   :  { %v5382_v15 = vpack.c.bf16 %v5375_v34, %v5375_v34  ;;  %v5329_v52 = vpop.f32.mrf.mxu1  ;;  %v11540_v42 = vrot.slane %v5400_v38, 5  ;;  %v5482_v31 = vshll.u32 %v11536_v12, 16  ;;  %v5486_v10 = vshrl.u32 %v11536_v12, 16 }
 0x730   :  { %v11544_v62 = vunpack.c.l.b16 %v5368_v9  ;;  %v5330_v18 = vadd.f32 %v5329_v52, %v5302_v41  ;;  %v11549_v1 = vsel %vm912_vm5, %v11463_v46, %v11531_v37  ;;  %v5563_v54 = vrot.slane %v11536_v12, 3  ;;  %v8003_v12 = vld [vmem:[%s11957_s9 + $0x1e8] sm:$0xff] }
 0x731   :  { %v11554_v58 = vsel %vm912_vm5, %v11443_v51, %v11540_v42  ;;  %v11556_v43 = vrot.slane %v5482_v31, 1  ;;  %v5512_v35 = vrot.slane %v11549_v1, 1  ;;  %v7975_v51 = vld [vmem:[%s11957_s9 + $0x108] sm:$0xff]  ;;  %v5457_v46 = vunpack.c.l.b16 %v5382_v15 }
 0x732   :  { %v5341_v39 = vmax.f32 %v5330_v18, 0.0  ;;  %v5530_v6 = vshrl.u32 %v11554_v58, 16  ;;  %v5533_v41 = vshll.u32 %v11554_v58, 16  ;;  %v5614_v49 = vrot.slane %v11554_v58, 5  ;;  %6250 = vmatmul.bf16.gmra.mxu2 %v11554_v58  ;;  %v7983_v58 = vld [vmem:[%s11957_s9 + $0x148] sm:$0xff] }
 0x733   :  { %v5485_v8 = vsel %vm1448_vm11, %v5480_v53, %v11556_v43  ;;  %v5513_v48 = vsel %vm936_vm10, %v5511_v40, %v5512_v35  ;;  %v5628_v56 = vrot.slane %v5486_v10, 5  ;;  %6355 = vmatpush.bf16.msrb.mxu2 %v7975_v51  ;;  %v5584_v11 = vshll.u32 %v11549_v1, 16 }
 0x734   :  { %v5355_v13 = vpack.c.bf16 %v5341_v39, %v5341_v39  ;;  %v5362_v26 = vmul.f32 %v10199_v3, %v5341_v39  ;;  %v5376_v61 = vmul.f32 %v10201_v63, %v5341_v39  ;;  %v5532_v4 = vrot.slane %v5530_v6, 2  ;;  %6273 = vmatmul.bf16.vlgmr.msrb.gmra.mxu3 %v5485_v8  ;;  %6301 = vmatmul.bf16.vlgmr.msrb.gmra.mxu0 %v5513_v48 }
 0x735   :  { %v5535_v59 = vrot.slane %v5533_v41, 3  ;;  %v11587_v3 = vsel %vm924_vm8, %v5562_v44, %v5563_v54  ;;  %v5581_v63 = vshrl.u32 %v11549_v1, 16  ;;  %v11594_v40 = vsel %vm912_vm5, %v5613_v47, %v5614_v49 }
 0x736   :  { %v5369_v14 = vpack.c.bf16 %v5362_v26, %v5362_v26  ;;  %v5383_v17 = vpack.c.bf16 %v5376_v61, %v5376_v61  ;;  %v5429_v53 = vunpack.c.l.b16 %v5355_v13  ;;  %v5586_v44 = vrot.slane %v5584_v11, 4 }
 0x737   :  { %v11596_v32 = vor.u32 %v5535_v59, %v5532_v4  ;;  %v5332_v22 = vpop.f32.mrf.mxu1  ;;  %v5583_v7 = vrot.slane %v5581_v63, 3  ;;  %v5629_v28 = vrot.slane %v5482_v31, 6  ;;  %v5646_v47 = vrot.slane %v11549_v1, 6  ;;  %v7990_v1 = vld [vmem:[%s11957_s9 + $0x180] sm:$0xff] }
 0x738   :  { %v5397_v34 = vunpack.c.l.b16 %v5369_v14  ;;  %v5433_v38 = vpack.c.b16 %v5429_v53, %v5428_v33  ;;  %v5458_v9 = vunpack.c.l.b16 %v5383_v17  ;;  %v5333_v15 = vadd.f32 %v5332_v22, %v11494_v57  ;;  %v7974_v57 = vld [vmem:[%s11957_s9 + $0x100] sm:$0xff]  ;;  %v7996_v33 = vld [vmem:[%s11957_s9 + $0x1b0] sm:$0xff] }
 0x739   :  { %v5537_v52 = vsel %vm3521_vm6, %v5528_v20, %v11596_v32  ;;  %v11601_v18 = vor.u32 %v5586_v44, %v5583_v7  ;;  %v11603_v39 = vor.u32 %v5629_v28, %v5628_v56  ;;  %v7988_v20 = vld [vmem:[%s11957_s9 + $0x170] sm:$0xff]  ;;  %v11640_v48 = vsel %vm391_vm0, %v5645_v25, %v5646_v47  ;;  %6356 = vmatpush.bf16.msrb.mxu2 %v7974_v57  ;;  %v7986_v28 = vld [vmem:[%s11957_s9 + $0x160] sm:$0xff] }
 0x73a   :  { %v11606_v6 = vrot.slane %v5433_v38, 5  ;;  %v5462_v41 = vpack.c.b16 %v5458_v9, %v5457_v46  ;;  %v5342_v51 = vmax.f32 %v5333_v15, 0.0  ;;  %6329 = vmatmul.bf16.vlgmr.msrb.gmra.mxu1 %v5537_v52  ;;  %v5401_v31 = vpack.c.b16 %v5397_v34, %v11544_v62  ;;  %v8005_v46 = vld [vmem:[%s11957_s9 + $0x1f8] sm:$0xff]  ;;  %6378 = vmatpush.bf16.msra.mxu3 %v7988_v20  ;;  %v7994_v34 = vld [vmem:[%s11957_s9 + $0x1a0] sm:$0xff] }
 0x73b   :  { %v11626_v62 = vsel %vm3573_vm3, %v5579_v23, %v11601_v18  ;;  %v11633_v8 = vsel %vm1277_vm13, %v5627_v60, %v11603_v39  ;;  %v5488_v60 = vor.u32 %v5486_v10, %v11556_v43  ;;  %6406 = vmatpush.bf16.msra.mxu0 %v7996_v33  ;;  %6433 = vmatpush.bf16.msra.mxu1 %v8005_v46  ;;  %v8013_v52 = vld [vmem:[%s11957_s9 + $0x238] sm:$0xff] }
 0x73c   :  { %v11642_v56 = vrot.slane %v5462_v41, 5  ;;  %v5356_v5 = vpack.c.bf16 %v5342_v51, %v5342_v51  ;;  %v5363_v29 = vmul.f32 %v10431_v27, %v5342_v51  ;;  %v5377_v23 = vmul.f32 %v10433_v19, %v5342_v51  ;;  %v7995_v27 = vld [vmem:[%s11957_s9 + $0x1a8] sm:$0xff]  ;;  %v8004_v19 = vld [vmem:[%s11957_s9 + $0x1f0] sm:$0xff]  ;;  %v7985_v33 = vld [vmem:[%s11957_s9 + $0x158] sm:$0xff] }
 0x73d   :  { %v5406_v24 = vrot.slane %v5401_v31, 5  ;;  %v11652_v21 = vsel %vm912_vm5, %v11524_v50, %v11606_v6  ;;  %v7993_v46 = vld [vmem:[%s11957_s9 + $0x198] sm:$0xff]  ;;  %6461 = vmatpush.bf16.msra.mxu2 %v8013_v52 }
 0x73e   :  { %v5370_v25 = vpack.c.bf16 %v5363_v29, %v5363_v29  ;;  %v5384_v13 = vpack.c.bf16 %v5377_v23, %v5377_v23  ;;  %v5430_v26 = vunpack.c.l.b16 %v5356_v5  ;;  %v5490_v50 = vshll.u32 %v11652_v21, 16  ;;  %6379 = vmatpush.bf16.msra.mxu3 %v7987_v2 }
 0x73f   :  { %v5334_v61 = vpop.f32.mrf.mxu1  ;;  %v11666_v4 = vsel %vm912_vm5, %v11540_v42, %v5406_v24  ;;  %v11671_v10 = vsel %vm912_vm5, %v11531_v37, %v11642_v56  ;;  %v5494_v43 = vshrl.u32 %v11652_v21, 16  ;;  %v5565_v0 = vrot.slane %v11652_v21, 3  ;;  %6407 = vmatpush.bf16.msra.mxu0 %v7995_v27  ;;  %6434 = vmatpush.bf16.msra.mxu1 %v8004_v19 }
 0x740   :  { %v5398_v36 = vunpack.c.l.b16 %v5370_v25  ;;  %v5434_v59 = vpack.c.b16 %v5430_v26, %v5430_v26  ;;  %v5459_v63 = vunpack.c.l.b16 %v5384_v13  ;;  %v5539_v11 = vshrl.u32 %v11666_v4, 16 }
 0x741   :  { %v5542_v14 = vshll.u32 %v11666_v4, 16  ;;  %v5492_v42 = vrot.slane %v5490_v50, 1  ;;  %v5514_v17 = vrot.slane %v11671_v10, 1  ;;  %v11683_v37 = vsel %vm924_vm8, %v5563_v54, %v5565_v0 }
 0x742   :  { %v5402_v53 = vpack.c.b16 %v5398_v36, %v5398_v36  ;;  %v5440_v22 = vrot.slane %v5434_v59, 5  ;;  %v5463_v7 = vpack.c.b16 %v5459_v63, %v5459_v63  ;;  %v5541_v44 = vrot.slane %v5539_v11, 2  ;;  %6255 = vmatmul.bf16.gmra.mxu2 %v11666_v4  ;;  %6380 = vmatpush.bf16.msra.mxu3 %v7986_v28 }
 0x743   :  { %v5544_v54 = vrot.slane %v5542_v14, 3  ;;  %v5493_v38 = vsel %vm1448_vm11, %v5488_v60, %v5492_v42  ;;  %v5515_v9 = vsel %vm936_vm10, %v5512_v35, %v5514_v17  ;;  %v5496_v15 = vor.u32 %v5494_v43, %v5492_v42  ;;  %6408 = vmatpush.bf16.msra.mxu0 %v7994_v34  ;;  %6435 = vmatpush.bf16.msra.mxu1 %v8003_v12  ;;  %v7984_v42 = vld [vmem:[%s11957_s9 + $0x150] sm:$0xff] }
 0x744   :  { %v5408_v41 = vrot.slane %v5402_v53, 5  ;;  %v5469_v51 = vrot.slane %v5463_v7, 5  ;;  %6278 = vmatmul.bf16.gmra.mxu3 %v5493_v38  ;;  %6306 = vmatmul.bf16.gmra.mxu0 %v5515_v9  ;;  %v5441_v31 = vsel %vm912_vm5, %v11606_v6, %v5440_v22  ;;  %v5590_v57 = vshrl.u32 %v11671_v10, 16  ;;  %v8001_v22 = vld [vmem:[%s11957_s9 + $0x1d8] sm:$0xff] }
 0x745   :  { %v5545_v20 = vor.u32 %v5544_v54, %v5541_v44  ;;  %v11709_v35 = vsel %vm10451_vm1, %v5441_v31, 0  ;;  %v5593_v5 = vshll.u32 %v11671_v10, 16  ;;  %v5616_v6 = vrot.slane %v11666_v4, 5  ;;  %v8000_v31 = vld [vmem:[%s11957_s9 + $0x1d0] sm:$0xff] }
 0x746   :  { %v5409_v29 = vsel %vm912_vm5, %v5406_v24, %v5408_v41  ;;  %v5498_v23 = vshll.u32 %v11709_v35, 16  ;;  %v5470_v2 = vsel %vm912_vm5, %v11642_v56, %v5469_v51  ;;  %v5502_v60 = vshrl.u32 %v11709_v35, 16  ;;  %v8002_v24 = vld [vmem:[%s11957_s9 + $0x1e0] sm:$0xff]  ;;  %6381 = vmatpush.bf16.msra.mxu3 %v7985_v33 }
 0x747   :  { %v5546_v27 = vsel %vm3521_vm6, %v11596_v32, %v5545_v20  ;;  %v11728_v19 = vsel %vm10451_vm1, %v5409_v29, 0  ;;  %v11732_v25 = vsel %vm10451_vm1, %v5470_v2, 0  ;;  %v5567_v56 = vrot.slane %v11709_v35, 3  ;;  %6409 = vmatpush.bf16.msra.mxu0 %v7993_v46  ;;  %6436 = vmatpush.bf16.msra.mxu1 %v8002_v24  ;;  %v7999_v29 = vld [vmem:[%s11957_s9 + $0x1c8] sm:$0xff]  ;;  %v7998_v2 = vld [vmem:[%s11957_s9 + $0x1c0] sm:$0xff] }
 0x748   :  { %v5548_v13 = vshrl.u32 %v11728_v19, 16  ;;  %v5551_v26 = vshll.u32 %v11728_v19, 16  ;;  %v11740_v61 = vrot.slane %v5498_v23, 1  ;;  %v5516_v32 = vrot.slane %v11732_v25, 1 }
 0x749   :  { %v11746_v30 = vsel %vm924_vm8, %v5565_v0, %v5567_v56  ;;  %v5592_v4 = vrot.slane %v5590_v57, 3  ;;  %v5595_v36 = vrot.slane %v5593_v5, 4  ;;  %v7992_v0 = vld [vmem:[%s11957_s9 + $0x190] sm:$0xff]  ;;  %v5636_v53 = vrot.slane %v5502_v60, 5 }
 0x74a   :  { %6334 = vmatmul.bf16.gmra.mxu1 %v5546_v27  ;;  %v5550_v59 = vrot.slane %v5548_v13, 2  ;;  %v5553_v63 = vrot.slane %v5551_v26, 3  ;;  %v5501_v11 = vsel %vm1448_vm11, %v5496_v15, %v11740_v61  ;;  %v5517_v14 = vsel %vm936_vm10, %v5514_v17, %v5516_v32  ;;  %v8012_v17 = vld [vmem:[%s11957_s9 + $0x230] sm:$0xff]  ;;  %6382 = vmatpush.bf16.msra.mxu3 %v7984_v42  ;;  %v8010_v27 = vld [vmem:[%s11957_s9 + $0x220] sm:$0xff]  ;;  %v8009_v13 = vld [vmem:[%s11957_s9 + $0x218] sm:$0xff] }
 0x74b   :  { %v5596_v7 = vor.u32 %v5595_v36, %v5592_v4  ;;  %v11770_v44 = vsel %vm912_vm5, %v5614_v49, %v5616_v6  ;;  %v5632_v28 = vrot.slane %v5494_v43, 5  ;;  %v5633_v12 = vrot.slane %v5490_v50, 6  ;;  %6410 = vmatpush.bf16.msra.mxu0 %v7992_v0  ;;  %v7991_v49 = vld [vmem:[%s11957_s9 + $0x188] sm:$0xff]  ;;  %6462 = vmatpush.bf16.msra.mxu2 %v8012_v17  ;;  %v8008_v26 = vld [vmem:[%s11957_s9 + $0x210] sm:$0xff] }
 0x74c   :  { %v5554_v34 = vor.u32 %v5553_v63, %v5550_v59  ;;  %v5599_v54 = vshrl.u32 %v11732_v25, 16  ;;  %v5602_v38 = vshll.u32 %v11732_v25, 16  ;;  %v5618_v21 = vrot.slane %v11728_v19, 5  ;;  %6437 = vmatpush.bf16.msra.mxu1 %v8001_v22 }
 0x74d   :  { %v5597_v43 = vsel %vm3573_vm3, %v11601_v18, %v5596_v7  ;;  %v5637_v50 = vrot.slane %v5498_v23, 6  ;;  %v5648_v9 = vrot.slane %v11671_v10, 6  ;;  %v5634_v52 = vor.u32 %v5633_v12, %v5632_v28  ;;  %v8011_v23 = vld [vmem:[%s11957_s9 + $0x228] sm:$0xff] }
 0x74e   :  { %v5555_v15 = vsel %vm3521_vm6, %v5545_v20, %v5554_v34  ;;  %v5601_v41 = vrot.slane %v5599_v54, 3  ;;  %v5604_v51 = vrot.slane %v5602_v38, 4  ;;  %v5619_v18 = vsel %vm912_vm5, %v5616_v6, %v5618_v21  ;;  %6383 = vmatpush.bf16.msra.mxu3 %v7983_v58  ;;  %v7982_v6 = vld [vmem:[%s11957_s9 + $0x140] sm:$0xff] }
 0x74f   :  { %v5638_v57 = vor.u32 %v5637_v50, %v5636_v53  ;;  %v5649_v10 = vsel %vm391_vm0, %v5646_v47, %v5648_v9  ;;  %v5635_v20 = vsel %vm1277_vm13, %v11603_v39, %v5634_v52  ;;  %v5650_v46 = vrot.slane %v11732_v25, 6  ;;  %6411 = vmatpush.bf16.msra.mxu0 %v7991_v49  ;;  %6463 = vmatpush.bf16.msra.mxu2 %v8011_v23 }
 0x750   :  { %v5605_v33 = vor.u32 %v5604_v51, %v5601_v41  ;;  %6438 = vmatpush.bf16.msra.mxu1 %v8000_v31  ;;  %v5504_v24 = vor.u32 %v5502_v60, %v11740_v61  ;;  %v8006_v60 = vld [vmem:[%s11957_s9 + $0x200] sm:$0xff] }
 0x751   :  { %v5639_v5 = vsel %vm1277_vm13, %v5634_v52, %v5638_v57  ;;  %v11813_v39 = vsel %vm391_vm0, %v5648_v9, %v5650_v46  ;;  %v5652_v9 = vsel %vm391_vm0, %v5650_v46, %v10588_v45 }
 0x752   :  { %6260 = vmatmul.bf16.gmra.mxu2 %v11728_v19  ;;  %v5606_v47 = vsel %vm3573_vm3, %v5596_v7, %v5605_v33  ;;  %6384 = vmatpush.bf16.msra.mxu3 %v7982_v6 }
 0x753   :  { %6412 = vmatpush.bf16.msra.mxu0 %v7990_v1  ;;  %6464 = vmatpush.bf16.msra.mxu2 %v8010_v27 }
 0x754   :  { %6283 = vmatmul.bf16.gmra.mxu3 %v5501_v11  ;;  %6311 = vmatmul.bf16.gmra.mxu0 %v5517_v14 }
 0x755   :  { %6439 = vmatpush.bf16.msra.mxu1 %v7999_v29 }
 0x757   :  { %6465 = vmatpush.bf16.msra.mxu2 %v8009_v13 }
 0x759   :  { %6440 = vmatpush.bf16.msra.mxu1 %v7998_v2 }
 0x75a   :  { %6339 = vmatmul.bf16.gmra.mxu1 %v5555_v15 }
 0x75b   :  { %6466 = vmatpush.bf16.msra.mxu2 %v8008_v26 }
 0x762   :  { %6357 = vmatmul.bf16.vlgmr.msrb.gmra.mxu2 %v11587_v3  ;;  %v8007_v3 = vld [vmem:[%s11957_s9 + $0x208] sm:$0xff] }
 0x763   :  { %6467 = vmatpush.bf16.msra.mxu2 %v8007_v3 }
 0x764   :  { %6288 = vmatmul.bf16.gmra.mxu3 %v5504_v24  ;;  %6316 = vmatmul.bf16.gmra.mxu0 %v5516_v32 }
 0x767   :  { %6468 = vmatpush.bf16.msra.mxu2 %v8006_v60 }
 0x76a   :  { %6344 = vmatmul.bf16.gmra.mxu1 %v5554_v34 }
 0x772   :  { %6362 = vmatmul.bf16.gmra.mxu2 %v11683_v37 }
 0x774   :  { %6385 = vmatmul.bf16.vlgmr.msra.gmra.mxu3 %v11626_v62  ;;  %6413 = vmatmul.bf16.vlgmr.msra.gmra.mxu0 %v11594_v40  ;;  %v5620_v62 = vsel %vm912_vm5, %v5618_v21, %v10585_v55 }
 0x77a   :  { %6441 = vmatmul.bf16.vlgmr.msra.gmra.mxu1 %v11633_v8  ;;  %v5640_v8 = vsel %vm1277_vm13, %v5638_v57, %v10600_v16 }
 0x782   :  { %6367 = vmatmul.bf16.gmra.mxu2 %v11746_v30 }
 0x784   :  { %6390 = vmatmul.bf16.gmra.mxu3 %v5597_v43  ;;  %6418 = vmatmul.bf16.gmra.mxu0 %v11770_v44 }
 0x78a   :  { %6446 = vmatmul.bf16.gmra.mxu1 %v5635_v20 }
 0x792   :  { %6372 = vmatmul.bf16.gmra.mxu2 %v5567_v56  ;;  %v8108_v56 = vld [vmem:[%s11958_s10] ss:$0 sm:$0xff] }
 0x794   :  { %6395 = vmatmul.bf16.gmra.mxu3 %v5606_v47  ;;  %6423 = vmatmul.bf16.gmra.mxu0 %v5619_v18 }
 0x79a   :  { %6451 = vmatmul.bf16.gmra.mxu1 %v5639_v5 }
 0x7a1   :  { %v6246_v40 = vpop.f32.mrf.mxu2 }
 0x7a2   :  { %6469 = vmatmul.bf16.vlgmr.msra.gmra.mxu2 %v11640_v48  ;;  %v6247_v61 = vadd.f32 %v8108_v56, %v6246_v40 }
 0x7a4   :  { %6400 = vmatmul.bf16.gmra.mxu3 %v5605_v33  ;;  %6428 = vmatmul.bf16.gmra.mxu0 %v5620_v62 }
 0x7a9   :  { %v6248_v37 = vpop.f32.mrf.mxu2 }
 0x7aa   :  { %6456 = vmatmul.bf16.gmra.mxu1 %v5640_v8  ;;  %v6249_v63 = vadd.f32 %v8108_v56, %v6248_v37 }
 0x7b1   :  { %v6302_v35 = vpop.f32.mrf.mxu0 }
 0x7b2   :  { %6474 = vmatmul.bf16.gmra.mxu2 %v5649_v10 }
 0x7b5   :  { %v6251_v48 = vpop.f32.mrf.mxu2 }
 0x7b6   :  { %v6252_v17 = vadd.f32 %v8108_v56, %v6251_v48 }
 0x7b7   :  { %v6330_v32 = vpop.f32.mrf.mxu1  ;;  %v6274_v30 = vpop.f32.mrf.mxu3 }
 0x7b8   :  { %v6275_v19 = vadd.f32 %v6274_v30, %v6247_v61 }
 0x7b9   :  { %v6304_v4 = vpop.f32.mrf.mxu0 }
 0x7ba   :  { %v6303_v55 = vadd.f32 %v6302_v35, %v6275_v19 }
 0x7bc   :  { %v11863_v36 = vadd.f32 %v6330_v32, %v6303_v55 }
 0x7bd   :  { %v6253_v59 = vpop.f32.mrf.mxu2 }
 0x7be   :  { %v6254_v58 = vadd.f32 %v8108_v56, %v6253_v59 }
 0x7bf   :  { %v6332_v16 = vpop.f32.mrf.mxu1  ;;  %v6276_v11 = vpop.f32.mrf.mxu3 }
 0x7c0   :  { %v6277_v14 = vadd.f32 %v6276_v11, %v6249_v63 }
 0x7c1   :  { %v6307_v42 = vpop.f32.mrf.mxu0 }
 0x7c2   :  { %v6305_v0 = vadd.f32 %v6304_v4, %v6277_v14  ;;  %6479 = vmatmul.bf16.gmra.mxu2 %v11813_v39 }
 0x7c4   :  { %v11866_v53 = vadd.f32 %v6332_v16, %v6305_v0 }
 0x7c5   :  { %v6256_v22 = vpop.f32.mrf.mxu2 }
 0x7c6   :  { %v6257_v51 = vadd.f32 %v8108_v56, %v6256_v22 }
 0x7c7   :  { %v6335_v7 = vpop.f32.mrf.mxu1  ;;  %v6279_v44 = vpop.f32.mrf.mxu3 }
 0x7c8   :  { %v6280_v28 = vadd.f32 %v6279_v44, %v6252_v17 }
 0x7c9   :  { %v6309_v34 = vpop.f32.mrf.mxu0 }
 0x7ca   :  { %v6308_v12 = vadd.f32 %v6307_v42, %v6280_v28 }
 0x7cc   :  { %v11868_v54 = vadd.f32 %v6335_v7, %v6308_v12 }
 0x7cd   :  { %v6258_v38 = vpop.f32.mrf.mxu2 }
 0x7ce   :  { %v6259_v6 = vadd.f32 %v8108_v56, %v6258_v38 }
 0x7cf   :  { %v6337_v49 = vpop.f32.mrf.mxu1  ;;  %v6281_v43 = vpop.f32.mrf.mxu3 }
 0x7d0   :  { %v6282_v21 = vadd.f32 %v6281_v43, %v6254_v58 }
 0x7d1   :  { %v6312_v50 = vpop.f32.mrf.mxu0 }
 0x7d2   :  { %v6310_v15 = vadd.f32 %v6309_v34, %v6282_v21  ;;  %6484 = vmatmul.bf16.gmra.mxu2 %v5652_v9 }
 0x7d4   :  { %v11874_v52 = vadd.f32 %v6337_v49, %v6310_v15 }
 0x7d5   :  { %v6261_v41 = vpop.f32.mrf.mxu2 }
 0x7d6   :  { %v6262_v23 = vadd.f32 %v8108_v56, %v6261_v41 }
 0x7d7   :  { %v6340_v31 = vpop.f32.mrf.mxu1  ;;  %v6284_v18 = vpop.f32.mrf.mxu3 }
 0x7d8   :  { %v6285_v57 = vadd.f32 %v6284_v18, %v6257_v51 }
 0x7d9   :  { %v6314_v10 = vpop.f32.mrf.mxu0 }
 0x7da   :  { %v6313_v20 = vadd.f32 %v6312_v50, %v6285_v57 }
 0x7dc   :  { %v11876_v33 = vadd.f32 %v6340_v31, %v6313_v20 }
 0x7dd   :  { %v6263_v5 = vpop.f32.mrf.mxu2 }
 0x7df   :  { %v6342_v1 = vpop.f32.mrf.mxu1  ;;  %v6286_v47 = vpop.f32.mrf.mxu3 }
 0x7e0   :  { %v6287_v25 = vadd.f32 %v6286_v47, %v6259_v6 }
 0x7e1   :  { %v6317_v39 = vpop.f32.mrf.mxu0 }
 0x7e2   :  { %v6315_v45 = vadd.f32 %v6314_v10, %v6287_v25 }
 0x7e4   :  { %v11878_v46 = vadd.f32 %v6342_v1, %v6315_v45 }
 0x7e5   :  { %v6358_v29 = vpop.f32.mrf.mxu2 }
 0x7e6   :  { %v6359_v44 = vadd.f32 %v6358_v29, %v11863_v36  ;;  %v8021_v36 = vld [vmem:[%s11959_s11 + $0x38] sm:$0xff] }
 0x7e7   :  { %v6345_v2 = vpop.f32.mrf.mxu1  ;;  %v6289_v27 = vpop.f32.mrf.mxu3  ;;  %6650 = vmatpush.bf16.msrb.mxu3 %v8021_v36 }
 0x7e8   :  { %v6290_v24 = vadd.f32 %v6289_v27, %v6262_v23 }
 0x7e9   :  { %v6319_v13 = vpop.f32.mrf.mxu0 }
 0x7ea   :  { %v6318_v26 = vadd.f32 %v6317_v39, %v6290_v24 }
 0x7ec   :  { %v11880_v3 = vadd.f32 %v6345_v2, %v6318_v26 }
 0x7ed   :  { %v6360_v60 = vpop.f32.mrf.mxu2 }
 0x7ee   :  { %v6361_v43 = vadd.f32 %v6360_v60, %v11866_v53  ;;  %v8020_v53 = vld [vmem:[%s11959_s11 + $0x30] sm:$0xff]  ;;  %v8019_v60 = vld [vmem:[%s11959_s11 + $0x28] sm:$0xff] }
 0x7ef   :  { %v6347_v40 = vpop.f32.mrf.mxu1  ;;  %v6291_v62 = vpop.f32.mrf.mxu3  ;;  %6651 = vmatpush.bf16.msrb.mxu3 %v8020_v53 }
 0x7f1   :  { %v6414_v8 = vpop.f32.mrf.mxu0 }
 0x7f3   :  { %6652 = vmatpush.bf16.msrb.mxu3 %v8019_v60 }
 0x7f5   :  { %v6363_v37 = vpop.f32.mrf.mxu2 }
 0x7f6   :  { %v6364_v10 = vadd.f32 %v6363_v37, %v11868_v54 }
 0x7f7   :  { %v6442_v35 = vpop.f32.mrf.mxu1  ;;  %v6386_v48 = vpop.f32.mrf.mxu3 }
 0x7f8   :  { %v6387_v28 = vadd.f32 %v6386_v48, %v6359_v44 }
 0x7f9   :  { %v6416_v61 = vpop.f32.mrf.mxu0 }
 0x7fa   :  { %v6415_v58 = vadd.f32 %v6414_v8, %v6387_v28 }
 0x7fc   :  { %v6443_v50 = vadd.f32 %v6442_v35, %v6415_v58 }
 0x7fd   :  { %v6365_v32 = vpop.f32.mrf.mxu2 }
 0x7fe   :  { %v6366_v29 = vadd.f32 %v6365_v32, %v11874_v52 }
 0x7ff   :  { %v6444_v30 = vpop.f32.mrf.mxu1  ;;  %v6388_v19 = vpop.f32.mrf.mxu3 }
 0x800   :  { %v6389_v21 = vadd.f32 %v6388_v19, %v6361_v43 }
 0x801   :  { %v6419_v4 = vpop.f32.mrf.mxu0 }
 0x802   :  { %v6417_v31 = vadd.f32 %v6416_v61, %v6389_v21 }
 0x804   :  { %v6445_v5 = vadd.f32 %v6444_v30, %v6417_v31  ;;  %v8018_v30 = vld [vmem:[%s11959_s11 + $0x20] sm:$0xff] }
 0x805   :  { %v6368_v56 = vpop.f32.mrf.mxu2  ;;  %6653 = vmatpush.bf16.msrb.mxu3 %v8018_v30 }
 0x806   :  { %v6369_v8 = vadd.f32 %v6368_v56, %v11876_v33 }
 0x807   :  { %v6447_v55 = vpop.f32.mrf.mxu1  ;;  %v6391_v59 = vpop.f32.mrf.mxu3 }
 0x808   :  { %v6392_v20 = vadd.f32 %v6391_v59, %v6364_v10  ;;  %v8147_v10 = vmov 9.0  }
 0x809   :  { %v6421_v63 = vpop.f32.mrf.mxu0  ;;  %8110 = vrcp.f32 %v8147_v10 }
 0x80a   :  { %v6420_v39 = vadd.f32 %v6419_v4, %v6392_v20 }
 0x80c   :  { %v6448_v24 = vadd.f32 %v6447_v55, %v6420_v39  ;;  %v8017_v55 = vld [vmem:[%s11959_s11 + $0x18] sm:$0xff] }
 0x80d   :  { %v11882_v16 = vpop.f32.mrf.mxu2  ;;  %6654 = vmatpush.bf16.msrb.mxu3 %v8017_v55 }
 0x80e   :  { %v6371_v33 = vadd.f32 %v11882_v16, %v11878_v46  ;;  %v8015_v46 = vld [vmem:[%s11959_s11 + $0x8] sm:$0xff] }
 0x80f   :  { %v6449_v11 = vpop.f32.mrf.mxu1  ;;  %v6393_v14 = vpop.f32.mrf.mxu3 }
 0x810   :  { %v6394_v2 = vadd.f32 %v6393_v14, %v6366_v29  ;;  %v8111_v53 = vpop.eup %8110 }
 0x811   :  { %v6424_v42 = vpop.f32.mrf.mxu0  ;;  %vm6561_vm0 = vweird.f32 %v8111_v53 }
 0x812   :  { %v6422_v40 = vadd.f32 %v6421_v63, %v6394_v2 }
 0x814   :  { %v6450_v48 = vadd.f32 %v6449_v11, %v6422_v40 }
 0x815   :  { %v11884_v0 = vpop.f32.mrf.mxu2 }
 0x816   :  { %v6374_v16 = vadd.f32 %v11884_v0, %v11880_v3 }
 0x817   :  { %v11886_v22 = vpop.f32.mrf.mxu1  ;;  %v6396_v17 = vpop.f32.mrf.mxu3 }
 0x818   :  { %v6397_v52 = vadd.f32 %v6396_v17, %v6369_v8 }
 0x819   :  { %v11888_v7 = vpop.f32.mrf.mxu0 }
 0x81a   :  { %v6425_v19 = vadd.f32 %v6424_v42, %v6397_v52  ;;  %v8016_v42 = vld [vmem:[%s11959_s11 + $0x10] sm:$0xff] }
 0x81b   :  { %6655 = vmatpush.bf16.msrb.mxu3 %v8016_v42 }
 0x81c   :  { %v6453_v11 = vadd.f32 %v11886_v22, %v6425_v19 }
 0x81d   :  { %v6375_v34 = vpop.f32.mrf.mxu2 }
 0x81f   :  { %v11891_v12 = vpop.f32.mrf.mxu1  ;;  %v6398_v38 = vpop.f32.mrf.mxu3  ;;  %6656 = vmatpush.bf16.msrb.mxu3 %v8015_v46 }
 0x820   :  { %v6399_v59 = vadd.f32 %v6398_v38, %v6371_v33 }
 0x821   :  { %v11893_v49 = vpop.f32.mrf.mxu0 }
 0x822   :  { %v6427_v28 = vadd.f32 %v11888_v7, %v6399_v59  ;;  %v8014_v7 = vld [vmem:[%s11959_s11] sm:$0xff] }
 0x823   :  { %6657 = vmatpush.bf16.msrb.mxu3 %v8014_v7 }
 0x824   :  { %v6455_v38 = vadd.f32 %v11891_v12, %v6427_v28 }
 0x825   :  { %v6470_v9 = vpop.f32.mrf.mxu2 }
 0x826   :  { %v6471_v15 = vadd.f32 %v6470_v9, %v6443_v50 }
 0x827   :  { %v11896_v41 = vpop.f32.mrf.mxu1  ;;  %v11898_v51 = vpop.f32.mrf.mxu3 }
 0x828   :  { %v6489_v18 = vmax.f32 %v6471_v15, 0.0  ;;  %v6402_v22 = vadd.f32 %v11898_v51, %v6374_v16 }
 0x829   :  { %v6431_v57 = vpop.f32.mrf.mxu0 }
 0x82a   :  { %6501 = vst [vmem:[#allocation4 + $0x1] sm:$0x1f] %v6489_v18  ;;  %v6430_v21 = vadd.f32 %v11893_v49, %v6402_v22 }
 0x82c   :  { %v6458_v3 = vadd.f32 %v11896_v41, %v6430_v21 }
 0x82d   :  { %v6472_v6 = vpop.f32.mrf.mxu2 }
 0x82e   :  { %v6473_v1 = vadd.f32 %v6472_v6, %v6445_v5 }
 0x82f   :  { %v6459_v47 = vpop.f32.mrf.mxu1  ;;  %v6403_v25 = vpop.f32.mrf.mxu3 }
 0x830   :  { %v6490_v45 = vmax.f32 %v6473_v1, 0.0 }
 0x832   :  { %v6503_v23 = vrot.slane %v6490_v45, 5 }
 0x834   :  { %v6505_v27 = vmax.f32 %v6489_v18, %v6503_v23  ;;  %v6506_v54 = vmax.f32 %v6490_v45, %v6503_v23 }
 0x835   :  { %v6475_v13 = vpop.f32.mrf.mxu2 }
 0x836   :  { %6507 = vst [vmem:[#allocation4 + $0x2] sm:$0xe0] %v6505_v27  ;;  %v6476_v26 = vadd.f32 %v6475_v13, %v6448_v24 }
 0x837   :  { %6508 = vst [vmem:[#allocation4 + $0xa] sm:$0x3] %v6506_v54 }
 0x838   :  { %v6491_v62 = vmax.f32 %v6476_v26, 0.0 }
 0x83a   :  { %v6511_v37 = vrot.slane %v6491_v62, 5 }
 0x83c   :  { %v6516_v35 = vmax.f32 %v6490_v45, %v6511_v37  ;;  %v6557_v45 = vmul.f32 9.0, %v8111_v53 }
 0x83d   :  { %v6477_v61 = vpop.f32.mrf.mxu2 }
 0x83e   :  { %6518 = vst [vmem:[#allocation4 + $0x6] sm:$0x80] %v6516_v35  ;;  %v6478_v32 = vadd.f32 %v6477_v61, %v6450_v48  ;;  %v6558_v24 = vsub.f32 1.0, %v6557_v45 }
 0x840   :  { %v6492_v4 = vmax.f32 %v6478_v32, 0.0 }
 0x842   :  { %v6512_v56 = vrot.slane %v6492_v4, 5  ;;  %6520 = vst [vmem:[#allocation4 + $0xd] sm:$0xc0] %v6492_v4 }
 0x844   :  { %v6513_v63 = vsel %vm912_vm5, %v6511_v37, %v6512_v56  ;;  %v6559_v37 = vmul.f32 %v8111_v53, %v6558_v24 }
 0x845   :  { %v6517_v14 = vmax.f32 %v6491_v62, %v6513_v63  ;;  %v6480_v17 = vpop.f32.mrf.mxu2 }
 0x846   :  { %v6481_v44 = vadd.f32 %v6480_v17, %v6453_v11  ;;  %v6560_v32 = vadd.f32 %v8111_v53, %v6559_v37 }
 0x847   :  { %6519 = vst [vmem:[#allocation4 + $0xe] sm:$0xf] %v6517_v14  ;;  %v8109_v14 = vld [vmem:[%s11960_s12] ss:$0 sm:$0xff] }
 0x848   :  { %v6493_v34 = vmax.f32 %v6481_v44, 0.0  ;;  %v6562_v55 = vsel %vm6561_vm0, %v8111_v53, %v6560_v32 }
 0x84a   :  { %6521 = vst [vmem:[#allocation4 + $0x15] sm:$0x7] %v6493_v34 }
 0x84d   :  { %v6482_v58 = vpop.f32.mrf.mxu2 }
 0x84e   :  { %v6483_v43 = vadd.f32 %v6482_v58, %v6455_v38  ;;  %v6534_v49 = vld [vmem:[#allocation4] ss:$2 sm:$0xff]  ;;  %v6540_v20 = vld [vmem:[#allocation4 + $0x1] ss:$2 sm:$0xff] }
 0x84f   :  { %v6545_v25 = vmax.f32 %v6534_v49, %v6540_v20 }
 0x850   :  { %v6494_v50 = vmax.f32 %v6483_v43, 0.0 }
 0x852   :  { %v6523_v9 = vrot.slane %v6494_v50, 5 }
 0x854   :  { %v6525_v15 = vmax.f32 %v6493_v34, %v6523_v9 }
 0x855   :  { %v6485_v0 = vpop.f32.mrf.mxu2 }
 0x856   :  { %6526 = vst [vmem:[#allocation4 + $0x16] sm:$0xf8] %v6525_v15  ;;  %v6486_v51 = vadd.f32 %v6485_v0, %v6458_v3 }
 0x858   :  { %v6495_v36 = vmax.f32 %v6486_v51, 0.0 }
 0x85a   :  { %v6528_v12 = vrot.slane %v6495_v36, 5 }
 0x85c   :  { %v6530_v31 = vmax.f32 %v6494_v50, %v6528_v12  ;;  %v6531_v18 = vmax.f32 %v6495_v36, %v6528_v12 }
 0x85d   :  { %v6487_v57 = vpop.f32.mrf.mxu2  ;;  %v6536_v5 = vld [vmem:[#allocation4 + $0x10] ss:$2 sm:$0xff] }
 0x85e   :  { %6532 = vst [vmem:[#allocation4 + $0x1a] sm:$0xe0] %v6530_v31 }
 0x85f   :  { %6533 = vst [vmem:[#allocation4 + $0x22] sm:$0x3] %v6531_v18 }
 0x865   :  { %v6542_v6 = vld [vmem:[#allocation4 + $0x11] ss:$2 sm:$0xff] }
 0x866   :  { %v6538_v1 = vld [vmem:[#allocation4 + $0x20] ss:$2 sm:$0x3]  ;;  %v6544_v47 = vld [vmem:[#allocation4 + $0x21] ss:$2 sm:$0x3]  ;;  %v6546_v41 = vmax.f32 %v6536_v5, %v6542_v6 }
 0x867   :  { %v6547_v39 = vmax.f32 %v6538_v1, %v6544_v47 }
 0x868   :  { %v6548_v29 = vsel %vm850_vm2, %v6546_v41, 0.0  ;;  %v6566_v23 = vrot.slane %v6546_v41, 1 }
 0x869   :  { %v6549_v2 = vadd.f32 %v6548_v29, %v6545_v25  ;;  %v6567_v27 = vrot.slane %v6547_v39, 1 }
 0x86b   :  { %v6550_v54 = vrot.slane %v6549_v2, 4  ;;  %v6568_v13 = vsel %vm936_vm10, %v6566_v23, %v6567_v27  ;;  %v6571_v26 = vsel %vm850_vm2, %v6567_v27, 0.0 }
 0x86c   :  { %v6572_v60 = vadd.f32 %v6571_v26, %v6568_v13 }
 0x86d   :  { %v6551_v40 = vadd.f32 %v6550_v54, %v6549_v2 }
 0x86e   :  { %v6573_v62 = vrot.slane %v6572_v60, 4 }
 0x86f   :  { %v6552_v8 = vrot.slane %v6551_v40, 2 }
 0x870   :  { %v6574_v52 = vadd.f32 %v6573_v62, %v6572_v60 }
 0x871   :  { %v6553_v35 = vadd.f32 %v6552_v8, %v6551_v40 }
 0x872   :  { %v6575_v48 = vrot.slane %v6574_v52, 2 }
 0x873   :  { %v6554_v61 = vrot.slane %v6553_v35, 1 }
 0x874   :  { %v6576_v30 = vadd.f32 %v6575_v48, %v6574_v52 }
 0x875   :  { %v6555_v19 = vadd.f32 %v6554_v61, %v6553_v35 }
 0x876   :  { %v6577_v4 = vrot.slane %v6576_v30, 1 }
 0x877   :  { %v6563_v56 = vmul.f32 %v6562_v55, %v6555_v19 }
 0x878   :  { %v6578_v33 = vadd.f32 %v6577_v4, %v6576_v30 }
 0x87a   :  { %v6579_v59 = vmul.f32 %v6578_v33, %v6562_v55 }
 0x87c   :  { %v6580_v63 = vsel %vm850_vm2, %v6563_v56, %v6579_v59 }
 0x87d   :  { %v6581_v11 = vpack.c.bf16 %v6580_v63, %v6580_v63 }
 0x87f   :  { %6658 = vmatmul.bf16.vlgmr.msrb.gmra.mxu3 %v6581_v11 }
 0x902   :  { %v6659_v17 = vpop.f32.mrf.mxu3 }
 0x903   :  { %v6660_v42 = vadd.f32 %v8109_v14, %v6659_v17 }
 0x905   :  { %6663 = vst [vmem:[#allocation5] sm:$0x3] %v6660_v42 }
 0x906   :  { %6674 = dma.vmem_to_hbm [thread:$0]  %s6670_s20, 32, %s6672_s23, [#allocation6]  }
 0x90a   :  { %v6661_v44 = vpop.f32.mrf.mxu3 }
 0x90b   :  { %8141 = dma.done.wait [#allocation6], 32  }
 0x90c   :  { %8142 = vsyncadd [#allocation6], 4294967264 }
 0x90d   :  { %6679 = vsyncpa [#allocation6], 1 }

</bundles_post_ra>
